<compile_context>
chip_gen: v6e
topology: v6e:2x2x1
jax: 0.10.0
libtpu: 0.0.40
codegen_flags: <defaults>
</compile_context>

<pallas_src>
import functools
import math

import jax
import jax.numpy as jnp
import numpy as np
from jax.experimental import pallas as pl
from jax.experimental.pallas import tpu as pltpu


# ---------------------------------------------------------------------------
# Shared in-kernel tail: bias + ReLU + 2x2 max-pool (+ lane-dense packing).
# ---------------------------------------------------------------------------
def _bias_relu_pool_store(y, bias, o_ref, pool_ref, *, B, H, W, Cout, fold):
    """y: (B*H*W, Cout) f32 conv output, rows in (b, h, w) row-major order."""
    y = jnp.maximum(y + bias, 0.0)                       # bias + ReLU

    # H-pool: free reshape (splits the row dim only; 2W is a multiple of 8)
    # followed by two sublane-ALIGNED half slices.
    z = y.reshape(B * (H // 2), 2 * W, Cout)
    yh = jnp.maximum(z[:, :W, :], z[:, W:, :])           # (B*H//2, W, Cout)

    # W-pool: even/odd columns interleave in sublanes, so compact via strided
    # reads from a small VMEM scratch (value-level strided slices do not lower
    # on Mosaic).
    # TODO(synk): drop pool_ref if Mosaic grows value-level stride-2 slicing.
    pool_ref[...] = yh.reshape(B * (H // 2) * W, Cout)
    P = (H // 2) * (W // 2)
    if fold:
        # Lane-dense output: pack two consecutive pooled pixels into one
        # 128-lane row -> unmasked full-lane output stores, half the padded
        # output footprint.  Row-major bytes are unchanged; the wrapper
        # reshapes back to (N, H/2, W/2, Cout) for free.
        n2 = B * P // 2
        p0 = jnp.maximum(pool_ref[pl.ds(0, n2, 4), :],
                         pool_ref[pl.ds(1, n2, 4), :])
        p1 = jnp.maximum(pool_ref[pl.ds(2, n2, 4), :],
                         pool_ref[pl.ds(3, n2, 4), :])
        o_ref[...] = jnp.concatenate([p0, p1], axis=-1).reshape(
            B, P // 2, 2 * Cout)
    else:
        n_out = B * P
        even = pool_ref[pl.ds(0, n_out, 2), :]
        odd = pool_ref[pl.ds(1, n_out, 2), :]
        o_ref[...] = jnp.maximum(even, odd).reshape(B, P, Cout)


# ---------------------------------------------------------------------------
# Kernels
# ---------------------------------------------------------------------------
def patch_matmul_relu_pool_kernel(p_ref, w_ref, b_ref, o_ref, pool_ref,
                                  *, B, H, W, Cout, fold):
    """conv1: pre-im2col'd bf16 patches -> MXU matmul + bias + ReLU + pool."""
    y = jnp.dot(p_ref[...], w_ref[...], preferred_element_type=jnp.float32)
    _bias_relu_pool_store(y, b_ref[...], o_ref, pool_ref,
                          B=B, H=H, W=W, Cout=Cout, fold=fold)


def conv_relu_pool_kernel(x_ref, w_ref, b_ref, o_ref, patches_ref, pool_ref,
                          *, B, H, W, K, Cin, Cout, fold):
    """conv2/conv3 (Cin=64): bf16 im2col with lane-aligned paired column
    stores, one deep MXU matmul, fused bias + ReLU + 2x2 max-pool.

    x_ref:       (B, H+K-1, W+K-1, Cin)  pre-padded NHWC input block (f32)
    w_ref:       (K*K*Cin, Cout)         bf16 weights, rows in (kw, kh, cin) order
    patches_ref: (B*H*W, K*K*Cin)        bf16 im2col scratch
    pool_ref:    (B*(H//2)*W, Cout)      f32 H-pooled scratch
    """
    R = B * H * W
    n_taps = K * K

    # Hoist the sublane-misaligned W-window slice: K slices (one per kw),
    # read directly from the ref and reused across kh.
    x_kw = [x_ref[:, :, kw:kw + W, :] for kw in range(K)]

    def tap(t):                                  # tap t = kw*K + kh -> (R, Cin) bf16
        kw, kh = t // K, t % K
        return x_kw[kw][:, kh:kh + H, :, :].reshape(R, Cin).astype(jnp.bfloat16)

    # Paired-tap im2col: 2*Cin = 128 lanes per store -> unmasked full-lane vst
    # at 128-aligned column offsets (12 full + 1 half store for K=5, Cin=64).
    for i in range(n_taps // 2):
        col = 2 * i * Cin
        patches_ref[:, col:col + 2 * Cin] = jnp.concatenate(
            [tap(2 * i), tap(2 * i + 1)], axis=-1)
    if n_taps % 2:
        t = n_taps - 1
        patches_ref[:, t * Cin:(t + 1) * Cin] = tap(t)

    # One deep MXU contraction: bf16 operands, f32 accumulation.
    y = jnp.dot(patches_ref[...], w_ref[...], preferred_element_type=jnp.float32)
    _bias_relu_pool_store(y, b_ref[...], o_ref, pool_ref,
                          B=B, H=H, W=W, Cout=Cout, fold=fold)


def linear_kernel(x_ref, w_ref, b_ref, o_ref, *, relu):
    x = x_ref[...].astype(w_ref.dtype)           # bf16 for fc1, f32 for fc2
    y = jnp.dot(x, w_ref[...], preferred_element_type=jnp.float32) + b_ref[...]
    if relu:
        y = jnp.maximum(y, 0.0)
    o_ref[...] = y


# ---------------------------------------------------------------------------
# Wrappers
# ---------------------------------------------------------------------------
def _pick_block(N, bmax=4):
    """Batch block: divides N, small enough for v5e/v7x VMEM budgets, and when
    possible leaves >= 2 grid steps so a v7x megacore can shard the grid."""
    B = math.gcd(N, bmax)
    while B > 1 and N // B < 2:
        B //= 2
    return B


def _pad128(n):
    return ((n + 127) // 128) * 128


def _vmem_limit(nbytes):
    return int(min(max(2 * nbytes, 16 << 20), 48 << 20))


def _im2col_same(x_nhwc, K):
    """'same'-padded KxK im2col in plain JAX, columns in (kh, kw, cin) order."""
    N, H, W, _ = x_nhwc.shape
    pad = (K - 1) // 2
    xp = jnp.pad(x_nhwc, ((0, 0), (pad, pad), (pad, pad), (0, 0)))
    cols = [xp[:, kh:kh + H, kw:kw + W, :]
            for kh in range(K) for kw in range(K)]
    return jnp.concatenate(cols, axis=-1)        # (N, H, W, K*K*Cin)


def conv1_relu_pool(x_nhwc, w_r, b, *, K=5):
    """conv1 (Cin=3): im2col in the wrapper (avoids a 3-wide lane dim in VMEM);
    the Pallas kernel fuses matmul + bias + ReLU + 2x2 max-pool."""
    N, H, W, _ = x_nhwc.shape
    KKC, Cout = w_r.shape
    P = (H // 2) * (W // 2)
    fold = (Cout == 64 and P % 2 == 0)

    patches = _im2col_same(x_nhwc, K).astype(jnp.bfloat16).reshape(N * H * W, KKC)
    B = _pick_block(N)
    R = B * H * W

    vmem = _vmem_limit(
        2 * R * _pad128(KKC) * 2                 # double-buffered bf16 patches
        + 2 * KKC * _pad128(Cout) * 2            # bf16 weights
        + R * _pad128(Cout) * 4                  # f32 conv output
        + B * (H // 2) * W * _pad128(Cout) * 4   # pool scratch
        + 2 * B * P * _pad128(Cout) * 4)         # double-buffered output

    if fold:
        out_shape = jax.ShapeDtypeStruct((N, P // 2, 2 * Cout), jnp.float32)
        out_spec = pl.BlockSpec((B, P // 2, 2 * Cout), lambda n: (n, 0, 0))
    else:
        out_shape = jax.ShapeDtypeStruct((N, P, Cout), jnp.float32)
        out_spec = pl.BlockSpec((B, P, Cout), lambda n: (n, 0, 0))

    kern = functools.partial(patch_matmul_relu_pool_kernel,
                             B=B, H=H, W=W, Cout=Cout, fold=fold)
    out = pl.pallas_call(
        kern,
        out_shape=out_shape,
        grid=(N // B,),
        in_specs=[
            pl.BlockSpec((R, KKC), lambda n: (n, 0)),
            pl.BlockSpec((KKC, Cout), lambda n: (0, 0)),
            pl.BlockSpec((1, Cout), lambda n: (0, 0)),
        ],
        out_specs=out_spec,
        scratch_shapes=[pltpu.VMEM((B * (H // 2) * W, Cout), jnp.float32)],
        compiler_params=pltpu.CompilerParams(
            dimension_semantics=("parallel",), vmem_limit_bytes=vmem),
    )(patches, w_r, b.reshape(1, Cout))
    return out.reshape(N, H // 2, W // 2, Cout)


def conv_relu_pool(x_nhwc, w_r, b, *, K=5):
    """conv2/conv3: fused conv(5x5, 'same') + bias + ReLU + 2x2 max-pool."""
    N, H, W, Cin = x_nhwc.shape
    KKC, Cout = w_r.shape
    assert KKC == K * K * Cin
    pad = (K - 1) // 2
    # TODO(synk): fold the halo padding into the kernel (masked edge taps) to
    # avoid materializing the padded activation in HBM between layers.
    xp = jnp.pad(x_nhwc, ((0, 0), (pad, pad), (pad, pad), (0, 0)))
    Hp, Wp = H + 2 * pad, W + 2 * pad
    P = (H // 2) * (W // 2)
    fold = (Cout == 64 and P % 2 == 0)

    B = _pick_block(N)
    R = B * H * W

    vmem = _vmem_limit(
        2 * B * Hp * Wp * _pad128(Cin) * 4       # double-buffered padded input
        + K * B * Hp * W * _pad128(Cin) * 4      # hoisted kw window slices
        + R * _pad128(KKC) * 2                   # bf16 im2col scratch
        + 2 * KKC * _pad128(Cout) * 2            # bf16 weights
        + R * _pad128(Cout) * 4                  # f32 conv output
        + B * (H // 2) * W * _pad128(Cout) * 4   # pool scratch
        + 2 * B * P * _pad128(Cout) * 4)         # double-buffered output

    if fold:
        out_shape = jax.ShapeDtypeStruct((N, P // 2, 2 * Cout), jnp.float32)
        out_spec = pl.BlockSpec((B, P // 2, 2 * Cout), lambda n: (n, 0, 0))
    else:
        out_shape = jax.ShapeDtypeStruct((N, P, Cout), jnp.float32)
        out_spec = pl.BlockSpec((B, P, Cout), lambda n: (n, 0, 0))

    kern = functools.partial(conv_relu_pool_kernel,
                             B=B, H=H, W=W, K=K, Cin=Cin, Cout=Cout, fold=fold)
    out = pl.pallas_call(
        kern,
        out_shape=out_shape,
        grid=(N // B,),
        in_specs=[
            pl.BlockSpec((B, Hp, Wp, Cin), lambda n: (n, 0, 0, 0)),
            pl.BlockSpec((KKC, Cout), lambda n: (0, 0)),
            pl.BlockSpec((1, Cout), lambda n: (0, 0)),
        ],
        out_specs=out_spec,
        scratch_shapes=[
            pltpu.VMEM((R, KKC), jnp.bfloat16),
            pltpu.VMEM((B * (H // 2) * W, Cout), jnp.float32),
        ],
        compiler_params=pltpu.CompilerParams(
            dimension_semantics=("parallel",), vmem_limit_bytes=vmem),
    )(xp, w_r, b.reshape(1, Cout))
    return out.reshape(N, H // 2, W // 2, Cout)


def linear(x, w, b, *, relu):
    # TODO(synk): tile the M dim over a grid if N grows; whole-array VMEM is
    # fine at these sizes (<= ~2.1 MiB).
    N = x.shape[0]
    Dout = w.shape[-1]
    kern = functools.partial(linear_kernel, relu=relu)
    return pl.pallas_call(
        kern,
        out_shape=jax.ShapeDtypeStruct((N, Dout), jnp.float32),
        in_specs=[pl.BlockSpec(memory_space=pltpu.MemorySpace.VMEM)
                  for _ in range(3)],
        out_specs=pl.BlockSpec(memory_space=pltpu.MemorySpace.VMEM),
    )(x, w, b.reshape(1, Dout))


# ---------------------------------------------------------------------------
# Parameters & forward
# ---------------------------------------------------------------------------
def init_params(key):
    ks = jax.random.split(key, 10)
    s = 0.05
    return {
        "w1": s * jax.random.normal(ks[0], (5, 5, 3, 64), jnp.float32),
        "b1": s * jax.random.normal(ks[1], (64,), jnp.float32),
        "w2": s * jax.random.normal(ks[2], (5, 5, 64, 64), jnp.float32),
        "b2": s * jax.random.normal(ks[3], (64,), jnp.float32),
        "w3": s * jax.random.normal(ks[4], (5, 5, 64, 128), jnp.float32),
        "b3": s * jax.random.normal(ks[5], (128,), jnp.float32),
        "wl1": s * jax.random.normal(ks[6], (2048, 512), jnp.float32),
        "bl1": s * jax.random.normal(ks[7], (512,), jnp.float32),
        "wl2": s * jax.random.normal(ks[8], (512, 10), jnp.float32),
        "bl2": s * jax.random.normal(ks[9], (10,), jnp.float32),
    }


def prepare_params(p, *, K=5):
    """Reshape / cast weights ONCE for the kernels (no per-forward astype).

    conv1 rows are (kh, kw, cin) to match the wrapper im2col; conv2/3 rows are
    (kw, kh, cin) to match the kw-hoisted in-kernel im2col.  fc2 stays f32.
    """
    return {
        "w1": p["w1"].reshape(K * K * 3, 64).astype(jnp.bfloat16),
        "b1": p["b1"],
        "w2": p["w2"].transpose(1, 0, 2, 3).reshape(K * K * 64, 64).astype(jnp.bfloat16),
        "b2": p["b2"],
        "w3": p["w3"].transpose(1, 0, 2, 3).reshape(K * K * 64, 128).astype(jnp.bfloat16),
        "b3": p["b3"],
        "wl1": p["wl1"].astype(jnp.bfloat16),
        "bl1": p["bl1"],
        "wl2": p["wl2"],          # keep the logits matmul in f32
        "bl2": p["bl2"],
    }


@jax.jit
def cifar10_net_forward(x_nchw, kp):
    x = jnp.transpose(x_nchw, (0, 2, 3, 1))               # NCHW -> NHWC
    x = conv1_relu_pool(x, kp["w1"], kp["b1"])            # (N, 16, 16, 64)
    x = conv_relu_pool(x, kp["w2"], kp["b2"])             # (N, 8, 8, 64)
    x = conv_relu_pool(x, kp["w3"], kp["b3"])             # (N, 4, 4, 128)
    # dropout(p=0.25) is identity in eval mode.
    N = x.shape[0]
    x = jnp.transpose(x, (0, 3, 1, 2)).reshape(N, 2048)   # PyTorch (C,H,W) flatten
    x = linear(x, kp["wl1"], kp["bl1"], relu=True)
    # dropout(p=0.25) is identity in eval mode.
    x = linear(x, kp["wl2"], kp["bl2"], relu=False)
    return x


@jax.jit
def reference_forward(x_nchw, params):
    """Pure-JAX f32 reference (same math) for a correctness check."""
    x = jnp.transpose(x_nchw, (0, 2, 3, 1))

    def conv(x, w, b):
        y = jax.lax.conv_general_dilated(
            x, w, window_strides=(1, 1), padding=((2, 2), (2, 2)),
            dimension_numbers=("NHWC", "HWIO", "NHWC"),
            precision=jax.lax.Precision.HIGHEST)
        y = jax.nn.relu(y + b)
        return jax.lax.reduce_window(y, -jnp.inf, jax.lax.max,
                                     (1, 2, 2, 1), (1, 2, 2, 1), "VALID")

    x = conv(x, params["w1"], params["b1"])
    x = conv(x, params["w2"], params["b2"])
    x = conv(x, params["w3"], params["b3"])
    N = x.shape[0]
    x = jnp.transpose(x, (0, 3, 1, 2)).reshape(N, 2048)
    x = jax.nn.relu(jnp.dot(x, params["wl1"],
                            precision=jax.lax.Precision.HIGHEST) + params["bl1"])
    x = jnp.dot(x, params["wl2"],
                precision=jax.lax.Precision.HIGHEST) + params["bl2"]
    return x


if __name__ == "__main__":
    key = jax.random.PRNGKey(0)
    pkey, xkey = jax.random.split(key)
    params = init_params(pkey)
    kparams = prepare_params(params)

    # linear1 expects 2048 = 128 * 4 * 4 features => input must be (N, 3, 32, 32).
    x = jax.random.normal(xkey, (2, 3, 32, 32), jnp.float32)

    out = jax.block_until_ready(cifar10_net_forward(x, kparams))
    assert out.shape == (2, 10), out.shape

    ref = jax.block_until_ready(reference_forward(x, params))
    # bf16 MXU operands (f32 accumulation) vs the f32 reference -> looser tol.
    np.testing.assert_allclose(np.asarray(out), np.asarray(ref),
                               rtol=5e-2, atol=5e-2)
    print("KERNEL_OK")
</pallas_src>

<mosaic_0001>
module attributes {stable_mosaic.version = 11 : i64} {
  func.func @patch_matmul_relu_pool_kernel(%arg0: i32, %arg1: memref<1024x75xbf16, #tpu.memory_space<vmem>>, %arg2: memref<75x64xbf16, #tpu.memory_space<vmem>>, %arg3: memref<1x64xf32, #tpu.memory_space<vmem>>, %arg4: memref<1x128x128xf32, #tpu.memory_space<vmem>>, %arg5: memref<512x64xf32, #tpu.memory_space<vmem>>) attributes {dimension_semantics = [#tpu.dimension_semantics<parallel>], iteration_bounds = array<i64: 2>, scalar_prefetch = 0 : i64, scratch_operands = 1 : i64, tpu.core_type = #tpu.core_type<tc>, window_params = [{transform_indices = @transform_0, window_bounds = array<i64: 1024, 75>}, {pipeline_mode = #tpu.pipeline_mode<synchronous>, transform_indices = @transform_1, window_bounds = array<i64: 75, 64>}, {pipeline_mode = #tpu.pipeline_mode<synchronous>, transform_indices = @transform_2, window_bounds = array<i64: 1, 64>}, {transform_indices = @transform_3, window_bounds = array<i64: 1, 128, 128>}]} {
    %c0 = arith.constant 0 : index
    %c0_0 = arith.constant 0 : index
    %0 = vector.load %arg1[%c0, %c0_0] : memref<1024x75xbf16, #tpu.memory_space<vmem>>, vector<1024x75xbf16>
    %c0_1 = arith.constant 0 : index
    %c0_2 = arith.constant 0 : index
    %1 = vector.load %arg2[%c0_1, %c0_2] : memref<75x64xbf16, #tpu.memory_space<vmem>>, vector<75x64xbf16>
    %cst = arith.constant dense<0.000000e+00> : vector<1024x64xf32>
    %2 = tpu.matmul %0, %1, %cst {dimension_numbers = #tpu.dot_dimension_numbers<[1], [0], [0], [1], [0, 0, 1, 1], [], []>} : vector<1024x75xbf16>, vector<75x64xbf16>, vector<1024x64xf32> -> vector<1024x64xf32>
    %c0_3 = arith.constant 0 : index
    %c0_4 = arith.constant 0 : index
    %3 = vector.load %arg3[%c0_3, %c0_4] : memref<1x64xf32, #tpu.memory_space<vmem>>, vector<1x64xf32>
    %4 = vector.broadcast %3 : vector<1x64xf32> to vector<1024x64xf32>
    %5 = arith.addf %2, %4 : vector<1024x64xf32>
    %cst_5 = arith.constant 0.000000e+00 : f32
    %6 = vector.broadcast %cst_5 : f32 to vector<1024x64xf32>
    %7 = arith.maximumf %5, %6 : vector<1024x64xf32>
    %8 = vector.shape_cast %7 : vector<1024x64xf32> to vector<16x64x64xf32>
    %9 = vector.extract_strided_slice %8 {offsets = [0, 0, 0], sizes = [16, 32, 64], strides = [1, 1, 1]} : vector<16x64x64xf32> to vector<16x32x64xf32>
    %10 = vector.extract_strided_slice %8 {offsets = [0, 32, 0], sizes = [16, 32, 64], strides = [1, 1, 1]} : vector<16x64x64xf32> to vector<16x32x64xf32>
    %11 = arith.maximumf %9, %10 : vector<16x32x64xf32>
    %12 = vector.shape_cast %11 : vector<16x32x64xf32> to vector<512x64xf32>
    %c0_6 = arith.constant 0 : index
    %c0_7 = arith.constant 0 : index
    %13 = vector.load %arg5[%c0_6, %c0_7] : memref<512x64xf32, #tpu.memory_space<vmem>>, vector<512x64xf32>
    tpu.vector_store %arg5[%c0_6, %c0_7], %12 {strides = array<i32>} : memref<512x64xf32, #tpu.memory_space<vmem>>, vector<512x64xf32>,
    %c0_8 = arith.constant 0 : index
    %c0_9 = arith.constant 0 : index
    %14 = tpu.strided_load %arg5[%c0_8, %c0_9] {strides = array<i32: 4, 1>} : memref<512x64xf32, #tpu.memory_space<vmem>>, vector<128x64xf32>
    %c1 = arith.constant 1 : index
    %c0_10 = arith.constant 0 : index
    %15 = tpu.strided_load %arg5[%c1, %c0_10] {strides = array<i32: 4, 1>} : memref<512x64xf32, #tpu.memory_space<vmem>>, vector<128x64xf32>
    %16 = arith.maximumf %14, %15 : vector<128x64xf32>
    %c2 = arith.constant 2 : index
    %c0_11 = arith.constant 0 : index
    %17 = tpu.strided_load %arg5[%c2, %c0_11] {strides = array<i32: 4, 1>} : memref<512x64xf32, #tpu.memory_space<vmem>>, vector<128x64xf32>
    %c3 = arith.constant 3 : index
    %c0_12 = arith.constant 0 : index
    %18 = tpu.strided_load %arg5[%c3, %c0_12] {strides = array<i32: 4, 1>} : memref<512x64xf32, #tpu.memory_space<vmem>>, vector<128x64xf32>
    %19 = arith.maximumf %17, %18 : vector<128x64xf32>
    %20 = tpu.concatenate %16, %19 in 1 : vector<128x64xf32>, vector<128x64xf32> -> vector<128x128xf32>
    %21 = vector.shape_cast %20 : vector<128x128xf32> to vector<1x128x128xf32>
    %c0_13 = arith.constant 0 : index
    %c0_14 = arith.constant 0 : index
    %c0_15 = arith.constant 0 : index
    %22 = vector.load %arg4[%c0_13, %c0_14, %c0_15] : memref<1x128x128xf32, #tpu.memory_space<vmem>>, vector<1x128x128xf32>
    tpu.vector_store %arg4[%c0_13, %c0_14, %c0_15], %21 {strides = array<i32>} : memref<1x128x128xf32, #tpu.memory_space<vmem>>, vector<1x128x128xf32>,
    return
  }
  func.func @transform_0(%arg0: i32) -> (i32, i32) {
    %c0_i32 = arith.constant 0 : i32
    %c0_i32_0 = arith.constant 0 : i32
    return %arg0, %c0_i32 : i32, i32
  }
  func.func @transform_1(%arg0: i32) -> (i32, i32) {
    %c0_i32 = arith.constant 0 : i32
    %c0_i32_0 = arith.constant 0 : i32
    %c0_i32_1 = arith.constant 0 : i32
    return %c0_i32, %c0_i32_0 : i32, i32
  }
  func.func @transform_2(%arg0: i32) -> (i32, i32) {
    %c0_i32 = arith.constant 0 : i32
    %c0_i32_0 = arith.constant 0 : i32
    %c0_i32_1 = arith.constant 0 : i32
    return %c0_i32, %c0_i32_0 : i32, i32
  }
  func.func @transform_3(%arg0: i32) -> (i32, i32, i32) {
    %c0_i32 = arith.constant 0 : i32
    %c0_i32_0 = arith.constant 0 : i32
    %c0_i32_1 = arith.constant 0 : i32
    return %arg0, %c0_i32, %c0_i32_0 : i32, i32, i32
  }
}

module attributes {stable_mosaic.version = 11 : i64} {
  func.func @conv_relu_pool_kernel(%arg0: i32, %arg1: memref<1x20x20x64xf32, #tpu.memory_space<vmem>>, %arg2: memref<1600x64xbf16, #tpu.memory_space<vmem>>, %arg3: memref<1x64xf32, #tpu.memory_space<vmem>>, %arg4: memref<1x32x128xf32, #tpu.memory_space<vmem>>, %arg5: memref<256x1600xbf16, #tpu.memory_space<vmem>>, %arg6: memref<128x64xf32, #tpu.memory_space<vmem>>) attributes {dimension_semantics = [#tpu.dimension_semantics<parallel>], iteration_bounds = array<i64: 2>, scalar_prefetch = 0 : i64, scratch_operands = 2 : i64, tpu.core_type = #tpu.core_type<tc>, window_params = [{transform_indices = @transform_0, window_bounds = array<i64: 1, 20, 20, 64>}, {pipeline_mode = #tpu.pipeline_mode<synchronous>, transform_indices = @transform_1, window_bounds = array<i64: 1600, 64>}, {pipeline_mode = #tpu.pipeline_mode<synchronous>, transform_indices = @transform_2, window_bounds = array<i64: 1, 64>}, {transform_indices = @transform_3, window_bounds = array<i64: 1, 32, 128>}]} {
    %c0 = arith.constant 0 : index
    %c0_0 = arith.constant 0 : index
    %c0_1 = arith.constant 0 : index
    %c0_2 = arith.constant 0 : index
    %0 = vector.load %arg1[%c0, %c0_0, %c0_1, %c0_2] : memref<1x20x20x64xf32, #tpu.memory_space<vmem>>, vector<1x20x16x64xf32>
    %c0_3 = arith.constant 0 : index
    %c0_4 = arith.constant 0 : index
    %c1 = arith.constant 1 : index
    %c0_5 = arith.constant 0 : index
    %1 = vector.load %arg1[%c0_3, %c0_4, %c1, %c0_5] : memref<1x20x20x64xf32, #tpu.memory_space<vmem>>, vector<1x20x16x64xf32>
    %c0_6 = arith.constant 0 : index
    %c0_7 = arith.constant 0 : index
    %c2 = arith.constant 2 : index
    %c0_8 = arith.constant 0 : index
    %2 = vector.load %arg1[%c0_6, %c0_7, %c2, %c0_8] : memref<1x20x20x64xf32, #tpu.memory_space<vmem>>, vector<1x20x16x64xf32>
    %c0_9 = arith.constant 0 : index
    %c0_10 = arith.constant 0 : index
    %c3 = arith.constant 3 : index
    %c0_11 = arith.constant 0 : index
    %3 = vector.load %arg1[%c0_9, %c0_10, %c3, %c0_11] : memref<1x20x20x64xf32, #tpu.memory_space<vmem>>, vector<1x20x16x64xf32>
    %c0_12 = arith.constant 0 : index
    %c0_13 = arith.constant 0 : index
    %c4 = arith.constant 4 : index
    %c0_14 = arith.constant 0 : index
    %4 = vector.load %arg1[%c0_12, %c0_13, %c4, %c0_14] : memref<1x20x20x64xf32, #tpu.memory_space<vmem>>, vector<1x20x16x64xf32>
    %5 = vector.extract_strided_slice %0 {offsets = [0, 0, 0, 0], sizes = [1, 16, 16, 64], strides = [1, 1, 1, 1]} : vector<1x20x16x64xf32> to vector<1x16x16x64xf32>
    %6 = vector.shape_cast %5 : vector<1x16x16x64xf32> to vector<256x64xf32>
    %7 = arith.truncf %6 : vector<256x64xf32> to vector<256x64xbf16>
    %8 = vector.extract_strided_slice %0 {offsets = [0, 1, 0, 0], sizes = [1, 16, 16, 64], strides = [1, 1, 1, 1]} : vector<1x20x16x64xf32> to vector<1x16x16x64xf32>
    %9 = vector.shape_cast %8 : vector<1x16x16x64xf32> to vector<256x64xf32>
    %10 = arith.truncf %9 : vector<256x64xf32> to vector<256x64xbf16>
    %11 = tpu.concatenate %7, %10 in 1 : vector<256x64xbf16>, vector<256x64xbf16> -> vector<256x128xbf16>
    %c0_15 = arith.constant 0 : index
    %c0_16 = arith.constant 0 : index
    %12 = vector.load %arg5[%c0_15, %c0_16] : memref<256x1600xbf16, #tpu.memory_space<vmem>>, vector<256x128xbf16>
    tpu.vector_store %arg5[%c0_15, %c0_16], %11 {strides = array<i32>} : memref<256x1600xbf16, #tpu.memory_space<vmem>>, vector<256x128xbf16>,
    %13 = vector.extract_strided_slice %0 {offsets = [0, 2, 0, 0], sizes = [1, 16, 16, 64], strides = [1, 1, 1, 1]} : vector<1x20x16x64xf32> to vector<1x16x16x64xf32>
    %14 = vector.shape_cast %13 : vector<1x16x16x64xf32> to vector<256x64xf32>
    %15 = arith.truncf %14 : vector<256x64xf32> to vector<256x64xbf16>
    %16 = vector.extract_strided_slice %0 {offsets = [0, 3, 0, 0], sizes = [1, 16, 16, 64], strides = [1, 1, 1, 1]} : vector<1x20x16x64xf32> to vector<1x16x16x64xf32>
    %17 = vector.shape_cast %16 : vector<1x16x16x64xf32> to vector<256x64xf32>
    %18 = arith.truncf %17 : vector<256x64xf32> to vector<256x64xbf16>
    %19 = tpu.concatenate %15, %18 in 1 : vector<256x64xbf16>, vector<256x64xbf16> -> vector<256x128xbf16>
    %c0_17 = arith.constant 0 : index
    %c128 = arith.constant 128 : index
    %20 = vector.load %arg5[%c0_17, %c128] : memref<256x1600xbf16, #tpu.memory_space<vmem>>, vector<256x128xbf16>
    tpu.vector_store %arg5[%c0_17, %c128], %19 {strides = array<i32>} : memref<256x1600xbf16, #tpu.memory_space<vmem>>, vector<256x128xbf16>,
    %21 = vector.extract_strided_slice %0 {offsets = [0, 4, 0, 0], sizes = [1, 16, 16, 64], strides = [1, 1, 1, 1]} : vector<1x20x16x64xf32> to vector<1x16x16x64xf32>
    %22 = vector.shape_cast %21 : vector<1x16x16x64xf32> to vector<256x64xf32>
    %23 = arith.truncf %22 : vector<256x64xf32> to vector<256x64xbf16>
    %24 = vector.extract_strided_slice %1 {offsets = [0, 0, 0, 0], sizes = [1, 16, 16, 64], strides = [1, 1, 1, 1]} : vector<1x20x16x64xf32> to vector<1x16x16x64xf32>
    %25 = vector.shape_cast %24 : vector<1x16x16x64xf32> to vector<256x64xf32>
    %26 = arith.truncf %25 : vector<256x64xf32> to vector<256x64xbf16>
    %27 = tpu.concatenate %23, %26 in 1 : vector<256x64xbf16>, vector<256x64xbf16> -> vector<256x128xbf16>
    %c0_18 = arith.constant 0 : index
    %c256 = arith.constant 256 : index
    %28 = vector.load %arg5[%c0_18, %c256] : memref<256x1600xbf16, #tpu.memory_space<vmem>>, vector<256x128xbf16>
    tpu.vector_store %arg5[%c0_18, %c256], %27 {strides = array<i32>} : memref<256x1600xbf16, #tpu.memory_space<vmem>>, vector<256x128xbf16>,
    %29 = vector.extract_strided_slice %1 {offsets = [0, 1, 0, 0], sizes = [1, 16, 16, 64], strides = [1, 1, 1, 1]} : vector<1x20x16x64xf32> to vector<1x16x16x64xf32>
    %30 = vector.shape_cast %29 : vector<1x16x16x64xf32> to vector<256x64xf32>
    %31 = arith.truncf %30 : vector<256x64xf32> to vector<256x64xbf16>
    %32 = vector.extract_strided_slice %1 {offsets = [0, 2, 0, 0], sizes = [1, 16, 16, 64], strides = [1, 1, 1, 1]} : vector<1x20x16x64xf32> to vector<1x16x16x64xf32>
    %33 = vector.shape_cast %32 : vector<1x16x16x64xf32> to vector<256x64xf32>
    %34 = arith.truncf %33 : vector<256x64xf32> to vector<256x64xbf16>
    %35 = tpu.concatenate %31, %34 in 1 : vector<256x64xbf16>, vector<256x64xbf16> -> vector<256x128xbf16>
    %c0_19 = arith.constant 0 : index
    %c384 = arith.constant 384 : index
    %36 = vector.load %arg5[%c0_19, %c384] : memref<256x1600xbf16, #tpu.memory_space<vmem>>, vector<256x128xbf16>
    tpu.vector_store %arg5[%c0_19, %c384], %35 {strides = array<i32>} : memref<256x1600xbf16, #tpu.memory_space<vmem>>, vector<256x128xbf16>,
    %37 = vector.extract_strided_slice %1 {offsets = [0, 3, 0, 0], sizes = [1, 16, 16, 64], strides = [1, 1, 1, 1]} : vector<1x20x16x64xf32> to vector<1x16x16x64xf32>
    %38 = vector.shape_cast %37 : vector<1x16x16x64xf32> to vector<256x64xf32>
    %39 = arith.truncf %38 : vector<256x64xf32> to vector<256x64xbf16>
    %40 = vector.extract_strided_slice %1 {offsets = [0, 4, 0, 0], sizes = [1, 16, 16, 64], strides = [1, 1, 1, 1]} : vector<1x20x16x64xf32> to vector<1x16x16x64xf32>
    %41 = vector.shape_cast %40 : vector<1x16x16x64xf32> to vector<256x64xf32>
    %42 = arith.truncf %41 : vector<256x64xf32> to vector<256x64xbf16>
    %43 = tpu.concatenate %39, %42 in 1 : vector<256x64xbf16>, vector<256x64xbf16> -> vector<256x128xbf16>
    %c0_20 = arith.constant 0 : index
    %c512 = arith.constant 512 : index
    %44 = vector.load %arg5[%c0_20, %c512] : memref<256x1600xbf16, #tpu.memory_space<vmem>>, vector<256x128xbf16>
    tpu.vector_store %arg5[%c0_20, %c512], %43 {strides = array<i32>} : memref<256x1600xbf16, #tpu.memory_space<vmem>>, vector<256x128xbf16>,
    %45 = vector.extract_strided_slice %2 {offsets = [0, 0, 0, 0], sizes = [1, 16, 16, 64], strides = [1, 1, 1, 1]} : vector<1x20x16x64xf32> to vector<1x16x16x64xf32>
    %46 = vector.shape_cast %45 : vector<1x16x16x64xf32> to vector<256x64xf32>
    %47 = arith.truncf %46 : vector<256x64xf32> to vector<256x64xbf16>
    %48 = vector.extract_strided_slice %2 {offsets = [0, 1, 0, 0], sizes = [1, 16, 16, 64], strides = [1, 1, 1, 1]} : vector<1x20x16x64xf32> to vector<1x16x16x64xf32>
    %49 = vector.shape_cast %48 : vector<1x16x16x64xf32> to vector<256x64xf32>
    %50 = arith.truncf %49 : vector<256x64xf32> to vector<256x64xbf16>
    %51 = tpu.concatenate %47, %50 in 1 : vector<256x64xbf16>, vector<256x64xbf16> -> vector<256x128xbf16>
    %c0_21 = arith.constant 0 : index
    %c640 = arith.constant 640 : index
    %52 = vector.load %arg5[%c0_21, %c640] : memref<256x1600xbf16, #tpu.memory_space<vmem>>, vector<256x128xbf16>
    tpu.vector_store %arg5[%c0_21, %c640], %51 {strides = array<i32>} : memref<256x1600xbf16, #tpu.memory_space<vmem>>, vector<256x128xbf16>,
    %53 = vector.extract_strided_slice %2 {offsets = [0, 2, 0, 0], sizes = [1, 16, 16, 64], strides = [1, 1, 1, 1]} : vector<1x20x16x64xf32> to vector<1x16x16x64xf32>
    %54 = vector.shape_cast %53 : vector<1x16x16x64xf32> to vector<256x64xf32>
    %55 = arith.truncf %54 : vector<256x64xf32> to vector<256x64xbf16>
    %56 = vector.extract_strided_slice %2 {offsets = [0, 3, 0, 0], sizes = [1, 16, 16, 64], strides = [1, 1, 1, 1]} : vector<1x20x16x64xf32> to vector<1x16x16x64xf32>
    %57 = vector.shape_cast %56 : vector<1x16x16x64xf32> to vector<256x64xf32>
    %58 = arith.truncf %57 : vector<256x64xf32> to vector<256x64xbf16>
    %59 = tpu.concatenate %55, %58 in 1 : vector<256x64xbf16>, vector<256x64xbf16> -> vector<256x128xbf16>
    %c0_22 = arith.constant 0 : index
    %c768 = arith.constant 768 : index
    %60 = vector.load %arg5[%c0_22, %c768] : memref<256x1600xbf16, #tpu.memory_space<vmem>>, vector<256x128xbf16>
    tpu.vector_store %arg5[%c0_22, %c768], %59 {strides = array<i32>} : memref<256x1600xbf16, #tpu.memory_space<vmem>>, vector<256x128xbf16>,
    %61 = vector.extract_strided_slice %2 {offsets = [0, 4, 0, 0], sizes = [1, 16, 16, 64], strides = [1, 1, 1, 1]} : vector<1x20x16x64xf32> to vector<1x16x16x64xf32>
    %62 = vector.shape_cast %61 : vector<1x16x16x64xf32> to vector<256x64xf32>
    %63 = arith.truncf %62 : vector<256x64xf32> to vector<256x64xbf16>
    %64 = vector.extract_strided_slice %3 {offsets = [0, 0, 0, 0], sizes = [1, 16, 16, 64], strides = [1, 1, 1, 1]} : vector<1x20x16x64xf32> to vector<1x16x16x64xf32>
    %65 = vector.shape_cast %64 : vector<1x16x16x64xf32> to vector<256x64xf32>
    %66 = arith.truncf %65 : vector<256x64xf32> to vector<256x64xbf16>
    %67 = tpu.concatenate %63, %66 in 1 : vector<256x64xbf16>, vector<256x64xbf16> -> vector<256x128xbf16>
    %c0_23 = arith.constant 0 : index
    %c896 = arith.constant 896 : index
    %68 = vector.load %arg5[%c0_23, %c896] : memref<256x1600xbf16, #tpu.memory_space<vmem>>, vector<256x128xbf16>
    tpu.vector_store %arg5[%c0_23, %c896], %67 {strides = array<i32>} : memref<256x1600xbf16, #tpu.memory_space<vmem>>, vector<256x128xbf16>,
    %69 = vector.extract_strided_slice %3 {offsets = [0, 1, 0, 0], sizes = [1, 16, 16, 64], strides = [1, 1, 1, 1]} : vector<1x20x16x64xf32> to vector<1x16x16x64xf32>
    %70 = vector.shape_cast %69 : vector<1x16x16x64xf32> to vector<256x64xf32>
    %71 = arith.truncf %70 : vector<256x64xf32> to vector<256x64xbf16>
    %72 = vector.extract_strided_slice %3 {offsets = [0, 2, 0, 0], sizes = [1, 16, 16, 64], strides = [1, 1, 1, 1]} : vector<1x20x16x64xf32> to vector<1x16x16x64xf32>
    %73 = vector.shape_cast %72 : vector<1x16x16x64xf32> to vector<256x64xf32>
    %74 = arith.truncf %73 : vector<256x64xf32> to vector<256x64xbf16>
    %75 = tpu.concatenate %71, %74 in 1 : vector<256x64xbf16>, vector<256x64xbf16> -> vector<256x128xbf16>
    %c0_24 = arith.constant 0 : index
    %c1024 = arith.constant 1024 : index
    %76 = vector.load %arg5[%c0_24, %c1024] : memref<256x1600xbf16, #tpu.memory_space<vmem>>, vector<256x128xbf16>
    tpu.vector_store %arg5[%c0_24, %c1024], %75 {strides = array<i32>} : memref<256x1600xbf16, #tpu.memory_space<vmem>>, vector<256x128xbf16>,
    %77 = vector.extract_strided_slice %3 {offsets = [0, 3, 0, 0], sizes = [1, 16, 16, 64], strides = [1, 1, 1, 1]} : vector<1x20x16x64xf32> to vector<1x16x16x64xf32>
    %78 = vector.shape_cast %77 : vector<1x16x16x64xf32> to vector<256x64xf32>
    %79 = arith.truncf %78 : vector<256x64xf32> to vector<256x64xbf16>
    %80 = vector.extract_strided_slice %3 {offsets = [0, 4, 0, 0], sizes = [1, 16, 16, 64], strides = [1, 1, 1, 1]} : vector<1x20x16x64xf32> to vector<1x16x16x64xf32>
    %81 = vector.shape_cast %80 : vector<1x16x16x64xf32> to vector<256x64xf32>
    %82 = arith.truncf %81 : vector<256x64xf32> to vector<256x64xbf16>
    %83 = tpu.concatenate %79, %82 in 1 : vector<256x64xbf16>, vector<256x64xbf16> -> vector<256x128xbf16>
    %c0_25 = arith.constant 0 : index
    %c1152 = arith.constant 1152 : index
    %84 = vector.load %arg5[%c0_25, %c1152] : memref<256x1600xbf16, #tpu.memory_space<vmem>>, vector<256x128xbf16>
    tpu.vector_store %arg5[%c0_25, %c1152], %83 {strides = array<i32>} : memref<256x1600xbf16, #tpu.memory_space<vmem>>, vector<256x128xbf16>,
    %85 = vector.extract_strided_slice %4 {offsets = [0, 0, 0, 0], sizes = [1, 16, 16, 64], strides = [1, 1, 1, 1]} : vector<1x20x16x64xf32> to vector<1x16x16x64xf32>
    %86 = vector.shape_cast %85 : vector<1x16x16x64xf32> to vector<256x64xf32>
    %87 = arith.truncf %86 : vector<256x64xf32> to vector<256x64xbf16>
    %88 = vector.extract_strided_slice %4 {offsets = [0, 1, 0, 0], sizes = [1, 16, 16, 64], strides = [1, 1, 1, 1]} : vector<1x20x16x64xf32> to vector<1x16x16x64xf32>
    %89 = vector.shape_cast %88 : vector<1x16x16x64xf32> to vector<256x64xf32>
    %90 = arith.truncf %89 : vector<256x64xf32> to vector<256x64xbf16>
    %91 = tpu.concatenate %87, %90 in 1 : vector<256x64xbf16>, vector<256x64xbf16> -> vector<256x128xbf16>
    %c0_26 = arith.constant 0 : index
    %c1280 = arith.constant 1280 : index
    %92 = vector.load %arg5[%c0_26, %c1280] : memref<256x1600xbf16, #tpu.memory_space<vmem>>, vector<256x128xbf16>
    tpu.vector_store %arg5[%c0_26, %c1280], %91 {strides = array<i32>} : memref<256x1600xbf16, #tpu.memory_space<vmem>>, vector<256x128xbf16>,
    %93 = vector.extract_strided_slice %4 {offsets = [0, 2, 0, 0], sizes = [1, 16, 16, 64], strides = [1, 1, 1, 1]} : vector<1x20x16x64xf32> to vector<1x16x16x64xf32>
    %94 = vector.shape_cast %93 : vector<1x16x16x64xf32> to vector<256x64xf32>
    %95 = arith.truncf %94 : vector<256x64xf32> to vector<256x64xbf16>
    %96 = vector.extract_strided_slice %4 {offsets = [0, 3, 0, 0], sizes = [1, 16, 16, 64], strides = [1, 1, 1, 1]} : vector<1x20x16x64xf32> to vector<1x16x16x64xf32>
    %97 = vector.shape_cast %96 : vector<1x16x16x64xf32> to vector<256x64xf32>
    %98 = arith.truncf %97 : vector<256x64xf32> to vector<256x64xbf16>
    %99 = tpu.concatenate %95, %98 in 1 : vector<256x64xbf16>, vector<256x64xbf16> -> vector<256x128xbf16>
    %c0_27 = arith.constant 0 : index
    %c1408 = arith.constant 1408 : index
    %100 = vector.load %arg5[%c0_27, %c1408] : memref<256x1600xbf16, #tpu.memory_space<vmem>>, vector<256x128xbf16>
    tpu.vector_store %arg5[%c0_27, %c1408], %99 {strides = array<i32>} : memref<256x1600xbf16, #tpu.memory_space<vmem>>, vector<256x128xbf16>,
    %101 = vector.extract_strided_slice %4 {offsets = [0, 4, 0, 0], sizes = [1, 16, 16, 64], strides = [1, 1, 1, 1]} : vector<1x20x16x64xf32> to vector<1x16x16x64xf32>
    %102 = vector.shape_cast %101 : vector<1x16x16x64xf32> to vector<256x64xf32>
    %103 = arith.truncf %102 : vector<256x64xf32> to vector<256x64xbf16>
    %c0_28 = arith.constant 0 : index
    %c1536 = arith.constant 1536 : index
    %104 = vector.load %arg5[%c0_28, %c1536] : memref<256x1600xbf16, #tpu.memory_space<vmem>>, vector<256x64xbf16>
    tpu.vector_store %arg5[%c0_28, %c1536], %103 {strides = array<i32>} : memref<256x1600xbf16, #tpu.memory_space<vmem>>, vector<256x64xbf16>,
    %c0_29 = arith.constant 0 : index
    %c0_30 = arith.constant 0 : index
    %105 = vector.load %arg5[%c0_29, %c0_30] : memref<256x1600xbf16, #tpu.memory_space<vmem>>, vector<256x1600xbf16>
    %c0_31 = arith.constant 0 : index
    %c0_32 = arith.constant 0 : index
    %106 = vector.load %arg2[%c0_31, %c0_32] : memref<1600x64xbf16, #tpu.memory_space<vmem>>, vector<1600x64xbf16>
    %cst = arith.constant dense<0.000000e+00> : vector<256x64xf32>
    %107 = tpu.matmul %105, %106, %cst {dimension_numbers = #tpu.dot_dimension_numbers<[1], [0], [0], [1], [0, 0, 1, 1], [], []>} : vector<256x1600xbf16>, vector<1600x64xbf16>, vector<256x64xf32> -> vector<256x64xf32>
    %c0_33 = arith.constant 0 : index
    %c0_34 = arith.constant 0 : index
    %108 = vector.load %arg3[%c0_33, %c0_34] : memref<1x64xf32, #tpu.memory_space<vmem>>, vector<1x64xf32>
    %109 = vector.broadcast %108 : vector<1x64xf32> to vector<256x64xf32>
    %110 = arith.addf %107, %109 : vector<256x64xf32>
    %cst_35 = arith.constant 0.000000e+00 : f32
    %111 = vector.broadcast %cst_35 : f32 to vector<256x64xf32>
    %112 = arith.maximumf %110, %111 : vector<256x64xf32>
    %113 = vector.shape_cast %112 : vector<256x64xf32> to vector<8x32x64xf32>
    %114 = vector.extract_strided_slice %113 {offsets = [0, 0, 0], sizes = [8, 16, 64], strides = [1, 1, 1]} : vector<8x32x64xf32> to vector<8x16x64xf32>
    %115 = vector.extract_strided_slice %113 {offsets = [0, 16, 0], sizes = [8, 16, 64], strides = [1, 1, 1]} : vector<8x32x64xf32> to vector<8x16x64xf32>
    %116 = arith.maximumf %114, %115 : vector<8x16x64xf32>
    %117 = vector.shape_cast %116 : vector<8x16x64xf32> to vector<128x64xf32>
    %c0_36 = arith.constant 0 : index
    %c0_37 = arith.constant 0 : index
    %118 = vector.load %arg6[%c0_36, %c0_37] : memref<128x64xf32, #tpu.memory_space<vmem>>, vector<128x64xf32>
    tpu.vector_store %arg6[%c0_36, %c0_37], %117 {strides = array<i32>} : memref<128x64xf32, #tpu.memory_space<vmem>>, vector<128x64xf32>,
    %c0_38 = arith.constant 0 : index
    %c0_39 = arith.constant 0 : index
    %119 = tpu.strided_load %arg6[%c0_38, %c0_39] {strides = array<i32: 4, 1>} : memref<128x64xf32, #tpu.memory_space<vmem>>, vector<32x64xf32>
    %c1_40 = arith.constant 1 : index
    %c0_41 = arith.constant 0 : index
    %120 = tpu.strided_load %arg6[%c1_40, %c0_41] {strides = array<i32: 4, 1>} : memref<128x64xf32, #tpu.memory_space<vmem>>, vector<32x64xf32>
    %121 = arith.maximumf %119, %120 : vector<32x64xf32>
    %c2_42 = arith.constant 2 : index
    %c0_43 = arith.constant 0 : index
    %122 = tpu.strided_load %arg6[%c2_42, %c0_43] {strides = array<i32: 4, 1>} : memref<128x64xf32, #tpu.memory_space<vmem>>, vector<32x64xf32>
    %c3_44 = arith.constant 3 : index
    %c0_45 = arith.constant 0 : index
    %123 = tpu.strided_load %arg6[%c3_44, %c0_45] {strides = array<i32: 4, 1>} : memref<128x64xf32, #tpu.memory_space<vmem>>, vector<32x64xf32>
    %124 = arith.maximumf %122, %123 : vector<32x64xf32>
    %125 = tpu.concatenate %121, %124 in 1 : vector<32x64xf32>, vector<32x64xf32> -> vector<32x128xf32>
    %126 = vector.shape_cast %125 : vector<32x128xf32> to vector<1x32x128xf32>
    %c0_46 = arith.constant 0 : index
    %c0_47 = arith.constant 0 : index
    %c0_48 = arith.constant 0 : index
    %127 = vector.load %arg4[%c0_46, %c0_47, %c0_48] : memref<1x32x128xf32, #tpu.memory_space<vmem>>, vector<1x32x128xf32>
    tpu.vector_store %arg4[%c0_46, %c0_47, %c0_48], %126 {strides = array<i32>} : memref<1x32x128xf32, #tpu.memory_space<vmem>>, vector<1x32x128xf32>,
    return
  }
  func.func @transform_0(%arg0: i32) -> (i32, i32, i32, i32) {
    %c0_i32 = arith.constant 0 : i32
    %c0_i32_0 = arith.constant 0 : i32
    %c0_i32_1 = arith.constant 0 : i32
    %c0_i32_2 = arith.constant 0 : i32
    return %arg0, %c0_i32, %c0_i32_0, %c0_i32_1 : i32, i32, i32, i32
  }
  func.func @transform_1(%arg0: i32) -> (i32, i32) {
    %c0_i32 = arith.constant 0 : i32
    %c0_i32_0 = arith.constant 0 : i32
    %c0_i32_1 = arith.constant 0 : i32
    return %c0_i32, %c0_i32_0 : i32, i32
  }
  func.func @transform_2(%arg0: i32) -> (i32, i32) {
    %c0_i32 = arith.constant 0 : i32
    %c0_i32_0 = arith.constant 0 : i32
    %c0_i32_1 = arith.constant 0 : i32
    return %c0_i32, %c0_i32_0 : i32, i32
  }
  func.func @transform_3(%arg0: i32) -> (i32, i32, i32) {
    %c0_i32 = arith.constant 0 : i32
    %c0_i32_0 = arith.constant 0 : i32
    %c0_i32_1 = arith.constant 0 : i32
    return %arg0, %c0_i32, %c0_i32_0 : i32, i32, i32
  }
}

module attributes {stable_mosaic.version = 11 : i64} {
  func.func @conv_relu_pool_kernel(%arg0: i32, %arg1: memref<1x12x12x64xf32, #tpu.memory_space<vmem>>, %arg2: memref<1600x128xbf16, #tpu.memory_space<vmem>>, %arg3: memref<1x128xf32, #tpu.memory_space<vmem>>, %arg4: memref<1x16x128xf32, #tpu.memory_space<vmem>>, %arg5: memref<64x1600xbf16, #tpu.memory_space<vmem>>, %arg6: memref<32x128xf32, #tpu.memory_space<vmem>>) attributes {dimension_semantics = [#tpu.dimension_semantics<parallel>], iteration_bounds = array<i64: 2>, scalar_prefetch = 0 : i64, scratch_operands = 2 : i64, tpu.core_type = #tpu.core_type<tc>, window_params = [{transform_indices = @transform_0, window_bounds = array<i64: 1, 12, 12, 64>}, {pipeline_mode = #tpu.pipeline_mode<synchronous>, transform_indices = @transform_1, window_bounds = array<i64: 1600, 128>}, {pipeline_mode = #tpu.pipeline_mode<synchronous>, transform_indices = @transform_2, window_bounds = array<i64: 1, 128>}, {transform_indices = @transform_3, window_bounds = array<i64: 1, 16, 128>}]} {
    %c0 = arith.constant 0 : index
    %c0_0 = arith.constant 0 : index
    %c0_1 = arith.constant 0 : index
    %c0_2 = arith.constant 0 : index
    %0 = vector.load %arg1[%c0, %c0_0, %c0_1, %c0_2] : memref<1x12x12x64xf32, #tpu.memory_space<vmem>>, vector<1x12x8x64xf32>
    %c0_3 = arith.constant 0 : index
    %c0_4 = arith.constant 0 : index
    %c1 = arith.constant 1 : index
    %c0_5 = arith.constant 0 : index
    %1 = vector.load %arg1[%c0_3, %c0_4, %c1, %c0_5] : memref<1x12x12x64xf32, #tpu.memory_space<vmem>>, vector<1x12x8x64xf32>
    %c0_6 = arith.constant 0 : index
    %c0_7 = arith.constant 0 : index
    %c2 = arith.constant 2 : index
    %c0_8 = arith.constant 0 : index
    %2 = vector.load %arg1[%c0_6, %c0_7, %c2, %c0_8] : memref<1x12x12x64xf32, #tpu.memory_space<vmem>>, vector<1x12x8x64xf32>
    %c0_9 = arith.constant 0 : index
    %c0_10 = arith.constant 0 : index
    %c3 = arith.constant 3 : index
    %c0_11 = arith.constant 0 : index
    %3 = vector.load %arg1[%c0_9, %c0_10, %c3, %c0_11] : memref<1x12x12x64xf32, #tpu.memory_space<vmem>>, vector<1x12x8x64xf32>
    %c0_12 = arith.constant 0 : index
    %c0_13 = arith.constant 0 : index
    %c4 = arith.constant 4 : index
    %c0_14 = arith.constant 0 : index
    %4 = vector.load %arg1[%c0_12, %c0_13, %c4, %c0_14] : memref<1x12x12x64xf32, #tpu.memory_space<vmem>>, vector<1x12x8x64xf32>
    %5 = vector.extract_strided_slice %0 {offsets = [0, 0, 0, 0], sizes = [1, 8, 8, 64], strides = [1, 1, 1, 1]} : vector<1x12x8x64xf32> to vector<1x8x8x64xf32>
    %6 = vector.shape_cast %5 : vector<1x8x8x64xf32> to vector<64x64xf32>
    %7 = arith.truncf %6 : vector<64x64xf32> to vector<64x64xbf16>
    %8 = vector.extract_strided_slice %0 {offsets = [0, 1, 0, 0], sizes = [1, 8, 8, 64], strides = [1, 1, 1, 1]} : vector<1x12x8x64xf32> to vector<1x8x8x64xf32>
    %9 = vector.shape_cast %8 : vector<1x8x8x64xf32> to vector<64x64xf32>
    %10 = arith.truncf %9 : vector<64x64xf32> to vector<64x64xbf16>
    %11 = tpu.concatenate %7, %10 in 1 : vector<64x64xbf16>, vector<64x64xbf16> -> vector<64x128xbf16>
    %c0_15 = arith.constant 0 : index
    %c0_16 = arith.constant 0 : index
    %12 = vector.load %arg5[%c0_15, %c0_16] : memref<64x1600xbf16, #tpu.memory_space<vmem>>, vector<64x128xbf16>
    tpu.vector_store %arg5[%c0_15, %c0_16], %11 {strides = array<i32>} : memref<64x1600xbf16, #tpu.memory_space<vmem>>, vector<64x128xbf16>,
    %13 = vector.extract_strided_slice %0 {offsets = [0, 2, 0, 0], sizes = [1, 8, 8, 64], strides = [1, 1, 1, 1]} : vector<1x12x8x64xf32> to vector<1x8x8x64xf32>
    %14 = vector.shape_cast %13 : vector<1x8x8x64xf32> to vector<64x64xf32>
    %15 = arith.truncf %14 : vector<64x64xf32> to vector<64x64xbf16>
    %16 = vector.extract_strided_slice %0 {offsets = [0, 3, 0, 0], sizes = [1, 8, 8, 64], strides = [1, 1, 1, 1]} : vector<1x12x8x64xf32> to vector<1x8x8x64xf32>
    %17 = vector.shape_cast %16 : vector<1x8x8x64xf32> to vector<64x64xf32>
    %18 = arith.truncf %17 : vector<64x64xf32> to vector<64x64xbf16>
    %19 = tpu.concatenate %15, %18 in 1 : vector<64x64xbf16>, vector<64x64xbf16> -> vector<64x128xbf16>
    %c0_17 = arith.constant 0 : index
    %c128 = arith.constant 128 : index
    %20 = vector.load %arg5[%c0_17, %c128] : memref<64x1600xbf16, #tpu.memory_space<vmem>>, vector<64x128xbf16>
    tpu.vector_store %arg5[%c0_17, %c128], %19 {strides = array<i32>} : memref<64x1600xbf16, #tpu.memory_space<vmem>>, vector<64x128xbf16>,
    %21 = vector.extract_strided_slice %0 {offsets = [0, 4, 0, 0], sizes = [1, 8, 8, 64], strides = [1, 1, 1, 1]} : vector<1x12x8x64xf32> to vector<1x8x8x64xf32>
    %22 = vector.shape_cast %21 : vector<1x8x8x64xf32> to vector<64x64xf32>
    %23 = arith.truncf %22 : vector<64x64xf32> to vector<64x64xbf16>
    %24 = vector.extract_strided_slice %1 {offsets = [0, 0, 0, 0], sizes = [1, 8, 8, 64], strides = [1, 1, 1, 1]} : vector<1x12x8x64xf32> to vector<1x8x8x64xf32>
    %25 = vector.shape_cast %24 : vector<1x8x8x64xf32> to vector<64x64xf32>
    %26 = arith.truncf %25 : vector<64x64xf32> to vector<64x64xbf16>
    %27 = tpu.concatenate %23, %26 in 1 : vector<64x64xbf16>, vector<64x64xbf16> -> vector<64x128xbf16>
    %c0_18 = arith.constant 0 : index
    %c256 = arith.constant 256 : index
    %28 = vector.load %arg5[%c0_18, %c256] : memref<64x1600xbf16, #tpu.memory_space<vmem>>, vector<64x128xbf16>
    tpu.vector_store %arg5[%c0_18, %c256], %27 {strides = array<i32>} : memref<64x1600xbf16, #tpu.memory_space<vmem>>, vector<64x128xbf16>,
    %29 = vector.extract_strided_slice %1 {offsets = [0, 1, 0, 0], sizes = [1, 8, 8, 64], strides = [1, 1, 1, 1]} : vector<1x12x8x64xf32> to vector<1x8x8x64xf32>
    %30 = vector.shape_cast %29 : vector<1x8x8x64xf32> to vector<64x64xf32>
    %31 = arith.truncf %30 : vector<64x64xf32> to vector<64x64xbf16>
    %32 = vector.extract_strided_slice %1 {offsets = [0, 2, 0, 0], sizes = [1, 8, 8, 64], strides = [1, 1, 1, 1]} : vector<1x12x8x64xf32> to vector<1x8x8x64xf32>
    %33 = vector.shape_cast %32 : vector<1x8x8x64xf32> to vector<64x64xf32>
    %34 = arith.truncf %33 : vector<64x64xf32> to vector<64x64xbf16>
    %35 = tpu.concatenate %31, %34 in 1 : vector<64x64xbf16>, vector<64x64xbf16> -> vector<64x128xbf16>
    %c0_19 = arith.constant 0 : index
    %c384 = arith.constant 384 : index
    %36 = vector.load %arg5[%c0_19, %c384] : memref<64x1600xbf16, #tpu.memory_space<vmem>>, vector<64x128xbf16>
    tpu.vector_store %arg5[%c0_19, %c384], %35 {strides = array<i32>} : memref<64x1600xbf16, #tpu.memory_space<vmem>>, vector<64x128xbf16>,
    %37 = vector.extract_strided_slice %1 {offsets = [0, 3, 0, 0], sizes = [1, 8, 8, 64], strides = [1, 1, 1, 1]} : vector<1x12x8x64xf32> to vector<1x8x8x64xf32>
    %38 = vector.shape_cast %37 : vector<1x8x8x64xf32> to vector<64x64xf32>
    %39 = arith.truncf %38 : vector<64x64xf32> to vector<64x64xbf16>
    %40 = vector.extract_strided_slice %1 {offsets = [0, 4, 0, 0], sizes = [1, 8, 8, 64], strides = [1, 1, 1, 1]} : vector<1x12x8x64xf32> to vector<1x8x8x64xf32>
    %41 = vector.shape_cast %40 : vector<1x8x8x64xf32> to vector<64x64xf32>
    %42 = arith.truncf %41 : vector<64x64xf32> to vector<64x64xbf16>
    %43 = tpu.concatenate %39, %42 in 1 : vector<64x64xbf16>, vector<64x64xbf16> -> vector<64x128xbf16>
    %c0_20 = arith.constant 0 : index
    %c512 = arith.constant 512 : index
    %44 = vector.load %arg5[%c0_20, %c512] : memref<64x1600xbf16, #tpu.memory_space<vmem>>, vector<64x128xbf16>
    tpu.vector_store %arg5[%c0_20, %c512], %43 {strides = array<i32>} : memref<64x1600xbf16, #tpu.memory_space<vmem>>, vector<64x128xbf16>,
    %45 = vector.extract_strided_slice %2 {offsets = [0, 0, 0, 0], sizes = [1, 8, 8, 64], strides = [1, 1, 1, 1]} : vector<1x12x8x64xf32> to vector<1x8x8x64xf32>
    %46 = vector.shape_cast %45 : vector<1x8x8x64xf32> to vector<64x64xf32>
    %47 = arith.truncf %46 : vector<64x64xf32> to vector<64x64xbf16>
    %48 = vector.extract_strided_slice %2 {offsets = [0, 1, 0, 0], sizes = [1, 8, 8, 64], strides = [1, 1, 1, 1]} : vector<1x12x8x64xf32> to vector<1x8x8x64xf32>
    %49 = vector.shape_cast %48 : vector<1x8x8x64xf32> to vector<64x64xf32>
    %50 = arith.truncf %49 : vector<64x64xf32> to vector<64x64xbf16>
    %51 = tpu.concatenate %47, %50 in 1 : vector<64x64xbf16>, vector<64x64xbf16> -> vector<64x128xbf16>
    %c0_21 = arith.constant 0 : index
    %c640 = arith.constant 640 : index
    %52 = vector.load %arg5[%c0_21, %c640] : memref<64x1600xbf16, #tpu.memory_space<vmem>>, vector<64x128xbf16>
    tpu.vector_store %arg5[%c0_21, %c640], %51 {strides = array<i32>} : memref<64x1600xbf16, #tpu.memory_space<vmem>>, vector<64x128xbf16>,
    %53 = vector.extract_strided_slice %2 {offsets = [0, 2, 0, 0], sizes = [1, 8, 8, 64], strides = [1, 1, 1, 1]} : vector<1x12x8x64xf32> to vector<1x8x8x64xf32>
    %54 = vector.shape_cast %53 : vector<1x8x8x64xf32> to vector<64x64xf32>
    %55 = arith.truncf %54 : vector<64x64xf32> to vector<64x64xbf16>
    %56 = vector.extract_strided_slice %2 {offsets = [0, 3, 0, 0], sizes = [1, 8, 8, 64], strides = [1, 1, 1, 1]} : vector<1x12x8x64xf32> to vector<1x8x8x64xf32>
    %57 = vector.shape_cast %56 : vector<1x8x8x64xf32> to vector<64x64xf32>
    %58 = arith.truncf %57 : vector<64x64xf32> to vector<64x64xbf16>
    %59 = tpu.concatenate %55, %58 in 1 : vector<64x64xbf16>, vector<64x64xbf16> -> vector<64x128xbf16>
    %c0_22 = arith.constant 0 : index
    %c768 = arith.constant 768 : index
    %60 = vector.load %arg5[%c0_22, %c768] : memref<64x1600xbf16, #tpu.memory_space<vmem>>, vector<64x128xbf16>
    tpu.vector_store %arg5[%c0_22, %c768], %59 {strides = array<i32>} : memref<64x1600xbf16, #tpu.memory_space<vmem>>, vector<64x128xbf16>,
    %61 = vector.extract_strided_slice %2 {offsets = [0, 4, 0, 0], sizes = [1, 8, 8, 64], strides = [1, 1, 1, 1]} : vector<1x12x8x64xf32> to vector<1x8x8x64xf32>
    %62 = vector.shape_cast %61 : vector<1x8x8x64xf32> to vector<64x64xf32>
    %63 = arith.truncf %62 : vector<64x64xf32> to vector<64x64xbf16>
    %64 = vector.extract_strided_slice %3 {offsets = [0, 0, 0, 0], sizes = [1, 8, 8, 64], strides = [1, 1, 1, 1]} : vector<1x12x8x64xf32> to vector<1x8x8x64xf32>
    %65 = vector.shape_cast %64 : vector<1x8x8x64xf32> to vector<64x64xf32>
    %66 = arith.truncf %65 : vector<64x64xf32> to vector<64x64xbf16>
    %67 = tpu.concatenate %63, %66 in 1 : vector<64x64xbf16>, vector<64x64xbf16> -> vector<64x128xbf16>
    %c0_23 = arith.constant 0 : index
    %c896 = arith.constant 896 : index
    %68 = vector.load %arg5[%c0_23, %c896] : memref<64x1600xbf16, #tpu.memory_space<vmem>>, vector<64x128xbf16>
    tpu.vector_store %arg5[%c0_23, %c896], %67 {strides = array<i32>} : memref<64x1600xbf16, #tpu.memory_space<vmem>>, vector<64x128xbf16>,
    %69 = vector.extract_strided_slice %3 {offsets = [0, 1, 0, 0], sizes = [1, 8, 8, 64], strides = [1, 1, 1, 1]} : vector<1x12x8x64xf32> to vector<1x8x8x64xf32>
    %70 = vector.shape_cast %69 : vector<1x8x8x64xf32> to vector<64x64xf32>
    %71 = arith.truncf %70 : vector<64x64xf32> to vector<64x64xbf16>
    %72 = vector.extract_strided_slice %3 {offsets = [0, 2, 0, 0], sizes = [1, 8, 8, 64], strides = [1, 1, 1, 1]} : vector<1x12x8x64xf32> to vector<1x8x8x64xf32>
    %73 = vector.shape_cast %72 : vector<1x8x8x64xf32> to vector<64x64xf32>
    %74 = arith.truncf %73 : vector<64x64xf32> to vector<64x64xbf16>
    %75 = tpu.concatenate %71, %74 in 1 : vector<64x64xbf16>, vector<64x64xbf16> -> vector<64x128xbf16>
    %c0_24 = arith.constant 0 : index
    %c1024 = arith.constant 1024 : index
    %76 = vector.load %arg5[%c0_24, %c1024] : memref<64x1600xbf16, #tpu.memory_space<vmem>>, vector<64x128xbf16>
    tpu.vector_store %arg5[%c0_24, %c1024], %75 {strides = array<i32>} : memref<64x1600xbf16, #tpu.memory_space<vmem>>, vector<64x128xbf16>,
    %77 = vector.extract_strided_slice %3 {offsets = [0, 3, 0, 0], sizes = [1, 8, 8, 64], strides = [1, 1, 1, 1]} : vector<1x12x8x64xf32> to vector<1x8x8x64xf32>
    %78 = vector.shape_cast %77 : vector<1x8x8x64xf32> to vector<64x64xf32>
    %79 = arith.truncf %78 : vector<64x64xf32> to vector<64x64xbf16>
    %80 = vector.extract_strided_slice %3 {offsets = [0, 4, 0, 0], sizes = [1, 8, 8, 64], strides = [1, 1, 1, 1]} : vector<1x12x8x64xf32> to vector<1x8x8x64xf32>
    %81 = vector.shape_cast %80 : vector<1x8x8x64xf32> to vector<64x64xf32>
    %82 = arith.truncf %81 : vector<64x64xf32> to vector<64x64xbf16>
    %83 = tpu.concatenate %79, %82 in 1 : vector<64x64xbf16>, vector<64x64xbf16> -> vector<64x128xbf16>
    %c0_25 = arith.constant 0 : index
    %c1152 = arith.constant 1152 : index
    %84 = vector.load %arg5[%c0_25, %c1152] : memref<64x1600xbf16, #tpu.memory_space<vmem>>, vector<64x128xbf16>
    tpu.vector_store %arg5[%c0_25, %c1152], %83 {strides = array<i32>} : memref<64x1600xbf16, #tpu.memory_space<vmem>>, vector<64x128xbf16>,
    %85 = vector.extract_strided_slice %4 {offsets = [0, 0, 0, 0], sizes = [1, 8, 8, 64], strides = [1, 1, 1, 1]} : vector<1x12x8x64xf32> to vector<1x8x8x64xf32>
    %86 = vector.shape_cast %85 : vector<1x8x8x64xf32> to vector<64x64xf32>
    %87 = arith.truncf %86 : vector<64x64xf32> to vector<64x64xbf16>
    %88 = vector.extract_strided_slice %4 {offsets = [0, 1, 0, 0], sizes = [1, 8, 8, 64], strides = [1, 1, 1, 1]} : vector<1x12x8x64xf32> to vector<1x8x8x64xf32>
    %89 = vector.shape_cast %88 : vector<1x8x8x64xf32> to vector<64x64xf32>
    %90 = arith.truncf %89 : vector<64x64xf32> to vector<64x64xbf16>
    %91 = tpu.concatenate %87, %90 in 1 : vector<64x64xbf16>, vector<64x64xbf16> -> vector<64x128xbf16>
    %c0_26 = arith.constant 0 : index
    %c1280 = arith.constant 1280 : index
    %92 = vector.load %arg5[%c0_26, %c1280] : memref<64x1600xbf16, #tpu.memory_space<vmem>>, vector<64x128xbf16>
    tpu.vector_store %arg5[%c0_26, %c1280], %91 {strides = array<i32>} : memref<64x1600xbf16, #tpu.memory_space<vmem>>, vector<64x128xbf16>,
    %93 = vector.extract_strided_slice %4 {offsets = [0, 2, 0, 0], sizes = [1, 8, 8, 64], strides = [1, 1, 1, 1]} : vector<1x12x8x64xf32> to vector<1x8x8x64xf32>
    %94 = vector.shape_cast %93 : vector<1x8x8x64xf32> to vector<64x64xf32>
    %95 = arith.truncf %94 : vector<64x64xf32> to vector<64x64xbf16>
    %96 = vector.extract_strided_slice %4 {offsets = [0, 3, 0, 0], sizes = [1, 8, 8, 64], strides = [1, 1, 1, 1]} : vector<1x12x8x64xf32> to vector<1x8x8x64xf32>
    %97 = vector.shape_cast %96 : vector<1x8x8x64xf32> to vector<64x64xf32>
    %98 = arith.truncf %97 : vector<64x64xf32> to vector<64x64xbf16>
    %99 = tpu.concatenate %95, %98 in 1 : vector<64x64xbf16>, vector<64x64xbf16> -> vector<64x128xbf16>
    %c0_27 = arith.constant 0 : index
    %c1408 = arith.constant 1408 : index
    %100 = vector.load %arg5[%c0_27, %c1408] : memref<64x1600xbf16, #tpu.memory_space<vmem>>, vector<64x128xbf16>
    tpu.vector_store %arg5[%c0_27, %c1408], %99 {strides = array<i32>} : memref<64x1600xbf16, #tpu.memory_space<vmem>>, vector<64x128xbf16>,
    %101 = vector.extract_strided_slice %4 {offsets = [0, 4, 0, 0], sizes = [1, 8, 8, 64], strides = [1, 1, 1, 1]} : vector<1x12x8x64xf32> to vector<1x8x8x64xf32>
    %102 = vector.shape_cast %101 : vector<1x8x8x64xf32> to vector<64x64xf32>
    %103 = arith.truncf %102 : vector<64x64xf32> to vector<64x64xbf16>
    %c0_28 = arith.constant 0 : index
    %c1536 = arith.constant 1536 : index
    %104 = vector.load %arg5[%c0_28, %c1536] : memref<64x1600xbf16, #tpu.memory_space<vmem>>, vector<64x64xbf16>
    tpu.vector_store %arg5[%c0_28, %c1536], %103 {strides = array<i32>} : memref<64x1600xbf16, #tpu.memory_space<vmem>>, vector<64x64xbf16>,
    %c0_29 = arith.constant 0 : index
    %c0_30 = arith.constant 0 : index
    %105 = vector.load %arg5[%c0_29, %c0_30] : memref<64x1600xbf16, #tpu.memory_space<vmem>>, vector<64x1600xbf16>
    %c0_31 = arith.constant 0 : index
    %c0_32 = arith.constant 0 : index
    %106 = vector.load %arg2[%c0_31, %c0_32] : memref<1600x128xbf16, #tpu.memory_space<vmem>>, vector<1600x128xbf16>
    %cst = arith.constant dense<0.000000e+00> : vector<64x128xf32>
    %107 = tpu.matmul %105, %106, %cst {dimension_numbers = #tpu.dot_dimension_numbers<[1], [0], [0], [1], [0, 0, 1, 1], [], []>} : vector<64x1600xbf16>, vector<1600x128xbf16>, vector<64x128xf32> -> vector<64x128xf32>
    %c0_33 = arith.constant 0 : index
    %c0_34 = arith.constant 0 : index
    %108 = vector.load %arg3[%c0_33, %c0_34] : memref<1x128xf32, #tpu.memory_space<vmem>>, vector<1x128xf32>
    %109 = vector.broadcast %108 : vector<1x128xf32> to vector<64x128xf32>
    %110 = arith.addf %107, %109 : vector<64x128xf32>
    %cst_35 = arith.constant 0.000000e+00 : f32
    %111 = vector.broadcast %cst_35 : f32 to vector<64x128xf32>
    %112 = arith.maximumf %110, %111 : vector<64x128xf32>
    %113 = vector.shape_cast %112 : vector<64x128xf32> to vector<4x16x128xf32>
    %114 = vector.extract_strided_slice %113 {offsets = [0, 0, 0], sizes = [4, 8, 128], strides = [1, 1, 1]} : vector<4x16x128xf32> to vector<4x8x128xf32>
    %115 = vector.extract_strided_slice %113 {offsets = [0, 8, 0], sizes = [4, 8, 128], strides = [1, 1, 1]} : vector<4x16x128xf32> to vector<4x8x128xf32>
    %116 = arith.maximumf %114, %115 : vector<4x8x128xf32>
    %117 = vector.shape_cast %116 : vector<4x8x128xf32> to vector<32x128xf32>
    %c0_36 = arith.constant 0 : index
    %c0_37 = arith.constant 0 : index
    %118 = vector.load %arg6[%c0_36, %c0_37] : memref<32x128xf32, #tpu.memory_space<vmem>>, vector<32x128xf32>
    tpu.vector_store %arg6[%c0_36, %c0_37], %117 {strides = array<i32>} : memref<32x128xf32, #tpu.memory_space<vmem>>, vector<32x128xf32>,
    %c0_38 = arith.constant 0 : index
    %c0_39 = arith.constant 0 : index
    %119 = tpu.strided_load %arg6[%c0_38, %c0_39] {strides = array<i32: 2, 1>} : memref<32x128xf32, #tpu.memory_space<vmem>>, vector<16x128xf32>
    %c1_40 = arith.constant 1 : index
    %c0_41 = arith.constant 0 : index
    %120 = tpu.strided_load %arg6[%c1_40, %c0_41] {strides = array<i32: 2, 1>} : memref<32x128xf32, #tpu.memory_space<vmem>>, vector<16x128xf32>
    %121 = arith.maximumf %119, %120 : vector<16x128xf32>
    %122 = vector.shape_cast %121 : vector<16x128xf32> to vector<1x16x128xf32>
    %c0_42 = arith.constant 0 : index
    %c0_43 = arith.constant 0 : index
    %c0_44 = arith.constant 0 : index
    %123 = vector.load %arg4[%c0_42, %c0_43, %c0_44] : memref<1x16x128xf32, #tpu.memory_space<vmem>>, vector<1x16x128xf32>
    tpu.vector_store %arg4[%c0_42, %c0_43, %c0_44], %122 {strides = array<i32>} : memref<1x16x128xf32, #tpu.memory_space<vmem>>, vector<1x16x128xf32>,
    return
  }
  func.func @transform_0(%arg0: i32) -> (i32, i32, i32, i32) {
    %c0_i32 = arith.constant 0 : i32
    %c0_i32_0 = arith.constant 0 : i32
    %c0_i32_1 = arith.constant 0 : i32
    %c0_i32_2 = arith.constant 0 : i32
    return %arg0, %c0_i32, %c0_i32_0, %c0_i32_1 : i32, i32, i32, i32
  }
  func.func @transform_1(%arg0: i32) -> (i32, i32) {
    %c0_i32 = arith.constant 0 : i32
    %c0_i32_0 = arith.constant 0 : i32
    %c0_i32_1 = arith.constant 0 : i32
    return %c0_i32, %c0_i32_0 : i32, i32
  }
  func.func @transform_2(%arg0: i32) -> (i32, i32) {
    %c0_i32 = arith.constant 0 : i32
    %c0_i32_0 = arith.constant 0 : i32
    %c0_i32_1 = arith.constant 0 : i32
    return %c0_i32, %c0_i32_0 : i32, i32
  }
  func.func @transform_3(%arg0: i32) -> (i32, i32, i32) {
    %c0_i32 = arith.constant 0 : i32
    %c0_i32_0 = arith.constant 0 : i32
    %c0_i32_1 = arith.constant 0 : i32
    return %arg0, %c0_i32, %c0_i32_0 : i32, i32, i32
  }
}

module attributes {stable_mosaic.version = 11 : i64} {
  func.func @linear_kernel(%arg0: memref<2x2048xf32, #tpu.memory_space<vmem>>, %arg1: memref<2048x512xbf16, #tpu.memory_space<vmem>>, %arg2: memref<1x512xf32, #tpu.memory_space<vmem>>, %arg3: memref<2x512xf32, #tpu.memory_space<vmem>>) attributes {dimension_semantics = [], scalar_prefetch = 0 : i64, scratch_operands = 0 : i64, tpu.core_type = #tpu.core_type<tc>} {
    %c0 = arith.constant 0 : index
    %c0_0 = arith.constant 0 : index
    %0 = vector.load %arg0[%c0, %c0_0] : memref<2x2048xf32, #tpu.memory_space<vmem>>, vector<2x2048xf32>
    %1 = arith.truncf %0 : vector<2x2048xf32> to vector<2x2048xbf16>
    %c0_1 = arith.constant 0 : index
    %c0_2 = arith.constant 0 : index
    %2 = vector.load %arg1[%c0_1, %c0_2] : memref<2048x512xbf16, #tpu.memory_space<vmem>>, vector<2048x512xbf16>
    %cst = arith.constant dense<0.000000e+00> : vector<2x512xf32>
    %3 = tpu.matmul %1, %2, %cst {dimension_numbers = #tpu.dot_dimension_numbers<[1], [0], [0], [1], [0, 0, 1, 1], [], []>} : vector<2x2048xbf16>, vector<2048x512xbf16>, vector<2x512xf32> -> vector<2x512xf32>
    %c0_3 = arith.constant 0 : index
    %c0_4 = arith.constant 0 : index
    %4 = vector.load %arg2[%c0_3, %c0_4] : memref<1x512xf32, #tpu.memory_space<vmem>>, vector<1x512xf32>
    %5 = vector.broadcast %4 : vector<1x512xf32> to vector<2x512xf32>
    %6 = arith.addf %3, %5 : vector<2x512xf32>
    %cst_5 = arith.constant 0.000000e+00 : f32
    %7 = vector.broadcast %cst_5 : f32 to vector<2x512xf32>
    %8 = arith.maximumf %6, %7 : vector<2x512xf32>
    %c0_6 = arith.constant 0 : index
    %c0_7 = arith.constant 0 : index
    %9 = vector.load %arg3[%c0_6, %c0_7] : memref<2x512xf32, #tpu.memory_space<vmem>>, vector<2x512xf32>
    tpu.vector_store %arg3[%c0_6, %c0_7], %8 {strides = array<i32>} : memref<2x512xf32, #tpu.memory_space<vmem>>, vector<2x512xf32>,
    return
  }
}

module attributes {stable_mosaic.version = 11 : i64} {
  func.func @linear_kernel(%arg0: memref<2x512xf32, #tpu.memory_space<vmem>>, %arg1: memref<512x10xf32, #tpu.memory_space<vmem>>, %arg2: memref<1x10xf32, #tpu.memory_space<vmem>>, %arg3: memref<2x10xf32, #tpu.memory_space<vmem>>) attributes {dimension_semantics = [], scalar_prefetch = 0 : i64, scratch_operands = 0 : i64, tpu.core_type = #tpu.core_type<tc>} {
    %c0 = arith.constant 0 : index
    %c0_0 = arith.constant 0 : index
    %0 = vector.load %arg0[%c0, %c0_0] : memref<2x512xf32, #tpu.memory_space<vmem>>, vector<2x512xf32>
    %c0_1 = arith.constant 0 : index
    %c0_2 = arith.constant 0 : index
    %1 = vector.load %arg1[%c0_1, %c0_2] : memref<512x10xf32, #tpu.memory_space<vmem>>, vector<512x10xf32>
    %cst = arith.constant dense<0.000000e+00> : vector<2x10xf32>
    %2 = tpu.matmul %0, %1, %cst {dimension_numbers = #tpu.dot_dimension_numbers<[1], [0], [0], [1], [0, 0, 1, 1], [], []>} : vector<2x512xf32>, vector<512x10xf32>, vector<2x10xf32> -> vector<2x10xf32>
    %c0_3 = arith.constant 0 : index
    %c0_4 = arith.constant 0 : index
    %3 = vector.load %arg2[%c0_3, %c0_4] : memref<1x10xf32, #tpu.memory_space<vmem>>, vector<1x10xf32>
    %4 = vector.broadcast %3 : vector<1x10xf32> to vector<2x10xf32>
    %5 = arith.addf %2, %4 : vector<2x10xf32>
    %c0_5 = arith.constant 0 : index
    %c0_6 = arith.constant 0 : index
    %6 = vector.load %arg3[%c0_5, %c0_6] : memref<2x10xf32, #tpu.memory_space<vmem>>, vector<2x10xf32>
    tpu.vector_store %arg3[%c0_5, %c0_6], %5 {strides = array<i32>} : memref<2x10xf32, #tpu.memory_space<vmem>>, vector<2x10xf32>,
    return
  }
}

</mosaic_0001>

<bundles_post_ra>
// kernel: cifar10_net_forward.5
= control target key start
LH: loop header
LB: loop body
LE: loop exit
PB: predicated region body
PF: predicated region fallthrough
CT: control target
= control target key end

     0   :  { %s2453_s12 = smov 0   ;;  %s2860_s0 = inlined_call_operand.vmem [shape: bf16[2048,75], index: 0, kind: input, shape index: {}]   ;;  %s2861_s1 = inlined_call_operand.vmem [shape: bf16[75,64], index: 1, kind: input, shape index: {}]   ;;  %s2862_s2 = inlined_call_operand.vmem [shape: f32[1,64], index: 2, kind: input, shape index: {}]   ;;  %s2863_s3 = inlined_call_operand.vmem [shape: f32[2,128,128], index: 3, kind: output, shape index: {}]  }
   0x1 LB: > { %s2459_s13 = sadd.s32 4294967295, %s2429_s12   ;;  %p1984_p0 = scmp.ge.s32.totalorder %s2429_s12, 1  ;;  %s2429_s12 = sphi %s2453_s12, %s13_s12  }
   0x2   : > { %p138_p1 = scmp.lt.s32.totalorder %s2429_s12, 3 }
   0x4   : > { %p139_p2 = pnand %p1984_p0, %p138_p1 }
   0x5   : > { %s1985_s18 = sshll.u32 (!%p139_p2), %s2459_s13, 7  ;;  %s2432_s4 = smov (!%p139_p2), 64  }
   0x6   : > { %142 = sbr.rel (%p139_p2) target bundleno = 492 (0x1ec), region = 32  ;;  %p163_p3 = scmp.lt.s32.totalorder (!%p139_p2), %s1985_s18, 255 }
   0x7   : > { %p168_p4 = scmp.lt.s32.totalorder (!%p139_p2), %s2459_s13, 1 }
   0xb   : > { %v2353_v0 = vld [vmem:[%s2861_s1 + $0x20] sm:$0x3f]   ;;  %vm861_vm0 = vcmask 1044480   ;;  %vm862_vm1 = vcmask 1045504   ;;  %v2431_v1 = vmov 65535   ;;  %v2354_v4 = vld [vmem:[%s2861_s1 + $0x18] sm:$0xff]  }
   0xc   : > { %v863_v2 = vsel %vm861_vm0, 4294967295, %v2431_v1  ;;  %v2355_v6 = vld [vmem:[%s2861_s1 + $0x10] sm:$0xff]   ;;  %s2865_s18 = smov (!%p163_p3, %s1985_s18), 255  ;;  %v2356_v7 = vld [vmem:[%s2861_s1 + $0x8] sm:$0xff]   ;;  %vm668_vm2 = vcmask 613376   ;;  %v2357_v10 = vld [vmem:[%s2861_s1] sm:$0xff]  }
   0xd   : > { %v864_v3 = vsel %vm862_vm1, %v863_v2, 0  ;;  %s1986_s21 = sshll.u32 %s2865_s18, 2  ;;  %vm1605_vm3 = vcmask 523264   ;;  %s2867_s13 = smov (!%p168_p4, %s2459_s13), 1 }
   0xe   : > { %v866_v5 = vand.u32 %v2353_v0, %v864_v3  ;;  %s2479_s26 = scalar_lea.vmem %s2860_s0, %s1986_s21  ;;  %s2125_s7 = sshll.u32 %s2867_s13, 7 }
   0xf   : > { %v2358_v8 = vld [vmem:[%s2479_s26] sm:$0xff]   ;;  %v2360_v11 = vld [vmem:[%s2479_s26 + $0x8] sm:$0xff]   ;;  %v2362_v13 = vld [vmem:[%s2479_s26 + $0x10] sm:$0xff]   ;;  %s2822_s10 = scalar_lea.vmem %s2863_s3, %s2125_s7 }
  0x10   : > { %2195 = vmatprep.subr.bf16.mxu0 %v866_v5  ;;  %2333 = vmatprep.subr.bf16.mxu1 %v866_v5  ;;  %v2359_v9 = vld [vmem:[%s2479_s26 + $0x100] sm:$0xff]   ;;  %v2361_v12 = vld [vmem:[%s2479_s26 + $0x108] sm:$0xff]   ;;  %v2363_v14 = vld [vmem:[%s2479_s26 + $0x110] sm:$0xff]  }
  0x11   : > { %2196 = vmatpush3.bf16.msra.mxu0 %v866_v5  ;;  %2338 = vmatpush3.bf16.msra.mxu1 %v866_v5  ;;  %v2364_v15 = vld [vmem:[%s2479_s26 + $0x18] sm:$0xff]   ;;  %v2366_v17 = vld [vmem:[%s2479_s26 + $0x20] sm:$0xff]   ;;  %v2368_v19 = vld [vmem:[%s2479_s26 + $0x28] sm:$0xff]  }
  0x12   : > { %2197 = vmatprep.subr.bf16.mxu0 %v2354_v4  ;;  %2334 = vmatprep.subr.bf16.mxu1 %v2354_v4  ;;  %v2365_v16 = vld [vmem:[%s2479_s26 + $0x118] sm:$0xff]   ;;  %v2367_v18 = vld [vmem:[%s2479_s26 + $0x120] sm:$0xff]   ;;  %v2369_v20 = vld [vmem:[%s2479_s26 + $0x128] sm:$0xff]  }
  0x13   : > { %2205 = vmatprep.mubr.msk.bf16.mxu0 %vm668_vm2, %v2358_v8  ;;  %2269 = vmatprep.mubr.msk.bf16.mxu1 %vm668_vm2, %v2359_v9  ;;  %v2370_v21 = vld [vmem:[%s2479_s26 + $0x30] sm:$0xff]   ;;  %v2372_v23 = vld [vmem:[%s2479_s26 + $0x38] sm:$0xff]   ;;  %v2374_v25 = vld [vmem:[%s2479_s26 + $0x40] sm:$0xff]  }
  0x14   : > { %v2371_v22 = vld [vmem:[%s2479_s26 + $0x130] sm:$0xff]   ;;  %v2373_v24 = vld [vmem:[%s2479_s26 + $0x138] sm:$0xff]   ;;  %v2375_v26 = vld [vmem:[%s2479_s26 + $0x140] sm:$0xff]  }
  0x15   : > { %2198 = vmatpush3.bf16.msra.mxu0 %v2354_v4  ;;  %2339 = vmatpush3.bf16.msra.mxu1 %v2354_v4  ;;  %v2376_v27 = vld [vmem:[%s2479_s26 + $0x48] sm:$0xff]   ;;  %v2378_v29 = vld [vmem:[%s2479_s26 + $0x50] sm:$0xff]   ;;  %v2380_v31 = vld [vmem:[%s2479_s26 + $0x58] sm:$0xff]  }
  0x16   : > { %2199 = vmatprep.subr.bf16.mxu0 %v2355_v6  ;;  %2335 = vmatprep.subr.bf16.mxu1 %v2355_v6  ;;  %v2377_v28 = vld [vmem:[%s2479_s26 + $0x148] sm:$0xff]   ;;  %v2379_v30 = vld [vmem:[%s2479_s26 + $0x150] sm:$0xff]   ;;  %v2381_v32 = vld [vmem:[%s2479_s26 + $0x158] sm:$0xff]  }
  0x17   : > { %v2382_v33 = vld [vmem:[%s2479_s26 + $0x60] sm:$0xff]   ;;  %v2384_v35 = vld [vmem:[%s2479_s26 + $0x68] sm:$0xff]   ;;  %v2386_v37 = vld [vmem:[%s2479_s26 + $0x70] sm:$0xff]  }
  0x18   : > { %v2383_v34 = vld [vmem:[%s2479_s26 + $0x160] sm:$0xff]   ;;  %v2385_v36 = vld [vmem:[%s2479_s26 + $0x168] sm:$0xff]   ;;  %v2387_v38 = vld [vmem:[%s2479_s26 + $0x170] sm:$0xff]  }
  0x19   : > { %2200 = vmatpush3.bf16.msra.mxu0 %v2355_v6  ;;  %2340 = vmatpush3.bf16.msra.mxu1 %v2355_v6  ;;  %v2388_v39 = vld [vmem:[%s2479_s26 + $0x78] sm:$0xff]   ;;  %v2390_v41 = vld [vmem:[%s2479_s26 + $0x80] sm:$0xff]   ;;  %v2392_v43 = vld [vmem:[%s2479_s26 + $0x88] sm:$0xff]  }
  0x1a   : > { %2201 = vmatprep.subr.bf16.mxu0 %v2356_v7  ;;  %2336 = vmatprep.subr.bf16.mxu1 %v2356_v7  ;;  %v2389_v40 = vld [vmem:[%s2479_s26 + $0x178] sm:$0xff]   ;;  %v2391_v42 = vld [vmem:[%s2479_s26 + $0x180] sm:$0xff]   ;;  %v2393_v44 = vld [vmem:[%s2479_s26 + $0x188] sm:$0xff]  }
  0x1b   : > { %v2394_v45 = vld [vmem:[%s2479_s26 + $0x90] sm:$0xff]   ;;  %v2396_v47 = vld [vmem:[%s2479_s26 + $0x98] sm:$0xff]   ;;  %v2398_v49 = vld [vmem:[%s2479_s26 + $0xa0] sm:$0xff]  }
  0x1c   : > { %v2395_v46 = vld [vmem:[%s2479_s26 + $0x190] sm:$0xff]   ;;  %v2397_v48 = vld [vmem:[%s2479_s26 + $0x198] sm:$0xff]   ;;  %v2399_v50 = vld [vmem:[%s2479_s26 + $0x1a0] sm:$0xff]  }
  0x1d   : > { %2202 = vmatpush3.bf16.msra.mxu0 %v2356_v7  ;;  %2341 = vmatpush3.bf16.msra.mxu1 %v2356_v7  ;;  %v2400_v51 = vld [vmem:[%s2479_s26 + $0xa8] sm:$0xff]   ;;  %v2402_v53 = vld [vmem:[%s2479_s26 + $0xb0] sm:$0xff]   ;;  %v2404_v55 = vld [vmem:[%s2479_s26 + $0xb8] sm:$0xff]  }
  0x1e   : > { %2203 = vmatprep.subr.bf16.mxu0 %v2357_v10  ;;  %2337 = vmatprep.subr.bf16.mxu1 %v2357_v10  ;;  %v2401_v52 = vld [vmem:[%s2479_s26 + $0x1a8] sm:$0xff]   ;;  %v2403_v54 = vld [vmem:[%s2479_s26 + $0x1b0] sm:$0xff]   ;;  %v2405_v56 = vld [vmem:[%s2479_s26 + $0x1b8] sm:$0xff]  }
  0x1f   : > { %v2406_v57 = vld [vmem:[%s2479_s26 + $0xc0] sm:$0xff]   ;;  %v2408_v59 = vld [vmem:[%s2479_s26 + $0xc8] sm:$0xff]   ;;  %v2410_v61 = vld [vmem:[%s2479_s26 + $0xd0] sm:$0xff]  }
  0x20   : > { %v2407_v58 = vld [vmem:[%s2479_s26 + $0x1c0] sm:$0xff]   ;;  %v2409_v60 = vld [vmem:[%s2479_s26 + $0x1c8] sm:$0xff]   ;;  %v2411_v62 = vld [vmem:[%s2479_s26 + $0x1d0] sm:$0xff]  }
  0x21   : > { %2204 = vmatpush3.bf16.msra.mxu0 %v2357_v10  ;;  %2342 = vmatpush3.bf16.msra.mxu1 %v2357_v10  ;;  %v2412_v63 = vld [vmem:[%s2479_s26 + $0xd8] sm:$0xff]   ;;  %v2414_v1 = vld [vmem:[%s2479_s26 + $0xe0] sm:$0xff]   ;;  %v2416_v3 = vld [vmem:[%s2479_s26 + $0xe8] sm:$0xff]  }
  0x22   : > { %v2413_v0 = vld [vmem:[%s2479_s26 + $0x1d8] sm:$0xff]   ;;  %v2415_v2 = vld [vmem:[%s2479_s26 + $0x1e0] sm:$0xff]   ;;  %v2417_v4 = vld [vmem:[%s2479_s26 + $0x1e8] sm:$0xff]  }
  0x23   : > { %v2418_v5 = vld [vmem:[%s2479_s26 + $0xf0] sm:$0xff]   ;;  %v2420_v7 = vld [vmem:[%s2479_s26 + $0xf8] sm:$0xff]  }
  0x24   : > { %2206 = vmatmul.mubr.msk.bf16.vlgmr.msra.gmra.mxu0 %vm668_vm2, %v2360_v11  ;;  %2270 = vmatmul.mubr.msk.bf16.vlgmr.msra.gmra.mxu1 %vm668_vm2, %v2361_v12  ;;  %v2419_v6 = vld [vmem:[%s2479_s26 + $0x1f0] sm:$0xff]   ;;  %v2421_v8 = vld [vmem:[%s2479_s26 + $0x1f8] sm:$0xff]  }
  0x25   : > { %2209 = vmatprep.mubr.msk.bf16.mxu0 %vm668_vm2, %v2362_v13  ;;  %2273 = vmatprep.mubr.msk.bf16.mxu1 %vm668_vm2, %v2363_v14  ;;  %v2615_v13 = vld [vmem:[%s2862_s2] ss:$0 sm:$0xff] }
  0x2c   : > { %2210 = vmatmul.mubr.msk.bf16.gmra.mxu0 %vm668_vm2, %v2364_v15  ;;  %2274 = vmatmul.mubr.msk.bf16.gmra.mxu1 %vm668_vm2, %v2365_v16 }
  0x2d   : > { %2213 = vmatprep.mubr.msk.bf16.mxu0 %vm668_vm2, %v2366_v17  ;;  %2277 = vmatprep.mubr.msk.bf16.mxu1 %vm668_vm2, %v2367_v18 }
  0x34   : > { %2214 = vmatmul.mubr.msk.bf16.gmra.mxu0 %vm668_vm2, %v2368_v19  ;;  %2278 = vmatmul.mubr.msk.bf16.gmra.mxu1 %vm668_vm2, %v2369_v20 }
  0x35   : > { %2217 = vmatprep.mubr.msk.bf16.mxu0 %vm668_vm2, %v2370_v21  ;;  %2281 = vmatprep.mubr.msk.bf16.mxu1 %vm668_vm2, %v2371_v22 }
  0x3c   : > { %2218 = vmatmul.mubr.msk.bf16.gmra.mxu0 %vm668_vm2, %v2372_v23  ;;  %2282 = vmatmul.mubr.msk.bf16.gmra.mxu1 %vm668_vm2, %v2373_v24 }
  0x3d   : > { %2221 = vmatprep.mubr.msk.bf16.mxu0 %vm668_vm2, %v2374_v25  ;;  %2285 = vmatprep.mubr.msk.bf16.mxu1 %vm668_vm2, %v2375_v26 }
  0x44   : > { %2222 = vmatmul.mubr.msk.bf16.gmra.mxu0 %vm668_vm2, %v2376_v27  ;;  %2286 = vmatmul.mubr.msk.bf16.gmra.mxu1 %vm668_vm2, %v2377_v28 }
  0x45   : > { %2225 = vmatprep.mubr.msk.bf16.mxu0 %vm668_vm2, %v2378_v29  ;;  %2289 = vmatprep.mubr.msk.bf16.mxu1 %vm668_vm2, %v2379_v30 }
  0x4c   : > { %2226 = vmatmul.mubr.msk.bf16.gmra.mxu0 %vm668_vm2, %v2380_v31  ;;  %2290 = vmatmul.mubr.msk.bf16.gmra.mxu1 %vm668_vm2, %v2381_v32 }
  0x4d   : > { %2229 = vmatprep.mubr.msk.bf16.mxu0 %vm668_vm2, %v2382_v33  ;;  %2293 = vmatprep.mubr.msk.bf16.mxu1 %vm668_vm2, %v2383_v34 }
  0x54   : > { %2230 = vmatmul.mubr.msk.bf16.gmra.mxu0 %vm668_vm2, %v2384_v35  ;;  %2294 = vmatmul.mubr.msk.bf16.gmra.mxu1 %vm668_vm2, %v2385_v36 }
  0x55   : > { %2233 = vmatprep.mubr.msk.bf16.mxu0 %vm668_vm2, %v2386_v37  ;;  %2297 = vmatprep.mubr.msk.bf16.mxu1 %vm668_vm2, %v2387_v38 }
  0x5c   : > { %2234 = vmatmul.mubr.msk.bf16.gmra.mxu0 %vm668_vm2, %v2388_v39  ;;  %2298 = vmatmul.mubr.msk.bf16.gmra.mxu1 %vm668_vm2, %v2389_v40 }
  0x5d   : > { %2237 = vmatprep.mubr.msk.bf16.mxu0 %vm668_vm2, %v2390_v41  ;;  %2301 = vmatprep.mubr.msk.bf16.mxu1 %vm668_vm2, %v2391_v42 }
  0x64   : > { %2238 = vmatmul.mubr.msk.bf16.gmra.mxu0 %vm668_vm2, %v2392_v43  ;;  %2302 = vmatmul.mubr.msk.bf16.gmra.mxu1 %vm668_vm2, %v2393_v44 }
  0x65   : > { %2241 = vmatprep.mubr.msk.bf16.mxu0 %vm668_vm2, %v2394_v45  ;;  %2305 = vmatprep.mubr.msk.bf16.mxu1 %vm668_vm2, %v2395_v46 }
  0x6c   : > { %2242 = vmatmul.mubr.msk.bf16.gmra.mxu0 %vm668_vm2, %v2396_v47  ;;  %2306 = vmatmul.mubr.msk.bf16.gmra.mxu1 %vm668_vm2, %v2397_v48 }
  0x6d   : > { %2245 = vmatprep.mubr.msk.bf16.mxu0 %vm668_vm2, %v2398_v49  ;;  %2309 = vmatprep.mubr.msk.bf16.mxu1 %vm668_vm2, %v2399_v50 }
  0x74   : > { %2246 = vmatmul.mubr.msk.bf16.gmra.mxu0 %vm668_vm2, %v2400_v51  ;;  %2310 = vmatmul.mubr.msk.bf16.gmra.mxu1 %vm668_vm2, %v2401_v52 }
  0x75   : > { %2249 = vmatprep.mubr.msk.bf16.mxu0 %vm668_vm2, %v2402_v53  ;;  %2313 = vmatprep.mubr.msk.bf16.mxu1 %vm668_vm2, %v2403_v54 }
  0x7c   : > { %2250 = vmatmul.mubr.msk.bf16.gmra.mxu0 %vm668_vm2, %v2404_v55  ;;  %2314 = vmatmul.mubr.msk.bf16.gmra.mxu1 %vm668_vm2, %v2405_v56 }
  0x7d   : > { %2253 = vmatprep.mubr.msk.bf16.mxu0 %vm668_vm2, %v2406_v57  ;;  %2317 = vmatprep.mubr.msk.bf16.mxu1 %vm668_vm2, %v2407_v58 }
  0x84   : > { %2254 = vmatmul.mubr.msk.bf16.gmra.mxu0 %vm668_vm2, %v2408_v59  ;;  %2318 = vmatmul.mubr.msk.bf16.gmra.mxu1 %vm668_vm2, %v2409_v60 }
  0x85   : > { %2257 = vmatprep.mubr.msk.bf16.mxu0 %vm668_vm2, %v2410_v61  ;;  %2321 = vmatprep.mubr.msk.bf16.mxu1 %vm668_vm2, %v2411_v62 }
  0x8c   : > { %2258 = vmatmul.mubr.msk.bf16.gmra.mxu0 %vm668_vm2, %v2412_v63  ;;  %2322 = vmatmul.mubr.msk.bf16.gmra.mxu1 %vm668_vm2, %v2413_v0 }
  0x8d   : > { %2261 = vmatprep.mubr.msk.bf16.mxu0 %vm668_vm2, %v2414_v1  ;;  %2325 = vmatprep.mubr.msk.bf16.mxu1 %vm668_vm2, %v2415_v2 }
  0x94   : > { %2262 = vmatmul.mubr.msk.bf16.gmra.mxu0 %vm668_vm2, %v2416_v3  ;;  %2326 = vmatmul.mubr.msk.bf16.gmra.mxu1 %vm668_vm2, %v2417_v4 }
  0x95   : > { %2265 = vmatprep.mubr.msk.bf16.mxu0 %vm668_vm2, %v2418_v5  ;;  %2329 = vmatprep.mubr.msk.bf16.mxu1 %vm668_vm2, %v2419_v6 }
  0x9c   : > { %2266 = vmatmul.mubr.msk.bf16.gmra.mxu0 %vm668_vm2, %v2420_v7  ;;  %2330 = vmatmul.mubr.msk.bf16.gmra.mxu1 %vm668_vm2, %v2421_v8 }
  0xe4   : > { %v2207_v9 = vpop.f32.mrf.mxu0  ;;  %v2271_v10 = vpop.f32.mrf.mxu1 }
  0xe5   : > { %v911_v16 = vadd.f32 %v2207_v9, %v2615_v13  ;;  %v1167_v17 = vadd.f32 %v2271_v10, %v2615_v13 }
  0xe6   : > { %v902_v11 = vpop.f32.mrf.mxu0  ;;  %v1158_v12 = vpop.f32.mrf.mxu1 }
  0xe7   : > { %v903_v18 = vadd.f32 %v2615_v13, %v902_v11  ;;  %v1159_v19 = vadd.f32 %v2615_v13, %v1158_v12  ;;  %v1415_v26 = vmax.f32 %v911_v16, 0.0  ;;  %v1479_v27 = vmax.f32 %v1167_v17, 0.0 }
  0xe8   : > { %v2208_v14 = vpop.f32.mrf.mxu0  ;;  %v2272_v15 = vpop.f32.mrf.mxu1 }
  0xe9   : > { %v1413_v28 = vmax.f32 %v903_v18, 0.0  ;;  %v1477_v29 = vmax.f32 %v1159_v19, 0.0  ;;  %v914_v36 = vadd.f32 %v2208_v14, %v2615_v13  ;;  %v1170_v37 = vadd.f32 %v2272_v15, %v2615_v13 }
  0xea   : > { %v905_v20 = vpop.f32.mrf.mxu0  ;;  %v1161_v21 = vpop.f32.mrf.mxu1 }
  0xeb   : > { %v906_v38 = vadd.f32 %v2615_v13, %v905_v20  ;;  %v1162_v39 = vadd.f32 %v2615_v13, %v1161_v21  ;;  %v1416_v54 = vmax.f32 %v914_v36, 0.0  ;;  %v1480_v55 = vmax.f32 %v1170_v37, 0.0 }
  0xec   : > { %v2211_v22 = vpop.f32.mrf.mxu0  ;;  %v2275_v23 = vpop.f32.mrf.mxu1 }
  0xed   : > { %v927_v24 = vadd.f32 %v2211_v22, %v2615_v13  ;;  %v1183_v25 = vadd.f32 %v2275_v23, %v2615_v13  ;;  %v1414_v60 = vmax.f32 %v906_v38, 0.0  ;;  %v1478_v61 = vmax.f32 %v1162_v39, 0.0 }
  0xee   : > { %v918_v30 = vpop.f32.mrf.mxu0  ;;  %v1174_v31 = vpop.f32.mrf.mxu1 }
  0xef   : > { %v1419_v32 = vmax.f32 %v927_v24, 0.0  ;;  %v1483_v33 = vmax.f32 %v1183_v25, 0.0  ;;  %v919_v34 = vadd.f32 %v2615_v13, %v918_v30  ;;  %v1175_v35 = vadd.f32 %v2615_v13, %v1174_v31 }
  0xf0   : > { %v2212_v40 = vpop.f32.mrf.mxu0  ;;  %v2276_v41 = vpop.f32.mrf.mxu1 }
  0xf1   : > { %v1543_v42 = vmax.f32 %v1415_v26, %v1419_v32  ;;  %v1575_v43 = vmax.f32 %v1479_v27, %v1483_v33  ;;  %v1417_v44 = vmax.f32 %v919_v34, 0.0  ;;  %v1481_v45 = vmax.f32 %v1175_v35, 0.0 }
  0xf2   : > { %v930_v46 = vadd.f32 %v2212_v40, %v2615_v13  ;;  %v1186_v47 = vadd.f32 %v2276_v41, %v2615_v13  ;;  %v921_v48 = vpop.f32.mrf.mxu0  ;;  %v1177_v49 = vpop.f32.mrf.mxu1 }
  0xf3   : > { %1608 = vst.msk [vmem:[#allocation2 + $0x10] sm:$0xff] %vm1605_vm3, %v1543_v42  ;;  %1640 = vst.msk [vmem:[#allocation2 + $0x110] sm:$0xff] %vm1605_vm3, %v1575_v43  ;;  %v1541_v50 = vmax.f32 %v1413_v28, %v1417_v44  ;;  %v1573_v51 = vmax.f32 %v1477_v29, %v1481_v45  ;;  %v922_v52 = vadd.f32 %v2615_v13, %v921_v48 }
  0xf4   : > { %v1178_v53 = vadd.f32 %v2615_v13, %v1177_v49  ;;  %v1420_v56 = vmax.f32 %v930_v46, 0.0  ;;  %v1484_v57 = vmax.f32 %v1186_v47, 0.0  ;;  %v2215_v58 = vpop.f32.mrf.mxu0  ;;  %v2279_v59 = vpop.f32.mrf.mxu1 }
  0xf5   : > { %1606 = vst.msk [vmem:[#allocation2] sm:$0xff] %vm1605_vm3, %v1541_v50  ;;  %1638 = vst.msk [vmem:[#allocation2 + $0x100] sm:$0xff] %vm1605_vm3, %v1573_v51  ;;  %v1418_v62 = vmax.f32 %v922_v52, 0.0  ;;  %v943_v8 = vadd.f32 %v2215_v58, %v2615_v13  ;;  %v1199_v9 = vadd.f32 %v2279_v59, %v2615_v13 }
  0xf6   : > { %v1482_v63 = vmax.f32 %v1178_v53, 0.0  ;;  %v1544_v0 = vmax.f32 %v1416_v54, %v1420_v56  ;;  %v1576_v1 = vmax.f32 %v1480_v55, %v1484_v57  ;;  %v934_v2 = vpop.f32.mrf.mxu0  ;;  %v1190_v3 = vpop.f32.mrf.mxu1 }
  0xf7   : > { %v1542_v4 = vmax.f32 %v1414_v60, %v1418_v62  ;;  %v935_v12 = vadd.f32 %v2615_v13, %v934_v2  ;;  %v1191_v14 = vadd.f32 %v2615_v13, %v1190_v3  ;;  %v1423_v19 = vmax.f32 %v943_v8, 0.0 }
  0xf8   : > { %v1574_v5 = vmax.f32 %v1478_v61, %v1482_v63  ;;  %1609 = vst.msk [vmem:[#allocation2 + $0x18] sm:$0xff] %vm1605_vm3, %v1544_v0  ;;  %1641 = vst.msk [vmem:[#allocation2 + $0x118] sm:$0xff] %vm1605_vm3, %v1576_v1  ;;  %v2216_v6 = vpop.f32.mrf.mxu0  ;;  %v2280_v7 = vpop.f32.mrf.mxu1  ;;  %v1487_v20 = vmax.f32 %v1199_v9, 0.0 }
  0xf9   : > { %1607 = vst.msk [vmem:[#allocation2 + $0x8] sm:$0xff] %vm1605_vm3, %v1542_v4  ;;  %v946_v21 = vadd.f32 %v2216_v6, %v2615_v13  ;;  %v1202_v22 = vadd.f32 %v2280_v7, %v2615_v13  ;;  %v1421_v29 = vmax.f32 %v935_v12, 0.0  ;;  %v1485_v30 = vmax.f32 %v1191_v14, 0.0 }
  0xfa   : > { %1639 = vst.msk [vmem:[#allocation2 + $0x108] sm:$0xff] %vm1605_vm3, %v1574_v5  ;;  %v937_v10 = vpop.f32.mrf.mxu0  ;;  %v1193_v11 = vpop.f32.mrf.mxu1 }
  0xfb   : > { %v938_v31 = vadd.f32 %v2615_v13, %v937_v10  ;;  %v1194_v32 = vadd.f32 %v2615_v13, %v1193_v11  ;;  %v1424_v52 = vmax.f32 %v946_v21, 0.0  ;;  %v1488_v53 = vmax.f32 %v1202_v22, 0.0 }
  0xfc   : > { %v2219_v15 = vpop.f32.mrf.mxu0  ;;  %v2283_v16 = vpop.f32.mrf.mxu1 }
  0xfd   : > { %v959_v17 = vadd.f32 %v2219_v15, %v2615_v13  ;;  %v1215_v18 = vadd.f32 %v2283_v16, %v2615_v13  ;;  %v1422_v58 = vmax.f32 %v938_v31, 0.0  ;;  %v1486_v59 = vmax.f32 %v1194_v32, 0.0 }
  0xfe   : > { %v950_v23 = vpop.f32.mrf.mxu0  ;;  %v1206_v24 = vpop.f32.mrf.mxu1 }
  0xff   : > { %v1427_v25 = vmax.f32 %v959_v17, 0.0  ;;  %v1491_v26 = vmax.f32 %v1215_v18, 0.0  ;;  %v951_v27 = vadd.f32 %v2615_v13, %v950_v23  ;;  %v1207_v28 = vadd.f32 %v2615_v13, %v1206_v24 }
 0x100   : > { %v2220_v33 = vpop.f32.mrf.mxu0  ;;  %v2284_v34 = vpop.f32.mrf.mxu1  ;;  %v1750_v35 = vld [vmem:[#allocation2 + $0x2] ss:$4 sm:$0xff]  ;;  %v1782_v36 = vld [vmem:[#allocation2 + $0x3] ss:$4 sm:$0xff] }
 0x101   : > { %v1547_v37 = vmax.f32 %v1423_v19, %v1427_v25  ;;  %v1579_v38 = vmax.f32 %v1487_v20, %v1491_v26  ;;  %v1425_v39 = vmax.f32 %v951_v27, 0.0  ;;  %v1489_v40 = vmax.f32 %v1207_v28, 0.0  ;;  %v1766_v50 = vld [vmem:[#allocation2 + $0x102] ss:$4 sm:$0xff]  ;;  %v1798_v51 = vld [vmem:[#allocation2 + $0x103] ss:$4 sm:$0xff] }
 0x102   : > { %v962_v41 = vadd.f32 %v2220_v33, %v2615_v13  ;;  %v1218_v42 = vadd.f32 %v2284_v34, %v2615_v13  ;;  %v953_v43 = vpop.f32.mrf.mxu0  ;;  %v1209_v44 = vpop.f32.mrf.mxu1  ;;  %v1813_v45 = vmax.f32 %v1750_v35, %v1782_v36  ;;  %v1821_v2 = vmax.f32 %v1766_v50, %v1798_v51 }
 0x103   : > { %1612 = vst.msk [vmem:[#allocation2 + $0x30] sm:$0xff] %vm1605_vm3, %v1547_v37  ;;  %1644 = vst.msk [vmem:[#allocation2 + $0x130] sm:$0xff] %vm1605_vm3, %v1579_v38  ;;  %v1545_v46 = vmax.f32 %v1421_v29, %v1425_v39  ;;  %v1577_v47 = vmax.f32 %v1485_v30, %v1489_v40  ;;  %v954_v48 = vadd.f32 %v2615_v13, %v953_v43 }
 0x104   : > { %v1210_v49 = vadd.f32 %v2615_v13, %v1209_v44  ;;  %v1428_v54 = vmax.f32 %v962_v41, 0.0  ;;  %v1492_v55 = vmax.f32 %v1218_v42, 0.0  ;;  %1845 = vrot.lane.b32.xlu0 %v1813_v45, %s2432_s4  ;;  %v2223_v56 = vpop.f32.mrf.mxu0  ;;  %v2287_v57 = vpop.f32.mrf.mxu1 }
 0x105   : > { %1610 = vst.msk [vmem:[#allocation2 + $0x20] sm:$0xff] %vm1605_vm3, %v1545_v46  ;;  %1642 = vst.msk [vmem:[#allocation2 + $0x120] sm:$0xff] %vm1605_vm3, %v1577_v47  ;;  %v1426_v60 = vmax.f32 %v954_v48, 0.0  ;;  %v975_v7 = vadd.f32 %v2223_v56, %v2615_v13  ;;  %v1231_v8 = vadd.f32 %v2287_v57, %v2615_v13 }
 0x106   : > { %v1490_v61 = vmax.f32 %v1210_v49, 0.0  ;;  %v1548_v62 = vmax.f32 %v1424_v52, %v1428_v54  ;;  %v1580_v63 = vmax.f32 %v1488_v53, %v1492_v55  ;;  %v966_v0 = vpop.f32.mrf.mxu0  ;;  %v1222_v1 = vpop.f32.mrf.mxu1 }
 0x107   : > { %v1546_v3 = vmax.f32 %v1422_v58, %v1426_v60  ;;  %v967_v9 = vadd.f32 %v2615_v13, %v966_v0  ;;  %v1223_v10 = vadd.f32 %v2615_v13, %v1222_v1  ;;  %v1431_v18 = vmax.f32 %v975_v7, 0.0 }
 0x108   : > { %v1578_v4 = vmax.f32 %v1486_v59, %v1490_v61  ;;  %1613 = vst.msk [vmem:[#allocation2 + $0x38] sm:$0xff] %vm1605_vm3, %v1548_v62  ;;  %1645 = vst.msk [vmem:[#allocation2 + $0x138] sm:$0xff] %vm1605_vm3, %v1580_v63  ;;  %1861 = vrot.lane.b32.xlu0 %v1821_v2, %s2432_s4  ;;  %v2224_v5 = vpop.f32.mrf.mxu0  ;;  %v2288_v6 = vpop.f32.mrf.mxu1  ;;  %v1495_v19 = vmax.f32 %v1231_v8, 0.0 }
 0x109   : > { %1611 = vst.msk [vmem:[#allocation2 + $0x28] sm:$0xff] %vm1605_vm3, %v1546_v3  ;;  %v1429_v20 = vmax.f32 %v967_v9, 0.0  ;;  %v1493_v21 = vmax.f32 %v1223_v10, 0.0  ;;  %v978_v28 = vadd.f32 %v2224_v5, %v2615_v13  ;;  %v1234_v29 = vadd.f32 %v2288_v6, %v2615_v13 }
 0x10a   : > { %1643 = vst.msk [vmem:[#allocation2 + $0x128] sm:$0xff] %vm1605_vm3, %v1578_v4  ;;  %v969_v11 = vpop.f32.mrf.mxu0  ;;  %v1225_v12 = vpop.f32.mrf.mxu1 }
 0x10b   : > { %v970_v30 = vadd.f32 %v2615_v13, %v969_v11  ;;  %v1226_v31 = vadd.f32 %v2615_v13, %v1225_v12  ;;  %v1432_v52 = vmax.f32 %v978_v28, 0.0  ;;  %v1496_v53 = vmax.f32 %v1234_v29, 0.0 }
 0x10c   : > { %v2227_v14 = vpop.f32.mrf.mxu0  ;;  %v2291_v15 = vpop.f32.mrf.mxu1 }
 0x10d   : > { %v991_v16 = vadd.f32 %v2227_v14, %v2615_v13  ;;  %v1247_v17 = vadd.f32 %v2291_v15, %v2615_v13  ;;  %v1430_v58 = vmax.f32 %v970_v30, 0.0  ;;  %v1494_v59 = vmax.f32 %v1226_v31, 0.0 }
 0x10e   : > { %v982_v22 = vpop.f32.mrf.mxu0  ;;  %v1238_v23 = vpop.f32.mrf.mxu1 }
 0x10f   : > { %v1435_v24 = vmax.f32 %v991_v16, 0.0  ;;  %v1499_v25 = vmax.f32 %v1247_v17, 0.0  ;;  %v983_v26 = vadd.f32 %v2615_v13, %v982_v22  ;;  %v1239_v27 = vadd.f32 %v2615_v13, %v1238_v23 }
 0x110   : > { %v2228_v32 = vpop.f32.mrf.mxu0  ;;  %v2292_v33 = vpop.f32.mrf.mxu1  ;;  %v1752_v36 = vld [vmem:[#allocation2 + $0x22] ss:$4 sm:$0xff]  ;;  %v1784_v41 = vld [vmem:[#allocation2 + $0x23] ss:$4 sm:$0xff] }
 0x111   : > { %v1768_v34 = vld [vmem:[#allocation2 + $0x122] ss:$4 sm:$0xff]  ;;  %v1800_v35 = vld [vmem:[#allocation2 + $0x123] ss:$4 sm:$0xff]  ;;  %v1551_v37 = vmax.f32 %v1431_v18, %v1435_v24  ;;  %v1583_v38 = vmax.f32 %v1495_v19, %v1499_v25  ;;  %v1433_v39 = vmax.f32 %v983_v26, 0.0  ;;  %v1497_v40 = vmax.f32 %v1239_v27, 0.0 }
 0x112   : > { %v994_v42 = vadd.f32 %v2228_v32, %v2615_v13  ;;  %v1250_v43 = vadd.f32 %v2292_v33, %v2615_v13  ;;  %v985_v44 = vpop.f32.mrf.mxu0  ;;  %v1241_v45 = vpop.f32.mrf.mxu1  ;;  %v1822_v46 = vmax.f32 %v1768_v34, %v1800_v35  ;;  %v1814_v47 = vmax.f32 %v1752_v36, %v1784_v41 }
 0x113   : > { %1616 = vst.msk [vmem:[#allocation2 + $0x50] sm:$0xff] %vm1605_vm3, %v1551_v37  ;;  %1648 = vst.msk [vmem:[#allocation2 + $0x150] sm:$0xff] %vm1605_vm3, %v1583_v38  ;;  %v1549_v48 = vmax.f32 %v1429_v20, %v1433_v39  ;;  %v1581_v49 = vmax.f32 %v1493_v21, %v1497_v40  ;;  %v986_v50 = vadd.f32 %v2615_v13, %v985_v44 }
 0x114   : > { %v1242_v51 = vadd.f32 %v2615_v13, %v1241_v45  ;;  %v1436_v54 = vmax.f32 %v994_v42, 0.0  ;;  %v1500_v55 = vmax.f32 %v1250_v43, 0.0  ;;  %1863 = vrot.lane.b32.xlu1 %v1822_v46, %s2432_s4  ;;  %1847 = vrot.lane.b32.xlu0 %v1814_v47, %s2432_s4  ;;  %v2231_v56 = vpop.f32.mrf.mxu0  ;;  %v2295_v57 = vpop.f32.mrf.mxu1 }
 0x115   : > { %1614 = vst.msk [vmem:[#allocation2 + $0x40] sm:$0xff] %vm1605_vm3, %v1549_v48  ;;  %1646 = vst.msk [vmem:[#allocation2 + $0x140] sm:$0xff] %vm1605_vm3, %v1581_v49  ;;  %v1434_v60 = vmax.f32 %v986_v50, 0.0  ;;  %v1007_v6 = vadd.f32 %v2231_v56, %v2615_v13  ;;  %v1263_v7 = vadd.f32 %v2295_v57, %v2615_v13 }
 0x116   : > { %v1498_v61 = vmax.f32 %v1242_v51, 0.0  ;;  %v1552_v62 = vmax.f32 %v1432_v52, %v1436_v54  ;;  %v1584_v63 = vmax.f32 %v1496_v53, %v1500_v55  ;;  %v998_v0 = vpop.f32.mrf.mxu0  ;;  %v1254_v1 = vpop.f32.mrf.mxu1 }
 0x117   : > { %v1550_v2 = vmax.f32 %v1430_v58, %v1434_v60  ;;  %v999_v8 = vadd.f32 %v2615_v13, %v998_v0  ;;  %v1255_v9 = vadd.f32 %v2615_v13, %v1254_v1  ;;  %v1439_v17 = vmax.f32 %v1007_v6, 0.0 }
 0x118   : > { %v1582_v3 = vmax.f32 %v1494_v59, %v1498_v61  ;;  %1617 = vst.msk [vmem:[#allocation2 + $0x58] sm:$0xff] %vm1605_vm3, %v1552_v62  ;;  %1649 = vst.msk [vmem:[#allocation2 + $0x158] sm:$0xff] %vm1605_vm3, %v1584_v63  ;;  %v2232_v4 = vpop.f32.mrf.mxu0  ;;  %v2296_v5 = vpop.f32.mrf.mxu1  ;;  %v1503_v18 = vmax.f32 %v1263_v7, 0.0 }
 0x119   : > { %1615 = vst.msk [vmem:[#allocation2 + $0x48] sm:$0xff] %vm1605_vm3, %v1550_v2  ;;  %v1437_v19 = vmax.f32 %v999_v8, 0.0  ;;  %v1501_v20 = vmax.f32 %v1255_v9, 0.0  ;;  %v1010_v27 = vadd.f32 %v2232_v4, %v2615_v13  ;;  %v1266_v28 = vadd.f32 %v2296_v5, %v2615_v13 }
 0x11a   : > { %1647 = vst.msk [vmem:[#allocation2 + $0x148] sm:$0xff] %vm1605_vm3, %v1582_v3  ;;  %v1001_v10 = vpop.f32.mrf.mxu0  ;;  %v1257_v11 = vpop.f32.mrf.mxu1 }
 0x11b   : > { %v1002_v29 = vadd.f32 %v2615_v13, %v1001_v10  ;;  %v1258_v30 = vadd.f32 %v2615_v13, %v1257_v11  ;;  %v1440_v51 = vmax.f32 %v1010_v27, 0.0  ;;  %v1504_v52 = vmax.f32 %v1266_v28, 0.0 }
 0x11c   : > { %v2235_v12 = vpop.f32.mrf.mxu0  ;;  %v2299_v14 = vpop.f32.mrf.mxu1 }
 0x11d   : > { %v1023_v15 = vadd.f32 %v2235_v12, %v2615_v13  ;;  %v1279_v16 = vadd.f32 %v2299_v14, %v2615_v13  ;;  %v1438_v57 = vmax.f32 %v1002_v29, 0.0  ;;  %v1502_v58 = vmax.f32 %v1258_v30, 0.0 }
 0x11e   : > { %v1014_v21 = vpop.f32.mrf.mxu0  ;;  %v1270_v22 = vpop.f32.mrf.mxu1 }
 0x11f   : > { %v1443_v23 = vmax.f32 %v1023_v15, 0.0  ;;  %v1507_v24 = vmax.f32 %v1279_v16, 0.0  ;;  %v1015_v25 = vadd.f32 %v2615_v13, %v1014_v21  ;;  %v1271_v26 = vadd.f32 %v2615_v13, %v1270_v22 }
 0x120   : > { %v2236_v31 = vpop.f32.mrf.mxu0  ;;  %v2300_v32 = vpop.f32.mrf.mxu1  ;;  %v1754_v33 = vld [vmem:[#allocation2 + $0x42] ss:$4 sm:$0xff]  ;;  %v1786_v34 = vld [vmem:[#allocation2 + $0x43] ss:$4 sm:$0xff] }
 0x121   : > { %v1770_v35 = vld [vmem:[#allocation2 + $0x142] ss:$4 sm:$0xff]  ;;  %v1555_v36 = vmax.f32 %v1439_v17, %v1443_v23  ;;  %v1587_v37 = vmax.f32 %v1503_v18, %v1507_v24  ;;  %v1441_v38 = vmax.f32 %v1015_v25, 0.0  ;;  %v1505_v39 = vmax.f32 %v1271_v26, 0.0  ;;  %v1802_v40 = vld [vmem:[#allocation2 + $0x143] ss:$4 sm:$0xff] }
 0x122   : > { %v1026_v41 = vadd.f32 %v2236_v31, %v2615_v13  ;;  %v1282_v42 = vadd.f32 %v2300_v32, %v2615_v13  ;;  %v1017_v43 = vpop.f32.mrf.mxu0  ;;  %v1273_v44 = vpop.f32.mrf.mxu1  ;;  %v1815_v45 = vmax.f32 %v1754_v33, %v1786_v34  ;;  %v1823_v46 = vmax.f32 %v1770_v35, %v1802_v40 }
 0x123   : > { %1620 = vst.msk [vmem:[#allocation2 + $0x70] sm:$0xff] %vm1605_vm3, %v1555_v36  ;;  %1652 = vst.msk [vmem:[#allocation2 + $0x170] sm:$0xff] %vm1605_vm3, %v1587_v37  ;;  %v1553_v47 = vmax.f32 %v1437_v19, %v1441_v38  ;;  %v1585_v48 = vmax.f32 %v1501_v20, %v1505_v39  ;;  %v1018_v49 = vadd.f32 %v2615_v13, %v1017_v43 }
 0x124   : > { %v1274_v50 = vadd.f32 %v2615_v13, %v1273_v44  ;;  %v1444_v53 = vmax.f32 %v1026_v41, 0.0  ;;  %v1508_v54 = vmax.f32 %v1282_v42, 0.0  ;;  %1849 = vrot.lane.b32.xlu1 %v1815_v45, %s2432_s4  ;;  %1865 = vrot.lane.b32.xlu0 %v1823_v46, %s2432_s4  ;;  %v2239_v55 = vpop.f32.mrf.mxu0  ;;  %v2303_v56 = vpop.f32.mrf.mxu1 }
 0x125   : > { %1618 = vst.msk [vmem:[#allocation2 + $0x60] sm:$0xff] %vm1605_vm3, %v1553_v47  ;;  %1650 = vst.msk [vmem:[#allocation2 + $0x160] sm:$0xff] %vm1605_vm3, %v1585_v48  ;;  %v1442_v59 = vmax.f32 %v1018_v49, 0.0  ;;  %v1039_v5 = vadd.f32 %v2239_v55, %v2615_v13  ;;  %v1295_v6 = vadd.f32 %v2303_v56, %v2615_v13 }
 0x126   : > { %v1506_v60 = vmax.f32 %v1274_v50, 0.0  ;;  %v1556_v61 = vmax.f32 %v1440_v51, %v1444_v53  ;;  %v1588_v62 = vmax.f32 %v1504_v52, %v1508_v54  ;;  %v1030_v63 = vpop.f32.mrf.mxu0  ;;  %v1286_v0 = vpop.f32.mrf.mxu1 }
 0x127   : > { %v1554_v1 = vmax.f32 %v1438_v57, %v1442_v59  ;;  %v1031_v9 = vadd.f32 %v2615_v13, %v1030_v63  ;;  %v1287_v10 = vadd.f32 %v2615_v13, %v1286_v0  ;;  %v1447_v16 = vmax.f32 %v1039_v5, 0.0 }
 0x128   : > { %v1586_v2 = vmax.f32 %v1502_v58, %v1506_v60  ;;  %1621 = vst.msk [vmem:[#allocation2 + $0x78] sm:$0xff] %vm1605_vm3, %v1556_v61  ;;  %1653 = vst.msk [vmem:[#allocation2 + $0x178] sm:$0xff] %vm1605_vm3, %v1588_v62  ;;  %v2240_v3 = vpop.f32.mrf.mxu0  ;;  %v2304_v4 = vpop.f32.mrf.mxu1  ;;  %v1511_v17 = vmax.f32 %v1295_v6, 0.0 }
 0x129   : > { %1619 = vst.msk [vmem:[#allocation2 + $0x68] sm:$0xff] %vm1605_vm3, %v1554_v1  ;;  %v1042_v18 = vadd.f32 %v2240_v3, %v2615_v13  ;;  %v1298_v19 = vadd.f32 %v2304_v4, %v2615_v13  ;;  %v1445_v26 = vmax.f32 %v1031_v9, 0.0  ;;  %v1509_v27 = vmax.f32 %v1287_v10, 0.0 }
 0x12a   : > { %1651 = vst.msk [vmem:[#allocation2 + $0x168] sm:$0xff] %vm1605_vm3, %v1586_v2  ;;  %v1033_v7 = vpop.f32.mrf.mxu0  ;;  %v1289_v8 = vpop.f32.mrf.mxu1 }
 0x12b   : > { %v1034_v28 = vadd.f32 %v2615_v13, %v1033_v7  ;;  %v1290_v29 = vadd.f32 %v2615_v13, %v1289_v8  ;;  %v1448_v49 = vmax.f32 %v1042_v18, 0.0  ;;  %v1512_v50 = vmax.f32 %v1298_v19, 0.0 }
 0x12c   : > { %v2243_v11 = vpop.f32.mrf.mxu0  ;;  %v2307_v12 = vpop.f32.mrf.mxu1 }
 0x12d   : > { %v1055_v14 = vadd.f32 %v2243_v11, %v2615_v13  ;;  %v1311_v15 = vadd.f32 %v2307_v12, %v2615_v13  ;;  %v1446_v55 = vmax.f32 %v1034_v28, 0.0  ;;  %v1510_v56 = vmax.f32 %v1290_v29, 0.0 }
 0x12e   : > { %v1046_v20 = vpop.f32.mrf.mxu0  ;;  %v1302_v21 = vpop.f32.mrf.mxu1 }
 0x12f   : > { %v1451_v22 = vmax.f32 %v1055_v14, 0.0  ;;  %v1515_v23 = vmax.f32 %v1311_v15, 0.0  ;;  %v1047_v24 = vadd.f32 %v2615_v13, %v1046_v20  ;;  %v1303_v25 = vadd.f32 %v2615_v13, %v1302_v21 }
 0x130   : > { %v2244_v30 = vpop.f32.mrf.mxu0  ;;  %v2308_v31 = vpop.f32.mrf.mxu1  ;;  %v1756_v32 = vld [vmem:[#allocation2 + $0x62] ss:$4 sm:$0xff]  ;;  %v1788_v33 = vld [vmem:[#allocation2 + $0x63] ss:$4 sm:$0xff] }
 0x131   : > { %v1559_v34 = vmax.f32 %v1447_v16, %v1451_v22  ;;  %v1591_v35 = vmax.f32 %v1511_v17, %v1515_v23  ;;  %v1449_v36 = vmax.f32 %v1047_v24, 0.0  ;;  %v1513_v37 = vmax.f32 %v1303_v25, 0.0  ;;  %v1772_v47 = vld [vmem:[#allocation2 + $0x162] ss:$4 sm:$0xff]  ;;  %v1804_v48 = vld [vmem:[#allocation2 + $0x163] ss:$4 sm:$0xff] }
 0x132   : > { %v1058_v38 = vadd.f32 %v2244_v30, %v2615_v13  ;;  %v1314_v39 = vadd.f32 %v2308_v31, %v2615_v13  ;;  %v1049_v40 = vpop.f32.mrf.mxu0  ;;  %v1305_v41 = vpop.f32.mrf.mxu1  ;;  %v1816_v42 = vmax.f32 %v1756_v32, %v1788_v33  ;;  %v1824_v63 = vmax.f32 %v1772_v47, %v1804_v48 }
 0x133   : > { %1624 = vst.msk [vmem:[#allocation2 + $0x90] sm:$0xff] %vm1605_vm3, %v1559_v34  ;;  %1656 = vst.msk [vmem:[#allocation2 + $0x190] sm:$0xff] %vm1605_vm3, %v1591_v35  ;;  %v1557_v43 = vmax.f32 %v1445_v26, %v1449_v36  ;;  %v1589_v44 = vmax.f32 %v1509_v27, %v1513_v37  ;;  %v1050_v45 = vadd.f32 %v2615_v13, %v1049_v40 }
 0x134   : > { %v1306_v46 = vadd.f32 %v2615_v13, %v1305_v41  ;;  %v1452_v51 = vmax.f32 %v1058_v38, 0.0  ;;  %v1516_v52 = vmax.f32 %v1314_v39, 0.0  ;;  %1851 = vrot.lane.b32.xlu1 %v1816_v42, %s2432_s4  ;;  %v2247_v53 = vpop.f32.mrf.mxu0  ;;  %v2311_v54 = vpop.f32.mrf.mxu1 }
 0x135   : > { %1622 = vst.msk [vmem:[#allocation2 + $0x80] sm:$0xff] %vm1605_vm3, %v1557_v43  ;;  %1654 = vst.msk [vmem:[#allocation2 + $0x180] sm:$0xff] %vm1605_vm3, %v1589_v44  ;;  %v1450_v57 = vmax.f32 %v1050_v45, 0.0  ;;  %v1071_v4 = vadd.f32 %v2247_v53, %v2615_v13  ;;  %v1327_v5 = vadd.f32 %v2311_v54, %v2615_v13 }
 0x136   : > { %v1514_v58 = vmax.f32 %v1306_v46, 0.0  ;;  %v1560_v59 = vmax.f32 %v1448_v49, %v1452_v51  ;;  %v1592_v60 = vmax.f32 %v1512_v50, %v1516_v52  ;;  %v1062_v61 = vpop.f32.mrf.mxu0  ;;  %v1318_v62 = vpop.f32.mrf.mxu1 }
 0x137   : > { %v1558_v0 = vmax.f32 %v1446_v55, %v1450_v57  ;;  %v1063_v8 = vadd.f32 %v2615_v13, %v1062_v61  ;;  %v1319_v9 = vadd.f32 %v2615_v13, %v1318_v62  ;;  %v1455_v15 = vmax.f32 %v1071_v4, 0.0 }
 0x138   : > { %v1590_v1 = vmax.f32 %v1510_v56, %v1514_v58  ;;  %1625 = vst.msk [vmem:[#allocation2 + $0x98] sm:$0xff] %vm1605_vm3, %v1560_v59  ;;  %1657 = vst.msk [vmem:[#allocation2 + $0x198] sm:$0xff] %vm1605_vm3, %v1592_v60  ;;  %1867 = vrot.lane.b32.xlu1 %v1824_v63, %s2432_s4  ;;  %v2248_v2 = vpop.f32.mrf.mxu0  ;;  %v2312_v3 = vpop.f32.mrf.mxu1  ;;  %v1519_v16 = vmax.f32 %v1327_v5, 0.0 }
 0x139   : > { %1623 = vst.msk [vmem:[#allocation2 + $0x88] sm:$0xff] %vm1605_vm3, %v1558_v0  ;;  %v1074_v17 = vadd.f32 %v2248_v2, %v2615_v13  ;;  %v1330_v18 = vadd.f32 %v2312_v3, %v2615_v13  ;;  %v1453_v25 = vmax.f32 %v1063_v8, 0.0  ;;  %v1517_v26 = vmax.f32 %v1319_v9, 0.0 }
 0x13a   : > { %1655 = vst.msk [vmem:[#allocation2 + $0x188] sm:$0xff] %vm1605_vm3, %v1590_v1  ;;  %v1065_v6 = vpop.f32.mrf.mxu0  ;;  %v1321_v7 = vpop.f32.mrf.mxu1 }
 0x13b   : > { %v1066_v27 = vadd.f32 %v2615_v13, %v1065_v6  ;;  %v1322_v28 = vadd.f32 %v2615_v13, %v1321_v7  ;;  %v1456_v48 = vmax.f32 %v1074_v17, 0.0  ;;  %v1520_v49 = vmax.f32 %v1330_v18, 0.0 }
 0x13c   : > { %v2251_v10 = vpop.f32.mrf.mxu0  ;;  %v2315_v11 = vpop.f32.mrf.mxu1 }
 0x13d   : > { %v1087_v12 = vadd.f32 %v2251_v10, %v2615_v13  ;;  %v1343_v14 = vadd.f32 %v2315_v11, %v2615_v13  ;;  %v1454_v54 = vmax.f32 %v1066_v27, 0.0  ;;  %v1518_v55 = vmax.f32 %v1322_v28, 0.0 }
 0x13e   : > { %v1078_v19 = vpop.f32.mrf.mxu0  ;;  %v1334_v20 = vpop.f32.mrf.mxu1 }
 0x13f   : > { %v1459_v21 = vmax.f32 %v1087_v12, 0.0  ;;  %v1523_v22 = vmax.f32 %v1343_v14, 0.0  ;;  %v1079_v23 = vadd.f32 %v2615_v13, %v1078_v19  ;;  %v1335_v24 = vadd.f32 %v2615_v13, %v1334_v20 }
 0x140   : > { %v2252_v29 = vpop.f32.mrf.mxu0  ;;  %v2316_v30 = vpop.f32.mrf.mxu1  ;;  %v1758_v31 = vld [vmem:[#allocation2 + $0x82] ss:$4 sm:$0xff]  ;;  %v1790_v32 = vld [vmem:[#allocation2 + $0x83] ss:$4 sm:$0xff] }
 0x141   : > { %v1563_v33 = vmax.f32 %v1455_v15, %v1459_v21  ;;  %v1595_v34 = vmax.f32 %v1519_v16, %v1523_v22  ;;  %v1457_v35 = vmax.f32 %v1079_v23, 0.0  ;;  %v1521_v36 = vmax.f32 %v1335_v24, 0.0  ;;  %v1774_v46 = vld [vmem:[#allocation2 + $0x182] ss:$4 sm:$0xff]  ;;  %v1806_v47 = vld [vmem:[#allocation2 + $0x183] ss:$4 sm:$0xff] }
 0x142   : > { %v1090_v37 = vadd.f32 %v2252_v29, %v2615_v13  ;;  %v1346_v38 = vadd.f32 %v2316_v30, %v2615_v13  ;;  %v1081_v39 = vpop.f32.mrf.mxu0  ;;  %v1337_v40 = vpop.f32.mrf.mxu1  ;;  %v1817_v41 = vmax.f32 %v1758_v31, %v1790_v32  ;;  %v1825_v62 = vmax.f32 %v1774_v46, %v1806_v47 }
 0x143   : > { %1628 = vst.msk [vmem:[#allocation2 + $0xb0] sm:$0xff] %vm1605_vm3, %v1563_v33  ;;  %1660 = vst.msk [vmem:[#allocation2 + $0x1b0] sm:$0xff] %vm1605_vm3, %v1595_v34  ;;  %v1561_v42 = vmax.f32 %v1453_v25, %v1457_v35  ;;  %v1593_v43 = vmax.f32 %v1517_v26, %v1521_v36  ;;  %v1082_v44 = vadd.f32 %v2615_v13, %v1081_v39 }
 0x144   : > { %v1338_v45 = vadd.f32 %v2615_v13, %v1337_v40  ;;  %v1460_v50 = vmax.f32 %v1090_v37, 0.0  ;;  %v1524_v51 = vmax.f32 %v1346_v38, 0.0  ;;  %1853 = vrot.lane.b32.xlu0 %v1817_v41, %s2432_s4  ;;  %v2255_v52 = vpop.f32.mrf.mxu0  ;;  %v2319_v53 = vpop.f32.mrf.mxu1 }
 0x145   : > { %1626 = vst.msk [vmem:[#allocation2 + $0xa0] sm:$0xff] %vm1605_vm3, %v1561_v42  ;;  %1658 = vst.msk [vmem:[#allocation2 + $0x1a0] sm:$0xff] %vm1605_vm3, %v1593_v43  ;;  %v1458_v56 = vmax.f32 %v1082_v44, 0.0  ;;  %v1103_v3 = vadd.f32 %v2255_v52, %v2615_v13  ;;  %v1359_v4 = vadd.f32 %v2319_v53, %v2615_v13 }
 0x146   : > { %v1522_v57 = vmax.f32 %v1338_v45, 0.0  ;;  %v1564_v58 = vmax.f32 %v1456_v48, %v1460_v50  ;;  %v1596_v59 = vmax.f32 %v1520_v49, %v1524_v51  ;;  %v1094_v60 = vpop.f32.mrf.mxu0  ;;  %v1350_v61 = vpop.f32.mrf.mxu1 }
 0x147   : > { %v1562_v63 = vmax.f32 %v1454_v54, %v1458_v56  ;;  %v1095_v7 = vadd.f32 %v2615_v13, %v1094_v60  ;;  %v1351_v8 = vadd.f32 %v2615_v13, %v1350_v61  ;;  %v1463_v14 = vmax.f32 %v1103_v3, 0.0 }
 0x148   : > { %v1594_v0 = vmax.f32 %v1518_v55, %v1522_v57  ;;  %1629 = vst.msk [vmem:[#allocation2 + $0xb8] sm:$0xff] %vm1605_vm3, %v1564_v58  ;;  %1661 = vst.msk [vmem:[#allocation2 + $0x1b8] sm:$0xff] %vm1605_vm3, %v1596_v59  ;;  %1869 = vrot.lane.b32.xlu0 %v1825_v62, %s2432_s4  ;;  %v2256_v1 = vpop.f32.mrf.mxu0  ;;  %v2320_v2 = vpop.f32.mrf.mxu1  ;;  %v1527_v15 = vmax.f32 %v1359_v4, 0.0 }
 0x149   : > { %1627 = vst.msk [vmem:[#allocation2 + $0xa8] sm:$0xff] %vm1605_vm3, %v1562_v63  ;;  %v1106_v16 = vadd.f32 %v2256_v1, %v2615_v13  ;;  %v1362_v17 = vadd.f32 %v2320_v2, %v2615_v13  ;;  %v1461_v24 = vmax.f32 %v1095_v7, 0.0  ;;  %v1525_v25 = vmax.f32 %v1351_v8, 0.0 }
 0x14a   : > { %1659 = vst.msk [vmem:[#allocation2 + $0x1a8] sm:$0xff] %vm1605_vm3, %v1594_v0  ;;  %v1097_v5 = vpop.f32.mrf.mxu0  ;;  %v1353_v6 = vpop.f32.mrf.mxu1 }
 0x14b   : > { %v1098_v26 = vadd.f32 %v2615_v13, %v1097_v5  ;;  %v1354_v27 = vadd.f32 %v2615_v13, %v1353_v6  ;;  %v1464_v47 = vmax.f32 %v1106_v16, 0.0  ;;  %v1528_v48 = vmax.f32 %v1362_v17, 0.0 }
 0x14c   : > { %v2259_v9 = vpop.f32.mrf.mxu0  ;;  %v2323_v10 = vpop.f32.mrf.mxu1 }
 0x14d   : > { %v1119_v11 = vadd.f32 %v2259_v9, %v2615_v13  ;;  %v1375_v12 = vadd.f32 %v2323_v10, %v2615_v13  ;;  %v1462_v53 = vmax.f32 %v1098_v26, 0.0  ;;  %v1526_v54 = vmax.f32 %v1354_v27, 0.0 }
 0x14e   : > { %v1110_v18 = vpop.f32.mrf.mxu0  ;;  %v1366_v19 = vpop.f32.mrf.mxu1 }
 0x14f   : > { %v1467_v20 = vmax.f32 %v1119_v11, 0.0  ;;  %v1531_v21 = vmax.f32 %v1375_v12, 0.0  ;;  %v1111_v22 = vadd.f32 %v2615_v13, %v1110_v18  ;;  %v1367_v23 = vadd.f32 %v2615_v13, %v1366_v19 }
 0x150   : > { %v2260_v28 = vpop.f32.mrf.mxu0  ;;  %v2324_v29 = vpop.f32.mrf.mxu1  ;;  %v1760_v30 = vld [vmem:[#allocation2 + $0xa2] ss:$4 sm:$0xff]  ;;  %v1792_v31 = vld [vmem:[#allocation2 + $0xa3] ss:$4 sm:$0xff] }
 0x151   : > { %v1567_v32 = vmax.f32 %v1463_v14, %v1467_v20  ;;  %v1599_v33 = vmax.f32 %v1527_v15, %v1531_v21  ;;  %v1465_v34 = vmax.f32 %v1111_v22, 0.0  ;;  %v1529_v35 = vmax.f32 %v1367_v23, 0.0  ;;  %v1776_v45 = vld [vmem:[#allocation2 + $0x1a2] ss:$4 sm:$0xff]  ;;  %v1808_v46 = vld [vmem:[#allocation2 + $0x1a3] ss:$4 sm:$0xff] }
 0x152   : > { %v1122_v36 = vadd.f32 %v2260_v28, %v2615_v13  ;;  %v1378_v37 = vadd.f32 %v2324_v29, %v2615_v13  ;;  %v1113_v38 = vpop.f32.mrf.mxu0  ;;  %v1369_v39 = vpop.f32.mrf.mxu1  ;;  %v1818_v40 = vmax.f32 %v1760_v30, %v1792_v31  ;;  %v1826_v61 = vmax.f32 %v1776_v45, %v1808_v46  ;;  %v2422_v15 = vld [vmem:[%s2862_s2] ss:$0 sm:$0xff] }
 0x153   : > { %1632 = vst.msk [vmem:[#allocation2 + $0xd0] sm:$0xff] %vm1605_vm3, %v1567_v32  ;;  %1664 = vst.msk [vmem:[#allocation2 + $0x1d0] sm:$0xff] %vm1605_vm3, %v1599_v33  ;;  %v1565_v41 = vmax.f32 %v1461_v24, %v1465_v34  ;;  %v1597_v42 = vmax.f32 %v1525_v25, %v1529_v35  ;;  %v1114_v43 = vadd.f32 %v2615_v13, %v1113_v38 }
 0x154   : > { %v1370_v44 = vadd.f32 %v2615_v13, %v1369_v39  ;;  %v1468_v49 = vmax.f32 %v1122_v36, 0.0  ;;  %v1532_v50 = vmax.f32 %v1378_v37, 0.0  ;;  %1855 = vrot.lane.b32.xlu1 %v1818_v40, %s2432_s4  ;;  %v2263_v51 = vpop.f32.mrf.mxu0  ;;  %v2327_v52 = vpop.f32.mrf.mxu1 }
 0x155   : > { %1630 = vst.msk [vmem:[#allocation2 + $0xc0] sm:$0xff] %vm1605_vm3, %v1565_v41  ;;  %1662 = vst.msk [vmem:[#allocation2 + $0x1c0] sm:$0xff] %vm1605_vm3, %v1597_v42  ;;  %v1466_v55 = vmax.f32 %v1114_v43, 0.0  ;;  %v1135_v2 = vadd.f32 %v2263_v51, %v2615_v13  ;;  %v1391_v3 = vadd.f32 %v2327_v52, %v2615_v13 }
 0x156   : > { %v1530_v56 = vmax.f32 %v1370_v44, 0.0  ;;  %v1568_v57 = vmax.f32 %v1464_v47, %v1468_v49  ;;  %v1600_v58 = vmax.f32 %v1528_v48, %v1532_v50  ;;  %v1126_v59 = vpop.f32.mrf.mxu0  ;;  %v1382_v60 = vpop.f32.mrf.mxu1 }
 0x157   : > { %v1566_v62 = vmax.f32 %v1462_v53, %v1466_v55  ;;  %v1127_v6 = vadd.f32 %v2615_v13, %v1126_v59  ;;  %v1383_v7 = vadd.f32 %v2615_v13, %v1382_v60  ;;  %v1471_v12 = vmax.f32 %v1135_v2, 0.0 }
 0x158   : > { %v1598_v63 = vmax.f32 %v1526_v54, %v1530_v56  ;;  %1633 = vst.msk [vmem:[#allocation2 + $0xd8] sm:$0xff] %vm1605_vm3, %v1568_v57  ;;  %1665 = vst.msk [vmem:[#allocation2 + $0x1d8] sm:$0xff] %vm1605_vm3, %v1600_v58  ;;  %1871 = vrot.lane.b32.xlu1 %v1826_v61, %s2432_s4  ;;  %v2264_v0 = vpop.f32.mrf.mxu0  ;;  %v2328_v1 = vpop.f32.mrf.mxu1  ;;  %v1535_v14 = vmax.f32 %v1391_v3, 0.0 }
 0x159   : > { %1631 = vst.msk [vmem:[#allocation2 + $0xc8] sm:$0xff] %vm1605_vm3, %v1566_v62  ;;  %v1138_v16 = vadd.f32 %v2422_v15, %v2264_v0  ;;  %v1394_v17 = vadd.f32 %v2422_v15, %v2328_v1  ;;  %v1469_v24 = vmax.f32 %v1127_v6, 0.0  ;;  %v1533_v25 = vmax.f32 %v1383_v7, 0.0  ;;  %v1670_v62 = vld [vmem:[#allocation2] ss:$4 sm:$0xff] }
 0x15a   : > { %1663 = vst.msk [vmem:[#allocation2 + $0x1c8] sm:$0xff] %vm1605_vm3, %v1598_v63  ;;  %v1129_v4 = vpop.f32.mrf.mxu0  ;;  %v1385_v5 = vpop.f32.mrf.mxu1  ;;  %v1702_v63 = vld [vmem:[#allocation2 + $0x1] ss:$4 sm:$0xff] }
 0x15b   : > { %v1130_v26 = vadd.f32 %v2422_v15, %v1129_v4  ;;  %v1386_v27 = vadd.f32 %v2422_v15, %v1385_v5  ;;  %v1472_v46 = vmax.f32 %v1138_v16, 0.0  ;;  %v1536_v47 = vmax.f32 %v1394_v17, 0.0  ;;  %v1686_v5 = vld [vmem:[#allocation2 + $0x100] ss:$4 sm:$0xff]  ;;  %v1718_v6 = vld [vmem:[#allocation2 + $0x101] ss:$4 sm:$0xff] }
 0x15c   : > { %v2267_v8 = vpop.f32.mrf.mxu0  ;;  %v2331_v9 = vpop.f32.mrf.mxu1  ;;  %v1733_v2 = vmax.f32 %v1670_v62, %v1702_v63 }
 0x15d   : > { %v1151_v10 = vadd.f32 %v2267_v8, %v2615_v13  ;;  %v1407_v11 = vadd.f32 %v2331_v9, %v2615_v13  ;;  %v1470_v50 = vmax.f32 %v1130_v26, 0.0  ;;  %v1534_v51 = vmax.f32 %v1386_v27, 0.0 }
 0x15e   : > { %v1142_v18 = vpop.f32.mrf.mxu0  ;;  %v1398_v19 = vpop.f32.mrf.mxu1  ;;  %v1741_v8 = vmax.f32 %v1686_v5, %v1718_v6 }
 0x15f   : > { %v1475_v20 = vmax.f32 %v1151_v10, 0.0  ;;  %v1539_v21 = vmax.f32 %v1407_v11, 0.0  ;;  %v1143_v22 = vadd.f32 %v2422_v15, %v1142_v18  ;;  %v1399_v23 = vadd.f32 %v2422_v15, %v1398_v19  ;;  %v1688_v11 = vld [vmem:[#allocation2 + $0x120] ss:$4 sm:$0xff] }
 0x160   : > { %v2268_v28 = vpop.f32.mrf.mxu0  ;;  %v2332_v13 = vpop.f32.mrf.mxu1  ;;  %v1762_v29 = vld [vmem:[#allocation2 + $0xc2] ss:$4 sm:$0xff]  ;;  %v1794_v30 = vld [vmem:[#allocation2 + $0xc3] ss:$4 sm:$0xff]  ;;  %v1714_v62 = vld [vmem:[#allocation2 + $0xc1] ss:$4 sm:$0xff] }
 0x161   : > { %v1571_v31 = vmax.f32 %v1471_v12, %v1475_v20  ;;  %v1603_v32 = vmax.f32 %v1535_v14, %v1539_v21  ;;  %v1473_v33 = vmax.f32 %v1143_v22, 0.0  ;;  %v1537_v34 = vmax.f32 %v1399_v23, 0.0  ;;  %v1778_v44 = vld [vmem:[#allocation2 + $0x1c2] ss:$4 sm:$0xff]  ;;  %v1810_v45 = vld [vmem:[#allocation2 + $0x1c3] ss:$4 sm:$0xff] }
 0x162   : > { %v1154_v35 = vadd.f32 %v2422_v15, %v2268_v28  ;;  %v1410_v36 = vadd.f32 %v2422_v15, %v2332_v13  ;;  %v1145_v37 = vpop.f32.mrf.mxu0  ;;  %v1401_v38 = vpop.f32.mrf.mxu1  ;;  %v1819_v39 = vmax.f32 %v1762_v29, %v1794_v30  ;;  %v1827_v56 = vmax.f32 %v1778_v44, %v1810_v45  ;;  %v1720_v12 = vld [vmem:[#allocation2 + $0x121] ss:$4 sm:$0xff]  ;;  %v1672_v14 = vld [vmem:[#allocation2 + $0x20] ss:$4 sm:$0xff] }
 0x163   : > { %1636 = vst.msk [vmem:[#allocation2 + $0xf0] sm:$0xff] %vm1605_vm3, %v1571_v31  ;;  %1668 = vst.msk [vmem:[#allocation2 + $0x1f0] sm:$0xff] %vm1605_vm3, %v1603_v32  ;;  %v1569_v40 = vmax.f32 %v1469_v24, %v1473_v33  ;;  %v1601_v41 = vmax.f32 %v1533_v25, %v1537_v34  ;;  %v1146_v42 = vadd.f32 %v2422_v15, %v1145_v37  ;;  %v1674_v22 = vld [vmem:[#allocation2 + $0x40] ss:$4 sm:$0xff]  ;;  %v1706_v23 = vld [vmem:[#allocation2 + $0x41] ss:$4 sm:$0xff] }
 0x164   : > { %v1402_v43 = vadd.f32 %v2422_v15, %v1401_v38  ;;  %v1476_v48 = vmax.f32 %v1154_v35, 0.0  ;;  %v1540_v49 = vmax.f32 %v1410_v36, 0.0  ;;  %1857 = vrot.lane.b32.xlu0 %v1819_v39, %s2432_s4  ;;  %v1704_v15 = vld [vmem:[#allocation2 + $0x21] ss:$4 sm:$0xff]  ;;  %v1742_v16 = vmax.f32 %v1688_v11, %v1720_v12  ;;  %v1690_v24 = vld [vmem:[#allocation2 + $0x140] ss:$4 sm:$0xff] }
 0x165   : > { %1634 = vst.msk [vmem:[#allocation2 + $0xe0] sm:$0xff] %vm1605_vm3, %v1569_v40  ;;  %1666 = vst.msk [vmem:[#allocation2 + $0x1e0] sm:$0xff] %vm1605_vm3, %v1601_v41  ;;  %v1474_v52 = vmax.f32 %v1146_v42, 0.0  ;;  %v1734_v17 = vmax.f32 %v1672_v14, %v1704_v15  ;;  %v1722_v25 = vld [vmem:[#allocation2 + $0x141] ss:$4 sm:$0xff]  ;;  %v1735_v26 = vmax.f32 %v1674_v22, %v1706_v23 }
 0x166   : > { %v1538_v53 = vmax.f32 %v1402_v43, 0.0  ;;  %v1572_v54 = vmax.f32 %v1472_v46, %v1476_v48  ;;  %v1604_v55 = vmax.f32 %v1536_v47, %v1540_v49  ;;  %v1743_v27 = vmax.f32 %v1690_v24, %v1722_v25  ;;  %v1676_v31 = vld [vmem:[#allocation2 + $0x60] ss:$4 sm:$0xff]  ;;  %v1708_v32 = vld [vmem:[#allocation2 + $0x61] ss:$4 sm:$0xff] }
 0x167   : > { %v1570_v57 = vmax.f32 %v1470_v50, %v1474_v52  ;;  %v1736_v33 = vmax.f32 %v1676_v31, %v1708_v32  ;;  %v1692_v35 = vld [vmem:[#allocation2 + $0x160] ss:$4 sm:$0xff]  ;;  %v1724_v36 = vld [vmem:[#allocation2 + $0x161] ss:$4 sm:$0xff] }
 0x168   : > { %v1602_v58 = vmax.f32 %v1534_v51, %v1538_v53  ;;  %1637 = vst.msk [vmem:[#allocation2 + $0xf8] sm:$0xff] %vm1605_vm3, %v1572_v54  ;;  %1669 = vst.msk [vmem:[#allocation2 + $0x1f8] sm:$0xff] %vm1605_vm3, %v1604_v55  ;;  %1873 = vrot.lane.b32.xlu0 %v1827_v56, %s2432_s4  ;;  %v1744_v38 = vmax.f32 %v1692_v35, %v1724_v36  ;;  %v1678_v41 = vld [vmem:[#allocation2 + $0x80] ss:$4 sm:$0xff]  ;;  %v1710_v42 = vld [vmem:[#allocation2 + $0x81] ss:$4 sm:$0xff] }
 0x169   : > { %1635 = vst.msk [vmem:[#allocation2 + $0xe8] sm:$0xff] %vm1605_vm3, %v1570_v57  ;;  %v1737_v43 = vmax.f32 %v1678_v41, %v1710_v42  ;;  %v1694_v45 = vld [vmem:[#allocation2 + $0x180] ss:$4 sm:$0xff]  ;;  %v1726_v46 = vld [vmem:[#allocation2 + $0x181] ss:$4 sm:$0xff] }
 0x16a   : > { %1667 = vst.msk [vmem:[#allocation2 + $0x1e8] sm:$0xff] %vm1605_vm3, %v1602_v58  ;;  %v1745_v48 = vmax.f32 %v1694_v45, %v1726_v46  ;;  %v1680_v51 = vld [vmem:[#allocation2 + $0xa0] ss:$4 sm:$0xff]  ;;  %v1712_v52 = vld [vmem:[#allocation2 + $0xa1] ss:$4 sm:$0xff] }
 0x16b   : > { %v1738_v53 = vmax.f32 %v1680_v51, %v1712_v52  ;;  %v1696_v55 = vld [vmem:[#allocation2 + $0x1a0] ss:$4 sm:$0xff]  ;;  %v1728_v56 = vld [vmem:[#allocation2 + $0x1a1] ss:$4 sm:$0xff] }
 0x16c   : > { %v1746_v58 = vmax.f32 %v1696_v55, %v1728_v56 }
 0x170   : > { %v1764_v59 = vld [vmem:[#allocation2 + $0xe2] ss:$4 sm:$0xff]  ;;  %v1796_v60 = vld [vmem:[#allocation2 + $0xe3] ss:$4 sm:$0xff] }
 0x171   : > { %v1820_v61 = vmax.f32 %v1764_v59, %v1796_v60  ;;  %v1780_v0 = vld [vmem:[#allocation2 + $0x1e2] ss:$4 sm:$0xff]  ;;  %v1812_v1 = vld [vmem:[#allocation2 + $0x1e3] ss:$4 sm:$0xff]  ;;  %v1700_v11 = vld [vmem:[#allocation2 + $0x1e0] ss:$4 sm:$0xff] }
 0x172   : > { %v1828_v3 = vmax.f32 %v1780_v0, %v1812_v1  ;;  %v1698_v1 = vld [vmem:[#allocation2 + $0x1c0] ss:$4 sm:$0xff]  ;;  %v1732_v12 = vld [vmem:[#allocation2 + $0x1e1] ss:$4 sm:$0xff] }
 0x173   : > { %1859 = vrot.lane.b32.xlu1 %v1820_v61, %s2432_s4  ;;  %v1682_v61 = vld [vmem:[#allocation2 + $0xc0] ss:$4 sm:$0xff]  ;;  %v1748_v15 = vmax.f32 %v1700_v11, %v1732_v12 }
 0x174   : > { %v1739_v63 = vmax.f32 %v1682_v61, %v1714_v62 }
 0x176   : > { %v1846_v4 = vpop.permute.xlu0 %1845 }
 0x177   : > { %v1893_v7 = vsel %vm1605_vm3, %v1733_v2, %v1846_v4  ;;  %1875 = vrot.lane.b32.xlu1 %v1828_v3, %s2432_s4  ;;  %v1730_v2 = vld [vmem:[#allocation2 + $0x1c1] ss:$4 sm:$0xff] }
 0x178   : > { %1909 = vst [vmem:[%s2822_s10] sm:$0xff] %v1893_v7  ;;  %v1747_v4 = vmax.f32 %v1698_v1, %v1730_v2  ;;  %v1684_v7 = vld [vmem:[#allocation2 + $0xe0] ss:$4 sm:$0xff] }
 0x17a   : > { %v1862_v9 = vpop.permute.xlu0 %1861 }
 0x17b   : > { %v1901_v10 = vsel %vm1605_vm3, %v1741_v8, %v1862_v9  ;;  %v1716_v8 = vld [vmem:[#allocation2 + $0xe1] ss:$4 sm:$0xff] }
 0x17c   : > { %1917 = vst [vmem:[%s2822_s10 + $0x40] sm:$0xff] %v1901_v10  ;;  %v1740_v9 = vmax.f32 %v1684_v7, %v1716_v8 }
 0x186   : > { %v1864_v18 = vpop.permute.xlu1 %1863  ;;  %v1848_v19 = vpop.permute.xlu0 %1847 }
 0x187   : > { %v1902_v20 = vsel %vm1605_vm3, %v1742_v16, %v1864_v18  ;;  %v1894_v21 = vsel %vm1605_vm3, %v1734_v17, %v1848_v19 }
 0x188   : > { %1918 = vst [vmem:[%s2822_s10 + $0x48] sm:$0xff] %v1902_v20  ;;  %1910 = vst [vmem:[%s2822_s10 + $0x8] sm:$0xff] %v1894_v21 }
 0x196   : > { %v1850_v28 = vpop.permute.xlu1 %1849  ;;  %v1866_v13 = vpop.permute.xlu0 %1865 }
 0x197   : > { %v1895_v29 = vsel %vm1605_vm3, %v1735_v26, %v1850_v28  ;;  %v1903_v30 = vsel %vm1605_vm3, %v1743_v27, %v1866_v13 }
 0x198   : > { %1911 = vst [vmem:[%s2822_s10 + $0x10] sm:$0xff] %v1895_v29  ;;  %1919 = vst [vmem:[%s2822_s10 + $0x50] sm:$0xff] %v1903_v30 }
 0x1a6   : > { %v1852_v34 = vpop.permute.xlu1 %1851 }
 0x1a7   : > { %v1896_v37 = vsel %vm1605_vm3, %v1736_v33, %v1852_v34 }
 0x1a8   : > { %1912 = vst [vmem:[%s2822_s10 + $0x18] sm:$0xff] %v1896_v37 }
 0x1aa   : > { %v1868_v39 = vpop.permute.xlu1 %1867 }
 0x1ab   : > { %v1904_v40 = vsel %vm1605_vm3, %v1744_v38, %v1868_v39 }
 0x1ac   : > { %1920 = vst [vmem:[%s2822_s10 + $0x58] sm:$0xff] %v1904_v40 }
 0x1b6   : > { %v1854_v44 = vpop.permute.xlu0 %1853 }
 0x1b7   : > { %v1897_v47 = vsel %vm1605_vm3, %v1737_v43, %v1854_v44 }
 0x1b8   : > { %1913 = vst [vmem:[%s2822_s10 + $0x20] sm:$0xff] %v1897_v47 }
 0x1ba   : > { %v1870_v49 = vpop.permute.xlu0 %1869 }
 0x1bb   : > { %v1905_v50 = vsel %vm1605_vm3, %v1745_v48, %v1870_v49 }
 0x1bc   : > { %1921 = vst [vmem:[%s2822_s10 + $0x60] sm:$0xff] %v1905_v50 }
 0x1c6   : > { %v1856_v54 = vpop.permute.xlu1 %1855 }
 0x1c7   : > { %v1898_v57 = vsel %vm1605_vm3, %v1738_v53, %v1856_v54 }
 0x1c8   : > { %1914 = vst [vmem:[%s2822_s10 + $0x28] sm:$0xff] %v1898_v57 }
 0x1ca   : > { %v1872_v59 = vpop.permute.xlu1 %1871 }
 0x1cb   : > { %v1906_v60 = vsel %vm1605_vm3, %v1746_v58, %v1872_v59 }
 0x1cc   : > { %1922 = vst [vmem:[%s2822_s10 + $0x68] sm:$0xff] %v1906_v60 }
 0x1d6   : > { %v1858_v0 = vpop.permute.xlu0 %1857 }
 0x1d7   : > { %v1899_v3 = vsel %vm1605_vm3, %v1739_v63, %v1858_v0 }
 0x1d8   : > { %1915 = vst [vmem:[%s2822_s10 + $0x30] sm:$0xff] %v1899_v3 }
 0x1da   : > { %v1874_v5 = vpop.permute.xlu0 %1873 }
 0x1db   : > { %v1907_v6 = vsel %vm1605_vm3, %v1747_v4, %v1874_v5 }
 0x1dc   : > { %1923 = vst [vmem:[%s2822_s10 + $0x70] sm:$0xff] %v1907_v6 }
 0x1e5   : > { %v1860_v10 = vpop.permute.xlu1 %1859 }
 0x1e6   : > { %v1900_v14 = vsel %vm1605_vm3, %v1740_v9, %v1860_v10 }
 0x1e7   : > { %1916 = vst [vmem:[%s2822_s10 + $0x38] sm:$0xff] %v1900_v14 }
 0x1e9   : > { %v1876_v16 = vpop.permute.xlu1 %1875 }
 0x1ea   : > { %v1908_v17 = vsel %vm1605_vm3, %v1748_v15, %v1876_v16 }
 0x1eb   : > { %1924 = vst [vmem:[%s2822_s10 + $0x78] sm:$0xff] %v1908_v17 }
 0x1ec PF: > { %s13_s12 = sadd.s32 1, %s2429_s12  }
 0x1ed   : > { %p10_p5 = scmp.ge.s32.totalorder %s13_s12, 4  }
 0x1ef   :  { %12 = sbr.rel (!%p10_p5) target bundleno = 1 (0x1), region = 125 }

// kernel: cifar10_net_forward.7
= control target key start
LH: loop header
LB: loop body
LE: loop exit
PB: predicated region body
PF: predicated region fallthrough
CT: control target
= control target key end

     0   :  { %s3229_s12 = smov 0   ;;  %s4076_s0 = inlined_call_operand.vmem [shape: f32[2,12,12,64], index: 0, kind: input, shape index: {}]   ;;  %s4077_s1 = inlined_call_operand.vmem [shape: bf16[1600,128], index: 1, kind: input, shape index: {}]   ;;  %s4078_s2 = inlined_call_operand.vmem [shape: f32[1,128], index: 2, kind: input, shape index: {}]   ;;  %s4079_s3 = inlined_call_operand.vmem [shape: f32[2,16,128], index: 3, kind: output, shape index: {}]  }
   0x1 LB: > { %s2492_s13 = sadd.s32 4294967295, %s3206_s12   ;;  %p2496_p0 = scmp.ge.s32.totalorder %s3206_s12, 1  ;;  %s3206_s12 = sphi %s3229_s12, %s13_s12  }
   0x2   : > { %p137_p1 = scmp.lt.s32.totalorder %s3206_s12, 3 }
   0x4   : > { %p138_p2 = pnand %p2496_p0, %p137_p1 }
   0x6   : > { %141 = sbr.rel (%p138_p2) target bundleno = 468 (0x1d4), region = 32 }
   0xb   : > { %p161_p3 = scmp.lt.s32.totalorder %s2492_s13, 1  ;;  %v3024_v0 = vld [vmem:[%s4077_s1 + $0x78] sm:$0xff]   ;;  %v3028_v4 = vld [vmem:[%s4077_s1 + $0x70] sm:$0xff]   ;;  %s3208_s30 = smov 64   ;;  %vm811_vm0 = vcmask 519168   ;;  %vm252_vm1 = vcmask 523264  }
   0xc   : > { %2742 = vmatprep.subr.bf16.mxu0 %v3024_v0  ;;  %v3025_v1 = vld [vmem:[%s4077_s1 + $0xf8] sm:$0xff]   ;;  %v3029_v5 = vld [vmem:[%s4077_s1 + $0xf0] sm:$0xff]  }
   0xd   : > { %s4122_s13 = smov (!%p161_p3, %s2492_s13), 1  ;;  %v3026_v2 = vld [vmem:[%s4077_s1 + $0x38] sm:$0xff]   ;;  %2782 = vmatprep.subr.bf16.mxu1 %v3025_v1 }
   0xe   : > { %s3014_s20 = smul.u32 192, %s4122_s13  ;;  %v3027_v3 = vld [vmem:[%s4077_s1 + $0xb8] sm:$0xff]   ;;  %2743 = vmatpush3.bf16.msra.mxu0 %v3026_v2  ;;  %s2733_s23 = sshll.u32 %s4122_s13, 4 }
   0xf   : > { %2783 = vmatpush3.bf16.msra.mxu1 %v3027_v3  ;;  %2744 = vmatprep.subr.bf16.mxu0 %v3028_v4  ;;  %s170_s26 = scalar_lea.vmem %s4079_s3, %s2733_s23 }
  0x10   : > { %s3258_s27 = scalar_lea.vmem %s4076_s0, %s3014_s20  ;;  %2784 = vmatprep.subr.bf16.mxu1 %v3029_v5 }
  0x11   : > { %v184_v6 = vld [vmem:[%s3258_s27 + $0x1] sm:$0xff]  ;;  %v3265_v7 = vld [vmem:[%s3258_s27 + $0x11] sm:$0xff] }
  0x12   : > { %v3268_v8 = vld [vmem:[%s3258_s27 + $0x21] sm:$0xff]  ;;  %v325_v9 = vpack.c.bf16 %v3265_v7, %v184_v6  ;;  %v3274_v11 = vld [vmem:[%s3258_s27 + $0x10] sm:$0xff] }
  0x13   : > { %v3277_v12 = vld [vmem:[%s3258_s27 + $0x20] sm:$0xff]  ;;  %v3280_v13 = vld [vmem:[%s3258_s27 + $0x30] sm:$0xff] }
  0x14   : > { %v236_v15 = vpack.c.bf16 %v3277_v12, %v3274_v11  ;;  %v3287_v16 = vld [vmem:[%s3258_s27] sm:$0xff]  ;;  %v3290_v17 = vld [vmem:[%s3258_s27 + $0x31] sm:$0xff]  ;;  %333 = vrot.lane.b32.xlu1 %v325_v9, %s3208_s30 }
  0x15   : > { %v176_v18 = vld [vmem:[%s3258_s27 + $0x40] sm:$0xff]  ;;  %v326_v20 = vpack.c.bf16 %v3290_v17, %v3268_v8  ;;  %v177_v22 = vld [vmem:[%s3258_s27 + $0x50] sm:$0xff] }
  0x16   : > { %v3299_v21 = vld [vmem:[%s3258_s27 + $0x41] sm:$0xff]  ;;  %244 = vrot.lane.b32.xlu0 %v236_v15, %s3208_s30  ;;  %v237_v23 = vpack.c.bf16 %v176_v18, %v3280_v13  ;;  %v3305_v24 = vld [vmem:[%s3258_s27 + $0x51] sm:$0xff]  ;;  %v3310_v27 = vpack.c.bf16 %v177_v22, %v176_v18 }
  0x17   : > { %v178_v26 = vld [vmem:[%s3258_s27 + $0x60] sm:$0xff]  ;;  %v3316_v29 = vld [vmem:[%s3258_s27 + $0x71] sm:$0xff]  ;;  %v327_v37 = vpack.c.bf16 %v3305_v24, %v3299_v21 }
  0x18   : > { %v3313_v28 = vld [vmem:[%s3258_s27 + $0x61] sm:$0xff]  ;;  %v179_v31 = vld [vmem:[%s3258_s27 + $0x70] sm:$0xff]  ;;  %335 = vrot.lane.b32.xlu1 %v326_v20, %s3208_s30  ;;  %v238_v42 = vpack.c.bf16 %v178_v26, %v177_v22 }
  0x19   : > { %v3322_v32 = vld [vmem:[%s3258_s27 + $0x81] sm:$0xff]  ;;  %v3325_v34 = vpack.c.bf16 %v179_v31, %v178_v26  ;;  %v3330_v36 = vld [vmem:[%s3258_s27 + $0x90] sm:$0xff]  ;;  %v328_v55 = vpack.c.bf16 %v3316_v29, %v3313_v28 }
  0x1a   : > { %v180_v33 = vld [vmem:[%s3258_s27 + $0x80] sm:$0xff]  ;;  %v3339_v39 = vld [vmem:[%s3258_s27 + $0xb0] sm:$0xff]  ;;  %246 = vrot.lane.b32.xlu0 %v237_v23, %s3208_s30 }
  0x1b   : > { %v3336_v38 = vld [vmem:[%s3258_s27 + $0xa0] sm:$0xff]  ;;  %v3342_v40 = vpack.c.bf16 %v3330_v36, %v180_v33  ;;  %v3345_v41 = vld [vmem:[%s3258_s27 + $0x32] sm:$0xff]  ;;  %v239_v60 = vpack.c.bf16 %v180_v33, %v179_v31 }
  0x1c   : > { %v3351_v44 = vld [vmem:[%s3258_s27 + $0x2] sm:$0xff]  ;;  %v3354_v45 = vld [vmem:[%s3258_s27 + $0x12] sm:$0xff]  ;;  %337 = vrot.lane.b32.xlu1 %v327_v37, %s3208_s30 }
  0x1d   : > { %v3357_v46 = vld [vmem:[%s3258_s27 + $0x22] sm:$0xff]  ;;  %v3367_v50 = vld [vmem:[%s3258_s27 + $0x52] sm:$0xff] }
  0x1e   : > { %v3360_v47 = vld [vmem:[%s3258_s27 + $0x42] sm:$0xff]  ;;  %v3377_v53 = vld [vmem:[%s3258_s27 + $0x13] sm:$0xff]  ;;  %248 = vrot.lane.b32.xlu0 %v238_v42, %s3208_s30  ;;  %v302_v42 = vpack.c.bf16 %v3336_v38, %v3330_v36 }
  0x1f   : > { %v3370_v51 = vld [vmem:[%s3258_s27 + $0x62] sm:$0xff]  ;;  %v3374_v52 = vpack.c.bf16 %v3367_v50, %v3360_v47  ;;  %v3386_v56 = vld [vmem:[%s3258_s27 + $0x33] sm:$0xff]  ;;  %v467_v35 = vpack.c.bf16 %v3360_v47, %v3345_v41  ;;  %v466_v47 = vpack.c.bf16 %v3357_v46, %v3354_v45 }
  0x20   : > { %v3380_v54 = vld [vmem:[%s3258_s27 + $0x23] sm:$0xff]  ;;  %v3391_v58 = vld [vmem:[%s3258_s27 + $0x72] sm:$0xff]  ;;  %339 = vrot.lane.b32.xlu1 %v328_v55, %s3208_s30 }
  0x21   : > { %v3394_v59 = vld [vmem:[%s3258_s27 + $0x43] sm:$0xff]  ;;  %v3398_v61 = vld [vmem:[%s3258_s27 + $0x91] sm:$0xff]  ;;  %v3402_v62 = vpack.c.bf16 %v3391_v58, %v3370_v51 }
  0x22   : > { %v3407_v0 = vld [vmem:[%s3258_s27 + $0xa1] sm:$0xff]  ;;  %v3413_v2 = vld [vmem:[%s3258_s27 + $0x53] sm:$0xff]  ;;  %v390_v20 = vpack.c.bf16 %v3398_v61, %v3322_v32  ;;  %250 = vrot.lane.b32.xlu0 %v239_v60, %s3208_s30 }
  0x23   : > { %v3410_v1 = vld [vmem:[%s3258_s27 + $0x82] sm:$0xff]  ;;  %v3421_v5 = vld [vmem:[%s3258_s27 + $0x73] sm:$0xff] }
  0x24   : > { %v3418_v4 = vld [vmem:[%s3258_s27 + $0x63] sm:$0xff]  ;;  %v231_v15 = vld [vmem:[%s3258_s27 + $0xb4] sm:$0xff]  ;;  %392 = vrot.lane.b32.xlu1 %v390_v20, %s3208_s30 }
  0x25   : > { %v3426_v9 = vld [vmem:[%s3258_s27 + $0x44] sm:$0xff]  ;;  %v3436_v22 = vld [vmem:[%s3258_s27 + $0x34] sm:$0xff]  ;;  %v2741_v26 = vpack.c.bf16 %v231_v15, %v231_v15 }
  0x26   : > { %v3430_v18 = vld [vmem:[%s3258_s27 + $0x83] sm:$0xff]  ;;  %v2734_v23 = vpack.c.bf16 %v3426_v9, %v3426_v9  ;;  %v3443_v33 = vld [vmem:[%s3258_s27 + $0x92] sm:$0xff]  ;;  %304 = vrot.lane.b32.xlu0 %v302_v42, %s3208_s30 }
  0x27   : > { %v3446_v37 = vld [vmem:[%s3258_s27 + $0xa2] sm:$0xff]  ;;  %v3452_v55 = vld [vmem:[%s3258_s27 + $0xb2] sm:$0xff]  ;;  %v3456_v15 = vpack.c.bf16 %v3443_v33, %v3410_v1  ;;  %819 = vst.msk [vmem:[#allocation2 + $0x19c] sm:$0xf] %vm811_vm0, %v2741_v26 }
  0x28   : > { %v3459_v6 = vld [vmem:[%s3258_s27 + $0x4] sm:$0xff]  ;;  %v3462_v31 = vld [vmem:[%s3258_s27 + $0x14] sm:$0xff]  ;;  %812 = vst.msk [vmem:[#allocation2 + $0x30] sm:$0xf] %vm811_vm0, %v2734_v23  ;;  %476 = vrot.lane.b32.xlu1 %v467_v35, %s3208_s30 }
  0x29   : > { %4081 = vst [vmem:[#allocation4_spill] sm:$0xff] %v3459_v6  ;;  %v3467_v60 = vld [vmem:[%s3258_s27 + $0x93] sm:$0xff]  ;;  %v3472_v63 = vld [vmem:[%s3258_s27 + $0x24] sm:$0xff] }
  0x2a   : > { %v3477_v57 = vld [vmem:[%s3258_s27 + $0x54] sm:$0xff]  ;;  %v3482_v48 = vld [vmem:[%s3258_s27 + $0x64] sm:$0xff]  ;;  %474 = vrot.lane.b32.xlu0 %v466_v47, %s3208_s30  ;;  %v555_v47 = vpack.c.bf16 %v3386_v56, %v3380_v54 }
  0x2b   : > { %v2735_v26 = vpack.c.bf16 %v3477_v57, %v3477_v57  ;;  %v3487_v49 = vld [vmem:[%s3258_s27 + $0x74] sm:$0xff]  ;;  %v3490_v36 = vld [vmem:[%s3258_s27 + $0x84] sm:$0xff]  ;;  %v2736_v30 = vpack.c.bf16 %v3482_v48, %v3482_v48 }
  0x2c   : > { %v208_v3 = vld [vmem:[%s3258_s27 + $0x3] sm:$0xff]  ;;  %v2737_v23 = vpack.c.bf16 %v3487_v49, %v3487_v49  ;;  %v2738_v43 = vpack.c.bf16 %v3490_v36, %v3490_v36  ;;  %v3506_v14 = vld [vmem:[%s3258_s27 + $0x94] sm:$0xff] }
  0x2d   : > { %v3503_v25 = vld [vmem:[%s3258_s27 + $0xa3] sm:$0xff]  ;;  %813 = vst.msk [vmem:[#allocation2 + $0x64] sm:$0xf] %vm811_vm0, %v2735_v26  ;;  %v2739_v19 = vpack.c.bf16 %v3506_v14, %v3506_v14  ;;  %v3030_v6 = vld [vmem:[%s4077_s1 + $0x30] sm:$0xff]   ;;  %814 = vst.msk [vmem:[#allocation2 + $0x98] sm:$0xf] %vm811_vm0, %v2736_v30  ;;  %v468_v30 = vpack.c.bf16 %v3370_v51, %v3367_v50 }
  0x2e   : > { %v3509_v10 = vld [vmem:[%s3258_s27 + $0xa4] sm:$0xff]  ;;  %815 = vst.msk [vmem:[#allocation2 + $0xcc] sm:$0xf] %vm811_vm0, %v2737_v23  ;;  %816 = vst.msk [vmem:[#allocation2 + $0x100] sm:$0xf] %vm811_vm0, %v2738_v43  ;;  %v3031_v26 = vld [vmem:[%s4077_s1 + $0xb0] sm:$0xff]   ;;  %2745 = vmatpush3.bf16.msra.mxu0 %v3030_v6 }
  0x2f   : > { %v2740_v42 = vpack.c.bf16 %v3509_v10, %v3509_v10  ;;  %817 = vst.msk [vmem:[#allocation2 + $0x134] sm:$0xf] %vm811_vm0, %v2739_v19  ;;  %v3032_v20 = vld [vmem:[%s4077_s1 + $0x68] sm:$0xff]   ;;  %2785 = vmatpush3.bf16.msra.mxu1 %v3031_v26  ;;  %v554_v19 = vpack.c.bf16 %v3377_v53, %v208_v3  ;;  %v195_v50 = vld [vmem:[%s3258_s27 + $0xb1] sm:$0xff]  ;;  %v3036_v51 = vld [vmem:[%s4077_s1 + $0x60] sm:$0xff]   ;;  %478 = vrot.lane.b32.xlu1 %v468_v30, %s3208_s30 }
  0x30   : > { %v3033_v43 = vld [vmem:[%s4077_s1 + $0xe8] sm:$0xff]   ;;  %2746 = vmatprep.subr.bf16.mxu0 %v3032_v20  ;;  %v469_v3 = vpack.c.bf16 %v3410_v1, %v3391_v58  ;;  %v3037_v23 = vld [vmem:[%s4077_s1 + $0xe0] sm:$0xff]   ;;  %v3040_v1 = vld [vmem:[%s4077_s1 + $0x58] sm:$0xff]   ;;  %v556_v30 = vpack.c.bf16 %v3413_v2, %v3394_v59 }
  0x31   : > { %818 = vst.msk [vmem:[#allocation2 + $0x168] sm:$0xf] %vm811_vm0, %v2740_v42  ;;  %v3034_v6 = vld [vmem:[%s4077_s1 + $0x28] sm:$0xff]   ;;  %2786 = vmatprep.subr.bf16.mxu1 %v3033_v43  ;;  %562 = vrot.lane.b32.xlu0 %v554_v19, %s3208_s30  ;;  %v3038_v20 = vld [vmem:[%s4077_s1 + $0x20] sm:$0xff]   ;;  %v440_v42 = vpack.c.bf16 %v195_v50, %v3407_v0  ;;  %v3041_v26 = vld [vmem:[%s4077_s1 + $0xd8] sm:$0xff]  }
  0x32   : > { %v3035_v35 = vld [vmem:[%s4077_s1 + $0xa8] sm:$0xff]   ;;  %2747 = vmatpush3.bf16.msra.mxu0 %v3034_v6  ;;  %v3039_v58 = vld [vmem:[%s4077_s1 + $0xa0] sm:$0xff]   ;;  %v3042_v43 = vld [vmem:[%s4077_s1 + $0x18] sm:$0xff]  }
  0x33   : > { %2787 = vmatpush3.bf16.msra.mxu1 %v3035_v35  ;;  %2748 = vmatprep.subr.bf16.mxu0 %v3036_v51  ;;  %v3043_v19 = vld [vmem:[%s4077_s1 + $0x98] sm:$0xff]   ;;  %v3044_v6 = vld [vmem:[%s4077_s1 + $0x50] sm:$0xff]   ;;  %v557_v35 = vpack.c.bf16 %v3421_v5, %v3418_v4  ;;  %v531_v51 = vpack.c.bf16 %v3446_v37, %v3443_v33  ;;  %v696_v33 = vpack.c.bf16 %v3426_v9, %v3436_v22 }
  0x34   : > { %2788 = vmatprep.subr.bf16.mxu1 %v3037_v23  ;;  %480 = vrot.lane.b32.xlu1 %v469_v3, %s3208_s30  ;;  %v3045_v50 = vld [vmem:[%s4077_s1 + $0xd0] sm:$0xff]  }
  0x35   : > { %564 = vrot.lane.b32.xlu0 %v555_v47, %s3208_s30  ;;  %v3046_v3 = vld [vmem:[%s4077_s1 + $0x10] sm:$0xff]   ;;  %v3048_v47 = vld [vmem:[%s4077_s1 + $0x48] sm:$0xff]  }
  0x36   : > { %2749 = vmatpush3.bf16.msra.mxu0 %v3038_v20  ;;  %v3047_v23 = vld [vmem:[%s4077_s1 + $0x90] sm:$0xff]   ;;  %v3049_v20 = vld [vmem:[%s4077_s1 + $0xc8] sm:$0xff]  }
  0x37   : > { %2789 = vmatpush3.bf16.msra.mxu1 %v3039_v58  ;;  %2750 = vmatprep.subr.bf16.mxu0 %v3040_v1  ;;  %v695_v58 = vpack.c.bf16 %v3472_v63, %v3462_v31  ;;  %v3050_v1 = vld [vmem:[%s4077_s1 + $0x8] sm:$0xff]  }
  0x38   : > { %2790 = vmatprep.subr.bf16.mxu1 %v3041_v26  ;;  %442 = vrot.lane.b32.xlu1 %v440_v42, %s3208_s30  ;;  %v3051_v42 = vld [vmem:[%s4077_s1 + $0x88] sm:$0xff]   ;;  %v219_v26 = vld [vmem:[%s3258_s27 + $0xb3] sm:$0xff] }
  0x39   : > { %566 = vrot.lane.b32.xlu0 %v556_v30, %s3208_s30  ;;  %v3052_v30 = vld [vmem:[%s4077_s1 + $0x40] sm:$0xff]  }
  0x3a   : > { %2751 = vmatpush3.bf16.msra.mxu0 %v3042_v43  ;;  %v619_v43 = vpack.c.bf16 %v3467_v60, %v3430_v18 }
  0x3b   : > { %2791 = vmatpush3.bf16.msra.mxu1 %v3043_v19  ;;  %2752 = vmatprep.subr.bf16.mxu0 %v3044_v6  ;;  %v3053_v19 = vld [vmem:[%s4077_s1 + $0xc0] sm:$0xff]   ;;  %v697_v6 = vpack.c.bf16 %v3482_v48, %v3477_v57 }
  0x3c   : > { %2792 = vmatprep.subr.bf16.mxu1 %v3045_v50  ;;  %568 = vrot.lane.b32.xlu1 %v557_v35, %s3208_s30  ;;  %v3054_v35 = vld [vmem:[%s4077_s1] sm:$0xff]  }
  0x3d   : > { %533 = vrot.lane.b32.xlu0 %v531_v51, %s3208_s30  ;;  %v3055_v50 = vld [vmem:[%s4077_s1 + $0x80] sm:$0xff]   ;;  %v3062_v51 = vld [vmem:[%s4077_s1 + $0x178] sm:$0xff]  }
  0x3e   : > { %2753 = vmatpush3.bf16.msra.mxu0 %v3046_v3  ;;  %v669_v3 = vpack.c.bf16 %v219_v26, %v3503_v25 }
  0x3f   : > { %2793 = vmatpush3.bf16.msra.mxu1 %v3047_v23  ;;  %2754 = vmatprep.subr.bf16.mxu0 %v3048_v47  ;;  %v3063_v23 = vld [vmem:[%s4077_s1 + $0x1f8] sm:$0xff]   ;;  %v698_v47 = vpack.c.bf16 %v3490_v36, %v3487_v49 }
  0x40   : > { %2794 = vmatprep.subr.bf16.mxu1 %v3049_v20  ;;  %705 = vrot.lane.b32.xlu1 %v696_v33, %s3208_s30  ;;  %v760_v33 = vpack.c.bf16 %v3509_v10, %v3506_v14  ;;  %v693_v20 = vpack.c.bf16 %v3477_v57, %v3426_v9  ;;  %v4082_v10 = vpack.c.bf16 %v3274_v11, %v3287_v16  ;;  %v3125_v9 = vld [vmem:[%s4077_s1 + $0x2f0] sm:$0xff]  }
  0x41   : > { %703 = vrot.lane.b32.xlu0 %v695_v58, %s3208_s30  ;;  %v694_v58 = vpack.c.bf16 %v3487_v49, %v3482_v48  ;;  %v3131_v48 = vld [vmem:[%s4077_s1 + $0x2e8] sm:$0xff]  }
  0x42   : > { %2755 = vmatpush3.bf16.msra.mxu0 %v3050_v1  ;;  %v759_v1 = vpack.c.bf16 %v3506_v14, %v3490_v36  ;;  %v3134_v14 = vld [vmem:[%s4077_s1 + $0x228] sm:$0xff]   ;;  %v3138_v36 = vld [vmem:[%s4077_s1 + $0x260] sm:$0xff]  }
  0x43   : > { %2795 = vmatpush3.bf16.msra.mxu1 %v3051_v42  ;;  %2756 = vmatprep.subr.bf16.mxu0 %v3052_v30 }
  0x44   : > { %2796 = vmatprep.subr.bf16.mxu1 %v3053_v19  ;;  %621 = vrot.lane.b32.xlu1 %v619_v43, %s3208_s30 }
  0x45   : > { %707 = vrot.lane.b32.xlu0 %v697_v6, %s3208_s30 }
  0x46   : > { %2757 = vmatpush3.bf16.msra.mxu0 %v3054_v35 }
  0x47   : > { %2797 = vmatpush3.bf16.msra.mxu1 %v3055_v50  ;;  %2822 = vmatprep.subr.bf16.mxu0 %v3062_v51 }
  0x48   : > { %2862 = vmatprep.subr.bf16.mxu1 %v3063_v23  ;;  %671 = vrot.lane.b32.xlu1 %v669_v3, %s3208_s30  ;;  %v4083_v23 = vpack.c.bf16 %v3268_v8, %v3265_v7  ;;  %v4085_v8 = vpack.c.bf16 %v3299_v21, %v3290_v17 }
  0x49   : > { %709 = vrot.lane.b32.xlu0 %v698_v47, %s3208_s30 }
  0x4d   : > { %762 = vrot.lane.b32.xlu0 %v760_v33, %s3208_s30 }
  0x86   : > { %v334_v42 = vpop.permute.xlu1 %333 }
  0x87   : > { %v342_v26 = vsel %vm252_vm1, %v3310_v27, %v334_v42 }
  0x88   : > { %v245_v30 = vpop.permute.xlu0 %244  ;;  %v2510_v43 = vcombine.low %v342_v26, %v342_v26  ;;  %v2511_v19 = vcombine.high %v342_v26, %v342_v26 }
  0x89   : > { %v255_v6 = vsel %vm252_vm1, %v4082_v10, %v245_v30  ;;  %v4084_v30 = vpack.c.bf16 %v3280_v13, %v3277_v12 }
  0x8a   : > { %v2500_v35 = vcombine.low %v255_v6, %v255_v6  ;;  %v2501_v50 = vcombine.high %v255_v6, %v255_v6  ;;  %378 = vst [vmem:[#allocation2 + $0x8] sm:$0xf] %v2510_v43  ;;  %379 = vst [vmem:[#allocation2 + $0x3c] sm:$0xf] %v2511_v19  ;;  %v336_v51 = vpop.permute.xlu1 %335 }
  0x8b   : > { %v344_v3 = vsel %vm252_vm1, %v3325_v34, %v336_v51  ;;  %v395_v47 = vsel %vm252_vm1, %v4083_v23, %v336_v51 }
  0x8c   : > { %293 = vst [vmem:[#allocation2] sm:$0xf] %v2500_v35  ;;  %294 = vst [vmem:[#allocation2 + $0x34] sm:$0xf] %v2501_v50  ;;  %v247_v33 = vpop.permute.xlu0 %246  ;;  %v2512_v42 = vcombine.low %v344_v3, %v344_v3  ;;  %v2513_v11 = vcombine.high %v344_v3, %v344_v3  ;;  %v2518_v16 = vcombine.low %v395_v47, %v395_v47 }
  0x8d   : > { %v2519_v26 = vcombine.high %v395_v47, %v395_v47  ;;  %v258_v43 = vsel %vm252_vm1, %v4084_v30, %v247_v33  ;;  %v4086_v33 = vpack.c.bf16 %v3339_v39, %v3336_v38 }
  0x8e   : > { %380 = vst [vmem:[#allocation2 + $0x70] sm:$0xf] %v2512_v42  ;;  %381 = vst [vmem:[#allocation2 + $0xa4] sm:$0xf] %v2513_v11  ;;  %v2502_v19 = vcombine.low %v258_v43, %v258_v43  ;;  %v2503_v10 = vcombine.high %v258_v43, %v258_v43  ;;  %v338_v6 = vpop.permute.xlu1 %337  ;;  %v4087_v11 = vpack.c.bf16 %v3313_v28, %v3305_v24 }
  0x8f   : > { %431 = vst [vmem:[#allocation2 + $0xc] sm:$0xf] %v2518_v16  ;;  %432 = vst [vmem:[#allocation2 + $0x40] sm:$0xf] %v2519_v26  ;;  %v346_v7 = vsel %vm252_vm1, %v3342_v40, %v338_v6  ;;  %v397_v35 = vsel %vm252_vm1, %v4085_v8, %v338_v6  ;;  %v3065_v8 = vld [vmem:[%s4077_s1 + $0x1b8] sm:$0xff]  }
  0x90   : > { %v249_v50 = vpop.permute.xlu0 %248  ;;  %295 = vst [vmem:[#allocation2 + $0x68] sm:$0xf] %v2502_v19  ;;  %296 = vst [vmem:[#allocation2 + $0x9c] sm:$0xf] %v2503_v10  ;;  %v2514_v12 = vcombine.low %v346_v7, %v346_v7  ;;  %v2515_v13 = vcombine.high %v346_v7, %v346_v7  ;;  %v2520_v51 = vcombine.low %v397_v35, %v397_v35  ;;  %v3064_v7 = vld [vmem:[%s4077_s1 + $0x138] sm:$0xff]  }
  0x91   : > { %316 = vst [vmem:[#allocation2 + $0x4] sm:$0xf] %v2502_v19  ;;  %317 = vst [vmem:[#allocation2 + $0x38] sm:$0xf] %v2503_v10  ;;  %v2521_v3 = vcombine.high %v397_v35, %v397_v35  ;;  %v261_v23 = vsel %vm252_vm1, %v3310_v27, %v249_v50  ;;  %v3059_v38 = vld [vmem:[#allocation2 + $0x8] ss:$52 sps:$4 sm:$0xff]  }
  0x92   : > { %382 = vst [vmem:[#allocation2 + $0xd8] sm:$0xf] %v2514_v12  ;;  %383 = vst [vmem:[#allocation2 + $0x10c] sm:$0xf] %v2515_v13  ;;  %v2504_v17 = vcombine.low %v261_v23, %v261_v23  ;;  %v2505_v21 = vcombine.high %v261_v23, %v261_v23  ;;  %v340_v47 = vpop.permute.xlu1 %339 }
  0x93   : > { %433 = vst [vmem:[#allocation2 + $0x74] sm:$0xf] %v2520_v51  ;;  %434 = vst [vmem:[#allocation2 + $0xa8] sm:$0xf] %v2521_v3  ;;  %v349_v42 = vsel %vm252_vm1, %v4086_v33, %v340_v47  ;;  %v399_v16 = vsel %vm252_vm1, %v4087_v11, %v340_v47  ;;  %v3056_v12 = vld [vmem:[#allocation2] ss:$52 sps:$4 sm:$0xff]   ;;  %v4089_v11 = vpack.c.bf16 %v3345_v41, %v3357_v46 }
  0x94   : > { %454 = vst [vmem:[#allocation2 + $0x10] sm:$0xf] %v2520_v51  ;;  %455 = vst [vmem:[#allocation2 + $0x44] sm:$0xf] %v2521_v3  ;;  %v251_v27 = vpop.permute.xlu0 %250  ;;  %v2516_v26 = vcombine.low %v349_v42, %v349_v42  ;;  %v2517_v30 = vcombine.high %v349_v42, %v349_v42  ;;  %v2522_v43 = vcombine.low %v399_v16, %v399_v16  ;;  %v3073_v33 = vld [vmem:[%s4077_s1 + $0x1b0] sm:$0xff]   ;;  %v3075_v42 = vld [vmem:[%s4077_s1 + $0x1e8] sm:$0xff]  }
  0x95   : > { %297 = vst [vmem:[#allocation2 + $0xd0] sm:$0xf] %v2504_v17  ;;  %298 = vst [vmem:[#allocation2 + $0x104] sm:$0xf] %v2505_v21  ;;  %v2523_v19 = vcombine.high %v399_v16, %v399_v16  ;;  %v264_v10 = vsel %vm252_vm1, %v3325_v34, %v251_v27  ;;  %v4088_v34 = vpack.c.bf16 %v3322_v32, %v3316_v29  ;;  %v3071_v29 = vld [vmem:[%s4077_s1 + $0x1f0] sm:$0xff]   ;;  %v3074_v46 = vld [vmem:[%s4077_s1 + $0x168] sm:$0xff]  }
  0x96   : > { %318 = vst [vmem:[#allocation2 + $0x6c] sm:$0xf] %v2504_v17  ;;  %319 = vst [vmem:[#allocation2 + $0xa0] sm:$0xf] %v2505_v21  ;;  %v2506_v24 = vcombine.low %v264_v10, %v264_v10  ;;  %v2507_v28 = vcombine.high %v264_v10, %v264_v10  ;;  %v393_v39 = vpop.permute.xlu1 %392  ;;  %v3061_v6 = vld [vmem:[#allocation2 + $0xc] ss:$52 sps:$4 sm:$0xff]  }
  0x97   : > { %384 = vst [vmem:[#allocation2 + $0x140] sm:$0xf] %v2516_v26  ;;  %385 = vst [vmem:[#allocation2 + $0x174] sm:$0xf] %v2517_v30  ;;  %v402_v35 = vsel %vm252_vm1, %v4088_v34, %v393_v39  ;;  %2052 = vmatprep.mubr.bf16.mxu1 %v3061_v6  ;;  %v3070_v17 = vld [vmem:[%s4077_s1 + $0x170] sm:$0xff]   ;;  %v3085_v39 = vld [vmem:[%s4077_s1 + $0x1e0] sm:$0xff]  }
  0x98   : > { %435 = vst [vmem:[#allocation2 + $0xdc] sm:$0xf] %v2522_v43  ;;  %436 = vst [vmem:[#allocation2 + $0x110] sm:$0xf] %v2523_v19  ;;  %v305_v50 = vpop.permute.xlu0 %304  ;;  %v2524_v13 = vcombine.low %v402_v35, %v402_v35  ;;  %v2525_v51 = vcombine.high %v402_v35, %v402_v35  ;;  %v3058_v23 = vld [vmem:[#allocation2 + $0x4] ss:$52 sps:$4 sm:$0xff]   ;;  %2053 = vmatmul.mubr.bf16.vlgmr.msra.gmra.mxu1 %v3059_v38 }
  0x99   : > { %456 = vst [vmem:[#allocation2 + $0x78] sm:$0xf] %v2522_v43  ;;  %457 = vst [vmem:[#allocation2 + $0xac] sm:$0xf] %v2523_v19  ;;  %v308_v3 = vsel %vm252_vm1, %v3342_v40, %v305_v50  ;;  %1987 = vmatprep.mubr.bf16.mxu0 %v3058_v23  ;;  %2863 = vmatpush3.bf16.msra.mxu1 %v3065_v8  ;;  %v4090_v19 = vpack.c.bf16 %v3354_v45, %v3351_v44  ;;  %v3072_v38 = vld [vmem:[%s4077_s1 + $0x130] sm:$0xff]   ;;  %v3078_v44 = vld [vmem:[%s4077_s1 + $0x128] sm:$0xff]  }
  0x9a   : > { %299 = vst [vmem:[#allocation2 + $0x138] sm:$0xf] %v2506_v24  ;;  %300 = vst [vmem:[#allocation2 + $0x16c] sm:$0xf] %v2507_v28  ;;  %v2508_v32 = vcombine.low %v308_v3, %v308_v3  ;;  %v2509_v21 = vcombine.high %v308_v3, %v308_v3  ;;  %v3068_v47 = vld [vmem:[#allocation2 + $0x74] ss:$52 sps:$4 sm:$0xff]   ;;  %v477_v40 = vpop.permute.xlu1 %476  ;;  %1988 = vmatmul.mubr.bf16.vlgmr.msra.gmra.mxu0 %v3056_v12  ;;  %2864 = vmatprep.subr.bf16.mxu1 %v3071_v29 }
  0x9b   : > { %320 = vst [vmem:[#allocation2 + $0xd4] sm:$0xf] %v2506_v24  ;;  %321 = vst [vmem:[#allocation2 + $0x108] sm:$0xf] %v2507_v28  ;;  %v487_v16 = vsel %vm252_vm1, %v4089_v11, %v477_v40  ;;  %2060 = vmatprep.mubr.bf16.mxu1 %v3068_v47  ;;  %2823 = vmatpush3.bf16.msra.mxu0 %v3064_v7  ;;  %v3079_v45 = vld [vmem:[%s4077_s1 + $0x1a8] sm:$0xff]   ;;  %v3084_v12 = vld [vmem:[%s4077_s1 + $0x160] sm:$0xff]  }
  0x9c   : > { %437 = vst [vmem:[#allocation2 + $0x144] sm:$0xf] %v2524_v13  ;;  %438 = vst [vmem:[#allocation2 + $0x178] sm:$0xf] %v2525_v51  ;;  %v475_v27 = vpop.permute.xlu0 %474  ;;  %v2530_v30 = vcombine.low %v487_v16, %v487_v16  ;;  %v2531_v43 = vcombine.high %v487_v16, %v487_v16  ;;  %2824 = vmatprep.subr.bf16.mxu0 %v3070_v17  ;;  %v3077_v6 = vld [vmem:[#allocation2 + $0x70] ss:$52 sps:$4 sm:$0xff]  }
  0x9d   : > { %458 = vst [vmem:[#allocation2 + $0xe0] sm:$0xf] %v2524_v13  ;;  %459 = vst [vmem:[#allocation2 + $0x114] sm:$0xf] %v2525_v51  ;;  %v3066_v26 = vld [vmem:[#allocation2 + $0x6c] ss:$52 sps:$4 sm:$0xff]   ;;  %v484_v10 = vsel %vm252_vm1, %v4090_v19, %v475_v27  ;;  %2865 = vmatpush3.bf16.msra.mxu1 %v3073_v33 }
  0x9e   : > { %322 = vst [vmem:[#allocation2 + $0x13c] sm:$0xf] %v2508_v32  ;;  %323 = vst [vmem:[#allocation2 + $0x170] sm:$0xf] %v2509_v21  ;;  %v2528_v24 = vcombine.low %v484_v10, %v484_v10  ;;  %v2529_v41 = vcombine.high %v484_v10, %v484_v10  ;;  %1995 = vmatprep.mubr.bf16.mxu0 %v3066_v26  ;;  %2866 = vmatprep.subr.bf16.mxu1 %v3075_v42  ;;  %v3087_v13 = vld [vmem:[%s4077_s1 + $0x1a0] sm:$0xff]   ;;  %v3089_v21 = vld [vmem:[%s4077_s1 + $0x1d8] sm:$0xff]  }
  0x9f   : > { %524 = vst [vmem:[#allocation2 + $0x7c] sm:$0xf] %v2530_v30  ;;  %525 = vst [vmem:[#allocation2 + $0xb0] sm:$0xf] %v2531_v43  ;;  %2825 = vmatpush3.bf16.msra.mxu0 %v3072_v38  ;;  %v3082_v50 = vld [vmem:[#allocation2 + $0xdc] ss:$52 sps:$4 sm:$0xff]   ;;  %v4091_v42 = vpack.c.bf16 %v3380_v54, %v3377_v53 }
  0xa0   : > { %545 = vst [vmem:[#allocation2 + $0x18] sm:$0xf] %v2530_v30  ;;  %546 = vst [vmem:[#allocation2 + $0x4c] sm:$0xf] %v2531_v43  ;;  %2826 = vmatprep.subr.bf16.mxu0 %v3074_v46  ;;  %v3076_v3 = vld [vmem:[#allocation2 + $0x68] ss:$52 sps:$4 sm:$0xff]   ;;  %2061 = vmatmul.mubr.bf16.gmra.mxu1 %v3077_v6  ;;  %v4092_v46 = vpack.c.bf16 %v3407_v0, %v3398_v61  ;;  %v4093_v61 = vpack.c.bf16 %v3394_v59, %v3386_v56 }
  0xa1   : > { %v479_v28 = vpop.permute.xlu1 %478  ;;  %522 = vst [vmem:[#allocation2 + $0x14] sm:$0xf] %v2528_v24  ;;  %523 = vst [vmem:[#allocation2 + $0x48] sm:$0xf] %v2529_v41  ;;  %2867 = vmatpush3.bf16.msra.mxu1 %v3079_v45  ;;  %2068 = vmatprep.mubr.bf16.mxu1 %v3082_v50  ;;  %v3086_v40 = vld [vmem:[%s4077_s1 + $0x120] sm:$0xff]   ;;  %v3088_v27 = vld [vmem:[%s4077_s1 + $0x158] sm:$0xff]   ;;  %v4094_v59 = vpack.c.bf16 %v3452_v55, %v3446_v37 }
  0xa2   : > { %v490_v7 = vsel %vm252_vm1, %v3374_v52, %v479_v28  ;;  %v3080_v29 = vld [vmem:[#allocation2 + $0xd4] ss:$52 sps:$4 sm:$0xff]   ;;  %1996 = vmatmul.mubr.bf16.gmra.mxu0 %v3076_v3  ;;  %2868 = vmatprep.subr.bf16.mxu1 %v3085_v39  ;;  %v3091_v54 = vld [vmem:[#allocation2 + $0xd8] ss:$52 sps:$4 sm:$0xff]  }
  0xa3   : > { %v563_v8 = vpop.permute.xlu0 %562  ;;  %v2532_v34 = vcombine.low %v490_v7, %v490_v7  ;;  %v2533_v35 = vcombine.high %v490_v7, %v490_v7  ;;  %2827 = vmatpush3.bf16.msra.mxu0 %v3078_v44  ;;  %2003 = vmatprep.mubr.bf16.mxu0 %v3080_v29  ;;  %v3092_v38 = vld [vmem:[%s4077_s1 + $0x118] sm:$0xff]   ;;  %v3099_v24 = vld [vmem:[%s4077_s1 + $0x1d0] sm:$0xff]   ;;  %v3103_v56 = vld [vmem:[%s4077_s1 + $0x1c8] sm:$0xff]  }
  0xa4   : > { %v571_v51 = vsel %vm252_vm1, %v3374_v52, %v563_v8  ;;  %2828 = vmatprep.subr.bf16.mxu0 %v3084_v12  ;;  %v3094_v45 = vld [vmem:[#allocation2 + $0x144] ss:$52 sps:$4 sm:$0xff]   ;;  %v3098_v28 = vld [vmem:[%s4077_s1 + $0x150] sm:$0xff]   ;;  %v3102_v37 = vld [vmem:[%s4077_s1 + $0x148] sm:$0xff]  }
  0xa5   : > { %v2538_v23 = vcombine.low %v571_v51, %v571_v51  ;;  %v2539_v17 = vcombine.high %v571_v51, %v571_v51  ;;  %526 = vst [vmem:[#allocation2 + $0xe4] sm:$0xf] %v2532_v34  ;;  %527 = vst [vmem:[#allocation2 + $0x118] sm:$0xf] %v2533_v35  ;;  %2869 = vmatpush3.bf16.msra.mxu1 %v3087_v13  ;;  %v3101_v39 = vld [vmem:[%s4077_s1 + $0x190] sm:$0xff]  }
  0xa6   : > { %547 = vst [vmem:[#allocation2 + $0x80] sm:$0xf] %v2532_v34  ;;  %548 = vst [vmem:[#allocation2 + $0xb4] sm:$0xf] %v2533_v35  ;;  %v481_v32 = vpop.permute.xlu1 %480  ;;  %2870 = vmatprep.subr.bf16.mxu1 %v3089_v21  ;;  %v3090_v34 = vld [vmem:[#allocation2 + $0xd0] ss:$52 sps:$4 sm:$0xff]  }
  0xa7   : > { %607 = vst [vmem:[#allocation2 + $0x1c] sm:$0xf] %v2538_v23  ;;  %608 = vst [vmem:[#allocation2 + $0x50] sm:$0xf] %v2539_v17  ;;  %v565_v52 = vpop.permute.xlu0 %564  ;;  %v493_v47 = vsel %vm252_vm1, %v3402_v62, %v481_v32  ;;  %2829 = vmatpush3.bf16.msra.mxu0 %v3086_v40  ;;  %v3096_v13 = vld [vmem:[#allocation2 + $0x13c] ss:$52 sps:$4 sm:$0xff]   ;;  %v4095_v17 = vpack.c.bf16 %v3418_v4, %v3413_v2 }
  0xa8   : > { %v573_v33 = vsel %vm252_vm1, %v3402_v62, %v565_v52  ;;  %v624_v11 = vsel %vm252_vm1, %v4091_v42, %v565_v52  ;;  %v2534_v16 = vcombine.low %v493_v47, %v493_v47  ;;  %v3093_v62 = vld [vmem:[%s4077_s1 + $0x198] sm:$0xff]   ;;  %v2535_v10 = vcombine.high %v493_v47, %v493_v47  ;;  %2830 = vmatprep.subr.bf16.mxu0 %v3088_v27  ;;  %v3100_v21 = vld [vmem:[%s4077_s1 + $0x110] sm:$0xff]   ;;  %v3107_v2 = vld [vmem:[%s4077_s1 + $0x188] sm:$0xff]  }
  0xa9   : > { %v2540_v26 = vcombine.low %v573_v33, %v573_v33  ;;  %v2541_v30 = vcombine.high %v573_v33, %v573_v33  ;;  %v2546_v43 = vcombine.low %v624_v11, %v624_v11  ;;  %v2547_v19 = vcombine.high %v624_v11, %v624_v11  ;;  %2069 = vmatmul.mubr.bf16.gmra.mxu1 %v3091_v54  ;;  %v3105_v27 = vld [vmem:[#allocation2 + $0x140] ss:$52 sps:$4 sm:$0xff]  }
  0xaa   : > { %528 = vst [vmem:[#allocation2 + $0x14c] sm:$0xf] %v2534_v16  ;;  %549 = vst [vmem:[#allocation2 + $0xe8] sm:$0xf] %v2534_v16  ;;  %v443_v53 = vpop.permute.xlu1 %442  ;;  %2871 = vmatpush3.bf16.msra.mxu1 %v3093_v62  ;;  %2076 = vmatprep.mubr.bf16.mxu1 %v3094_v45  ;;  %v3111_v62 = vld [vmem:[%s4077_s1 + $0x140] sm:$0xff]  }
  0xab   : > { %609 = vst [vmem:[#allocation2 + $0x84] sm:$0xf] %v2540_v26  ;;  %610 = vst [vmem:[#allocation2 + $0xb8] sm:$0xf] %v2541_v30  ;;  %v567_v41 = vpop.permute.xlu0 %566  ;;  %v446_v44 = vsel %vm252_vm1, %v4092_v46, %v443_v53  ;;  %2004 = vmatmul.mubr.bf16.gmra.mxu0 %v3090_v34  ;;  %2872 = vmatprep.subr.bf16.mxu1 %v3099_v24  ;;  %v3112_v26 = vld [vmem:[%s4077_s1 + $0x1c0] sm:$0xff]  }
  0xac   : > { %660 = vst [vmem:[#allocation2 + $0x20] sm:$0xf] %v2546_v43  ;;  %661 = vst [vmem:[#allocation2 + $0x54] sm:$0xf] %v2547_v19  ;;  %v575_v6 = vsel %vm252_vm1, %v3456_v15, %v567_v41  ;;  %v626_v0 = vsel %vm252_vm1, %v4093_v61, %v567_v41  ;;  %v2526_v7 = vcombine.low %v446_v44, %v446_v44  ;;  %2831 = vmatpush3.bf16.msra.mxu0 %v3092_v38  ;;  %v3106_v19 = vld [vmem:[%s4077_s1 + $0x108] sm:$0xff]   ;;  %v3113_v61 = vld [vmem:[%s4077_s1 + $0x100] sm:$0xff]  }
  0xad   : > { %529 = vst [vmem:[#allocation2 + $0x180] sm:$0xf] %v2535_v10  ;;  %550 = vst [vmem:[#allocation2 + $0x11c] sm:$0xf] %v2535_v10  ;;  %v2527_v8 = vcombine.high %v446_v44, %v446_v44  ;;  %v2542_v35 = vcombine.low %v575_v6, %v575_v6  ;;  %v2543_v50 = vcombine.high %v575_v6, %v575_v6  ;;  %2011 = vmatprep.mubr.bf16.mxu0 %v3096_v13  ;;  %v3114_v10 = vld [vmem:[%s4077_s1 + $0x180] sm:$0xff]  }
  0xae   : > { %v2548_v12 = vcombine.low %v626_v0, %v626_v0  ;;  %v2549_v51 = vcombine.high %v626_v0, %v626_v0  ;;  %460 = vst [vmem:[#allocation2 + $0x148] sm:$0xf] %v2526_v7  ;;  %v569_v3 = vpop.permute.xlu1 %568  ;;  %2832 = vmatprep.subr.bf16.mxu0 %v3098_v28  ;;  %2873 = vmatpush3.bf16.msra.mxu1 %v3101_v39  ;;  %v3117_v33 = vld [vmem:[#allocation2 + $0x1c] ss:$52 sps:$4 sm:$0xff]   ;;  %v3104_v24 = vld [vmem:[#allocation2 + $0x138] ss:$52 sps:$4 sm:$0xff]  }
  0xaf   : > { %461 = vst [vmem:[#allocation2 + $0x17c] sm:$0xf] %v2527_v8  ;;  %611 = vst [vmem:[#allocation2 + $0xec] sm:$0xf] %v2542_v35  ;;  %v578_v23 = vsel %vm252_vm1, %v4094_v59, %v569_v3  ;;  %v628_v29 = vsel %vm252_vm1, %v4095_v17, %v569_v3  ;;  %v534_v32 = vpop.permute.xlu0 %533  ;;  %2874 = vmatprep.subr.bf16.mxu1 %v3103_v56  ;;  %v3110_v44 = vld [vmem:[#allocation2 + $0x14] ss:$52 sps:$4 sm:$0xff]   ;;  %v4099_v28 = vpack.c.bf16 %v3430_v18, %v3421_v5 }
  0xb0   : > { %612 = vst [vmem:[#allocation2 + $0x120] sm:$0xf] %v2543_v50  ;;  %662 = vst [vmem:[#allocation2 + $0x88] sm:$0xf] %v2548_v12  ;;  %v2544_v52 = vcombine.low %v578_v23, %v578_v23  ;;  %v2545_v47 = vcombine.high %v578_v23, %v578_v23  ;;  %v2550_v40 = vcombine.low %v628_v29, %v628_v29  ;;  %2833 = vmatpush3.bf16.msra.mxu0 %v3100_v21  ;;  %v3115_v5 = vld [vmem:[#allocation2 + $0x18] ss:$52 sps:$4 sm:$0xff]  }
  0xb1   : > { %683 = vst [vmem:[#allocation2 + $0x24] sm:$0xf] %v2548_v12  ;;  %663 = vst [vmem:[#allocation2 + $0xbc] sm:$0xf] %v2549_v51  ;;  %v2551_v4 = vcombine.high %v628_v29, %v628_v29  ;;  %v537_v55 = vsel %vm252_vm1, %v3456_v15, %v534_v32  ;;  %v4096_v15 = vpack.c.bf16 %v3436_v22, %v3472_v63  ;;  %v4097_v63 = vld [vmem:[#allocation4_spill] sm:$0xff]  ;;  %2834 = vmatprep.subr.bf16.mxu0 %v3102_v37  ;;  %v3118_v18 = vld [vmem:[%s4077_s1 + $0x278] sm:$0xff]  }
  0xb2   : > { %684 = vst [vmem:[#allocation2 + $0x58] sm:$0xf] %v2549_v51  ;;  %613 = vst [vmem:[#allocation2 + $0x154] sm:$0xf] %v2544_v52  ;;  %v706_v42 = vpop.permute.xlu1 %705  ;;  %v2536_v11 = vcombine.low %v537_v55, %v537_v55  ;;  %v2537_v16 = vcombine.high %v537_v55, %v537_v55  ;;  %v4098_v22 = vpack.c.bf16 %v3462_v31, %v4097_v63  ;;  %2077 = vmatmul.mubr.bf16.gmra.mxu1 %v3105_v27  ;;  %v3119_v31 = vld [vmem:[%s4077_s1 + $0x2f8] sm:$0xff]   ;;  %v3130_v52 = vld [vmem:[%s4077_s1 + $0x268] sm:$0xff]  }
  0xb3   : > { %614 = vst [vmem:[#allocation2 + $0x188] sm:$0xf] %v2545_v47  ;;  %664 = vst [vmem:[#allocation2 + $0xf0] sm:$0xf] %v2550_v40  ;;  %v716_v30 = vsel %vm252_vm1, %v4096_v15, %v706_v42  ;;  %v704_v43 = vpop.permute.xlu0 %703  ;;  %2875 = vmatpush3.bf16.msra.mxu1 %v3107_v2  ;;  %2182 = vmatprep.mubr.bf16.mxu1 %v3117_v33  ;;  %v3121_v50 = vld [vmem:[%s4077_s1 + $0x2b8] sm:$0xff]   ;;  %v4100_v13 = vpack.c.bf16 %v3503_v25, %v3467_v60  ;;  %v3124_v25 = vld [vmem:[%s4077_s1 + $0x270] sm:$0xff]  }
  0xb4   : > { %685 = vst [vmem:[#allocation2 + $0x8c] sm:$0xf] %v2550_v40  ;;  %665 = vst [vmem:[#allocation2 + $0x124] sm:$0xf] %v2551_v4  ;;  %v2558_v53 = vcombine.low %v716_v30, %v716_v30  ;;  %v2559_v54 = vcombine.high %v716_v30, %v716_v30  ;;  %v713_v38 = vsel %vm252_vm1, %v4098_v22, %v704_v43  ;;  %2012 = vmatmul.mubr.bf16.gmra.mxu0 %v3104_v24  ;;  %v3128_v12 = vld [vmem:[#allocation2 + $0x84] ss:$52 sps:$4 sm:$0xff]  }
  0xb5   : > { %686 = vst [vmem:[#allocation2 + $0xc0] sm:$0xf] %v2551_v4  ;;  %551 = vst [vmem:[#allocation2 + $0x150] sm:$0xf] %v2536_v11  ;;  %v2556_v41 = vcombine.low %v713_v38, %v713_v38  ;;  %v2557_v46 = vcombine.high %v713_v38, %v713_v38  ;;  %2876 = vmatprep.subr.bf16.mxu1 %v3112_v26  ;;  %2835 = vmatpush3.bf16.msra.mxu0 %v3106_v19  ;;  %v3120_v3 = vld [vmem:[%s4077_s1 + $0x238] sm:$0xff]   ;;  %v3127_v60 = vld [vmem:[%s4077_s1 + $0x2b0] sm:$0xff]  }
  0xb6   : > { %552 = vst [vmem:[#allocation2 + $0x184] sm:$0xf] %v2537_v16  ;;  %753 = vst [vmem:[#allocation2 + $0x90] sm:$0xf] %v2558_v53  ;;  %v622_v45 = vpop.permute.xlu1 %621  ;;  %2117 = vmatprep.mubr.bf16.mxu0 %v3110_v44  ;;  %2836 = vmatprep.subr.bf16.mxu0 %v3111_v62  ;;  %v3108_v17 = vld [vmem:[#allocation2 + $0x10] ss:$52 sps:$4 sm:$0xff]  }
  0xb7   : > { %754 = vst [vmem:[#allocation2 + $0xc4] sm:$0xf] %v2559_v54  ;;  %774 = vst [vmem:[#allocation2 + $0x2c] sm:$0xf] %v2558_v53  ;;  %v631_v39 = vsel %vm252_vm1, %v4099_v28, %v622_v45  ;;  %v708_v6 = vpop.permute.xlu0 %707  ;;  %2877 = vmatpush3.bf16.msra.mxu1 %v3114_v10  ;;  %v3122_v21 = vld [vmem:[#allocation2 + $0x7c] ss:$52 sps:$4 sm:$0xff]  }
  0xb8   : > { %775 = vst [vmem:[#allocation2 + $0x60] sm:$0xf] %v2559_v54  ;;  %751 = vst [vmem:[#allocation2 + $0x28] sm:$0xf] %v2556_v41  ;;  %v2552_v0 = vcombine.low %v631_v39, %v631_v39  ;;  %v2553_v7 = vcombine.high %v631_v39, %v631_v39  ;;  %v719_v8 = vsel %vm252_vm1, %v693_v20, %v708_v6  ;;  %2942 = vmatprep.subr.bf16.mxu1 %v3119_v31  ;;  %v3135_v47 = vld [vmem:[%s4077_s1 + $0x2a8] sm:$0xff]   ;;  %v3139_v33 = vld [vmem:[%s4077_s1 + $0x2e0] sm:$0xff]  }
  0xb9   : > { %752 = vst [vmem:[#allocation2 + $0x5c] sm:$0xf] %v2557_v46  ;;  %v2560_v34 = vcombine.low %v719_v8, %v719_v8  ;;  %v2561_v35 = vcombine.high %v719_v8, %v719_v8  ;;  %2837 = vmatpush3.bf16.msra.mxu0 %v3113_v61  ;;  %v3133_v37 = vld [vmem:[#allocation2 + $0x80] ss:$52 sps:$4 sm:$0xff]   ;;  %v3132_v42 = vld [vmem:[#allocation2 + $0x78] ss:$52 sps:$4 sm:$0xff]  }
  0xba   : > { %666 = vst [vmem:[#allocation2 + $0x158] sm:$0xf] %v2552_v0  ;;  %667 = vst [vmem:[#allocation2 + $0x18c] sm:$0xf] %v2553_v7  ;;  %v672_v57 = vpop.permute.xlu1 %671  ;;  %2902 = vmatprep.subr.bf16.mxu0 %v3118_v18  ;;  %2183 = vmatmul.mubr.bf16.vlgmr.msra.gmra.mxu1 %v3115_v5  ;;  %v3142_v55 = vld [vmem:[#allocation2 + $0xec] ss:$52 sps:$4 sm:$0xff]  }
  0xbb   : > { %687 = vst [vmem:[#allocation2 + $0xf4] sm:$0xf] %v2552_v0  ;;  %688 = vst [vmem:[#allocation2 + $0x128] sm:$0xf] %v2553_v7  ;;  %v710_v20 = vpop.permute.xlu0 %709  ;;  %v675_v51 = vsel %vm252_vm1, %v4100_v13, %v672_v57  ;;  %2943 = vmatpush3.bf16.msra.mxu1 %v3121_v50  ;;  %2190 = vmatprep.mubr.bf16.mxu1 %v3128_v12  ;;  %v3136_v11 = vld [vmem:[#allocation2 + $0xe4] ss:$52 sps:$4 sm:$0xff]  }
  0xbc   : > { %755 = vst [vmem:[#allocation2 + $0xf8] sm:$0xf] %v2560_v34  ;;  %756 = vst [vmem:[#allocation2 + $0x12c] sm:$0xf] %v2561_v35  ;;  %v722_v56 = vsel %vm252_vm1, %v694_v58, %v710_v20  ;;  %v2554_v59 = vcombine.low %v675_v51, %v675_v51  ;;  %v2555_v23 = vcombine.high %v675_v51, %v675_v51  ;;  %2118 = vmatmul.mubr.bf16.vlgmr.msra.gmra.mxu0 %v3108_v17  ;;  %v3126_v58 = vld [vmem:[%s4077_s1 + $0x230] sm:$0xff]   ;;  %v3145_v16 = vld [vmem:[%s4077_s1 + $0x2d8] sm:$0xff]  }
  0xbd   : > { %776 = vst [vmem:[#allocation2 + $0x94] sm:$0xf] %v2560_v34  ;;  %777 = vst [vmem:[#allocation2 + $0xc8] sm:$0xf] %v2561_v35  ;;  %v2562_v29 = vcombine.low %v722_v56, %v722_v56  ;;  %v2563_v32 = vcombine.high %v722_v56, %v722_v56  ;;  %2944 = vmatprep.subr.bf16.mxu1 %v3125_v9  ;;  %2903 = vmatpush3.bf16.msra.mxu0 %v3120_v3  ;;  %v3140_v27 = vld [vmem:[%s4077_s1 + $0x220] sm:$0xff]   ;;  %v3144_v26 = vld [vmem:[%s4077_s1 + $0x258] sm:$0xff]  }
  0xbe   : > { %689 = vst [vmem:[#allocation2 + $0x15c] sm:$0xf] %v2554_v59  ;;  %690 = vst [vmem:[#allocation2 + $0x190] sm:$0xf] %v2555_v23  ;;  %2125 = vmatprep.mubr.bf16.mxu0 %v3122_v21  ;;  %2904 = vmatprep.subr.bf16.mxu0 %v3124_v25  ;;  %v3147_v15 = vld [vmem:[#allocation2 + $0xe8] ss:$52 sps:$4 sm:$0xff]  }
  0xbf   : > { %757 = vst [vmem:[#allocation2 + $0x160] sm:$0xf] %v2562_v29  ;;  %758 = vst [vmem:[#allocation2 + $0x194] sm:$0xf] %v2563_v32  ;;  %v763_v49 = vpop.permute.xlu0 %762  ;;  %2945 = vmatpush3.bf16.msra.mxu1 %v3127_v60  ;;  %v3149_v30 = vld [vmem:[%s4077_s1 + $0x298] sm:$0xff]   ;;  %v3153_v19 = vld [vmem:[%s4077_s1 + $0x2d0] sm:$0xff]  }
  0xc0   : > { %778 = vst [vmem:[#allocation2 + $0xfc] sm:$0xf] %v2562_v29  ;;  %779 = vst [vmem:[#allocation2 + $0x130] sm:$0xf] %v2563_v32  ;;  %v766_v40 = vsel %vm252_vm1, %v759_v1, %v763_v49  ;;  %2946 = vmatprep.subr.bf16.mxu1 %v3131_v48  ;;  %v3141_v1 = vld [vmem:[%s4077_s1 + $0x2a0] sm:$0xff]   ;;  %v3148_v62 = vld [vmem:[%s4077_s1 + $0x218] sm:$0xff]  }
  0xc1   : > { %v2564_v2 = vcombine.low %v766_v40, %v766_v40  ;;  %v2565_v4 = vcombine.high %v766_v40, %v766_v40  ;;  %2905 = vmatpush3.bf16.msra.mxu0 %v3126_v58  ;;  %v3156_v43 = vld [vmem:[#allocation2 + $0x154] ss:$52 sps:$4 sm:$0xff]   ;;  %v3150_v54 = vld [vmem:[#allocation2 + $0x14c] ss:$52 sps:$4 sm:$0xff]   ;;  %v3161_v41 = vld [vmem:[#allocation2 + $0x150] ss:$52 sps:$4 sm:$0xff]  }
  0xc2   : > { %2906 = vmatprep.subr.bf16.mxu0 %v3130_v52  ;;  %2191 = vmatmul.mubr.bf16.gmra.mxu1 %v3133_v37  ;;  %v3146_v10 = vld [vmem:[#allocation2 + $0xe0] ss:$52 sps:$4 sm:$0xff]   ;;  %v3159_v22 = vld [vmem:[%s4077_s1 + $0x2c8] sm:$0xff]   ;;  %v3166_v6 = vld [vmem:[#allocation2 + $0x24] ss:$52 sps:$4 sm:$0xff]  }
  0xc3   : > { %780 = vst [vmem:[#allocation2 + $0x164] sm:$0xf] %v2564_v2  ;;  %781 = vst [vmem:[#allocation2 + $0x198] sm:$0xf] %v2565_v4  ;;  %2947 = vmatpush3.bf16.msra.mxu1 %v3135_v47  ;;  %2198 = vmatprep.mubr.bf16.mxu1 %v3142_v55  ;;  %v3152_v53 = vld [vmem:[%s4077_s1 + $0x250] sm:$0xff]   ;;  %v3158_v24 = vld [vmem:[%s4077_s1 + $0x248] sm:$0xff]  }
  0xc4   : > { %2126 = vmatmul.mubr.bf16.gmra.mxu0 %v3132_v42  ;;  %2948 = vmatprep.subr.bf16.mxu1 %v3139_v33  ;;  %v3155_v63 = vld [vmem:[%s4077_s1 + $0x290] sm:$0xff]   ;;  %v3163_v46 = vld [vmem:[%s4077_s1 + $0x288] sm:$0xff]   ;;  %v3168_v45 = vld [vmem:[%s4077_s1 + $0x2c0] sm:$0xff]  }
  0xc5   : > { %2907 = vmatpush3.bf16.msra.mxu0 %v3134_v14  ;;  %2133 = vmatprep.mubr.bf16.mxu0 %v3136_v11  ;;  %v3154_v38 = vld [vmem:[%s4077_s1 + $0x210] sm:$0xff]   ;;  %v3173_v44 = vld [vmem:[#allocation2 + $0x2c] ss:$52 sps:$4 sm:$0xff]   ;;  %v3160_v28 = vld [vmem:[#allocation2 + $0x148] ss:$52 sps:$4 sm:$0xff]  }
  0xc6   : > { %2908 = vmatprep.subr.bf16.mxu0 %v3138_v36  ;;  %v3162_v31 = vld [vmem:[%s4077_s1 + $0x208] sm:$0xff]   ;;  %v3167_v39 = vld [vmem:[%s4077_s1 + $0x240] sm:$0xff]   ;;  %v3174_v0 = vld [vmem:[%s4077_s1 + $0x318] sm:$0xff]  }
  0xc7   : > { %2949 = vmatpush3.bf16.msra.mxu1 %v3141_v1  ;;  %v3170_v61 = vld [vmem:[%s4077_s1 + $0x280] sm:$0xff]   ;;  %v3171_v8 = vld [vmem:[#allocation2 + $0x28] ss:$52 sps:$4 sm:$0xff]   ;;  %v3179_v5 = vld [vmem:[%s4077_s1 + $0x310] sm:$0xff]  }
  0xc8   : > { %2950 = vmatprep.subr.bf16.mxu1 %v3145_v16  ;;  %v3169_v7 = vld [vmem:[%s4077_s1 + $0x200] sm:$0xff]   ;;  %v3175_v18 = vld [vmem:[#allocation2 + $0x94] ss:$52 sps:$4 sm:$0xff]   ;;  %v3184_v9 = vld [vmem:[#allocation2 + $0xfc] ss:$52 sps:$4 sm:$0xff]  }
  0xc9   : > { %2909 = vmatpush3.bf16.msra.mxu0 %v3140_v27  ;;  %v3164_v34 = vld [vmem:[#allocation2 + $0x20] ss:$52 sps:$4 sm:$0xff]   ;;  %v3186_v50 = vld [vmem:[%s4077_s1 + $0x308] sm:$0xff]   ;;  %v3181_v12 = vld [vmem:[#allocation2 + $0x90] ss:$52 sps:$4 sm:$0xff]  }
  0xca   : > { %2910 = vmatprep.subr.bf16.mxu0 %v3144_v26  ;;  %2199 = vmatmul.mubr.bf16.gmra.mxu1 %v3147_v15  ;;  %v3177_v35 = vld [vmem:[#allocation2 + $0x8c] ss:$52 sps:$4 sm:$0xff]   ;;  %v3180_v20 = vld [vmem:[#allocation2 + $0x88] ss:$52 sps:$4 sm:$0xff]   ;;  %v3191_v3 = vld [vmem:[#allocation2 + $0x164] ss:$52 sps:$4 sm:$0xff]  }
  0xcb   : > { %2951 = vmatpush3.bf16.msra.mxu1 %v3149_v30  ;;  %2206 = vmatprep.mubr.bf16.mxu1 %v3156_v43  ;;  %v3193_v57 = vld [vmem:[%s4077_s1 + $0x300] sm:$0xff]   ;;  %v3182_v13 = vld [vmem:[#allocation2 + $0xf4] ss:$52 sps:$4 sm:$0xff]   ;;  %v3188_v51 = vld [vmem:[#allocation2 + $0xf8] ss:$52 sps:$4 sm:$0xff]  }
  0xcc   : > { %2134 = vmatmul.mubr.bf16.gmra.mxu0 %v3146_v10  ;;  %2952 = vmatprep.subr.bf16.mxu1 %v3153_v19  ;;  %v3187_v56 = vld [vmem:[#allocation2 + $0xf0] ss:$52 sps:$4 sm:$0xff]   ;;  %v3197_v23 = vld [vmem:[#allocation2 + $0x100] ss:$52 sps:$4 sm:$0xff]   ;;  %v3194_v60 = vld [vmem:[#allocation2 + $0x158] ss:$52 sps:$4 sm:$0xff]  }
  0xcd   : > { %2911 = vmatpush3.bf16.msra.mxu0 %v3148_v62  ;;  %2141 = vmatprep.mubr.bf16.mxu0 %v3150_v54  ;;  %v3189_v59 = vld [vmem:[#allocation2 + $0x15c] ss:$52 sps:$4 sm:$0xff]   ;;  %v3195_v17 = vld [vmem:[#allocation2 + $0x160] ss:$52 sps:$4 sm:$0xff]   ;;  %v3198_v32 = vld [vmem:[#allocation2 + $0x98] ss:$52 sps:$4 sm:$0xff]  }
  0xce   : > { %2912 = vmatprep.subr.bf16.mxu0 %v3152_v53  ;;  %v3196_v25 = vld [vmem:[#allocation2 + $0x30] ss:$52 sps:$4 sm:$0xff]   ;;  %v3199_v29 = vld [vmem:[#allocation2 + $0x168] ss:$52 sps:$4 sm:$0xff]   ;;  %v3975_v52 = vld [vmem:[%s4078_s2] ss:$0 sm:$0xff] }
  0xcf   : > { %2953 = vmatpush3.bf16.msra.mxu1 %v3155_v63 }
  0xd0   : > { %2954 = vmatprep.subr.bf16.mxu1 %v3159_v22 }
  0xd1   : > { %2913 = vmatpush3.bf16.msra.mxu0 %v3154_v38 }
  0xd2   : > { %2914 = vmatprep.subr.bf16.mxu0 %v3158_v24  ;;  %2207 = vmatmul.mubr.bf16.gmra.mxu1 %v3161_v41 }
  0xd3   : > { %2955 = vmatpush3.bf16.msra.mxu1 %v3163_v46  ;;  %2312 = vmatprep.mubr.bf16.mxu1 %v3173_v44 }
  0xd4   : > { %2142 = vmatmul.mubr.bf16.gmra.mxu0 %v3160_v28  ;;  %2956 = vmatprep.subr.bf16.mxu1 %v3168_v45 }
  0xd5   : > { %2915 = vmatpush3.bf16.msra.mxu0 %v3162_v31  ;;  %2247 = vmatprep.mubr.bf16.mxu0 %v3166_v6 }
  0xd6   : > { %2916 = vmatprep.subr.bf16.mxu0 %v3167_v39 }
  0xd7   : > { %2957 = vmatpush3.bf16.msra.mxu1 %v3170_v61 }
  0xd8   : > { %3006 = vmatprep.subr.bf16.mxu1 %v3174_v0 }
  0xd9   : > { %2917 = vmatpush3.bf16.msra.mxu0 %v3169_v7 }
  0xda   : > { %2990 = vmatprep.subr.bf16.mxu0 %v3174_v0  ;;  %2313 = vmatmul.mubr.bf16.vlgmr.msra.gmra.mxu1 %v3171_v8 }
  0xdb   : > { %3010 = vmatpush3.bf16.msra.mxu1 %v3174_v0  ;;  %2320 = vmatprep.mubr.bf16.mxu1 %v3175_v18 }
  0xdc   : > { %2248 = vmatmul.mubr.bf16.vlgmr.msra.gmra.mxu0 %v3164_v34  ;;  %3007 = vmatprep.subr.bf16.mxu1 %v3179_v5 }
  0xdd   : > { %2991 = vmatpush3.bf16.msra.mxu0 %v3174_v0  ;;  %2255 = vmatprep.mubr.bf16.mxu0 %v3177_v35 }
  0xde   : > { %2992 = vmatprep.subr.bf16.mxu0 %v3179_v5 }
  0xdf   : > { %3011 = vmatpush3.bf16.msra.mxu1 %v3179_v5 }
  0xe0   : > { %3008 = vmatprep.subr.bf16.mxu1 %v3186_v50 }
  0xe1   : > { %2993 = vmatpush3.bf16.msra.mxu0 %v3179_v5 }
  0xe2   : > { %2321 = vmatmul.mubr.bf16.gmra.mxu1 %v3181_v12  ;;  %2994 = vmatprep.subr.bf16.mxu0 %v3186_v50 }
  0xe3   : > { %2328 = vmatprep.mubr.bf16.mxu1 %v3184_v9  ;;  %3012 = vmatpush3.bf16.msra.mxu1 %v3186_v50 }
  0xe4   : > { %2256 = vmatmul.mubr.bf16.gmra.mxu0 %v3180_v20  ;;  %3009 = vmatprep.subr.bf16.mxu1 %v3193_v57 }
  0xe5   : > { %2263 = vmatprep.mubr.bf16.mxu0 %v3182_v13  ;;  %2995 = vmatpush3.bf16.msra.mxu0 %v3186_v50 }
  0xe6   : > { %2996 = vmatprep.subr.bf16.mxu0 %v3193_v57 }
  0xe7   : > { %3013 = vmatpush3.bf16.msra.mxu1 %v3193_v57 }
  0xe9   : > { %2997 = vmatpush3.bf16.msra.mxu0 %v3193_v57 }
  0xea   : > { %2329 = vmatmul.mubr.bf16.gmra.mxu1 %v3188_v51 }
  0xeb   : > { %2336 = vmatprep.mubr.bf16.mxu1 %v3191_v3 }
  0xec   : > { %2264 = vmatmul.mubr.bf16.gmra.mxu0 %v3187_v56 }
  0xed   : > { %2271 = vmatprep.mubr.bf16.mxu0 %v3189_v59 }
  0xf2   : > { %2337 = vmatmul.mubr.bf16.gmra.mxu1 %v3195_v17 }
  0xf3   : > { %3002 = vmatprep.mubr.msk.bf16.mxu1 %vm252_vm1, %v3197_v23 }
  0xf4   : > { %2272 = vmatmul.mubr.bf16.gmra.mxu0 %v3194_v60 }
  0xf5   : > { %2998 = vmatprep.mubr.msk.bf16.mxu0 %vm252_vm1, %v3196_v25 }
  0xfa   : > { %3003 = vmatmul.mubr.msk.bf16.vlgmr.msra.gmra.mxu1 %vm252_vm1, %v3199_v29 }
  0xfc   : > { %2999 = vmatmul.mubr.msk.bf16.vlgmr.msra.gmra.mxu0 %vm252_vm1, %v3198_v32 }
 0x158   : > { %v2798_v21 = vpop.f32.mrf.mxu1 }
 0x15a   : > { %v2758_v48 = vpop.f32.mrf.mxu0  ;;  %v2799_v49 = vpop.f32.mrf.mxu1 }
 0x15b   : > { %v2800_v58 = vadd.f32 %v2799_v49, %v2798_v21 }
 0x15c   : > { %v2759_v47 = vpop.f32.mrf.mxu0  ;;  %v2801_v40 = vpop.f32.mrf.mxu1 }
 0x15d   : > { %v2760_v37 = vadd.f32 %v2759_v47, %v2758_v48 }
 0x15e   : > { %v2761_v2 = vpop.f32.mrf.mxu0  ;;  %v2802_v4 = vpop.f32.mrf.mxu1 }
 0x15f   : > { %v1990_v55 = vadd.f32 %v2760_v37, %v3975_v52  ;;  %v2803_v33 = vadd.f32 %v2802_v4, %v2801_v40 }
 0x160   : > { %v2762_v14 = vpop.f32.mrf.mxu0  ;;  %v2804_v36 = vpop.f32.mrf.mxu1 }
 0x161   : > { %v2055_v1 = vadd.f32 %v2800_v58, %v1990_v55  ;;  %v2763_v42 = vadd.f32 %v2762_v14, %v2761_v2 }
 0x162   : > { %v2764_v11 = vpop.f32.mrf.mxu0  ;;  %v2805_v16 = vpop.f32.mrf.mxu1 }
 0x163   : > { %v1993_v27 = vadd.f32 %v2763_v42, %v3975_v52  ;;  %v2806_v26 = vadd.f32 %v2805_v16, %v2804_v36 }
 0x164   : > { %v2765_v15 = vpop.f32.mrf.mxu0  ;;  %v2807_v30 = vpop.f32.mrf.mxu1 }
 0x165   : > { %v3979_v43 = vadd.f32 %v2803_v33, %v1993_v27  ;;  %v2766_v19 = vadd.f32 %v2765_v15, %v2764_v11 }
 0x166   : > { %v2767_v62 = vpop.f32.mrf.mxu0  ;;  %v2808_v10 = vpop.f32.mrf.mxu1 }
 0x167   : > { %v1998_v53 = vadd.f32 %v2766_v19, %v3975_v52  ;;  %v2809_v54 = vadd.f32 %v2808_v10, %v2807_v30 }
 0x168   : > { %v2768_v63 = vpop.f32.mrf.mxu0 }
 0x169   : > { %v2810_v22 = vpop.f32.mrf.mxu1  ;;  %v3982_v38 = vadd.f32 %v2806_v26, %v1998_v53  ;;  %v2769_v24 = vadd.f32 %v2768_v63, %v2767_v62 }
 0x16b   : > { %v2770_v41 = vpop.f32.mrf.mxu0  ;;  %v2811_v46 = vpop.f32.mrf.mxu1  ;;  %v2001_v44 = vadd.f32 %v2769_v24, %v3975_v52 }
 0x16c   : > { %v2812_v45 = vadd.f32 %v2811_v46, %v2810_v22 }
 0x16d   : > { %v2771_v31 = vpop.f32.mrf.mxu0  ;;  %v2813_v28 = vpop.f32.mrf.mxu1  ;;  %v3985_v39 = vadd.f32 %v2809_v54, %v2001_v44 }
 0x16e   : > { %v2772_v6 = vadd.f32 %v2771_v31, %v2770_v41 }
 0x16f   : > { %v2773_v61 = vpop.f32.mrf.mxu0  ;;  %v2814_v0 = vpop.f32.mrf.mxu1 }
 0x170   : > { %v2006_v7 = vadd.f32 %v2772_v6, %v3975_v52  ;;  %v2815_v8 = vadd.f32 %v2814_v0, %v2813_v28 }
 0x171   : > { %v2774_v5 = vpop.f32.mrf.mxu0 }
 0x172   : > { %v2816_v18 = vpop.f32.mrf.mxu1  ;;  %v3988_v34 = vadd.f32 %v2812_v45, %v2006_v7  ;;  %v2775_v35 = vadd.f32 %v2774_v5, %v2773_v61 }
 0x174   : > { %v2776_v50 = vpop.f32.mrf.mxu0  ;;  %v2817_v12 = vpop.f32.mrf.mxu1  ;;  %v2009_v57 = vadd.f32 %v2775_v35, %v3975_v52 }
 0x175   : > { %v3991_v9 = vadd.f32 %v2817_v12, %v2816_v18 }
 0x176   : > { %v2777_v20 = vpop.f32.mrf.mxu0  ;;  %v3993_v13 = vpop.f32.mrf.mxu1  ;;  %v3995_v51 = vadd.f32 %v2815_v8, %v2009_v57 }
 0x178   : > { %v2779_v3 = vpop.f32.mrf.mxu0  ;;  %v3997_v56 = vpop.f32.mrf.mxu1 }
 0x17a   : > { %v2780_v59 = vpop.f32.mrf.mxu0  ;;  %v2878_v23 = vpop.f32.mrf.mxu1 }
 0x17c   : > { %v2838_v17 = vpop.f32.mrf.mxu0  ;;  %v2879_v25 = vpop.f32.mrf.mxu1 }
 0x17d   : > { %v2880_v58 = vadd.f32 %v2879_v25, %v2878_v23  ;;  %v2778_v23 = vadd.f32 %v2777_v20, %v2776_v50 }
 0x17e   : > { %v2839_v60 = vpop.f32.mrf.mxu0  ;;  %v3999_v29 = vpop.f32.mrf.mxu1 }
 0x17f   : > { %v2840_v32 = vadd.f32 %v2839_v60, %v2838_v17  ;;  %v2781_v60 = vadd.f32 %v2780_v59, %v2779_v3  ;;  %v2821_v3 = vadd.f32 %v3997_v56, %v3993_v13 }
 0x180   : > { %v2841_v21 = vpop.f32.mrf.mxu0  ;;  %v4001_v48 = vpop.f32.mrf.mxu1 }
 0x181   : > { %v2120_v49 = vadd.f32 %v2840_v32, %v2055_v1 }
 0x182   : > { %v2842_v47 = vpop.f32.mrf.mxu0  ;;  %v2884_v40 = vpop.f32.mrf.mxu1 }
 0x183   : > { %v4003_v37 = vadd.f32 %v2880_v58, %v2120_v49 }
 0x184   : > { %v2844_v2 = vpop.f32.mrf.mxu0  ;;  %v2885_v4 = vpop.f32.mrf.mxu1 }
 0x186   : > { %v2845_v55 = vpop.f32.mrf.mxu0  ;;  %v4005_v33 = vpop.f32.mrf.mxu1 }
 0x187   : > { %v2846_v32 = vadd.f32 %v2845_v55, %v2844_v2  ;;  %v2886_v55 = vadd.f32 %v2885_v4, %v2884_v40 }
 0x188   : > { %v2847_v14 = vpop.f32.mrf.mxu0  ;;  %v4007_v36 = vpop.f32.mrf.mxu1 }
 0x18a   : > { %v2848_v42 = vpop.f32.mrf.mxu0  ;;  %v4009_v11 = vpop.f32.mrf.mxu1 }
 0x18b   : > { %v2849_v59 = vadd.f32 %v2848_v42, %v2847_v14 }
 0x18c   : > { %v2850_v16 = vpop.f32.mrf.mxu0  ;;  %v2891_v27 = vpop.f32.mrf.mxu1 }
 0x18d   : > { %v2892_v13 = vadd.f32 %v2891_v27, %v4009_v11 }
 0x18e   : > { %v2851_v26 = vpop.f32.mrf.mxu0  ;;  %v4011_v1 = vpop.f32.mrf.mxu1 }
 0x190   : > { %v2853_v15 = vpop.f32.mrf.mxu0  ;;  %v4013_v30 = vpop.f32.mrf.mxu1 }
 0x192   : > { %v2854_v19 = vpop.f32.mrf.mxu0  ;;  %v2896_v62 = vpop.f32.mrf.mxu1 }
 0x193   : > { %v2855_v2 = vadd.f32 %v2854_v19, %v2853_v15 }
 0x194   : > { %v2856_v10 = vpop.f32.mrf.mxu0  ;;  %v2897_v53 = vpop.f32.mrf.mxu1 }
 0x195   : > { %v2139_v14 = vadd.f32 %v2855_v2, %v3995_v51  ;;  %v2898_v42 = vadd.f32 %v2897_v53, %v2896_v62 }
 0x196   : > { %v2857_v54 = vpop.f32.mrf.mxu0  ;;  %v4015_v63 = vpop.f32.mrf.mxu1 }
 0x198   : > { %v2859_v22 = vpop.f32.mrf.mxu0  ;;  %v4017_v24 = vpop.f32.mrf.mxu1 }
 0x19a   : > { %v2860_v41 = vpop.f32.mrf.mxu0  ;;  %v4019_v46 = vpop.f32.mrf.mxu1 }
 0x19b   : > { %4101 = vst [vmem:[#allocation4_spill] sm:$0xff] %v4019_v46 }
 0x19c   : > { %v2918_v44 = vpop.f32.mrf.mxu0  ;;  %v4021_v45 = vpop.f32.mrf.mxu1 }
 0x19d   : > { %4102 = vst [vmem:[#allocation5_spill] sm:$0xff] %v4021_v45 }
 0x19e   : > { %v2919_v31 = vpop.f32.mrf.mxu0  ;;  %v4023_v28 = vpop.f32.mrf.mxu1 }
 0x19f   : > { %4103 = vst [vmem:[#allocation6_spill] sm:$0xff] %v4023_v28  ;;  %v2852_v28 = vadd.f32 %v2851_v26, %v2850_v16  ;;  %v2861_v26 = vadd.f32 %v2860_v41, %v2859_v22  ;;  %v2920_v19 = vadd.f32 %v2919_v31, %v2918_v44 }
 0x1a0   : > { %v2921_v6 = vpop.f32.mrf.mxu0  ;;  %v4025_v61 = vpop.f32.mrf.mxu1 }
 0x1a1   : > { %4104 = vst [vmem:[#allocation7_spill] sm:$0xff] %v4025_v61  ;;  %v2014_v61 = vadd.f32 %v2778_v23, %v3975_v52  ;;  %v2136_v16 = vadd.f32 %v2852_v28, %v3988_v34  ;;  %v2131_v34 = vadd.f32 %v2849_v59, %v3985_v39  ;;  %v2901_v39 = vadd.f32 %v4017_v24, %v4015_v63 }
 0x1a2   : > { %v2922_v0 = vpop.f32.mrf.mxu0  ;;  %v4027_v7 = vpop.f32.mrf.mxu1  ;;  %v2250_v44 = vadd.f32 %v2920_v19, %v4003_v37 }
 0x1a3   : > { %4105 = vst [vmem:[#allocation8_spill] sm:$0xff] %v4027_v7  ;;  %v2858_v7 = vadd.f32 %v2857_v54, %v2856_v10  ;;  %v2923_v28 = vadd.f32 %v2922_v0, %v2921_v6  ;;  %v4114_v0 = vld [vmem:[#allocation4_spill] sm:$0xff] }
 0x1a4   : > { %v2924_v8 = vpop.f32.mrf.mxu0  ;;  %v4029_v5 = vpop.f32.mrf.mxu1 }
 0x1a5   : > { %4106 = vst [vmem:[#allocation9_spill] sm:$0xff] %v4029_v5  ;;  %v2017_v5 = vadd.f32 %v2781_v60, %v3975_v52 }
 0x1a6   : > { %v2925_v18 = vpop.f32.mrf.mxu0  ;;  %v4031_v35 = vpop.f32.mrf.mxu1 }
 0x1a7   : > { %4107 = vst [vmem:[#allocation10_spill] sm:$0xff] %v4031_v35  ;;  %v2843_v35 = vadd.f32 %v2842_v47, %v2841_v21  ;;  %v2082_v52 = vadd.f32 %v2821_v3, %v2017_v5  ;;  %v2926_v56 = vadd.f32 %v2925_v18, %v2924_v8 }
 0x1a8   : > { %v2927_v12 = vpop.f32.mrf.mxu0  ;;  %v4033_v57 = vpop.f32.mrf.mxu1 }
 0x1a9   : > { %4108 = vst [vmem:[#allocation11_spill] sm:$0xff] %v4033_v57  ;;  %v2128_v57 = vadd.f32 %v2846_v32, %v3982_v38  ;;  %v2123_v21 = vadd.f32 %v2843_v35, %v3979_v43  ;;  %v2883_v38 = vadd.f32 %v4001_v48, %v3999_v29  ;;  %v2201_v43 = vadd.f32 %v2892_v13, %v2136_v16 }
 0x1aa   : > { %v2928_v17 = vpop.f32.mrf.mxu0  ;;  %v4035_v25 = vpop.f32.mrf.mxu1  ;;  %v2895_v29 = vadd.f32 %v4013_v30, %v4011_v1  ;;  %v2147_v48 = vadd.f32 %v2861_v26, %v2082_v52  ;;  %v4111_v31 = vld [vmem:[#allocation8_spill] sm:$0xff]  ;;  %v4119_v52 = vld [vmem:[#allocation6_spill] sm:$0xff] }
 0x1ab   : > { %4109 = vst [vmem:[#allocation12_spill] sm:$0xff] %v4035_v25  ;;  %v2079_v25 = vadd.f32 %v3991_v9, %v2014_v61  ;;  %v2193_v10 = vadd.f32 %v2886_v55, %v2128_v57  ;;  %v2889_v9 = vadd.f32 %v4007_v36, %v4005_v33  ;;  %v2929_v36 = vadd.f32 %v2928_v17, %v2927_v12 }
 0x1ac   : > { %v2930_v49 = vpop.f32.mrf.mxu0  ;;  %v2971_v58 = vpop.f32.mrf.mxu1  ;;  %v2188_v41 = vadd.f32 %v2883_v38, %v2123_v21  ;;  %v2204_v61 = vadd.f32 %v2895_v29, %v2139_v14  ;;  %v2212_v30 = vadd.f32 %v2901_v39, %v2147_v48  ;;  %v4112_v8 = vld [vmem:[#allocation9_spill] sm:$0xff]  ;;  %v4120_v21 = vld [vmem:[#allocation7_spill] sm:$0xff] }
 0x1ad   : > { %v2144_v47 = vadd.f32 %v2858_v7, %v2079_v25  ;;  %v2258_v51 = vadd.f32 %v2926_v56, %v2193_v10  ;;  %v2966_v5 = vadd.f32 %v4112_v8, %v4111_v31  ;;  %v4115_v25 = vld [vmem:[#allocation5_spill] sm:$0xff] }
 0x1ae   : > { %v2931_v45 = vpop.f32.mrf.mxu0  ;;  %v4038_v46 = vpop.f32.mrf.mxu1  ;;  %v2960_v60 = vadd.f32 %v4115_v25, %v4114_v0  ;;  %v2253_v32 = vadd.f32 %v2923_v28, %v2188_v41  ;;  %v4116_v37 = vld [vmem:[#allocation10_spill] sm:$0xff] }
 0x1af   : > { %4110 = vst [vmem:[#allocation13_spill] sm:$0xff] %v4038_v46  ;;  %v2932_v15 = vadd.f32 %v2931_v45, %v2930_v49  ;;  %v2209_v33 = vadd.f32 %v2898_v42, %v2144_v47  ;;  %v2196_v45 = vadd.f32 %v2889_v9, %v2131_v34  ;;  %v2323_v49 = vadd.f32 %v2966_v5, %v2258_v51 }
 0x1b0   : > { %v2933_v50 = vpop.f32.mrf.mxu0  ;;  %v2974_v20 = vpop.f32.mrf.mxu1  ;;  %v4117_v2 = vld [vmem:[#allocation11_spill] sm:$0xff]  ;;  %v2315_v13 = vadd.f32 %v2960_v60, %v2250_v44 }
 0x1b1   : > { %v2266_v7 = vadd.f32 %v2932_v15, %v2201_v43  ;;  %v2261_v57 = vadd.f32 %v2929_v36, %v2196_v45  ;;  %v2969_v55 = vadd.f32 %v4117_v2, %v4116_v37 }
 0x1b2   : > { %v2934_v23 = vpop.f32.mrf.mxu0  ;;  %v2976_v46 = vpop.f32.mrf.mxu1  ;;  %v4113_v17 = vld [vmem:[#allocation12_spill] sm:$0xff] }
 0x1b3   : > { %v2935_v11 = vadd.f32 %v2934_v23, %v2933_v50  ;;  %v2972_v63 = vadd.f32 %v2971_v58, %v4113_v17  ;;  %v2963_v58 = vadd.f32 %v4120_v21, %v4119_v52 }
 0x1b4   : > { %v2936_v40 = vpop.f32.mrf.mxu0  ;;  %v2977_v4 = vpop.f32.mrf.mxu1 }
 0x1b5   : > { %v2978_v18 = vadd.f32 %v2977_v4, %v2976_v46  ;;  %v2269_v24 = vadd.f32 %v2935_v11, %v2204_v61  ;;  %v2331_v23 = vadd.f32 %v2972_v63, %v2266_v7 }
 0x1b6   : > { %v2937_v54 = vpop.f32.mrf.mxu0  ;;  %v2979_v22 = vpop.f32.mrf.mxu1  ;;  %v4118_v16 = vld [vmem:[#allocation13_spill] sm:$0xff] }
 0x1b7   : > { %v2938_v27 = vadd.f32 %v2937_v54, %v2936_v40  ;;  %v2975_v46 = vadd.f32 %v2974_v20, %v4118_v16  ;;  %v2326_v40 = vadd.f32 %v2969_v55, %v2261_v57  ;;  %v2318_v20 = vadd.f32 %v2963_v58, %v2253_v32 }
 0x1b8   : > { %v2939_v62 = vpop.f32.mrf.mxu0  ;;  %v2980_v53 = vpop.f32.mrf.mxu1 }
 0x1b9   : > { %v2274_v1 = vadd.f32 %v2938_v27, %v2209_v33  ;;  %v2981_v38 = vadd.f32 %v2980_v53, %v2979_v22  ;;  %v2334_v4 = vadd.f32 %v2975_v46, %v2269_v24 }
 0x1ba   : > { %v2940_v35 = vpop.f32.mrf.mxu0  ;;  %v3004_v12 = vpop.f32.mrf.mxu1 }
 0x1bb   : > { %v2941_v6 = vadd.f32 %v2940_v35, %v2939_v62  ;;  %v2339_v3 = vadd.f32 %v2978_v18, %v2274_v1 }
 0x1bc   : > { %v3000_v50 = vpop.f32.mrf.mxu0  ;;  %v2395_v59 = vpop.f32.mrf.mxu1 }
 0x1bd   : > { %v2277_v26 = vadd.f32 %v2941_v6, %v2212_v30  ;;  %v2388_v47 = vadd.f32 %v3000_v50, %v2323_v49  ;;  %v2396_v56 = vadd.f32 %v2395_v59, %v2331_v23  ;;  %v2404_v34 = vadd.f32 %v3004_v12, %v2339_v3 }
 0x1be   : > { %v2379_v10 = vpop.f32.mrf.mxu0  ;;  %v3005_v9 = vpop.f32.mrf.mxu1 }
 0x1bf   : > { %v2342_v42 = vadd.f32 %v2981_v38, %v2277_v26  ;;  %v2380_v43 = vadd.f32 %v2379_v10, %v2315_v13  ;;  %v2412_v19 = vmax.f32 %v2388_v47, 0.0  ;;  %v2414_v36 = vmax.f32 %v2396_v56, 0.0 }
 0x1c0   : > { %v3001_v14 = vpop.f32.mrf.mxu0  ;;  %v2398_v15 = vpop.f32.mrf.mxu1  ;;  %v2416_v41 = vmax.f32 %v2404_v34, 0.0 }
 0x1c1   : > { %v2391_v29 = vadd.f32 %v3001_v14, %v2326_v40  ;;  %v2399_v48 = vadd.f32 %v2398_v15, %v2334_v4  ;;  %v2407_v54 = vadd.f32 %v3005_v9, %v2342_v42  ;;  %v2410_v28 = vmax.f32 %v2380_v43, 0.0 }
 0x1c2   : > { %v2382_v33 = vpop.f32.mrf.mxu0 }
 0x1c3   : > { %v2413_v22 = vmax.f32 %v2391_v29, 0.0  ;;  %v2383_v11 = vadd.f32 %v2382_v33, %v2318_v20  ;;  %v2415_v27 = vmax.f32 %v2399_v48, 0.0  ;;  %v2417_v39 = vmax.f32 %v2407_v54, 0.0 }
 0x1c5   : > { %v2419_v51 = vmax.f32 %v2412_v19, %v2413_v22  ;;  %v2411_v62 = vmax.f32 %v2383_v11, 0.0  ;;  %v2420_v53 = vmax.f32 %v2414_v36, %v2415_v27  ;;  %v2421_v45 = vmax.f32 %v2416_v41, %v2417_v39 }
 0x1c7   : > { %2423 = vst [vmem:[#allocation3 + $0x8] sm:$0xff] %v2419_v51  ;;  %v2418_v61 = vmax.f32 %v2410_v28, %v2411_v62  ;;  %2424 = vst [vmem:[#allocation3 + $0x10] sm:$0xff] %v2420_v53 }
 0x1c8   : > { %2425 = vst [vmem:[#allocation3 + $0x18] sm:$0xff] %v2421_v45 }
 0x1c9   : > { %2422 = vst [vmem:[#allocation3] sm:$0xff] %v2418_v61 }
 0x1cf   : > { %v2428_v7 = vld [vmem:[#allocation3 + $0x10] ss:$2 sm:$0xff]  ;;  %v2432_v1 = vld [vmem:[#allocation3 + $0x11] ss:$2 sm:$0xff] }
 0x1d0   : > { %v2426_v30 = vld [vmem:[#allocation3] ss:$2 sm:$0xff]  ;;  %v2430_v44 = vld [vmem:[#allocation3 + $0x1] ss:$2 sm:$0xff]  ;;  %v2434_v31 = vmax.f32 %v2428_v7, %v2432_v1 }
 0x1d1   : > { %v2433_v8 = vmax.f32 %v2426_v30, %v2430_v44 }
 0x1d2   : > { %2436 = vst [vmem:[%s170_s26 + $0x8] sm:$0xff] %v2434_v31 }
 0x1d3   : > { %2435 = vst [vmem:[%s170_s26] sm:$0xff] %v2433_v8 }
 0x1d4 PF: > { %s13_s12 = sadd.s32 1, %s3206_s12  }
 0x1d5   : > { %p10_p4 = scmp.ge.s32.totalorder %s13_s12, 4  }
 0x1d7   :  { %12 = sbr.rel (!%p10_p4) target bundleno = 1 (0x1), region = 65 }

// kernel: cifar10_net_forward.9
= control target key start
LH: loop header
LB: loop body
LE: loop exit
PB: predicated region body
PF: predicated region fallthrough
CT: control target
= control target key end

     0   :  { %v361_v30 = vmov 1983009808   ;;  %v92_v32 = vlaneseq  ;;  %s584_s0 = inlined_call_operand.vmem [shape: f32[2,512], index: 0, kind: input, shape index: {}]   ;;  %s585_s1 = inlined_call_operand.vmem [shape: f32[512,10], index: 1, kind: input, shape index: {}]   ;;  %s586_s2 = inlined_call_operand.vmem [shape: f32[1,10], index: 2, kind: input, shape index: {}]   ;;  %s587_s3 = inlined_call_operand.hbm [shape: f32[2,10], index: 3, kind: output, shape index: {}]  }
   0x1   :  { %v47_v0 = vld [vmem:[%s585_s1 + $0xf8] sm:$0xff]  ;;  %v46_v4 = vld [vmem:[%s585_s1 + $0xf0] sm:$0xff]  ;;  %v45_v8 = vld [vmem:[%s585_s1 + $0xe8] sm:$0xff]  ;;  %v90_v31 = vunpack.c.l.s4 %v361_v30 }
   0x2   :  { %v79_v1 = vld [vmem:[%s585_s1 + $0x1f8] sm:$0xff]  ;;  %266 = vmatprep.subr.mxu0 %v47_v0  ;;  %v78_v5 = vld [vmem:[%s585_s1 + $0x1f0] sm:$0xff]  ;;  %v77_v9 = vld [vmem:[%s585_s1 + $0x1e8] sm:$0xff]  ;;  %v93_v42 = vshrl.u32 %v92_v32, 7 }
   0x3   :  { %v31_v2 = vld [vmem:[%s585_s1 + $0x78] sm:$0xff]  ;;  %301 = vmatprep.subr.mxu1 %v79_v1  ;;  %v30_v6 = vld [vmem:[%s585_s1 + $0x70] sm:$0xff]  ;;  %v29_v10 = vld [vmem:[%s585_s1 + $0x68] sm:$0xff]  ;;  %v91_v41 = vunpack.c.0.s8 %v90_v31 }
   0x4   :  { %v63_v3 = vld [vmem:[%s585_s1 + $0x178] sm:$0xff]  ;;  %267 = vmatpush3.msra.mxu0 %v31_v2  ;;  %v62_v7 = vld [vmem:[%s585_s1 + $0x170] sm:$0xff]  ;;  %v61_v11 = vld [vmem:[%s585_s1 + $0x168] sm:$0xff] }
   0x5   :  { %302 = vmatpush3.msra.mxu1 %v63_v3  ;;  %268 = vmatprep.subr.mxu0 %v46_v4  ;;  %v44_v12 = vld [vmem:[%s585_s1 + $0xe0] sm:$0xff]  ;;  %v43_v16 = vld [vmem:[%s585_s1 + $0xd8] sm:$0xff]  ;;  %v42_v20 = vld [vmem:[%s585_s1 + $0xd0] sm:$0xff]  ;;  %v94_v52 = vsub.s32 %v91_v41, %v93_v42 }
   0x6   :  { %303 = vmatprep.subr.mxu1 %v78_v5  ;;  %269 = vmatpush3.msra.mxu0 %v30_v6  ;;  %v76_v13 = vld [vmem:[%s585_s1 + $0x1e0] sm:$0xff]  ;;  %v75_v17 = vld [vmem:[%s585_s1 + $0x1d8] sm:$0xff]  ;;  %v74_v21 = vld [vmem:[%s585_s1 + $0x1d0] sm:$0xff] }
   0x7   :  { %304 = vmatpush3.msra.mxu1 %v62_v7  ;;  %270 = vmatprep.subr.mxu0 %v45_v8  ;;  %v28_v14 = vld [vmem:[%s585_s1 + $0x60] sm:$0xff]  ;;  %v27_v18 = vld [vmem:[%s585_s1 + $0x58] sm:$0xff]  ;;  %v26_v22 = vld [vmem:[%s585_s1 + $0x50] sm:$0xff] }
   0x8   :  { %305 = vmatprep.subr.mxu1 %v77_v9  ;;  %v60_v15 = vld [vmem:[%s585_s1 + $0x160] sm:$0xff]  ;;  %271 = vmatpush3.msra.mxu0 %v29_v10  ;;  %v59_v19 = vld [vmem:[%s585_s1 + $0x158] sm:$0xff]  ;;  %v58_v23 = vld [vmem:[%s585_s1 + $0x150] sm:$0xff] }
   0x9   :  { %306 = vmatpush3.msra.mxu1 %v61_v11  ;;  %272 = vmatprep.subr.mxu0 %v44_v12  ;;  %v41_v24 = vld [vmem:[%s585_s1 + $0xc8] sm:$0xff]  ;;  %v40_v28 = vld [vmem:[%s585_s1 + $0xc0] sm:$0xff]  ;;  %v39_v35 = vld [vmem:[%s585_s1 + $0xb8] sm:$0xff] }
   0xa   :  { %307 = vmatprep.subr.mxu1 %v76_v13  ;;  %273 = vmatpush3.msra.mxu0 %v28_v14  ;;  %v73_v25 = vld [vmem:[%s585_s1 + $0x1c8] sm:$0xff]  ;;  %v72_v29 = vld [vmem:[%s585_s1 + $0x1c0] sm:$0xff]  ;;  %v71_v36 = vld [vmem:[%s585_s1 + $0x1b8] sm:$0xff] }
   0xb   :  { %308 = vmatpush3.msra.mxu1 %v60_v15  ;;  %274 = vmatprep.subr.mxu0 %v43_v16  ;;  %v25_v26 = vld [vmem:[%s585_s1 + $0x48] sm:$0xff]  ;;  %v24_v33 = vld [vmem:[%s585_s1 + $0x40] sm:$0xff]  ;;  %v23_v37 = vld [vmem:[%s585_s1 + $0x38] sm:$0xff] }
   0xc   :  { %309 = vmatprep.subr.mxu1 %v75_v17  ;;  %275 = vmatpush3.msra.mxu0 %v27_v18  ;;  %v57_v27 = vld [vmem:[%s585_s1 + $0x148] sm:$0xff]  ;;  %v56_v34 = vld [vmem:[%s585_s1 + $0x140] sm:$0xff]  ;;  %v55_v38 = vld [vmem:[%s585_s1 + $0x138] sm:$0xff] }
   0xd   :  { %310 = vmatpush3.msra.mxu1 %v59_v19  ;;  %276 = vmatprep.subr.mxu0 %v42_v20  ;;  %v38_v39 = vld [vmem:[%s585_s1 + $0xb0] sm:$0xff]  ;;  %v37_v45 = vld [vmem:[%s585_s1 + $0xa8] sm:$0xff]  ;;  %v36_v49 = vld [vmem:[%s585_s1 + $0xa0] sm:$0xff] }
   0xe   :  { %311 = vmatprep.subr.mxu1 %v74_v21  ;;  %277 = vmatpush3.msra.mxu0 %v26_v22  ;;  %v70_v40 = vld [vmem:[%s585_s1 + $0x1b0] sm:$0xff]  ;;  %v69_v46 = vld [vmem:[%s585_s1 + $0x1a8] sm:$0xff]  ;;  %v68_v50 = vld [vmem:[%s585_s1 + $0x1a0] sm:$0xff] }
   0xf   :  { %312 = vmatpush3.msra.mxu1 %v58_v23  ;;  %278 = vmatprep.subr.mxu0 %v41_v24  ;;  %v22_v43 = vld [vmem:[%s585_s1 + $0x30] sm:$0xff]  ;;  %v21_v47 = vld [vmem:[%s585_s1 + $0x28] sm:$0xff]  ;;  %v20_v51 = vld [vmem:[%s585_s1 + $0x20] sm:$0xff] }
  0x10   :  { %313 = vmatprep.subr.mxu1 %v73_v25  ;;  %279 = vmatpush3.msra.mxu0 %v25_v26  ;;  %v54_v44 = vld [vmem:[%s585_s1 + $0x130] sm:$0xff]  ;;  %v53_v48 = vld [vmem:[%s585_s1 + $0x128] sm:$0xff]  ;;  %v52_v53 = vld [vmem:[%s585_s1 + $0x120] sm:$0xff] }
  0x11   :  { %314 = vmatpush3.msra.mxu1 %v57_v27  ;;  %280 = vmatprep.subr.mxu0 %v40_v28  ;;  %v15_v54 = vld [vmem:[%s584_s0] sm:$0xff] }
  0x12   :  { %315 = vmatprep.subr.mxu1 %v72_v29  ;;  %281 = vmatpush3.msra.mxu0 %v24_v33 }
  0x13   :  { %316 = vmatpush3.msra.mxu1 %v56_v34  ;;  %282 = vmatprep.subr.mxu0 %v39_v35 }
  0x14   :  { %317 = vmatprep.subr.mxu1 %v71_v36  ;;  %283 = vmatpush3.msra.mxu0 %v23_v37 }
  0x15   :  { %318 = vmatpush3.msra.mxu1 %v55_v38  ;;  %284 = vmatprep.subr.mxu0 %v38_v39 }
  0x16   :  { %319 = vmatprep.subr.mxu1 %v70_v40  ;;  %285 = vmatpush3.msra.mxu0 %v22_v43 }
  0x17   :  { %320 = vmatpush3.msra.mxu1 %v54_v44  ;;  %286 = vmatprep.subr.mxu0 %v37_v45 }
  0x18   :  { %321 = vmatprep.subr.mxu1 %v69_v46 }
  0x19   :  { %8 = vsyncpa [#allocation3], 0  ;;  %287 = vmatpush3.msra.mxu0 %v21_v47  ;;  %322 = vmatpush3.msra.mxu1 %v53_v48  ;;  %v35_v55 = vld [vmem:[%s585_s1 + $0x98] sm:$0xff]  ;;  %v88_v57 = vcombine.high %v15_v54, %v15_v54  ;;  %v34_v60 = vld [vmem:[%s585_s1 + $0x90] sm:$0xff]  ;;  %v95_v62 = vrot.slane %v15_v54, %v94_v52  ;;  %s362_s8 = smov [#allocation2]   ;;  %vm249_vm0 = vcmask 74752  }
  0x1a   :  { %v67_v56 = vld [vmem:[%s585_s1 + $0x198] sm:$0xff]  ;;  %288 = vmatprep.subr.mxu0 %v36_v49  ;;  %323 = vmatprep.subr.mxu1 %v68_v50  ;;  %v66_v61 = vld [vmem:[%s585_s1 + $0x190] sm:$0xff]  ;;  %v33_v2 = vld [vmem:[%s585_s1 + $0x88] sm:$0xff]  ;;  %s257_s0 = sshll.u32 %s362_s8, 4  ;;  %s258_s0 = int_to_ptr.vmem [resolvable:$true] %s257_s0 }
  0x1b   :  { %v19_v58 = vld [vmem:[%s585_s1 + $0x18] sm:$0xff]  ;;  %289 = vmatpush3.msra.mxu0 %v20_v51  ;;  %324 = vmatpush3.msra.mxu1 %v52_v53  ;;  %v18_v63 = vld [vmem:[%s585_s1 + $0x10] sm:$0xff]  ;;  %v102_v1 = vrot.slane %v88_v57, %v94_v52  ;;  %v65_v3 = vld [vmem:[%s585_s1 + $0x188] sm:$0xff]  ;;  %v103_v8 = vcombine.high %v95_v62, %v95_v62  ;;  %p344_p1 = scmp.lt.s32.totalorder %s258_s0, %s258_s0 }
  0x1c   :  { %v51_v59 = vld [vmem:[%s585_s1 + $0x118] sm:$0xff]  ;;  %290 = vmatprep.subr.mxu0 %v35_v55  ;;  %325 = vmatprep.subr.mxu1 %v67_v56  ;;  %v50_v0 = vld [vmem:[%s585_s1 + $0x110] sm:$0xff]  ;;  %v17_v4 = vld [vmem:[%s585_s1 + $0x8] sm:$0xff] }
  0x1d   :  { %291 = vmatpush3.msra.mxu0 %v19_v58  ;;  %326 = vmatpush3.msra.mxu1 %v51_v59  ;;  %v49_v5 = vld [vmem:[%s585_s1 + $0x108] sm:$0xff]  ;;  %v32_v6 = vld [vmem:[%s585_s1 + $0x80] sm:$0xff]  ;;  %v104_v10 = vcombine.high %v102_v1, %v102_v1 }
  0x1e   :  { %292 = vmatprep.subr.mxu0 %v34_v60  ;;  %327 = vmatprep.subr.mxu1 %v66_v61  ;;  %v64_v7 = vld [vmem:[%s585_s1 + $0x180] sm:$0xff] }
  0x1f   :  { %293 = vmatpush3.msra.mxu0 %v18_v63  ;;  %328 = vmatpush3.msra.mxu1 %v50_v0  ;;  %v16_v9 = vld [vmem:[%s585_s1] sm:$0xff] }
  0x20   :  { %294 = vmatprep.subr.mxu0 %v33_v2  ;;  %329 = vmatprep.subr.mxu1 %v65_v3  ;;  %v48_v11 = vld [vmem:[%s585_s1 + $0x100] sm:$0xff]  ;;  %s339_s1 = scalar_lea.vmem %s258_s0, 32 }
  0x21   :  { %295 = vmatpush3.msra.mxu0 %v17_v4  ;;  %330 = vmatpush3.msra.mxu1 %v49_v5  ;;  %v265_v14 = vld [vmem:[%s586_s2] ss:$0 sm:$0xff]  ;;  %p340_p0 = scmp.ne.s32.totalorder %s258_s0, %s339_s1  ;;  %p345_p2 = scmp.lt.s32.totalorder %s339_s1, %s339_s1 }
  0x22   :  { %296 = vmatprep.subr.mxu0 %v32_v6  ;;  %331 = vmatprep.subr.mxu1 %v64_v7 }
  0x23   :  { %297 = vmatpush3.msra.mxu0 %v16_v9  ;;  %173 = vmatprep.mubr.f32.mxu0 %v103_v8  ;;  %p346_p3 = por %p345_p2, %p344_p1 }
  0x24   :  { %332 = vmatpush3.msra.mxu1 %v48_v11  ;;  %243 = vmatprep.mubr.f32.mxu1 %v104_v10 }
  0x25   :  { %174 = vmatmul.mubr.f32.vlgmr.msra.gmra.mxu0 %v95_v62  ;;  %244 = vmatmul.mubr.f32.vlgmr.msra.gmra.mxu1 %v102_v1  ;;  %p347_p4 = pnand %p346_p3, %p340_p0 }
  0xe5   :  { %v298_v12 = vpop.f32.mrf.mxu0  ;;  %v333_v13 = vpop.f32.mrf.mxu1 }
  0xe7   :  { %v299_v15 = vpop.f32.mrf.mxu0  ;;  %v334_v16 = vpop.f32.mrf.mxu1 }
  0xe8   :  { %v300_v17 = vadd.f32 %v299_v15, %v298_v12  ;;  %v335_v19 = vadd.f32 %v334_v16, %v333_v13 }
  0xea   :  { %v176_v18 = vadd.f32 %v300_v17, %v265_v14 }
  0xec   :  { %v246_v20 = vadd.f32 %v335_v19, %v176_v18 }
  0xee   :  { %250 = vst.msk [vmem:[#allocation2] sm:$0x3] %vm249_vm0, %v246_v20 }
  0xef   :  { %350 = shalt.err (!%p347_p4)
}
  0xf0   :  { %260 = dma.vmem_to_hbm [thread:$0]  %s258_s0, 32, %s587_s3, [#allocation3]  }
  0xf1   :  { %359 = dma.done.wait [#allocation3], 32  }
  0xf2   :  { %360 = vsyncadd [#allocation3], 4294967264 }
  0xf3   :  { %264 = vsyncpa [#allocation3], 1 }

// kernel: cifar10_net_forward.6
= control target key start
LH: loop header
LB: loop body
LE: loop exit
PB: predicated region body
PF: predicated region fallthrough
CT: control target
= control target key end

     0   :  { %s7681_s12 = smov 0   ;;  %s9571_s0 = inlined_call_operand.vmem [shape: f32[2,20,20,64], index: 0, kind: input, shape index: {}]   ;;  %s9572_s1 = inlined_call_operand.vmem [shape: bf16[1600,64], index: 1, kind: input, shape index: {}]   ;;  %s9573_s2 = inlined_call_operand.vmem [shape: f32[1,64], index: 2, kind: input, shape index: {}]   ;;  %s9574_s3 = inlined_call_operand.vmem [shape: f32[2,32,128], index: 3, kind: output, shape index: {}]  }
   0x1 LB: > { %s5861_s13 = sadd.s32 4294967295, %s7658_s12   ;;  %p5865_p0 = scmp.ge.s32.totalorder %s7658_s12, 1  ;;  %s7658_s12 = sphi %s7681_s12, %s13_s12  }
   0x2   : > { %p137_p1 = scmp.lt.s32.totalorder %s7658_s12, 3 }
   0x4   : > { %p138_p2 = pnand %p5865_p0, %p137_p1 }
   0x6   : > { %141 = sbr.rel (%p138_p2) target bundleno = 911 (0x38f), region = 32 }
   0xb   : > { %p161_p3 = scmp.lt.s32.totalorder %s5861_s13, 1  ;;  %v7263_v0 = vld [vmem:[%s9572_s1 + $0x78] sm:$0xff]   ;;  %v7265_v2 = vld [vmem:[%s9572_s1 + $0x70] sm:$0xff]   ;;  %v7267_v4 = vld [vmem:[%s9572_s1 + $0x68] sm:$0xff]   ;;  %s7660_s30 = smov 64   ;;  %vm437_vm0 = vcmask 523264  }
   0xc   : > { %v7264_v1 = vld [vmem:[%s9572_s1 + $0x38] sm:$0xff]   ;;  %7237 = vmatprep.subr.bf16.mxu1 %v7263_v0  ;;  %6505 = vmatprep.subr.bf16.mxu0 %v7263_v0  ;;  %v7266_v3 = vld [vmem:[%s9572_s1 + $0x30] sm:$0xff]   ;;  %v7268_v5 = vld [vmem:[%s9572_s1 + $0x28] sm:$0xff]   ;;  %vm2400_vm1 = vcmask 519168  }
   0xd   : > { %s9681_s13 = smov (!%p161_p3, %s5861_s13), 1  ;;  %7245 = vmatpush3.bf16.msra.mxu1 %v7264_v1  ;;  %6506 = vmatpush3.bf16.msra.mxu0 %v7264_v1  ;;  %v7269_v58 = vld [vmem:[%s9572_s1 + $0x60] sm:$0xff]   ;;  %v7271_v62 = vld [vmem:[%s9572_s1 + $0x58] sm:$0xff]  }
   0xe   : > { %s7253_s20 = smul.u32 480, %s9681_s13  ;;  %7238 = vmatprep.subr.bf16.mxu1 %v7265_v2  ;;  %6507 = vmatprep.subr.bf16.mxu0 %v7265_v2  ;;  %v7270_v59 = vld [vmem:[%s9572_s1 + $0x20] sm:$0xff]  }
  0x10   : > { %s7710_s27 = scalar_lea.vmem %s9571_s0, %s7253_s20 }
  0x11   : > { %v198_v6 = vld [vmem:[%s7710_s27 + $0x138] sm:$0xff]  ;;  %v199_v7 = vld [vmem:[%s7710_s27 + $0x140] sm:$0xff]  ;;  %v202_v11 = vld [vmem:[%s7710_s27 + $0x168] sm:$0xff]  ;;  %7246 = vmatpush3.bf16.msra.mxu1 %v7266_v3  ;;  %6508 = vmatpush3.bf16.msra.mxu0 %v7266_v3 }
  0x12   : > { %v174_v8 = vld [vmem:[%s7710_s27 + $0x18] sm:$0xff]  ;;  %v7718_v9 = vpack.c.bf16 %v199_v7, %v198_v6  ;;  %v175_v10 = vld [vmem:[%s7710_s27 + $0x20] sm:$0xff]  ;;  %v203_v12 = vld [vmem:[%s7710_s27 + $0x170] sm:$0xff]  ;;  %7239 = vmatprep.subr.bf16.mxu1 %v7267_v4  ;;  %6509 = vmatprep.subr.bf16.mxu0 %v7267_v4 }
  0x13   : > { %v7723_v13 = vpack.c.bf16 %v175_v10, %v174_v8  ;;  %v178_v14 = vld [vmem:[%s7710_s27 + $0x48] sm:$0xff]  ;;  %v179_v15 = vld [vmem:[%s7710_s27 + $0x50] sm:$0xff]  ;;  %v7729_v16 = vpack.c.bf16 %v203_v12, %v202_v11  ;;  %v201_v19 = vld [vmem:[%s7710_s27 + $0x158] sm:$0xff] }
  0x14   : > { %429 = vrot.lane.b32.xlu0 %v7718_v9, %s7660_s30  ;;  %v7733_v17 = vpack.c.bf16 %v179_v15, %v178_v14  ;;  %v200_v18 = vld [vmem:[%s7710_s27 + $0x150] sm:$0xff]  ;;  %v204_v20 = vld [vmem:[%s7710_s27 + $0x180] sm:$0xff]  ;;  %v205_v21 = vld [vmem:[%s7710_s27 + $0x188] sm:$0xff] }
  0x15   : > { %405 = vrot.lane.b32.xlu1 %v7723_v13, %s7660_s30  ;;  %7247 = vmatpush3.bf16.msra.mxu1 %v7268_v5  ;;  %v7741_v22 = vpack.c.bf16 %v201_v19, %v200_v18  ;;  %v7745_v23 = vpack.c.bf16 %v205_v21, %v204_v20  ;;  %v176_v24 = vld [vmem:[%s7710_s27 + $0x30] sm:$0xff]  ;;  %v177_v25 = vld [vmem:[%s7710_s27 + $0x38] sm:$0xff]  ;;  %v180_v26 = vld [vmem:[%s7710_s27 + $0x60] sm:$0xff] }
  0x16   : > { %6510 = vmatpush3.bf16.msra.mxu0 %v7268_v5  ;;  %v181_v27 = vld [vmem:[%s7710_s27 + $0x68] sm:$0xff]  ;;  %v7753_v28 = vpack.c.bf16 %v177_v25, %v176_v24  ;;  %v206_v30 = vld [vmem:[%s7710_s27 + $0x198] sm:$0xff]  ;;  %v207_v31 = vld [vmem:[%s7710_s27 + $0x1a0] sm:$0xff]  ;;  %7240 = vmatprep.subr.bf16.mxu1 %v7269_v58 }
  0x17   : > { %v7757_v29 = vpack.c.bf16 %v181_v27, %v180_v26  ;;  %v182_v32 = vld [vmem:[%s7710_s27 + $0x78] sm:$0xff]  ;;  %v183_v33 = vld [vmem:[%s7710_s27 + $0x80] sm:$0xff]  ;;  %v7765_v34 = vpack.c.bf16 %v207_v31, %v206_v30  ;;  %v208_v36 = vld [vmem:[%s7710_s27 + $0x1b0] sm:$0xff]  ;;  %6511 = vmatprep.subr.bf16.mxu0 %v7269_v58 }
  0x18   : > { %433 = vrot.lane.b32.xlu0 %v7729_v16, %s7660_s30  ;;  %v7769_v35 = vpack.c.bf16 %v183_v33, %v182_v32  ;;  %v209_v37 = vld [vmem:[%s7710_s27 + $0x1b8] sm:$0xff]  ;;  %v184_v38 = vld [vmem:[%s7710_s27 + $0x90] sm:$0xff]  ;;  %v212_v42 = vld [vmem:[%s7710_s27 + $0x1] sm:$0xff] }
  0x19   : > { %409 = vrot.lane.b32.xlu1 %v7733_v17, %s7660_s30  ;;  %v185_v39 = vld [vmem:[%s7710_s27 + $0x98] sm:$0xff]  ;;  %v7777_v40 = vpack.c.bf16 %v209_v37, %v208_v36  ;;  %v213_v43 = vld [vmem:[%s7710_s27 + $0x9] sm:$0xff]  ;;  %v215_v51 = vld [vmem:[%s7710_s27 + $0x21] sm:$0xff]  ;;  %7248 = vmatpush3.bf16.msra.mxu1 %v7270_v59 }
  0x1a   : > { %v7781_v41 = vpack.c.bf16 %v185_v39, %v184_v38  ;;  %v216_v44 = vld [vmem:[%s7710_s27 + $0x31] sm:$0xff]  ;;  %v217_v45 = vld [vmem:[%s7710_s27 + $0x39] sm:$0xff]  ;;  %v691_v46 = vpack.c.bf16 %v213_v43, %v212_v42  ;;  %v186_v48 = vld [vmem:[%s7710_s27 + $0xa8] sm:$0xff]  ;;  %6512 = vmatpush3.bf16.msra.mxu0 %v7270_v59  ;;  %7241 = vmatprep.subr.bf16.mxu1 %v7271_v62 }
  0x1b   : > { %v7791_v47 = vpack.c.bf16 %v217_v45, %v216_v44  ;;  %v187_v49 = vld [vmem:[%s7710_s27 + $0xb0] sm:$0xff]  ;;  %v214_v50 = vld [vmem:[%s7710_s27 + $0x19] sm:$0xff]  ;;  %v189_v57 = vld [vmem:[%s7710_s27 + $0xc8] sm:$0xff]  ;;  %6513 = vmatprep.subr.bf16.mxu0 %v7271_v62 }
  0x1c   : > { %431 = vrot.lane.b32.xlu0 %v7741_v22, %s7660_s30  ;;  %v7798_v52 = vpack.c.bf16 %v187_v49, %v186_v48  ;;  %v218_v53 = vld [vmem:[%s7710_s27 + $0x49] sm:$0xff]  ;;  %v219_v54 = vld [vmem:[%s7710_s27 + $0x51] sm:$0xff]  ;;  %v7804_v55 = vpack.c.bf16 %v215_v51, %v214_v50  ;;  %v188_v56 = vld [vmem:[%s7710_s27 + $0xc0] sm:$0xff] }
  0x1d   : > { %435 = vrot.lane.b32.xlu1 %v7745_v23, %s7660_s30  ;;  %v7816_v60 = vpack.c.bf16 %v219_v54, %v218_v53  ;;  %v220_v61 = vld [vmem:[%s7710_s27 + $0x61] sm:$0xff]  ;;  %v7824_v63 = vpack.c.bf16 %v189_v57, %v188_v56  ;;  %v221_v0 = vld [vmem:[%s7710_s27 + $0x69] sm:$0xff]  ;;  %v190_v1 = vld [vmem:[%s7710_s27 + $0xd8] sm:$0xff] }
  0x1e   : > { %v191_v2 = vld [vmem:[%s7710_s27 + $0xe0] sm:$0xff]  ;;  %v7272_v3 = vld [vmem:[%s9572_s1 + $0x18] sm:$0xff]   ;;  %v7273_v4 = vld [vmem:[%s9572_s1 + $0x50] sm:$0xff]   ;;  %v7837_v5 = vpack.c.bf16 %v221_v0, %v220_v61 }
  0x1f   : > { %v192_v6 = vld [vmem:[%s7710_s27 + $0xf0] sm:$0xff]  ;;  %v222_v7 = vld [vmem:[%s7710_s27 + $0x79] sm:$0xff]  ;;  %v223_v8 = vld [vmem:[%s7710_s27 + $0x81] sm:$0xff]  ;;  %7249 = vmatpush3.bf16.msra.mxu1 %v7272_v3  ;;  %v7844_v10 = vpack.c.bf16 %v191_v2, %v190_v1  ;;  %6514 = vmatpush3.bf16.msra.mxu0 %v7272_v3 }
  0x20   : > { %407 = vrot.lane.b32.xlu0 %v7753_v28, %s7660_s30  ;;  %v7274_v11 = vld [vmem:[%s9572_s1 + $0x10] sm:$0xff]   ;;  %v193_v12 = vld [vmem:[%s7710_s27 + $0xf8] sm:$0xff]  ;;  %7242 = vmatprep.subr.bf16.mxu1 %v7273_v4  ;;  %v7275_v14 = vld [vmem:[%s9572_s1 + $0x48] sm:$0xff]   ;;  %v7855_v15 = vpack.c.bf16 %v223_v8, %v222_v7 }
  0x21   : > { %411 = vrot.lane.b32.xlu1 %v7757_v29, %s7660_s30  ;;  %6515 = vmatprep.subr.bf16.mxu0 %v7273_v4  ;;  %v194_v18 = vld [vmem:[%s7710_s27 + $0x108] sm:$0xff]  ;;  %v7863_v20 = vpack.c.bf16 %v193_v12, %v192_v6  ;;  %v195_v21 = vld [vmem:[%s7710_s27 + $0x110] sm:$0xff]  ;;  %v225_v25 = vld [vmem:[%s7710_s27 + $0x99] sm:$0xff] }
  0x22   : > { %v7276_v19 = vld [vmem:[%s9572_s1 + $0x8] sm:$0xff]   ;;  %v224_v24 = vld [vmem:[%s7710_s27 + $0x91] sm:$0xff]  ;;  %v7277_v26 = vld [vmem:[%s9572_s1 + $0x40] sm:$0xff]   ;;  %v7883_v36 = vpack.c.bf16 %v195_v21, %v194_v18 }
  0x23   : > { %7250 = vmatpush3.bf16.msra.mxu1 %v7274_v11  ;;  %6516 = vmatpush3.bf16.msra.mxu0 %v7274_v11  ;;  %v196_v27 = vld [vmem:[%s7710_s27 + $0x120] sm:$0xff]  ;;  %v197_v30 = vld [vmem:[%s7710_s27 + $0x128] sm:$0xff]  ;;  %v7875_v31 = vpack.c.bf16 %v225_v25, %v224_v24  ;;  %v227_v37 = vld [vmem:[%s7710_s27 + $0xb1] sm:$0xff] }
  0x24   : > { %634 = vrot.lane.b32.xlu0 %v7765_v34, %s7660_s30  ;;  %7243 = vmatprep.subr.bf16.mxu1 %v7275_v14  ;;  %v226_v32 = vld [vmem:[%s7710_s27 + $0xa9] sm:$0xff]  ;;  %v7278_v33 = vld [vmem:[%s9572_s1] sm:$0xff]   ;;  %v7282_v38 = vld [vmem:[%s9572_s1 + $0xf8] sm:$0xff]   ;;  %v7900_v45 = vpack.c.bf16 %v197_v30, %v196_v27 }
  0x25   : > { %413 = vrot.lane.b32.xlu1 %v7769_v35, %s7660_s30  ;;  %6517 = vmatprep.subr.bf16.mxu0 %v7275_v14  ;;  %v7288_v39 = vld [vmem:[%s9572_s1 + $0x178] sm:$0xff]   ;;  %v7895_v43 = vpack.c.bf16 %v227_v37, %v226_v32  ;;  %v228_v44 = vld [vmem:[%s7710_s27 + $0xc1] sm:$0xff]  ;;  %v234_v59 = vld [vmem:[%s7710_s27 + $0x109] sm:$0xff] }
  0x26   : > { %v230_v42 = vld [vmem:[%s7710_s27 + $0xd9] sm:$0xff]  ;;  %v231_v48 = vld [vmem:[%s7710_s27 + $0xe1] sm:$0xff]  ;;  %v232_v50 = vld [vmem:[%s7710_s27 + $0xf1] sm:$0xff] }
  0x27   : > { %7251 = vmatpush3.bf16.msra.mxu1 %v7276_v19  ;;  %6518 = vmatpush3.bf16.msra.mxu0 %v7276_v19  ;;  %v7911_v51 = vpack.c.bf16 %v231_v48, %v230_v42  ;;  %v233_v53 = vld [vmem:[%s7710_s27 + $0xf9] sm:$0xff]  ;;  %v255_v56 = vld [vmem:[%s7710_s27 + $0x22] sm:$0xff]  ;;  %v235_v62 = vld [vmem:[%s7710_s27 + $0x111] sm:$0xff] }
  0x28   : > { %636 = vrot.lane.b32.xlu0 %v7777_v40, %s7660_s30  ;;  %7244 = vmatprep.subr.bf16.mxu1 %v7277_v26  ;;  %v254_v54 = vld [vmem:[%s7710_s27 + $0x1a] sm:$0xff]  ;;  %v256_v57 = vld [vmem:[%s7710_s27 + $0x32] sm:$0xff]  ;;  %v7919_v58 = vpack.c.bf16 %v233_v53, %v232_v50  ;;  %v7930_v1 = vpack.c.bf16 %v235_v62, %v234_v59  ;;  %v258_v3 = vld [vmem:[%s7710_s27 + $0x4a] sm:$0xff] }
  0x29   : > { %415 = vrot.lane.b32.xlu1 %v7781_v41, %s7660_s30  ;;  %6519 = vmatprep.subr.bf16.mxu0 %v7277_v26  ;;  %v7924_v61 = vpack.c.bf16 %v255_v56, %v254_v54  ;;  %v257_v0 = vld [vmem:[%s7710_s27 + $0x3a] sm:$0xff]  ;;  %v237_v6 = vld [vmem:[%s7710_s27 + $0x129] sm:$0xff]  ;;  %v259_v7 = vld [vmem:[%s7710_s27 + $0x52] sm:$0xff] }
  0x2a   : > { %v7934_v2 = vpack.c.bf16 %v257_v0, %v256_v57  ;;  %v236_v4 = vld [vmem:[%s7710_s27 + $0x121] sm:$0xff]  ;;  %v238_v11 = vld [vmem:[%s7710_s27 + $0x139] sm:$0xff]  ;;  %v7947_v12 = vpack.c.bf16 %v259_v7, %v258_v3  ;;  %v261_v19 = vld [vmem:[%s7710_s27 + $0x6a] sm:$0xff] }
  0x2b   : > { %7252 = vmatpush3.bf16.msra.mxu1 %v7278_v33  ;;  %6520 = vmatpush3.bf16.msra.mxu0 %v7278_v33  ;;  %v7942_v8 = vpack.c.bf16 %v237_v6, %v236_v4  ;;  %v239_v14 = vld [vmem:[%s7710_s27 + $0x141] sm:$0xff]  ;;  %v240_v25 = vld [vmem:[%s7710_s27 + $0x151] sm:$0xff]  ;;  %v241_v27 = vld [vmem:[%s7710_s27 + $0x159] sm:$0xff] }
  0x2c   : > { %723 = vrot.lane.b32.xlu0 %v691_v46, %s7660_s30  ;;  %v229_v46 = vld [vmem:[%s7710_s27 + $0xc9] sm:$0xff]  ;;  %6617 = vmatprep.subr.bf16.mxu1 %v7282_v38  ;;  %v262_v21 = vld [vmem:[%s7710_s27 + $0x7a] sm:$0xff]  ;;  %v7955_v24 = vpack.c.bf16 %v239_v14, %v238_v11  ;;  %v7966_v32 = vpack.c.bf16 %v241_v27, %v240_v25  ;;  %v264_v37 = vld [vmem:[%s7710_s27 + $0x92] sm:$0xff] }
  0x2d   : > { %727 = vrot.lane.b32.xlu1 %v7791_v47, %s7660_s30  ;;  %6729 = vmatprep.subr.bf16.mxu0 %v7288_v39  ;;  %v7906_v49 = vpack.c.bf16 %v229_v46, %v228_v44  ;;  %v260_v18 = vld [vmem:[%s7710_s27 + $0x62] sm:$0xff]  ;;  %v243_v39 = vld [vmem:[%s7710_s27 + $0x171] sm:$0xff]  ;;  %v265_v42 = vld [vmem:[%s7710_s27 + $0x9a] sm:$0xff] }
  0x2e   : > { %v7960_v26 = vpack.c.bf16 %v261_v19, %v260_v18  ;;  %v263_v30 = vld [vmem:[%s7710_s27 + $0x82] sm:$0xff]  ;;  %v7982_v46 = vpack.c.bf16 %v265_v42, %v264_v37  ;;  %v266_v48 = vld [vmem:[%s7710_s27 + $0xaa] sm:$0xff]  ;;  %v267_v54 = vld [vmem:[%s7710_s27 + $0xb2] sm:$0xff] }
  0x2f   : > { %v7970_v33 = vpack.c.bf16 %v263_v30, %v262_v21  ;;  %v242_v38 = vld [vmem:[%s7710_s27 + $0x169] sm:$0xff]  ;;  %v244_v50 = vld [vmem:[%s7710_s27 + $0x181] sm:$0xff]  ;;  %v246_v59 = vld [vmem:[%s7710_s27 + $0x199] sm:$0xff]  ;;  %v7996_v62 = vpack.c.bf16 %v267_v54, %v266_v48 }
  0x30   : > { %417 = vrot.lane.b32.xlu0 %v7798_v52, %s7660_s30  ;;  %v7978_v44 = vpack.c.bf16 %v243_v39, %v242_v38  ;;  %v245_v53 = vld [vmem:[%s7710_s27 + $0x189] sm:$0xff]  ;;  %v247_v0 = vld [vmem:[%s7710_s27 + $0x1a1] sm:$0xff]  ;;  %v272_v21 = vld [vmem:[%s7710_s27 + $0xf2] sm:$0xff] }
  0x31   : > { %725 = vrot.lane.b32.xlu1 %v7804_v55, %s7660_s30  ;;  %v268_v56 = vld [vmem:[%s7710_s27 + $0xc2] sm:$0xff]  ;;  %v7991_v57 = vpack.c.bf16 %v245_v53, %v244_v50  ;;  %v269_v3 = vld [vmem:[%s7710_s27 + $0xca] sm:$0xff]  ;;  %v8002_v4 = vpack.c.bf16 %v247_v0, %v246_v59  ;;  %v270_v6 = vld [vmem:[%s7710_s27 + $0xda] sm:$0xff] }
  0x32   : > { %v292_v7 = vld [vmem:[%s7710_s27 + $0x3] sm:$0xff]  ;;  %v8008_v11 = vpack.c.bf16 %v269_v3, %v268_v56  ;;  %v293_v14 = vld [vmem:[%s7710_s27 + $0xb] sm:$0xff]  ;;  %v294_v27 = vld [vmem:[%s7710_s27 + $0x1b] sm:$0xff] }
  0x33   : > { %9606 = vst [vmem:[#allocation4_spill] sm:$0xff] %v8002_v4  ;;  %v271_v18 = vld [vmem:[%s7710_s27 + $0xe2] sm:$0xff]  ;;  %v1497_v19 = vpack.c.bf16 %v293_v14, %v292_v7  ;;  %v273_v37 = vld [vmem:[%s7710_s27 + $0xfa] sm:$0xff]  ;;  %v274_v39 = vld [vmem:[%s7710_s27 + $0x10a] sm:$0xff] }
  0x34   : > { %729 = vrot.lane.b32.xlu0 %v7816_v60, %s7660_s30  ;;  %v8017_v25 = vpack.c.bf16 %v271_v18, %v270_v6  ;;  %v295_v30 = vld [vmem:[%s7710_s27 + $0x23] sm:$0xff]  ;;  %v8028_v42 = vpack.c.bf16 %v273_v37, %v272_v21  ;;  %v296_v48 = vld [vmem:[%s7710_s27 + $0x33] sm:$0xff]  ;;  %v297_v50 = vld [vmem:[%s7710_s27 + $0x3b] sm:$0xff] }
  0x35   : > { %419 = vrot.lane.b32.xlu1 %v7824_v63, %s7660_s30  ;;  %v8023_v38 = vpack.c.bf16 %v295_v30, %v294_v27  ;;  %v275_v53 = vld [vmem:[%s7710_s27 + $0x112] sm:$0xff]  ;;  %v8037_v59 = vpack.c.bf16 %v297_v50, %v296_v48  ;;  %v276_v3 = vld [vmem:[%s7710_s27 + $0x122] sm:$0xff]  ;;  %v277_v6 = vld [vmem:[%s7710_s27 + $0x12a] sm:$0xff] }
  0x36   : > { %9607 = vst [vmem:[#allocation5_spill] sm:$0xff] %v8028_v42  ;;  %v298_v54 = vld [vmem:[%s7710_s27 + $0x4b] sm:$0xff]  ;;  %v299_v56 = vld [vmem:[%s7710_s27 + $0x53] sm:$0xff]  ;;  %v8041_v0 = vpack.c.bf16 %v275_v53, %v274_v39  ;;  %v300_v7 = vld [vmem:[%s7710_s27 + $0x63] sm:$0xff]  ;;  %v8055_v27 = vpack.c.bf16 %v277_v6, %v276_v3 }
  0x37   : > { %9608 = vst [vmem:[#allocation6_spill] sm:$0xff] %v8037_v59  ;;  %v301_v14 = vld [vmem:[%s7710_s27 + $0x6b] sm:$0xff]  ;;  %v8049_v18 = vpack.c.bf16 %v299_v56, %v298_v54  ;;  %v279_v21 = vld [vmem:[%s7710_s27 + $0x142] sm:$0xff]  ;;  %v281_v53 = vld [vmem:[%s7710_s27 + $0x15a] sm:$0xff] }
  0x38   : > { %731 = vrot.lane.b32.xlu0 %v7837_v5, %s7660_s30  ;;  %9609 = vst [vmem:[#allocation7_spill] sm:$0xff] %v8041_v0  ;;  %9611 = vst [vmem:[#allocation9_spill] sm:$0xff] %v8055_v27  ;;  %v302_v30 = vld [vmem:[%s7710_s27 + $0x7b] sm:$0xff]  ;;  %v303_v37 = vld [vmem:[%s7710_s27 + $0x83] sm:$0xff]  ;;  %v8061_v39 = vpack.c.bf16 %v301_v14, %v300_v7 }
  0x39   : > { %421 = vrot.lane.b32.xlu1 %v7844_v10, %s7660_s30  ;;  %9610 = vst [vmem:[#allocation8_spill] sm:$0xff] %v8049_v18  ;;  %v280_v48 = vld [vmem:[%s7710_s27 + $0x152] sm:$0xff]  ;;  %v305_v56 = vld [vmem:[%s7710_s27 + $0x9b] sm:$0xff]  ;;  %v8073_v3 = vpack.c.bf16 %v303_v37, %v302_v30 }
  0x3a   : > { %9612 = vst [vmem:[#allocation10_spill] sm:$0xff] %v8061_v39  ;;  %v304_v54 = vld [vmem:[%s7710_s27 + $0x93] sm:$0xff]  ;;  %v8079_v14 = vpack.c.bf16 %v281_v53, %v280_v48  ;;  %v306_v37 = vld [vmem:[%s7710_s27 + $0xab] sm:$0xff] }
  0x3b   : > { %9614 = vst [vmem:[#allocation12_spill] sm:$0xff] %v8073_v3  ;;  %v248_v6 = vld [vmem:[%s7710_s27 + $0x1b1] sm:$0xff]  ;;  %v249_v7 = vld [vmem:[%s7710_s27 + $0x1b9] sm:$0xff]  ;;  %v8087_v30 = vpack.c.bf16 %v305_v56, %v304_v54  ;;  %v250_v53 = vld [vmem:[%s7710_s27 + $0x1c9] sm:$0xff] }
  0x3c   : > { %733 = vrot.lane.b32.xlu0 %v7855_v15, %s7660_s30  ;;  %9615 = vst [vmem:[#allocation13_spill] sm:$0xff] %v8079_v14  ;;  %v8093_v48 = vpack.c.bf16 %v249_v7, %v248_v6  ;;  %v284_v54 = vld [vmem:[%s7710_s27 + $0x182] sm:$0xff]  ;;  %v285_v56 = vld [vmem:[%s7710_s27 + $0x18a] sm:$0xff] }
  0x3d   : > { %423 = vrot.lane.b32.xlu1 %v7863_v20, %s7660_s30  ;;  %9616 = vst [vmem:[#allocation14_spill] sm:$0xff] %v8087_v30 }
  0x3e   : > { %9617 = vst [vmem:[#allocation15_spill] sm:$0xff] %v8093_v48 }
  0x40   : > { %735 = vrot.lane.b32.xlu0 %v7875_v31, %s7660_s30 }
  0x41   : > { %425 = vrot.lane.b32.xlu1 %v7883_v36, %s7660_s30 }
  0x44   : > { %737 = vrot.lane.b32.xlu0 %v7895_v43, %s7660_s30 }
  0x45   : > { %427 = vrot.lane.b32.xlu1 %v7900_v45, %s7660_s30 }
  0x48   : > { %739 = vrot.lane.b32.xlu0 %v7906_v49, %s7660_s30 }
  0x49   : > { %741 = vrot.lane.b32.xlu1 %v7911_v51, %s7660_s30 }
  0x4c   : > { %743 = vrot.lane.b32.xlu0 %v7919_v58, %s7660_s30 }
  0x4d   : > { %1212 = vrot.lane.b32.xlu1 %v7924_v61, %s7660_s30 }
  0x50   : > { %745 = vrot.lane.b32.xlu0 %v7930_v1, %s7660_s30 }
  0x51   : > { %1214 = vrot.lane.b32.xlu1 %v7934_v2, %s7660_s30 }
  0x54   : > { %747 = vrot.lane.b32.xlu0 %v7942_v8, %s7660_s30 }
  0x55   : > { %1216 = vrot.lane.b32.xlu1 %v7947_v12, %s7660_s30 }
  0x58   : > { %749 = vrot.lane.b32.xlu0 %v7955_v24, %s7660_s30 }
  0x59   : > { %1218 = vrot.lane.b32.xlu1 %v7960_v26, %s7660_s30 }
  0x5c   : > { %751 = vrot.lane.b32.xlu0 %v7966_v32, %s7660_s30 }
  0x5d   : > { %1220 = vrot.lane.b32.xlu1 %v7970_v33, %s7660_s30 }
  0x60   : > { %753 = vrot.lane.b32.xlu0 %v7978_v44, %s7660_s30 }
  0x61   : > { %1222 = vrot.lane.b32.xlu1 %v7982_v46, %s7660_s30 }
  0x64   : > { %937 = vrot.lane.b32.xlu0 %v7991_v57, %s7660_s30 }
  0x65   : > { %1224 = vrot.lane.b32.xlu1 %v7996_v62, %s7660_s30 }
  0x68   : > { %939 = vrot.lane.b32.xlu0 %v8002_v4, %s7660_s30  ;;  %v282_v4 = vld [vmem:[%s7710_s27 + $0x16a] sm:$0xff] }
  0x69   : > { %1226 = vrot.lane.b32.xlu1 %v8008_v11, %s7660_s30 }
  0x6c   : > { %1529 = vrot.lane.b32.xlu0 %v1497_v19, %s7660_s30  ;;  %v278_v19 = vld [vmem:[%s7710_s27 + $0x13a] sm:$0xff] }
  0x6d   : > { %1228 = vrot.lane.b32.xlu1 %v8017_v25, %s7660_s30  ;;  %v8066_v50 = vpack.c.bf16 %v279_v21, %v278_v19  ;;  %v172_v19 = vld [vmem:[%s7710_s27] sm:$0xff]  ;;  %v173_v21 = vld [vmem:[%s7710_s27 + $0x8] sm:$0xff] }
  0x6f   : > { %9613 = vst [vmem:[#allocation11_spill] sm:$0xff] %v8066_v50 }
  0x70   : > { %1531 = vrot.lane.b32.xlu0 %v8023_v38, %s7660_s30 }
  0x71   : > { %1230 = vrot.lane.b32.xlu1 %v8028_v42, %s7660_s30  ;;  %v339_v42 = vld [vmem:[%s7710_s27 + $0x54] sm:$0xff] }
  0x74   : > { %1533 = vrot.lane.b32.xlu0 %v8037_v59, %s7660_s30  ;;  %v308_v59 = vld [vmem:[%s7710_s27 + $0xc3] sm:$0xff] }
  0x75   : > { %1232 = vrot.lane.b32.xlu1 %v8041_v0, %s7660_s30 }
  0x78   : > { %1535 = vrot.lane.b32.xlu0 %v8049_v18, %s7660_s30  ;;  %v372_v18 = vpack.c.bf16 %v173_v21, %v172_v19  ;;  %v309_v19 = vld [vmem:[%s7710_s27 + $0xcb] sm:$0xff] }
  0x79   : > { %1234 = vrot.lane.b32.xlu1 %v8055_v27, %s7660_s30  ;;  %v283_v27 = vld [vmem:[%s7710_s27 + $0x172] sm:$0xff] }
  0x7c   : > { %1537 = vrot.lane.b32.xlu0 %v8061_v39, %s7660_s30  ;;  %v307_v39 = vld [vmem:[%s7710_s27 + $0xb3] sm:$0xff] }
  0x7d   : > { %1236 = vrot.lane.b32.xlu1 %v8066_v50, %s7660_s30  ;;  %v251_v50 = vld [vmem:[%s7710_s27 + $0x1d1] sm:$0xff]  ;;  %v8105_v0 = vpack.c.bf16 %v307_v39, %v306_v37 }
  0x7f   : > { %9619 = vst [vmem:[#allocation17_spill] sm:$0xff] %v8105_v0 }
  0x80   : > { %1539 = vrot.lane.b32.xlu0 %v8073_v3, %s7660_s30  ;;  %v8099_v3 = vpack.c.bf16 %v283_v27, %v282_v4  ;;  %v1120_v27 = vpack.c.bf16 %v251_v50, %v250_v53 }
  0x81   : > { %1238 = vrot.lane.b32.xlu1 %v8079_v14, %s7660_s30 }
  0x82   : > { %9618 = vst [vmem:[#allocation16_spill] sm:$0xff] %v8099_v3 }
  0x84   : > { %1541 = vrot.lane.b32.xlu0 %v8087_v30, %s7660_s30 }
  0x85   : > { %1123 = vrot.lane.b32.xlu1 %v8093_v48, %s7660_s30  ;;  %v310_v48 = vld [vmem:[%s7710_s27 + $0xdb] sm:$0xff] }
  0x86   : > { %v430_v14 = vpop.permute.xlu0 %429 }
  0x87   : > { %v476_v6 = vsel %vm437_vm0, %v7900_v45, %v430_v14  ;;  %v406_v7 = vpop.permute.xlu1 %405  ;;  %v8117_v14 = vpack.c.bf16 %v285_v56, %v284_v54  ;;  %v8127_v56 = vpack.c.bf16 %v309_v19, %v308_v59  ;;  %v316_v19 = vld [vmem:[%s7710_s27 + $0x123] sm:$0xff] }
  0x88   : > { %v5893_v21 = vcombine.low %v476_v6, %v476_v6  ;;  %v5894_v30 = vcombine.high %v476_v6, %v476_v6  ;;  %v440_v4 = vsel %vm437_vm0, %v372_v18, %v406_v7  ;;  %1240 = vrot.lane.b32.xlu0 %v8099_v3, %s7660_s30  ;;  %v311_v6 = vld [vmem:[%s7710_s27 + $0xe3] sm:$0xff]  ;;  %v312_v7 = vld [vmem:[%s7710_s27 + $0xf3] sm:$0xff] }
  0x89   : > { %v5869_v39 = vcombine.low %v440_v4, %v440_v4  ;;  %v5870_v37 = vcombine.high %v440_v4, %v440_v4  ;;  %1543 = vrot.lane.b32.xlu1 %v8105_v0, %s7660_s30  ;;  %9620 = vst [vmem:[#allocation18_spill] sm:$0xff] %v8117_v14  ;;  %v313_v4 = vld [vmem:[%s7710_s27 + $0xfb] sm:$0xff]  ;;  %9621 = vst [vmem:[#allocation19_spill] sm:$0xff] %v8127_v56 }
  0x8a   : > { %622 = vst [vmem:[#allocation2 + $0x4e0] sm:$0xf] %v5893_v21  ;;  %623 = vst [vmem:[#allocation2 + $0x514] sm:$0xf] %v5894_v30  ;;  %v434_v18 = vpop.permute.xlu0 %433 }
  0x8b   : > { %678 = vst [vmem:[#allocation2 + $0x414] sm:$0xf] %v5893_v21  ;;  %679 = vst [vmem:[#allocation2 + $0x448] sm:$0xf] %v5894_v30  ;;  %v482_v50 = vsel %vm437_vm0, %v7741_v22, %v434_v18  ;;  %v410_v53 = vpop.permute.xlu1 %409  ;;  %v314_v30 = vld [vmem:[%s7710_s27 + $0x10b] sm:$0xff]  ;;  %v315_v21 = vld [vmem:[%s7710_s27 + $0x113] sm:$0xff]  ;;  %v8133_v18 = vpack.c.bf16 %v311_v6, %v310_v48 }
  0x8c   : > { %598 = vst [vmem:[#allocation2] sm:$0xf] %v5869_v39  ;;  %599 = vst [vmem:[#allocation2 + $0x34] sm:$0xf] %v5870_v37  ;;  %v5897_v3 = vcombine.low %v482_v50, %v482_v50  ;;  %v5898_v0 = vcombine.high %v482_v50, %v482_v50  ;;  %v446_v54 = vsel %vm437_vm0, %v7753_v28, %v410_v53  ;;  %1125 = vrot.lane.b32.xlu0 %v1120_v27, %s7660_s30 }
  0x8d   : > { %v5873_v39 = vcombine.low %v446_v54, %v446_v54  ;;  %v5874_v37 = vcombine.high %v446_v54, %v446_v54  ;;  %1242 = vrot.lane.b32.xlu1 %v8117_v14, %s7660_s30  ;;  %9622 = vst [vmem:[#allocation20_spill] sm:$0xff] %v8133_v18  ;;  %v8146_v54 = vpack.c.bf16 %v315_v21, %v314_v30  ;;  %v7286_v21 = vld [vmem:[%s9572_s1 + $0xb8] sm:$0xff]  }
  0x8e   : > { %626 = vst [vmem:[#allocation2 + $0x5b0] sm:$0xf] %v5897_v3  ;;  %627 = vst [vmem:[#allocation2 + $0x5e4] sm:$0xf] %v5898_v0  ;;  %v432_v50 = vpop.permute.xlu0 %431 }
  0x8f   : > { %682 = vst [vmem:[#allocation2 + $0x4e4] sm:$0xf] %v5897_v3  ;;  %683 = vst [vmem:[#allocation2 + $0x518] sm:$0xf] %v5898_v0  ;;  %v479_v28 = vsel %vm437_vm0, %v7718_v9, %v432_v50  ;;  %v436_v59 = vpop.permute.xlu1 %435  ;;  %v8142_v0 = vpack.c.bf16 %v313_v4, %v312_v7 }
  0x90   : > { %602 = vst [vmem:[#allocation2 + $0xd0] sm:$0xf] %v5873_v39  ;;  %603 = vst [vmem:[#allocation2 + $0x104] sm:$0xf] %v5874_v37  ;;  %v5895_v27 = vcombine.low %v479_v28, %v479_v28  ;;  %v5896_v53 = vcombine.high %v479_v28, %v479_v28  ;;  %v485_v48 = vsel %vm437_vm0, %v7729_v16, %v436_v59  ;;  %1545 = vrot.lane.b32.xlu0 %v8127_v56, %s7660_s30 }
  0x91   : > { %658 = vst [vmem:[#allocation2 + $0x4] sm:$0xf] %v5873_v39  ;;  %659 = vst [vmem:[#allocation2 + $0x38] sm:$0xf] %v5874_v37  ;;  %v5899_v3 = vcombine.low %v485_v48, %v485_v48  ;;  %v5900_v6 = vcombine.high %v485_v48, %v485_v48  ;;  %1547 = vrot.lane.b32.xlu1 %v8133_v18, %s7660_s30  ;;  %v317_v39 = vld [vmem:[%s7710_s27 + $0x12b] sm:$0xff] }
  0x92   : > { %9623 = vst [vmem:[#allocation21_spill] sm:$0xff] %v8142_v0  ;;  %9624 = vst [vmem:[#allocation22_spill] sm:$0xff] %v8146_v54  ;;  %v408_v37 = vpop.permute.xlu0 %407  ;;  %v8158_v59 = vpack.c.bf16 %v317_v39, %v316_v19 }
  0x93   : > { %624 = vst [vmem:[#allocation2 + $0x548] sm:$0xf] %v5895_v27  ;;  %625 = vst [vmem:[#allocation2 + $0x57c] sm:$0xf] %v5896_v53  ;;  %v443_v7 = vsel %vm437_vm0, %v7723_v13, %v408_v37  ;;  %v412_v4 = vpop.permute.xlu1 %411  ;;  %v7279_v13 = vld [vmem:[#allocation2 + $0x4e0] ss:$52 sps:$4 sm:$0xff]  }
  0x94   : > { %680 = vst [vmem:[#allocation2 + $0x47c] sm:$0xf] %v5895_v27  ;;  %681 = vst [vmem:[#allocation2 + $0x4b0] sm:$0xf] %v5896_v53  ;;  %v5871_v50 = vcombine.low %v443_v7, %v443_v7  ;;  %v5872_v28 = vcombine.high %v443_v7, %v443_v7  ;;  %v449_v30 = vsel %vm437_vm0, %v7733_v17, %v412_v4  ;;  %1549 = vrot.lane.b32.xlu0 %v8142_v0, %s7660_s30  ;;  %v318_v27 = vld [vmem:[%s7710_s27 + $0x13b] sm:$0xff]  ;;  %v319_v53 = vld [vmem:[%s7710_s27 + $0x143] sm:$0xff] }
  0x95   : > { %628 = vst [vmem:[#allocation2 + $0x618] sm:$0xf] %v5899_v3  ;;  %629 = vst [vmem:[#allocation2 + $0x64c] sm:$0xf] %v5900_v6  ;;  %v5875_v48 = vcombine.low %v449_v30, %v449_v30  ;;  %1551 = vrot.lane.b32.xlu1 %v8146_v54, %s7660_s30  ;;  %v7283_v7 = vld [vmem:[#allocation2] ss:$52 sps:$4 sm:$0xff]  }
  0x96   : > { %684 = vst [vmem:[#allocation2 + $0x54c] sm:$0xf] %v5899_v3  ;;  %685 = vst [vmem:[#allocation2 + $0x580] sm:$0xf] %v5900_v6  ;;  %v5876_v3 = vcombine.high %v449_v30, %v449_v30  ;;  %v7287_v6 = vld [vmem:[%s9572_s1 + $0xf0] sm:$0xff]   ;;  %v635_v17 = vpop.permute.xlu0 %634  ;;  %v7290_v30 = vld [vmem:[%s9572_s1 + $0x138] sm:$0xff]  }
  0x97   : > { %9625 = vst [vmem:[#allocation23_spill] sm:$0xff] %v8158_v59  ;;  %600 = vst [vmem:[#allocation2 + $0x68] sm:$0xf] %v5871_v50  ;;  %v7281_v37 = vld [vmem:[#allocation2 + $0x4e4] ss:$52 sps:$4 sm:$0xff]   ;;  %v640_v19 = vsel %vm437_vm0, %v7745_v23, %v635_v17  ;;  %v414_v39 = vpop.permute.xlu1 %413  ;;  %v7289_v17 = vld [vmem:[%s9572_s1 + $0xb0] sm:$0xff]  }
  0x98   : > { %601 = vst [vmem:[#allocation2 + $0x9c] sm:$0xf] %v5872_v28  ;;  %604 = vst [vmem:[#allocation2 + $0x138] sm:$0xf] %v5875_v48  ;;  %v7285_v4 = vld [vmem:[#allocation2 + $0x4] ss:$52 sps:$4 sm:$0xff]   ;;  %v5901_v14 = vcombine.low %v640_v19, %v640_v19  ;;  %v5902_v54 = vcombine.high %v640_v19, %v640_v19  ;;  %v452_v50 = vsel %vm437_vm0, %v7757_v29, %v414_v39  ;;  %4680 = vmatprep.mubr.bf16.mxu1 %v7281_v37 }
  0x99   : > { %605 = vst [vmem:[#allocation2 + $0x16c] sm:$0xf] %v5876_v3  ;;  %660 = vst [vmem:[#allocation2 + $0x6c] sm:$0xf] %v5875_v48  ;;  %v7306_v28 = vld [vmem:[%s9572_s1 + $0x170] sm:$0xff]   ;;  %1553 = vrot.lane.b32.xlu0 %v8158_v59, %s7660_s30  ;;  %v5877_v48 = vcombine.low %v452_v50, %v452_v50  ;;  %4584 = vmatprep.mubr.bf16.mxu0 %v7285_v4  ;;  %v8182_v19 = vpack.c.bf16 %v319_v53, %v318_v27 }
  0x9a   : > { %661 = vst [vmem:[#allocation2 + $0xa0] sm:$0xf] %v5876_v3  ;;  %v5878_v3 = vcombine.high %v452_v50, %v452_v50  ;;  %4681 = vmatmul.mubr.bf16.vlgmr.msra.gmra.mxu1 %v7279_v13  ;;  %686 = vst [vmem:[#allocation2 + $0x5b4] sm:$0xf] %v5901_v14  ;;  %4585 = vmatmul.mubr.bf16.vlgmr.msra.gmra.mxu0 %v7283_v7  ;;  %v637_v37 = vpop.permute.xlu0 %636  ;;  %v7291_v14 = vld [vmem:[%s9572_s1 + $0xe8] sm:$0xff]   ;;  %v320_v7 = vld [vmem:[%s7710_s27 + $0x153] sm:$0xff] }
  0x9b   : > { %9626 = vst [vmem:[#allocation24_spill] sm:$0xff] %v8182_v19  ;;  %687 = vst [vmem:[#allocation2 + $0x5e8] sm:$0xf] %v5902_v54  ;;  %6618 = vmatpush3.bf16.msra.mxu1 %v7286_v21  ;;  %v643_v13 = vsel %vm437_vm0, %v7765_v34, %v637_v37  ;;  %v416_v4 = vpop.permute.xlu1 %415  ;;  %6730 = vmatpush3.bf16.msra.mxu0 %v7290_v30  ;;  %v7310_v54 = vld [vmem:[%s9572_s1 + $0x130] sm:$0xff]   ;;  %v321_v30 = vld [vmem:[%s7710_s27 + $0x15b] sm:$0xff] }
  0x9c   : > { %606 = vst [vmem:[#allocation2 + $0x1a0] sm:$0xf] %v5877_v48  ;;  %607 = vst [vmem:[#allocation2 + $0x1d4] sm:$0xf] %v5878_v3  ;;  %6619 = vmatprep.subr.bf16.mxu1 %v7287_v6  ;;  %v5903_v21 = vcombine.low %v643_v13, %v643_v13  ;;  %v5904_v27 = vcombine.high %v643_v13, %v643_v13  ;;  %v455_v53 = vsel %vm437_vm0, %v7769_v35, %v416_v4  ;;  %v7298_v6 = vld [vmem:[%s9572_s1 + $0xa8] sm:$0xff]  }
  0x9d   : > { %v7294_v39 = vld [vmem:[#allocation2 + $0x54c] ss:$52 sps:$4 sm:$0xff]   ;;  %662 = vst [vmem:[#allocation2 + $0xd4] sm:$0xf] %v5877_v48  ;;  %663 = vst [vmem:[#allocation2 + $0x108] sm:$0xf] %v5878_v3  ;;  %6731 = vmatprep.subr.bf16.mxu0 %v7306_v28  ;;  %v5879_v50 = vcombine.low %v455_v53, %v455_v53  ;;  %v5880_v48 = vcombine.high %v455_v53, %v455_v53  ;;  %1555 = vrot.lane.b32.xlu1 %v8182_v19, %s7660_s30 }
  0x9e   : > { %4688 = vmatprep.mubr.bf16.mxu1 %v7294_v39  ;;  %v7297_v3 = vld [vmem:[#allocation2 + $0x548] ss:$52 sps:$4 sm:$0xff]   ;;  %v8205_v13 = vld [vmem:[%s7710_s27 + $0x6c] sm:$0xff]  ;;  %688 = vst [vmem:[#allocation2 + $0x61c] sm:$0xf] %v5903_v21  ;;  %v724_v39 = vpop.permute.xlu0 %723 }
  0x9f   : > { %v8202_v37 = vld [vmem:[%s7710_s27 + $0x64] sm:$0xff]  ;;  %689 = vst [vmem:[#allocation2 + $0x650] sm:$0xf] %v5904_v27  ;;  %6620 = vmatpush3.bf16.msra.mxu1 %v7289_v17  ;;  %v6474_v53 = vpack.c.bf16 %v8205_v13, %v8205_v13  ;;  %608 = vst [vmem:[#allocation2 + $0x208] sm:$0xf] %v5879_v50  ;;  %v756_v19 = vsel %vm437_vm0, %v7757_v29, %v724_v39  ;;  %v728_v59 = vpop.permute.xlu1 %727  ;;  %6732 = vmatpush3.bf16.msra.mxu0 %v7310_v54 }
  0xa0   : > { %v6473_v28 = vpack.c.bf16 %v8202_v37, %v8202_v37  ;;  %609 = vst [vmem:[#allocation2 + $0x23c] sm:$0xf] %v5880_v48  ;;  %664 = vst [vmem:[#allocation2 + $0x13c] sm:$0xf] %v5879_v50  ;;  %6621 = vmatprep.subr.bf16.mxu1 %v7291_v14  ;;  %v7296_v21 = vld [vmem:[#allocation2 + $0x68] ss:$52 sps:$4 sm:$0xff]   ;;  %v8216_v27 = vpack.c.bf16 %v321_v30, %v320_v7  ;;  %v5905_v0 = vcombine.low %v756_v19, %v756_v19 }
  0xa1   : > { %v7292_v4 = vld [vmem:[#allocation2 + $0x6c] ss:$52 sps:$4 sm:$0xff]   ;;  %665 = vst [vmem:[#allocation2 + $0x170] sm:$0xf] %v5880_v48  ;;  %v5906_v18 = vcombine.high %v756_v19, %v756_v19  ;;  %v760_v56 = vsel %vm437_vm0, %v7781_v41, %v728_v59  ;;  %v942_v50 = vsel %vm437_vm0, %v7804_v55, %v728_v59  ;;  %2402 = vst.msk [vmem:[#allocation2 + $0x64] sm:$0xf] %vm2400_vm1, %v6474_v53 }
  0xa2   : > { %v7299_v17 = vld [vmem:[%s9572_s1 + $0xe0] sm:$0xff]   ;;  %9627 = vst [vmem:[#allocation25_spill] sm:$0xff] %v8216_v27  ;;  %4592 = vmatprep.mubr.bf16.mxu0 %v7292_v4  ;;  %v7324_v14 = vld [vmem:[%s9572_s1 + $0x168] sm:$0xff]   ;;  %2401 = vst.msk [vmem:[#allocation2 + $0x30] sm:$0xf] %vm2400_vm1, %v6473_v28  ;;  %v5909_v55 = vcombine.low %v760_v56, %v760_v56  ;;  %v5910_v59 = vcombine.high %v760_v56, %v760_v56  ;;  %v5937_v7 = vcombine.low %v942_v50, %v942_v50  ;;  %v418_v39 = vpop.permute.xlu0 %417 }
  0xa3   : > { %v7304_v29 = vld [vmem:[%s9572_s1 + $0xa0] sm:$0xff]   ;;  %v7326_v54 = vld [vmem:[%s9572_s1 + $0x128] sm:$0xff]   ;;  %v5938_v30 = vcombine.high %v942_v50, %v942_v50  ;;  %4689 = vmatmul.mubr.bf16.gmra.mxu1 %v7297_v3  ;;  %901 = vst [vmem:[#allocation2 + $0x8] sm:$0xf] %v5905_v0  ;;  %902 = vst [vmem:[#allocation2 + $0x3c] sm:$0xf] %v5906_v18  ;;  %4593 = vmatmul.mubr.bf16.gmra.mxu0 %v7296_v21  ;;  %v458_v56 = vsel %vm437_vm0, %v7781_v41, %v418_v39  ;;  %v726_v28 = vpop.permute.xlu1 %725 }
  0xa4   : > { %v7337_v19 = vld [vmem:[%s9572_s1 + $0x160] sm:$0xff]   ;;  %v7302_v48 = vld [vmem:[#allocation2 + $0x5b4] ss:$52 sps:$4 sm:$0xff]   ;;  %6622 = vmatpush3.bf16.msra.mxu1 %v7298_v6  ;;  %905 = vst [vmem:[#allocation2 + $0xd8] sm:$0xf] %v5909_v55  ;;  %v7305_v18 = vld [vmem:[%s9572_s1 + $0xd8] sm:$0xff]   ;;  %v5881_v6 = vcombine.low %v458_v56, %v458_v56  ;;  %v5882_v3 = vcombine.high %v458_v56, %v458_v56  ;;  %v758_v53 = vsel %vm437_vm0, %v7769_v35, %v726_v28 }
  0xa5   : > { %v7300_v4 = vld [vmem:[#allocation2 + $0xd4] ss:$52 sps:$4 sm:$0xff]   ;;  %906 = vst [vmem:[#allocation2 + $0x10c] sm:$0xf] %v5910_v59  ;;  %1087 = vst [vmem:[#allocation2 + $0xc] sm:$0xf] %v5937_v7  ;;  %6623 = vmatprep.subr.bf16.mxu1 %v7299_v17  ;;  %4696 = vmatprep.mubr.bf16.mxu1 %v7302_v48  ;;  %v5907_v59 = vcombine.low %v758_v53, %v758_v53  ;;  %v5908_v7 = vcombine.high %v758_v53, %v758_v53 }
  0xa6   : > { %1088 = vst [vmem:[#allocation2 + $0x40] sm:$0xf] %v5938_v30  ;;  %v7340_v0 = vld [vmem:[%s9572_s1 + $0x120] sm:$0xff]   ;;  %4600 = vmatprep.mubr.bf16.mxu0 %v7300_v4  ;;  %v7309_v41 = vld [vmem:[%s9572_s1 + $0x98] sm:$0xff]   ;;  %6733 = vmatprep.subr.bf16.mxu0 %v7324_v14  ;;  %v322_v21 = vld [vmem:[%s7710_s27 + $0x16b] sm:$0xff]  ;;  %v730_v35 = vpop.permute.xlu0 %729 }
  0xa7   : > { %v8251_v17 = vld [vmem:[%s7710_s27 + $0x94] sm:$0xff]  ;;  %v287_v55 = vld [vmem:[%s7710_s27 + $0x1a2] sm:$0xff]  ;;  %6734 = vmatpush3.bf16.msra.mxu0 %v7326_v54  ;;  %1557 = vrot.lane.b32.xlu1 %v8216_v27, %s7660_s30  ;;  %610 = vst [vmem:[#allocation2 + $0x270] sm:$0xf] %v5881_v6  ;;  %611 = vst [vmem:[#allocation2 + $0x2a4] sm:$0xf] %v5882_v3  ;;  %v762_v4 = vsel %vm437_vm0, %v7798_v52, %v730_v35  ;;  %v420_v56 = vpop.permute.xlu1 %419 }
  0xa8   : > { %v286_v50 = vld [vmem:[%s7710_s27 + $0x19a] sm:$0xff]  ;;  %666 = vst [vmem:[#allocation2 + $0x1a4] sm:$0xf] %v5881_v6  ;;  %667 = vst [vmem:[#allocation2 + $0x1d8] sm:$0xf] %v5882_v3  ;;  %6624 = vmatpush3.bf16.msra.mxu1 %v7304_v29  ;;  %6735 = vmatprep.subr.bf16.mxu0 %v7337_v19  ;;  %v6477_v48 = vpack.c.bf16 %v8251_v17, %v8251_v17  ;;  %v944_v29 = vsel %vm437_vm0, %v7791_v47, %v730_v35  ;;  %v7315_v28 = vld [vmem:[%s9572_s1 + $0xd0] sm:$0xff]  }
  0xa9   : > { %v8258_v30 = vld [vmem:[%s7710_s27 + $0x9c] sm:$0xff]  ;;  %v323_v14 = vld [vmem:[%s7710_s27 + $0x173] sm:$0xff]  ;;  %v8265_v54 = vpack.c.bf16 %v287_v55, %v286_v50  ;;  %903 = vst [vmem:[#allocation2 + $0x70] sm:$0xf] %v5907_v59  ;;  %904 = vst [vmem:[#allocation2 + $0xa4] sm:$0xf] %v5908_v7  ;;  %6625 = vmatprep.subr.bf16.mxu1 %v7305_v18  ;;  %v5911_v3 = vcombine.low %v762_v4, %v762_v4  ;;  %v5912_v53 = vcombine.high %v762_v4, %v762_v4 }
  0xaa   : > { %v6478_v39 = vpack.c.bf16 %v8258_v30, %v8258_v30  ;;  %v7308_v19 = vld [vmem:[#allocation2 + $0x5b0] ss:$52 sps:$4 sm:$0xff]   ;;  %v7353_v6 = vld [vmem:[%s9572_s1 + $0x158] sm:$0xff]   ;;  %v5939_v50 = vcombine.low %v944_v29, %v944_v29  ;;  %v5940_v55 = vcombine.high %v944_v29, %v944_v29  ;;  %2405 = vst.msk [vmem:[#allocation2 + $0x100] sm:$0xf] %vm2400_vm1, %v6477_v48  ;;  %v461_v35 = vsel %vm437_vm0, %v7798_v52, %v420_v56 }
  0xab   : > { %9628 = vst [vmem:[#allocation26_spill] sm:$0xff] %v8265_v54  ;;  %v7307_v59 = vld [vmem:[#allocation2 + $0xd0] ss:$52 sps:$4 sm:$0xff]   ;;  %v7354_v18 = vld [vmem:[%s9572_s1 + $0x118] sm:$0xff]   ;;  %1440 = vrot.lane.b32.xlu0 %v8265_v54, %s7660_s30  ;;  %4697 = vmatmul.mubr.bf16.gmra.mxu1 %v7308_v19  ;;  %v8290_v27 = vpack.c.bf16 %v323_v14, %v322_v21  ;;  %907 = vst [vmem:[#allocation2 + $0x140] sm:$0xf] %v5911_v3  ;;  %v5883_v48 = vcombine.low %v461_v35, %v461_v35  ;;  %v732_v54 = vpop.permute.xlu0 %731 }
  0xac   : > { %v7316_v47 = vld [vmem:[%s9572_s1 + $0x90] sm:$0xff]   ;;  %2406 = vst.msk [vmem:[#allocation2 + $0x134] sm:$0xf] %vm2400_vm1, %v6478_v39  ;;  %6736 = vmatpush3.bf16.msra.mxu0 %v7340_v0  ;;  %908 = vst [vmem:[#allocation2 + $0x174] sm:$0xf] %v5912_v53  ;;  %v5884_v39 = vcombine.high %v461_v35, %v461_v35  ;;  %6626 = vmatpush3.bf16.msra.mxu1 %v7309_v41  ;;  %v764_v52 = vsel %vm437_vm0, %v7824_v63, %v732_v54  ;;  %v422_v0 = vpop.permute.xlu1 %421  ;;  %v7317_v21 = vld [vmem:[%s9572_s1 + $0xc8] sm:$0xff]  }
  0xad   : > { %v338_v7 = vld [vmem:[%s7710_s27 + $0x4c] sm:$0xff]  ;;  %1089 = vst [vmem:[#allocation2 + $0x74] sm:$0xf] %v5939_v50  ;;  %1090 = vst [vmem:[#allocation2 + $0xa8] sm:$0xf] %v5940_v55  ;;  %4601 = vmatmul.mubr.bf16.gmra.mxu0 %v7307_v59  ;;  %v946_v56 = vsel %vm437_vm0, %v7816_v60, %v732_v54  ;;  %v5913_v19 = vcombine.low %v764_v52, %v764_v52  ;;  %v5914_v3 = vcombine.high %v764_v52, %v764_v52  ;;  %v289_v53 = vld [vmem:[%s7710_s27 + $0x1ba] sm:$0xff] }
  0xae   : > { %v7311_v4 = vld [vmem:[#allocation2 + $0x61c] ss:$52 sps:$4 sm:$0xff]   ;;  %612 = vst [vmem:[#allocation2 + $0x2d8] sm:$0xf] %v5883_v48  ;;  %613 = vst [vmem:[#allocation2 + $0x30c] sm:$0xf] %v5884_v39  ;;  %v5941_v60 = vcombine.low %v946_v56, %v946_v56  ;;  %v5942_v54 = vcombine.high %v946_v56, %v946_v56  ;;  %6627 = vmatprep.subr.bf16.mxu1 %v7315_v28  ;;  %v464_v50 = vsel %vm437_vm0, %v7824_v63, %v422_v0 }
  0xaf   : > { %v7313_v29 = vld [vmem:[#allocation2 + $0x13c] ss:$52 sps:$4 sm:$0xff]   ;;  %4704 = vmatprep.mubr.bf16.mxu1 %v7311_v4  ;;  %668 = vst [vmem:[#allocation2 + $0x20c] sm:$0xf] %v5883_v48  ;;  %669 = vst [vmem:[#allocation2 + $0x240] sm:$0xf] %v5884_v39  ;;  %6737 = vmatprep.subr.bf16.mxu0 %v7353_v6  ;;  %v8309_v55 = vpack.c.bf16 %v339_v42, %v338_v7  ;;  %v5885_v35 = vcombine.low %v464_v50, %v464_v50  ;;  %v734_v6 = vpop.permute.xlu0 %733 }
  0xb0   : > { %4608 = vmatprep.mubr.bf16.mxu0 %v7313_v29  ;;  %v7361_v41 = vld [vmem:[%s9572_s1 + $0x150] sm:$0xff]   ;;  %1559 = vrot.lane.b32.xlu1 %v8290_v27, %s7660_s30  ;;  %909 = vst [vmem:[#allocation2 + $0x1a8] sm:$0xf] %v5913_v19  ;;  %910 = vst [vmem:[#allocation2 + $0x1dc] sm:$0xf] %v5914_v3  ;;  %v5886_v28 = vcombine.high %v464_v50, %v464_v50  ;;  %v7320_v63 = vld [vmem:[%s9572_s1 + $0x88] sm:$0xff]   ;;  %v424_v7 = vpop.permute.xlu1 %423  ;;  %v766_v48 = vsel %vm437_vm0, %v7844_v10, %v734_v6 }
  0xb1   : > { %v288_v14 = vld [vmem:[%s7710_s27 + $0x1b2] sm:$0xff]  ;;  %1091 = vst [vmem:[#allocation2 + $0xdc] sm:$0xf] %v5941_v60  ;;  %1092 = vst [vmem:[#allocation2 + $0x110] sm:$0xf] %v5942_v54  ;;  %6628 = vmatpush3.bf16.msra.mxu1 %v7316_v47  ;;  %v7323_v42 = vld [vmem:[%s9572_s1 + $0xc0] sm:$0xff]   ;;  %6738 = vmatpush3.bf16.msra.mxu0 %v7354_v18  ;;  %v948_v47 = vsel %vm437_vm0, %v7837_v5, %v734_v6  ;;  %v8328_v18 = vpack.c.bf16 %v8205_v13, %v8202_v37 }
  0xb2   : > { %v8311_v59 = vpack.c.bf16 %v289_v53, %v288_v14  ;;  %1147 = vst [vmem:[#allocation2 + $0x10] sm:$0xf] %v5941_v60  ;;  %1148 = vst [vmem:[#allocation2 + $0x44] sm:$0xf] %v5942_v54  ;;  %v7318_v4 = vld [vmem:[#allocation2 + $0x138] ss:$52 sps:$4 sm:$0xff]   ;;  %6629 = vmatprep.subr.bf16.mxu1 %v7317_v21  ;;  %6739 = vmatprep.subr.bf16.mxu0 %v7361_v41  ;;  %v467_v56 = vsel %vm437_vm0, %v7844_v10, %v424_v7 }
  0xb3   : > { %v7319_v29 = vld [vmem:[#allocation2 + $0x618] ss:$52 sps:$4 sm:$0xff]   ;;  %v7365_v52 = vld [vmem:[%s9572_s1 + $0x110] sm:$0xff]   ;;  %614 = vst [vmem:[#allocation2 + $0x340] sm:$0xf] %v5885_v35  ;;  %v5915_v0 = vcombine.low %v766_v48, %v766_v48  ;;  %v5916_v21 = vcombine.high %v766_v48, %v766_v48  ;;  %v5943_v5 = vcombine.low %v948_v47, %v948_v47  ;;  %v334_v41 = vld [vmem:[%s7710_s27 + $0x1c] sm:$0xff]  ;;  %v5887_v19 = vcombine.low %v467_v56, %v467_v56  ;;  %v736_v60 = vpop.permute.xlu0 %735 }
  0xb4   : > { %v7329_v39 = vld [vmem:[#allocation2 + $0xc] ss:$52 sps:$4 sm:$0xff]   ;;  %615 = vst [vmem:[#allocation2 + $0x374] sm:$0xf] %v5886_v28  ;;  %670 = vst [vmem:[#allocation2 + $0x274] sm:$0xf] %v5885_v35  ;;  %1442 = vrot.lane.b32.xlu0 %v8311_v59, %s7660_s30  ;;  %v5888_v3 = vcombine.high %v467_v56, %v467_v56  ;;  %4705 = vmatmul.mubr.bf16.gmra.mxu1 %v7319_v29  ;;  %v5944_v37 = vcombine.high %v948_v47, %v948_v47  ;;  %v426_v53 = vpop.permute.xlu1 %425 }
  0xb5   : > { %671 = vst [vmem:[#allocation2 + $0x2a8] sm:$0xf] %v5886_v28  ;;  %v335_v14 = vld [vmem:[%s7710_s27 + $0x24] sm:$0xff]  ;;  %2022 = vrot.lane.b32.xlu1 %v8309_v55, %s7660_s30  ;;  %4609 = vmatmul.mubr.bf16.gmra.mxu0 %v7318_v4  ;;  %911 = vst [vmem:[#allocation2 + $0x210] sm:$0xf] %v5915_v0  ;;  %v7330_v50 = vld [vmem:[%s9572_s1 + $0x1f8] sm:$0xff]   ;;  %v768_v35 = vsel %vm437_vm0, %v7863_v20, %v736_v60  ;;  %v950_v28 = vsel %vm437_vm0, %v7855_v15, %v736_v60 }
  0xb6   : > { %v7321_v13 = vld [vmem:[#allocation2 + $0x1a4] ss:$52 sps:$4 sm:$0xff]   ;;  %6630 = vmatpush3.bf16.msra.mxu1 %v7320_v63  ;;  %912 = vst [vmem:[#allocation2 + $0x244] sm:$0xf] %v5916_v21  ;;  %1093 = vst [vmem:[#allocation2 + $0x144] sm:$0xf] %v5943_v5  ;;  %v8351_v4 = vpack.c.bf16 %v335_v14, %v334_v41  ;;  %v470_v63 = vsel %vm437_vm0, %v7863_v20, %v426_v53  ;;  %4745 = vmatprep.mubr.bf16.mxu1 %v7329_v39 }
  0xb7   : > { %1149 = vst [vmem:[#allocation2 + $0x78] sm:$0xf] %v5943_v5  ;;  %v7325_v10 = vld [vmem:[%s9572_s1 + $0x80] sm:$0xff]   ;;  %v7377_v54 = vld [vmem:[%s9572_s1 + $0x148] sm:$0xff]   ;;  %616 = vst [vmem:[#allocation2 + $0x3a8] sm:$0xf] %v5887_v19  ;;  %4616 = vmatprep.mubr.bf16.mxu0 %v7321_v13  ;;  %6631 = vmatprep.subr.bf16.mxu1 %v7323_v42  ;;  %v5917_v6 = vcombine.low %v768_v35, %v768_v35  ;;  %v5918_v7 = vcombine.high %v768_v35, %v768_v35  ;;  %v738_v5 = vpop.permute.xlu0 %737 }
  0xb8   : > { %617 = vst [vmem:[#allocation2 + $0x3dc] sm:$0xf] %v5888_v3  ;;  %672 = vst [vmem:[#allocation2 + $0x2dc] sm:$0xf] %v5887_v19  ;;  %v5945_v29 = vcombine.low %v950_v28, %v950_v28  ;;  %v8356_v42 = vld [vmem:[%s7710_s27 + $0x2] sm:$0xff]  ;;  %v8359_v48 = vld [vmem:[%s7710_s27 + $0xa] sm:$0xff]  ;;  %v5889_v56 = vcombine.low %v470_v63, %v470_v63  ;;  %v5890_v0 = vcombine.high %v470_v63, %v470_v63  ;;  %6740 = vmatpush3.bf16.msra.mxu0 %v7365_v52  ;;  %v428_v52 = vpop.permute.xlu1 %427 }
  0xb9   : > { %673 = vst [vmem:[#allocation2 + $0x310] sm:$0xf] %v5888_v3  ;;  %1094 = vst [vmem:[#allocation2 + $0x178] sm:$0xf] %v5944_v37  ;;  %v7378_v47 = vld [vmem:[%s9572_s1 + $0x108] sm:$0xff]   ;;  %v5946_v21 = vcombine.high %v950_v28, %v950_v28  ;;  %2024 = vrot.lane.b32.xlu1 %v8328_v18, %s7660_s30  ;;  %v7332_v39 = vld [vmem:[%s9572_s1 + $0x1b8] sm:$0xff]   ;;  %6741 = vmatprep.subr.bf16.mxu0 %v7377_v54  ;;  %v1179_v14 = vpack.c.bf16 %v8359_v48, %v8356_v42 }
  0xba   : > { %1150 = vst [vmem:[#allocation2 + $0xac] sm:$0xf] %v5944_v37  ;;  %v7327_v15 = vld [vmem:[#allocation2 + $0x8] ss:$52 sps:$4 sm:$0xff]   ;;  %6632 = vmatpush3.bf16.msra.mxu1 %v7325_v10  ;;  %v7331_v20 = vld [vmem:[#allocation2 + $0x1a0] ss:$52 sps:$4 sm:$0xff]   ;;  %v770_v3 = vsel %vm437_vm0, %v7883_v36, %v738_v5  ;;  %v952_v37 = vsel %vm437_vm0, %v7875_v31, %v738_v5  ;;  %2018 = vrot.lane.b32.xlu0 %v8351_v4, %s7660_s30 }
  0xbb   : > { %913 = vst [vmem:[#allocation2 + $0x278] sm:$0xf] %v5917_v6  ;;  %914 = vst [vmem:[#allocation2 + $0x2ac] sm:$0xf] %v5918_v7  ;;  %v7345_v41 = vld [vmem:[%s9572_s1 + $0x1f0] sm:$0xff]   ;;  %6841 = vmatprep.subr.bf16.mxu1 %v7330_v50  ;;  %v7387_v13 = vld [vmem:[%s9572_s1 + $0x140] sm:$0xff]   ;;  %v473_v10 = vsel %vm437_vm0, %v7883_v36, %v428_v52  ;;  %v5919_v54 = vcombine.low %v770_v3, %v770_v3  ;;  %v5920_v53 = vcombine.high %v770_v3, %v770_v3 }
  0xbc   : > { %1095 = vst [vmem:[#allocation2 + $0x1ac] sm:$0xf] %v5945_v29  ;;  %1151 = vst [vmem:[#allocation2 + $0xe0] sm:$0xf] %v5945_v29  ;;  %v7335_v19 = vld [vmem:[#allocation2 + $0x74] ss:$52 sps:$4 sm:$0xff]   ;;  %v5947_v50 = vcombine.low %v952_v37, %v952_v37  ;;  %v5891_v6 = vcombine.low %v473_v10, %v473_v10  ;;  %v5892_v7 = vcombine.high %v473_v10, %v473_v10  ;;  %6742 = vmatpush3.bf16.msra.mxu0 %v7378_v47 }
  0xbd   : > { %618 = vst [vmem:[#allocation2 + $0x410] sm:$0xf] %v5889_v56  ;;  %619 = vst [vmem:[#allocation2 + $0x444] sm:$0xf] %v5890_v0  ;;  %v7333_v60 = vld [vmem:[#allocation2 + $0x20c] ss:$52 sps:$4 sm:$0xff]   ;;  %4746 = vmatmul.mubr.bf16.vlgmr.msra.gmra.mxu1 %v7327_v15  ;;  %v5948_v29 = vcombine.high %v952_v37, %v952_v37  ;;  %4617 = vmatmul.mubr.bf16.gmra.mxu0 %v7331_v20  ;;  %v8407_v47 = vpack.c.bf16 %v8258_v30, %v8251_v17 }
  0xbe   : > { %674 = vst [vmem:[#allocation2 + $0x344] sm:$0xf] %v5889_v56  ;;  %675 = vst [vmem:[#allocation2 + $0x378] sm:$0xf] %v5890_v0  ;;  %v7348_v31 = vld [vmem:[%s9572_s1 + $0x1b0] sm:$0xff]   ;;  %v7390_v35 = vld [vmem:[%s9572_s1 + $0x100] sm:$0xff]   ;;  %6842 = vmatpush3.bf16.msra.mxu1 %v7332_v39  ;;  %v742_v39 = vpop.permute.xlu1 %741  ;;  %4624 = vmatprep.mubr.bf16.mxu0 %v7333_v60 }
  0xbf   : > { %1096 = vst [vmem:[#allocation2 + $0x1e0] sm:$0xf] %v5946_v21  ;;  %1152 = vst [vmem:[#allocation2 + $0x114] sm:$0xf] %v5946_v21  ;;  %v336_v28 = vld [vmem:[%s7710_s27 + $0x34] sm:$0xff]  ;;  %v337_v63 = vld [vmem:[%s7710_s27 + $0x3c] sm:$0xff]  ;;  %v740_v21 = vpop.permute.xlu0 %739  ;;  %4753 = vmatprep.mubr.bf16.mxu1 %v7335_v19  ;;  %v774_v10 = vsel %vm437_vm0, %v7718_v9, %v742_v39  ;;  %6843 = vmatprep.subr.bf16.mxu1 %v7345_v41 }
  0xc0   : > { %v7362_v36 = vld [vmem:[%s9572_s1 + $0x1e8] sm:$0xff]   ;;  %v8397_v56 = vld [vmem:[%s7710_s27 + $0x7c] sm:$0xff]  ;;  %915 = vst [vmem:[#allocation2 + $0x2e0] sm:$0xf] %v5919_v54  ;;  %916 = vst [vmem:[#allocation2 + $0x314] sm:$0xf] %v5920_v53  ;;  %v772_v52 = vsel %vm437_vm0, %v7900_v45, %v740_v21  ;;  %v954_v17 = vsel %vm437_vm0, %v7895_v43, %v740_v21  ;;  %v8419_v37 = vpack.c.bf16 %v337_v63, %v336_v28  ;;  %6743 = vmatprep.subr.bf16.mxu0 %v7387_v13 }
  0xc1   : > { %v8400_v0 = vld [vmem:[%s7710_s27 + $0x84] sm:$0xff]  ;;  %1097 = vst [vmem:[#allocation2 + $0x214] sm:$0xf] %v5947_v50  ;;  %1153 = vst [vmem:[#allocation2 + $0x148] sm:$0xf] %v5947_v50  ;;  %v7403_v15 = vld [vmem:[%s9572_s1 + $0x278] sm:$0xff]   ;;  %v6475_v5 = vpack.c.bf16 %v8397_v56, %v8397_v56  ;;  %v956_v54 = vsel %vm437_vm0, %v7906_v49, %v742_v39  ;;  %v5921_v19 = vcombine.low %v772_v52, %v772_v52  ;;  %6744 = vmatpush3.bf16.msra.mxu0 %v7390_v35 }
  0xc2   : > { %v6476_v20 = vpack.c.bf16 %v8400_v0, %v8400_v0  ;;  %620 = vst [vmem:[#allocation2 + $0x478] sm:$0xf] %v5891_v6  ;;  %621 = vst [vmem:[#allocation2 + $0x4ac] sm:$0xf] %v5892_v7  ;;  %v324_v30 = vld [vmem:[%s7710_s27 + $0x183] sm:$0xff]  ;;  %v325_v3 = vld [vmem:[%s7710_s27 + $0x18b] sm:$0xff]  ;;  %v5922_v60 = vcombine.high %v772_v52, %v772_v52  ;;  %v5923_v45 = vcombine.low %v774_v10, %v774_v10  ;;  %6844 = vmatpush3.bf16.msra.mxu1 %v7348_v31  ;;  %v1213_v13 = vpop.permute.xlu1 %1212 }
  0xc3   : > { %676 = vst [vmem:[#allocation2 + $0x3ac] sm:$0xf] %v5891_v6  ;;  %677 = vst [vmem:[#allocation2 + $0x3e0] sm:$0xf] %v5892_v7  ;;  %v5924_v43 = vcombine.high %v774_v10, %v774_v10  ;;  %v5951_v53 = vcombine.low %v956_v54, %v956_v54  ;;  %v5952_v50 = vcombine.high %v956_v54, %v956_v54  ;;  %v7339_v28 = vld [vmem:[#allocation2 + $0x70] ss:$52 sps:$4 sm:$0xff]   ;;  %v744_v63 = vpop.permute.xlu0 %743  ;;  %6845 = vmatprep.subr.bf16.mxu1 %v7362_v36 }
  0xc4   : > { %1098 = vst [vmem:[#allocation2 + $0x248] sm:$0xf] %v5948_v29  ;;  %1154 = vst [vmem:[#allocation2 + $0x17c] sm:$0xf] %v5948_v29  ;;  %v7366_v9 = vld [vmem:[%s9572_s1 + $0x1a8] sm:$0xff]   ;;  %v5949_v49 = vcombine.low %v954_v17, %v954_v17  ;;  %v5950_v41 = vcombine.high %v954_v17, %v954_v17  ;;  %v7379_v6 = vld [vmem:[%s9572_s1 + $0x1e0] sm:$0xff]   ;;  %v8433_v7 = vpack.c.bf16 %v325_v3, %v324_v30  ;;  %6953 = vmatprep.subr.bf16.mxu0 %v7403_v15 }
  0xc5   : > { %2403 = vst.msk [vmem:[#allocation2 + $0x98] sm:$0xf] %vm2400_vm1, %v6475_v5  ;;  %2404 = vst.msk [vmem:[#allocation2 + $0xcc] sm:$0xf] %vm2400_vm1, %v6476_v20  ;;  %v326_v29 = vld [vmem:[%s7710_s27 + $0x19b] sm:$0xff]  ;;  %v776_v21 = vsel %vm437_vm0, %v7741_v22, %v744_v63  ;;  %v958_v5 = vsel %vm437_vm0, %v7911_v51, %v744_v63  ;;  %v327_v35 = vld [vmem:[%s7710_s27 + $0x1a3] sm:$0xff]  ;;  %v8443_v20 = vpack.c.bf16 %v8400_v0, %v8397_v56  ;;  %2028 = vrot.lane.b32.xlu1 %v8407_v47, %s7660_s30 }
  0xc6   : > { %917 = vst [vmem:[#allocation2 + $0x348] sm:$0xf] %v5921_v19  ;;  %918 = vst [vmem:[#allocation2 + $0x37c] sm:$0xf] %v5922_v60  ;;  %v7338_v31 = vld [vmem:[#allocation2 + $0x208] ss:$52 sps:$4 sm:$0xff]   ;;  %v1246_v39 = vsel %vm437_vm0, %v1179_v14, %v1213_v13  ;;  %v5925_v22 = vcombine.low %v776_v21, %v776_v21  ;;  %v5926_v36 = vcombine.high %v776_v21, %v776_v21  ;;  %4754 = vmatmul.mubr.bf16.gmra.mxu1 %v7339_v28  ;;  %v1215_v48 = vpop.permute.xlu1 %1214 }
  0xc7   : > { %919 = vst [vmem:[#allocation2 + $0x3b0] sm:$0xf] %v5923_v45  ;;  %920 = vst [vmem:[#allocation2 + $0x3e4] sm:$0xf] %v5924_v43  ;;  %v7341_v52 = vld [vmem:[#allocation2 + $0xdc] ss:$52 sps:$4 sm:$0xff]   ;;  %v5953_v17 = vcombine.low %v958_v5, %v958_v5  ;;  %v5973_v51 = vcombine.low %v1246_v39, %v1246_v39  ;;  %v5974_v15 = vcombine.high %v1246_v39, %v1246_v39  ;;  %2020 = vrot.lane.b32.xlu0 %v8419_v37, %s7660_s30  ;;  %v746_v42 = vpop.permute.xlu0 %745 }
  0xc8   : > { %1101 = vst [vmem:[#allocation2 + $0x2e4] sm:$0xf] %v5951_v53  ;;  %1102 = vst [vmem:[#allocation2 + $0x318] sm:$0xf] %v5952_v50  ;;  %v7343_v56 = vld [vmem:[#allocation2 + $0x274] ss:$52 sps:$4 sm:$0xff]   ;;  %v5954_v0 = vcombine.high %v958_v5, %v958_v5  ;;  %4625 = vmatmul.mubr.bf16.gmra.mxu0 %v7338_v31  ;;  %4761 = vmatprep.mubr.bf16.mxu1 %v7341_v52  ;;  %v778_v14 = vsel %vm437_vm0, %v7729_v16, %v746_v42 }
  0xc9   : > { %1157 = vst [vmem:[#allocation2 + $0x218] sm:$0xf] %v5951_v53  ;;  %1158 = vst [vmem:[#allocation2 + $0x24c] sm:$0xf] %v5952_v50  ;;  %4632 = vmatprep.mubr.bf16.mxu0 %v7343_v56  ;;  %6846 = vmatpush3.bf16.msra.mxu1 %v7366_v9  ;;  %v960_v30 = vsel %vm437_vm0, %v7919_v58, %v746_v42  ;;  %v7382_v3 = vld [vmem:[%s9572_s1 + $0x1a0] sm:$0xff]   ;;  %v8460_v10 = vpack.c.bf16 %v327_v35, %v326_v29  ;;  %v7396_v16 = vld [vmem:[%s9572_s1 + $0x1d8] sm:$0xff]  }
  0xca   : > { %1099 = vst [vmem:[#allocation2 + $0x27c] sm:$0xf] %v5949_v49  ;;  %1100 = vst [vmem:[#allocation2 + $0x2b0] sm:$0xf] %v5950_v41  ;;  %v1249_v54 = vsel %vm437_vm0, %v7924_v61, %v1215_v48  ;;  %v5927_v19 = vcombine.low %v778_v14, %v778_v14  ;;  %v5928_v60 = vcombine.high %v778_v14, %v778_v14  ;;  %6847 = vmatprep.subr.bf16.mxu1 %v7379_v6  ;;  %v7398_v50 = vld [vmem:[%s9572_s1 + $0x198] sm:$0xff]   ;;  %v346_v61 = vld [vmem:[%s7710_s27 + $0xac] sm:$0xff]  ;;  %v1217_v63 = vpop.permute.xlu1 %1216 }
  0xcb   : > { %1155 = vst [vmem:[#allocation2 + $0x1b0] sm:$0xf] %v5949_v49  ;;  %1156 = vst [vmem:[#allocation2 + $0x1e4] sm:$0xf] %v5950_v41  ;;  %v5955_v45 = vcombine.low %v960_v30, %v960_v30  ;;  %v5975_v43 = vcombine.low %v1249_v54, %v1249_v54  ;;  %v5976_v53 = vcombine.high %v1249_v54, %v1249_v54  ;;  %1743 = vrot.lane.b32.xlu1 %v8433_v7, %s7660_s30  ;;  %v748_v28 = vpop.permute.xlu0 %747  ;;  %v7411_v9 = vld [vmem:[%s9572_s1 + $0x1d0] sm:$0xff]   ;;  %v8500_v54 = vld [vmem:[%s7710_s27 + $0x1c8] sm:$0xff] }
  0xcc   : > { %921 = vst [vmem:[#allocation2 + $0x418] sm:$0xf] %v5925_v22  ;;  %922 = vst [vmem:[#allocation2 + $0x44c] sm:$0xf] %v5926_v36  ;;  %v5956_v58 = vcombine.high %v960_v30, %v960_v30  ;;  %2026 = vrot.lane.b32.xlu0 %v8443_v20, %s7660_s30  ;;  %v6479_v49 = vpack.c.bf16 %v346_v61, %v346_v61  ;;  %v7347_v41 = vld [vmem:[#allocation2 + $0xd8] ss:$52 sps:$4 sm:$0xff]   ;;  %v780_v6 = vsel %vm437_vm0, %v7745_v23, %v748_v28 }
  0xcd   : > { %1103 = vst [vmem:[#allocation2 + $0x34c] sm:$0xf] %v5953_v17  ;;  %1159 = vst [vmem:[#allocation2 + $0x280] sm:$0xf] %v5953_v17  ;;  %v962_v29 = vsel %vm437_vm0, %v7930_v1, %v748_v28  ;;  %6848 = vmatpush3.bf16.msra.mxu1 %v7382_v3  ;;  %v7346_v13 = vld [vmem:[#allocation2 + $0x270] ss:$52 sps:$4 sm:$0xff]   ;;  %v1252_v21 = vsel %vm437_vm0, %v7934_v2, %v1217_v63  ;;  %v5929_v5 = vcombine.low %v780_v6, %v780_v6 }
  0xce   : > { %1404 = vst [vmem:[#allocation2 + $0x14] sm:$0xf] %v5973_v51  ;;  %1405 = vst [vmem:[#allocation2 + $0x48] sm:$0xf] %v5974_v15  ;;  %v7349_v31 = vld [vmem:[#allocation2 + $0x144] ss:$52 sps:$4 sm:$0xff]   ;;  %v5930_v35 = vcombine.high %v780_v6, %v780_v6  ;;  %v5957_v39 = vcombine.low %v962_v29, %v962_v29  ;;  %6849 = vmatprep.subr.bf16.mxu1 %v7396_v16  ;;  %4762 = vmatmul.mubr.bf16.gmra.mxu1 %v7347_v41  ;;  %v1219_v15 = vpop.permute.xlu1 %1218 }
  0xcf   : > { %1104 = vst [vmem:[#allocation2 + $0x380] sm:$0xf] %v5954_v0  ;;  %1160 = vst [vmem:[#allocation2 + $0x2b4] sm:$0xf] %v5954_v0  ;;  %v347_v52 = vld [vmem:[%s7710_s27 + $0xb4] sm:$0xff]  ;;  %v5977_v22 = vcombine.low %v1252_v21, %v1252_v21  ;;  %v5978_v36 = vcombine.high %v1252_v21, %v1252_v21  ;;  %v5958_v17 = vcombine.high %v962_v29, %v962_v29  ;;  %1745 = vrot.lane.b32.xlu1 %v8460_v10, %s7660_s30  ;;  %v750_v1 = vpop.permute.xlu0 %749  ;;  %v348_v16 = vld [vmem:[%s7710_s27 + $0xc4] sm:$0xff] }
  0xd0   : > { %923 = vst [vmem:[#allocation2 + $0x480] sm:$0xf] %v5927_v19  ;;  %924 = vst [vmem:[#allocation2 + $0x4b4] sm:$0xf] %v5928_v60  ;;  %v7351_v23 = vld [vmem:[#allocation2 + $0x2dc] ss:$52 sps:$4 sm:$0xff]   ;;  %4633 = vmatmul.mubr.bf16.gmra.mxu0 %v7346_v13  ;;  %4769 = vmatprep.mubr.bf16.mxu1 %v7349_v31  ;;  %v8488_v2 = vpack.c.bf16 %v347_v52, %v346_v61  ;;  %v6480_v51 = vpack.c.bf16 %v347_v52, %v347_v52 }
  0xd1   : > { %1105 = vst [vmem:[#allocation2 + $0x3b4] sm:$0xf] %v5955_v45  ;;  %1161 = vst [vmem:[#allocation2 + $0x2e8] sm:$0xf] %v5955_v45  ;;  %4640 = vmatprep.mubr.bf16.mxu0 %v7351_v23  ;;  %v782_v56 = vsel %vm437_vm0, %v7765_v34, %v750_v1  ;;  %v964_v0 = vsel %vm437_vm0, %v7942_v8, %v750_v1  ;;  %6850 = vmatpush3.bf16.msra.mxu1 %v7398_v50  ;;  %v7414_v42 = vld [vmem:[%s9572_s1 + $0x190] sm:$0xff]   ;;  %v7427_v34 = vld [vmem:[%s9572_s1 + $0x1c8] sm:$0xff]  }
  0xd2   : > { %1406 = vst [vmem:[#allocation2 + $0x7c] sm:$0xf] %v5975_v43  ;;  %1407 = vst [vmem:[#allocation2 + $0xb0] sm:$0xf] %v5976_v53  ;;  %v1255_v48 = vsel %vm437_vm0, %v7947_v12, %v1219_v15  ;;  %v5931_v14 = vcombine.low %v782_v56, %v782_v56  ;;  %v5932_v30 = vcombine.high %v782_v56, %v782_v56  ;;  %v211_v19 = vld [vmem:[%s7710_s27 + $0x1d0] sm:$0xff]  ;;  %6851 = vmatprep.subr.bf16.mxu1 %v7411_v9  ;;  %v7430_v12 = vld [vmem:[%s9572_s1 + $0x188] sm:$0xff]   ;;  %v1221_v28 = vpop.permute.xlu1 %1220 }
  0xd3   : > { %1106 = vst [vmem:[#allocation2 + $0x3e8] sm:$0xf] %v5956_v58  ;;  %1162 = vst [vmem:[#allocation2 + $0x31c] sm:$0xf] %v5956_v58  ;;  %v5959_v3 = vcombine.low %v964_v0, %v964_v0  ;;  %v5979_v8 = vcombine.low %v1255_v48, %v1255_v48  ;;  %v5980_v60 = vcombine.high %v1255_v48, %v1255_v48  ;;  %2030 = vrot.lane.b32.xlu0 %v8488_v2, %s7660_s30  ;;  %v752_v43 = vpop.permute.xlu0 %751  ;;  %v7441_v53 = vld [vmem:[%s9572_s1 + $0x1c0] sm:$0xff]   ;;  %v349_v21 = vld [vmem:[%s7710_s27 + $0xcc] sm:$0xff] }
  0xd4   : > { %2407 = vst.msk [vmem:[#allocation2 + $0x168] sm:$0xf] %vm2400_vm1, %v6479_v49  ;;  %925 = vst [vmem:[#allocation2 + $0x4e8] sm:$0xf] %v5929_v5  ;;  %v5960_v45 = vcombine.high %v964_v0, %v964_v0  ;;  %v6481_v58 = vpack.c.bf16 %v348_v16, %v348_v16  ;;  %v7355_v50 = vld [vmem:[#allocation2 + $0x2d8] ss:$52 sps:$4 sm:$0xff]   ;;  %v785_v9 = vsel %vm437_vm0, %v7777_v40, %v752_v43 }
  0xd5   : > { %926 = vst [vmem:[#allocation2 + $0x51c] sm:$0xf] %v5930_v35  ;;  %1107 = vst [vmem:[#allocation2 + $0x41c] sm:$0xf] %v5957_v39  ;;  %v7356_v61 = vld [vmem:[#allocation2 + $0x140] ss:$52 sps:$4 sm:$0xff]   ;;  %v966_v49 = vsel %vm437_vm0, %v7955_v24, %v752_v43  ;;  %v690_v41 = vpack.c.bf16 %v211_v19, %v8500_v54  ;;  %6852 = vmatpush3.bf16.msra.mxu1 %v7414_v42  ;;  %v1258_v6 = vsel %vm437_vm0, %v7960_v26, %v1221_v28 }
  0xd6   : > { %1163 = vst [vmem:[#allocation2 + $0x350] sm:$0xf] %v5957_v39  ;;  %1408 = vst [vmem:[#allocation2 + $0xe4] sm:$0xf] %v5977_v22  ;;  %v7357_v63 = vld [vmem:[#allocation2 + $0x1ac] ss:$52 sps:$4 sm:$0xff]   ;;  %v5933_v29 = vcombine.low %v785_v9, %v785_v9  ;;  %v5934_v13 = vcombine.high %v785_v9, %v785_v9  ;;  %v5961_v31 = vcombine.low %v966_v49, %v966_v49  ;;  %6853 = vmatprep.subr.bf16.mxu1 %v7427_v34 }
  0xd7   : > { %1409 = vst [vmem:[#allocation2 + $0x118] sm:$0xf] %v5978_v36  ;;  %1464 = vst [vmem:[#allocation2 + $0x18] sm:$0xf] %v5977_v22  ;;  %4770 = vmatmul.mubr.bf16.gmra.mxu1 %v7356_v61  ;;  %v7359_v5 = vld [vmem:[#allocation2 + $0x344] ss:$52 sps:$4 sm:$0xff]   ;;  %v5981_v40 = vcombine.low %v1258_v6, %v1258_v6  ;;  %v5982_v35 = vcombine.high %v1258_v6, %v1258_v6  ;;  %v5962_v39 = vcombine.high %v966_v49, %v966_v49  ;;  %v754_v52 = vpop.permute.xlu0 %753 }
  0xd8   : > { %1465 = vst [vmem:[#allocation2 + $0x4c] sm:$0xf] %v5978_v36  ;;  %1108 = vst [vmem:[#allocation2 + $0x450] sm:$0xf] %v5958_v17  ;;  %v8525_v24 = vpack.c.bf16 %v349_v21, %v348_v16  ;;  %4641 = vmatmul.mubr.bf16.gmra.mxu0 %v7355_v50  ;;  %4777 = vmatprep.mubr.bf16.mxu1 %v7357_v63  ;;  %v6482_v22 = vpack.c.bf16 %v349_v21, %v349_v21  ;;  %v1223_v36 = vpop.permute.xlu1 %1222  ;;  %v7442_v1 = vld [vmem:[%s9572_s1 + $0x180] sm:$0xff]   ;;  %v7456_v42 = vld [vmem:[%s9572_s1 + $0x2f8] sm:$0xff]  }
  0xd9   : > { %1164 = vst [vmem:[#allocation2 + $0x384] sm:$0xf] %v5958_v17  ;;  %2408 = vst.msk [vmem:[#allocation2 + $0x19c] sm:$0xf] %vm2400_vm1, %v6480_v51  ;;  %4648 = vmatprep.mubr.bf16.mxu0 %v7359_v5  ;;  %v788_v23 = vsel %vm437_vm0, %v690_v41, %v754_v52  ;;  %v968_v17 = vsel %vm437_vm0, %v7966_v32, %v754_v52  ;;  %6854 = vmatpush3.bf16.msra.mxu1 %v7430_v12  ;;  %v350_v48 = vld [vmem:[%s7710_s27 + $0xdc] sm:$0xff]  ;;  %v351_v32 = vld [vmem:[%s7710_s27 + $0xe4] sm:$0xff] }
  0xda   : > { %927 = vst [vmem:[#allocation2 + $0x550] sm:$0xf] %v5931_v14  ;;  %928 = vst [vmem:[#allocation2 + $0x584] sm:$0xf] %v5932_v30  ;;  %v1261_v51 = vsel %vm437_vm0, %v7970_v33, %v1223_v36  ;;  %v5935_v15 = vcombine.low %v788_v23, %v788_v23  ;;  %v5936_v56 = vcombine.high %v788_v23, %v788_v23  ;;  %6855 = vmatprep.subr.bf16.mxu1 %v7441_v53  ;;  %v7363_v16 = vld [vmem:[#allocation2 + $0x340] ss:$52 sps:$4 sm:$0xff]  }
  0xdb   : > { %1109 = vst [vmem:[#allocation2 + $0x484] sm:$0xf] %v5959_v3  ;;  %1165 = vst [vmem:[#allocation2 + $0x3b8] sm:$0xf] %v5959_v3  ;;  %v5963_v0 = vcombine.low %v968_v17, %v968_v17  ;;  %v5983_v14 = vcombine.low %v1261_v51, %v1261_v51  ;;  %v5984_v30 = vcombine.high %v1261_v51, %v1261_v51  ;;  %2032 = vrot.lane.b32.xlu0 %v8525_v24, %s7660_s30  ;;  %v938_v19 = vpop.permute.xlu0 %937  ;;  %v7367_v43 = vld [vmem:[#allocation2 + $0x214] ss:$52 sps:$4 sm:$0xff]  }
  0xdc   : > { %1410 = vst [vmem:[#allocation2 + $0x14c] sm:$0xf] %v5979_v8  ;;  %1411 = vst [vmem:[#allocation2 + $0x180] sm:$0xf] %v5980_v60  ;;  %v5964_v3 = vcombine.high %v968_v17, %v968_v17  ;;  %v8543_v54 = vpack.c.bf16 %v351_v32, %v350_v48  ;;  %v6483_v34 = vpack.c.bf16 %v350_v48, %v350_v48  ;;  %v7369_v61 = vld [vmem:[#allocation2 + $0x3ac] ss:$52 sps:$4 sm:$0xff]  }
  0xdd   : > { %1466 = vst [vmem:[#allocation2 + $0x80] sm:$0xf] %v5979_v8  ;;  %1467 = vst [vmem:[#allocation2 + $0xb4] sm:$0xf] %v5980_v60  ;;  %v6484_v8 = vpack.c.bf16 %v351_v32, %v351_v32  ;;  %v7364_v60 = vld [vmem:[#allocation2 + $0x1a8] ss:$52 sps:$4 sm:$0xff]   ;;  %v971_v12 = vsel %vm437_vm0, %v7978_v44, %v938_v19  ;;  %6856 = vmatpush3.bf16.msra.mxu1 %v7442_v1 }
  0xde   : > { %1110 = vst [vmem:[#allocation2 + $0x4b8] sm:$0xf] %v5960_v45  ;;  %1166 = vst [vmem:[#allocation2 + $0x3ec] sm:$0xf] %v5960_v45  ;;  %v1225_v45 = vpop.permute.xlu1 %1224  ;;  %v5966_v50 = vcombine.high %v971_v12, %v971_v12  ;;  %7065 = vmatprep.subr.bf16.mxu1 %v7456_v42  ;;  %v328_v21 = vld [vmem:[%s7710_s27 + $0x1b3] sm:$0xff]  ;;  %v329_v5 = vld [vmem:[%s7710_s27 + $0x1bb] sm:$0xff] }
  0xdf   : > { %2409 = vst.msk [vmem:[#allocation2 + $0x1d0] sm:$0xf] %vm2400_vm1, %v6481_v58  ;;  %929 = vst [vmem:[#allocation2 + $0x5b8] sm:$0xf] %v5933_v29  ;;  %v1264_v53 = vsel %vm437_vm0, %v7982_v46, %v1225_v45  ;;  %v5965_v58 = vcombine.low %v971_v12, %v971_v12  ;;  %4778 = vmatmul.mubr.bf16.gmra.mxu1 %v7364_v60  ;;  %2034 = vrot.lane.b32.xlu0 %v8543_v54, %s7660_s30  ;;  %v940_v44 = vpop.permute.xlu0 %939  ;;  %v7372_v52 = vld [vmem:[#allocation2 + $0x210] ss:$52 sps:$4 sm:$0xff]  }
  0xe0   : > { %930 = vst [vmem:[#allocation2 + $0x5ec] sm:$0xf] %v5934_v13  ;;  %1111 = vst [vmem:[#allocation2 + $0x4ec] sm:$0xf] %v5961_v31  ;;  %v5985_v28 = vcombine.low %v1264_v53, %v1264_v53  ;;  %v5986_v9 = vcombine.high %v1264_v53, %v1264_v53  ;;  %4649 = vmatmul.mubr.bf16.gmra.mxu0 %v7363_v16  ;;  %4785 = vmatprep.mubr.bf16.mxu1 %v7367_v43  ;;  %v7373_v36 = vld [vmem:[#allocation2 + $0x27c] ss:$52 sps:$4 sm:$0xff]  }
  0xe1   : > { %1167 = vst [vmem:[#allocation2 + $0x420] sm:$0xf] %v5961_v31  ;;  %1412 = vst [vmem:[#allocation2 + $0x1b4] sm:$0xf] %v5981_v40  ;;  %4656 = vmatprep.mubr.bf16.mxu0 %v7369_v61  ;;  %v974_v41 = vsel %vm437_vm0, %v7991_v57, %v940_v44  ;;  %v7375_v51 = vld [vmem:[#allocation2 + $0x414] ss:$52 sps:$4 sm:$0xff]  }
  0xe2   : > { %1413 = vst [vmem:[#allocation2 + $0x1e8] sm:$0xf] %v5982_v35  ;;  %1468 = vst [vmem:[#allocation2 + $0xe8] sm:$0xf] %v5981_v40  ;;  %v1227_v49 = vpop.permute.xlu1 %1226  ;;  %v5967_v6 = vcombine.low %v974_v41, %v974_v41  ;;  %v5968_v29 = vcombine.high %v974_v41, %v974_v41  ;;  %v352_v48 = vld [vmem:[%s7710_s27 + $0xf4] sm:$0xff]  ;;  %v353_v32 = vld [vmem:[%s7710_s27 + $0xfc] sm:$0xff] }
  0xe3   : > { %1469 = vst [vmem:[#allocation2 + $0x11c] sm:$0xf] %v5982_v35  ;;  %1112 = vst [vmem:[#allocation2 + $0x520] sm:$0xf] %v5962_v39  ;;  %v1267_v63 = vsel %vm437_vm0, %v7996_v62, %v1227_v49  ;;  %v1530_v40 = vpop.permute.xlu0 %1529  ;;  %v8559_v35 = vpack.c.bf16 %v329_v5, %v328_v21  ;;  %v8573_v19 = vpack.c.bf16 %v353_v32, %v352_v48  ;;  %v7383_v61 = vld [vmem:[#allocation2 + $0x2e4] ss:$52 sps:$4 sm:$0xff]  }
  0xe4   : > { %1168 = vst [vmem:[#allocation2 + $0x454] sm:$0xf] %v5962_v39  ;;  %2410 = vst.msk [vmem:[#allocation2 + $0x204] sm:$0xf] %vm2400_vm1, %v6482_v22  ;;  %v5987_v13 = vcombine.low %v1267_v63, %v1267_v63  ;;  %v5988_v31 = vcombine.high %v1267_v63, %v1267_v63  ;;  %v7371_v39 = vld [vmem:[#allocation2 + $0x3a8] ss:$52 sps:$4 sm:$0xff]   ;;  %v1562_v22 = vsel %vm437_vm0, %v7960_v26, %v1530_v40 }
  0xe5   : > { %931 = vst [vmem:[#allocation2 + $0x620] sm:$0xf] %v5935_v15  ;;  %932 = vst [vmem:[#allocation2 + $0x654] sm:$0xf] %v5936_v56  ;;  %v6009_v17 = vcombine.low %v1562_v22, %v1562_v22  ;;  %v6010_v1 = vcombine.high %v1562_v22, %v1562_v22  ;;  %1929 = vrot.lane.b32.xlu1 %v8559_v35, %s7660_s30  ;;  %v6485_v60 = vpack.c.bf16 %v352_v48, %v352_v48  ;;  %v331_v63 = vld [vmem:[%s7710_s27 + $0x1d3] sm:$0xff] }
  0xe6   : > { %1113 = vst [vmem:[#allocation2 + $0x554] sm:$0xf] %v5963_v0  ;;  %1169 = vst [vmem:[#allocation2 + $0x488] sm:$0xf] %v5963_v0  ;;  %v1229_v57 = vpop.permute.xlu1 %1228  ;;  %v6486_v45 = vpack.c.bf16 %v353_v32, %v353_v32  ;;  %2036 = vrot.lane.b32.xlu0 %v8573_v19, %s7660_s30  ;;  %v9630_v40 = vld [vmem:[#allocation6_spill] sm:$0xff]  ;;  %v9631_v22 = vld [vmem:[#allocation7_spill] sm:$0xff] }
  0xe7   : > { %1414 = vst [vmem:[#allocation2 + $0x21c] sm:$0xf] %v5983_v14  ;;  %1415 = vst [vmem:[#allocation2 + $0x250] sm:$0xf] %v5984_v30  ;;  %v1270_v23 = vsel %vm437_vm0, %v8008_v11, %v1229_v57  ;;  %4786 = vmatmul.mubr.bf16.gmra.mxu1 %v7372_v52  ;;  %v1532_v26 = vpop.permute.xlu0 %1531  ;;  %v354_v52 = vld [vmem:[%s7710_s27 + $0x10c] sm:$0xff]  ;;  %v355_v57 = vld [vmem:[%s7710_s27 + $0x114] sm:$0xff] }
  0xe8   : > { %1470 = vst [vmem:[#allocation2 + $0x150] sm:$0xf] %v5983_v14  ;;  %1471 = vst [vmem:[#allocation2 + $0x184] sm:$0xf] %v5984_v30  ;;  %v5989_v15 = vcombine.low %v1270_v23, %v1270_v23  ;;  %v5990_v56 = vcombine.high %v1270_v23, %v1270_v23  ;;  %4657 = vmatmul.mubr.bf16.gmra.mxu0 %v7371_v39  ;;  %4793 = vmatprep.mubr.bf16.mxu1 %v7373_v36  ;;  %v7388_v48 = vld [vmem:[#allocation2 + $0x478] ss:$52 sps:$4 sm:$0xff]  }
  0xe9   : > { %1114 = vst [vmem:[#allocation2 + $0x588] sm:$0xf] %v5964_v3  ;;  %1170 = vst [vmem:[#allocation2 + $0x4bc] sm:$0xf] %v5964_v3  ;;  %4664 = vmatprep.mubr.bf16.mxu0 %v7375_v51  ;;  %v1564_v42 = vsel %vm437_vm0, %v7970_v33, %v1532_v26  ;;  %v7381_v33 = vld [vmem:[#allocation2 + $0x278] ss:$52 sps:$4 sm:$0xff]   ;;  %v8596_v26 = vpack.c.bf16 %v355_v57, %v354_v52 }
  0xea   : > { %2411 = vst.msk [vmem:[#allocation2 + $0x238] sm:$0xf] %vm2400_vm1, %v6483_v34  ;;  %2412 = vst.msk [vmem:[#allocation2 + $0x26c] sm:$0xf] %vm2400_vm1, %v6484_v8  ;;  %v1231_v0 = vpop.permute.xlu1 %1230  ;;  %v6011_v30 = vcombine.low %v1564_v42, %v1564_v42  ;;  %v6012_v3 = vcombine.high %v1564_v42, %v1564_v42  ;;  %v6488_v42 = vpack.c.bf16 %v355_v57, %v355_v57  ;;  %v7389_v32 = vld [vmem:[#allocation2 + $0x2e0] ss:$52 sps:$4 sm:$0xff]  }
  0xeb   : > { %1115 = vst [vmem:[#allocation2 + $0x5bc] sm:$0xf] %v5965_v58  ;;  %1116 = vst [vmem:[#allocation2 + $0x5f0] sm:$0xf] %v5966_v50  ;;  %v1273_v14 = vsel %vm437_vm0, %v8017_v25, %v1231_v0  ;;  %v1534_v12 = vpop.permute.xlu0 %1533  ;;  %v6487_v0 = vpack.c.bf16 %v354_v52, %v354_v52  ;;  %2038 = vrot.lane.b32.xlu0 %v8596_v26, %s7660_s30 }
  0xec   : > { %1171 = vst [vmem:[#allocation2 + $0x4f0] sm:$0xf] %v5965_v58  ;;  %1172 = vst [vmem:[#allocation2 + $0x524] sm:$0xf] %v5966_v50  ;;  %v5991_v34 = vcombine.low %v1273_v14, %v1273_v14  ;;  %v5992_v8 = vcombine.high %v1273_v14, %v1273_v14  ;;  %v1566_v43 = vsel %vm437_vm0, %v7982_v46, %v1534_v12  ;;  %v330_v58 = vld [vmem:[%s7710_s27 + $0x1cb] sm:$0xff] }
  0xed   : > { %1416 = vst [vmem:[#allocation2 + $0x284] sm:$0xf] %v5985_v28  ;;  %1417 = vst [vmem:[#allocation2 + $0x2b8] sm:$0xf] %v5986_v9  ;;  %v1748_v53 = vsel %vm437_vm0, %v8023_v38, %v1534_v12  ;;  %v7380_v50 = vld [vmem:[#allocation2 + $0x410] ss:$52 sps:$4 sm:$0xff]   ;;  %v6013_v44 = vcombine.low %v1566_v43, %v1566_v43  ;;  %v6014_v49 = vcombine.high %v1566_v43, %v1566_v43 }
  0xee   : > { %1472 = vst [vmem:[#allocation2 + $0x1b8] sm:$0xf] %v5985_v28  ;;  %1473 = vst [vmem:[#allocation2 + $0x1ec] sm:$0xf] %v5986_v9  ;;  %v1233_v16 = vpop.permute.xlu1 %1232  ;;  %v9629_v28 = vld [vmem:[#allocation5_spill] sm:$0xff]  ;;  %v6041_v41 = vcombine.low %v1748_v53, %v1748_v53  ;;  %v1926_v38 = vpack.c.bf16 %v331_v63, %v330_v58 }
  0xef   : > { %1117 = vst [vmem:[#allocation2 + $0x624] sm:$0xf] %v5967_v6  ;;  %1118 = vst [vmem:[#allocation2 + $0x658] sm:$0xf] %v5968_v29  ;;  %v1276_v9 = vsel %vm437_vm0, %v9629_v28, %v1233_v16  ;;  %4794 = vmatmul.mubr.bf16.gmra.mxu1 %v7381_v33  ;;  %v7395_v43 = vld [vmem:[#allocation2 + $0x14] ss:$52 sps:$4 sm:$0xff]  }
  0xf0   : > { %1173 = vst [vmem:[#allocation2 + $0x558] sm:$0xf] %v5967_v6  ;;  %1174 = vst [vmem:[#allocation2 + $0x58c] sm:$0xf] %v5968_v29  ;;  %v7385_v6 = vld [vmem:[#allocation2 + $0x47c] ss:$52 sps:$4 sm:$0xff]   ;;  %v5993_v46 = vcombine.low %v1276_v9, %v1276_v9  ;;  %v5994_v29 = vcombine.high %v1276_v9, %v1276_v9  ;;  %4665 = vmatmul.mubr.bf16.gmra.mxu0 %v7380_v50  ;;  %4801 = vmatprep.mubr.bf16.mxu1 %v7383_v61 }
  0xf1   : > { %1418 = vst [vmem:[#allocation2 + $0x2ec] sm:$0xf] %v5987_v13  ;;  %1419 = vst [vmem:[#allocation2 + $0x320] sm:$0xf] %v5988_v31  ;;  %4672 = vmatprep.mubr.bf16.mxu0 %v7385_v6  ;;  %1931 = vrot.lane.b32.xlu1 %v1926_v38, %s7660_s30  ;;  %v357_v63 = vld [vmem:[%s7710_s27 + $0x12c] sm:$0xff]  ;;  %v9635_v6 = vld [vmem:[#allocation11_spill] sm:$0xff] }
  0xf2   : > { %1474 = vst [vmem:[#allocation2 + $0x220] sm:$0xf] %v5987_v13  ;;  %1475 = vst [vmem:[#allocation2 + $0x254] sm:$0xf] %v5988_v31  ;;  %v6042_v13 = vcombine.high %v1748_v53, %v1748_v53  ;;  %v1536_v31 = vpop.permute.xlu0 %1535  ;;  %v1235_v21 = vpop.permute.xlu1 %1234  ;;  %v6490_v57 = vpack.c.bf16 %v357_v63, %v357_v63 }
  0xf3   : > { %1707 = vst [vmem:[#allocation2 + $0x1c] sm:$0xf] %v6009_v17  ;;  %1708 = vst [vmem:[#allocation2 + $0x50] sm:$0xf] %v6010_v1  ;;  %v1568_v5 = vsel %vm437_vm0, %v7996_v62, %v1536_v31  ;;  %v1750_v39 = vsel %vm437_vm0, %v9630_v40, %v1536_v31  ;;  %v1279_v36 = vsel %vm437_vm0, %v9631_v22, %v1235_v21 }
  0xf4   : > { %1420 = vst [vmem:[#allocation2 + $0x354] sm:$0xf] %v5989_v15  ;;  %1421 = vst [vmem:[#allocation2 + $0x388] sm:$0xf] %v5990_v56  ;;  %v6015_v23 = vcombine.low %v1568_v5, %v1568_v5  ;;  %v6016_v17 = vcombine.high %v1568_v5, %v1568_v5  ;;  %v6043_v1 = vcombine.low %v1750_v39, %v1750_v39 }
  0xf5   : > { %1476 = vst [vmem:[#allocation2 + $0x288] sm:$0xf] %v5989_v15  ;;  %1477 = vst [vmem:[#allocation2 + $0x2bc] sm:$0xf] %v5990_v56  ;;  %v5995_v51 = vcombine.low %v1279_v36, %v1279_v36  ;;  %v5996_v15 = vcombine.high %v1279_v36, %v1279_v36  ;;  %v6044_v56 = vcombine.high %v1750_v39, %v1750_v39  ;;  %v7397_v36 = vld [vmem:[#allocation2 + $0x348] ss:$52 sps:$4 sm:$0xff]  }
  0xf6   : > { %1709 = vst [vmem:[#allocation2 + $0x84] sm:$0xf] %v6011_v30  ;;  %1710 = vst [vmem:[#allocation2 + $0xb8] sm:$0xf] %v6012_v3  ;;  %v1538_v62 = vpop.permute.xlu0 %1537  ;;  %v1237_v14 = vpop.permute.xlu1 %1236  ;;  %v9632_v3 = vld [vmem:[#allocation8_spill] sm:$0xff] }
  0xf7   : > { %1422 = vst [vmem:[#allocation2 + $0x3bc] sm:$0xf] %v5991_v34  ;;  %1423 = vst [vmem:[#allocation2 + $0x3f0] sm:$0xf] %v5992_v8  ;;  %v1570_v30 = vsel %vm437_vm0, %v8008_v11, %v1538_v62  ;;  %4802 = vmatmul.mubr.bf16.gmra.mxu1 %v7389_v32 }
  0xf8   : > { %1478 = vst [vmem:[#allocation2 + $0x2f0] sm:$0xf] %v5991_v34  ;;  %1479 = vst [vmem:[#allocation2 + $0x324] sm:$0xf] %v5992_v8  ;;  %v1752_v34 = vsel %vm437_vm0, %v9632_v3, %v1538_v62  ;;  %v7391_v8 = vld [vmem:[#allocation2 + $0x34c] ss:$52 sps:$4 sm:$0xff]   ;;  %v6017_v12 = vcombine.low %v1570_v30, %v1570_v30  ;;  %v6018_v33 = vcombine.high %v1570_v30, %v1570_v30  ;;  %4673 = vmatmul.mubr.bf16.gmra.mxu0 %v7388_v48 }
  0xf9   : > { %2413 = vst.msk [vmem:[#allocation2 + $0x2a0] sm:$0xf] %vm2400_vm1, %v6485_v60  ;;  %2414 = vst.msk [vmem:[#allocation2 + $0x2d4] sm:$0xf] %vm2400_vm1, %v6486_v45  ;;  %v9633_v60 = vld [vmem:[#allocation9_spill] sm:$0xff]  ;;  %v6045_v16 = vcombine.low %v1752_v34, %v1752_v34  ;;  %v6046_v58 = vcombine.high %v1752_v34, %v1752_v34  ;;  %4809 = vmatprep.mubr.bf16.mxu1 %v7391_v8  ;;  %4906 = vmatprep.mubr.bf16.mxu0 %v7395_v43  ;;  %v7419_v62 = vld [vmem:[%s9572_s1 + $0x270] sm:$0xff]  }
  0xfa   : > { %1711 = vst [vmem:[#allocation2 + $0xec] sm:$0xf] %v6013_v44  ;;  %1712 = vst [vmem:[#allocation2 + $0x120] sm:$0xf] %v6014_v49  ;;  %v1282_v45 = vsel %vm437_vm0, %v9633_v60, %v1237_v14  ;;  %v1540_v50 = vpop.permute.xlu0 %1539  ;;  %v1239_v61 = vpop.permute.xlu1 %1238  ;;  %v9634_v44 = vld [vmem:[#allocation10_spill] sm:$0xff]  ;;  %v9637_v14 = vld [vmem:[#allocation4_spill] sm:$0xff] }
  0xfb   : > { %1893 = vst [vmem:[#allocation2 + $0x20] sm:$0xf] %v6041_v41  ;;  %1424 = vst [vmem:[#allocation2 + $0x424] sm:$0xf] %v5993_v46  ;;  %v5997_v11 = vcombine.low %v1282_v45, %v1282_v45  ;;  %v5998_v53 = vcombine.high %v1282_v45, %v1282_v45  ;;  %v1572_v9 = vsel %vm437_vm0, %v8017_v25, %v1540_v50  ;;  %v356_v41 = vld [vmem:[%s7710_s27 + $0x124] sm:$0xff]  ;;  %v7404_v25 = vld [vmem:[%s9572_s1 + $0x238] sm:$0xff]  }
  0xfc   : > { %1425 = vst [vmem:[#allocation2 + $0x458] sm:$0xf] %v5994_v29  ;;  %1480 = vst [vmem:[#allocation2 + $0x358] sm:$0xf] %v5993_v46  ;;  %v1754_v49 = vsel %vm437_vm0, %v9634_v44, %v1540_v50  ;;  %v1285_v46 = vsel %vm437_vm0, %v9635_v6, %v1239_v61  ;;  %v8616_v40 = vpack.c.bf16 %v357_v63, %v356_v41  ;;  %v7420_v45 = vld [vmem:[%s9572_s1 + $0x230] sm:$0xff]   ;;  %v7435_v43 = vld [vmem:[%s9572_s1 + $0x268] sm:$0xff]  }
  0xfd   : > { %1481 = vst [vmem:[#allocation2 + $0x38c] sm:$0xf] %v5994_v29  ;;  %1894 = vst [vmem:[#allocation2 + $0x54] sm:$0xf] %v6042_v13  ;;  %v6019_v29 = vcombine.low %v1572_v9, %v1572_v9  ;;  %v6020_v13 = vcombine.high %v1572_v9, %v1572_v9  ;;  %v6047_v38 = vcombine.low %v1754_v49, %v1754_v49  ;;  %v9639_v50 = vld [vmem:[#allocation14_spill] sm:$0xff]  ;;  %v358_v9 = vld [vmem:[%s7710_s27 + $0x13c] sm:$0xff] }
  0xfe   : > { %1713 = vst [vmem:[#allocation2 + $0x154] sm:$0xf] %v6015_v23  ;;  %1714 = vst [vmem:[#allocation2 + $0x188] sm:$0xf] %v6016_v17  ;;  %v5999_v31 = vcombine.low %v1285_v46, %v1285_v46  ;;  %v6000_v21 = vcombine.high %v1285_v46, %v1285_v46  ;;  %v6048_v5 = vcombine.high %v1754_v49, %v1754_v49  ;;  %v1542_v39 = vpop.permute.xlu0 %1541  ;;  %v9636_v17 = vld [vmem:[#allocation12_spill] sm:$0xff]  ;;  %2040 = vrot.lane.b32.xlu1 %v8616_v40, %s7660_s30 }
  0xff   : > { %1895 = vst [vmem:[#allocation2 + $0x88] sm:$0xf] %v6043_v1  ;;  %1426 = vst [vmem:[#allocation2 + $0x48c] sm:$0xf] %v5995_v51  ;;  %v6489_v52 = vpack.c.bf16 %v356_v41, %v356_v41  ;;  %v1574_v23 = vsel %vm437_vm0, %v9629_v28, %v1542_v39  ;;  %v1756_v1 = vsel %vm437_vm0, %v9636_v17, %v1542_v39  ;;  %4810 = vmatmul.mubr.bf16.gmra.mxu1 %v7397_v36  ;;  %v7401_v28 = vld [vmem:[#allocation2 + $0x7c] ss:$52 sps:$4 sm:$0xff]  }
 0x100   : > { %1427 = vst [vmem:[#allocation2 + $0x4c0] sm:$0xf] %v5996_v15  ;;  %1482 = vst [vmem:[#allocation2 + $0x3c0] sm:$0xf] %v5995_v51  ;;  %v1124_v51 = vpop.permute.xlu1 %1123  ;;  %v6049_v48 = vcombine.low %v1756_v1, %v1756_v1  ;;  %v6050_v32 = vcombine.high %v1756_v1, %v1756_v1  ;;  %v359_v44 = vld [vmem:[%s7710_s27 + $0x144] sm:$0xff] }
 0x101   : > { %1483 = vst [vmem:[#allocation2 + $0x3f4] sm:$0xf] %v5996_v15  ;;  %1896 = vst [vmem:[#allocation2 + $0xbc] sm:$0xf] %v6044_v56  ;;  %v7393_v15 = vld [vmem:[#allocation2 + $0x10] ss:$52 sps:$4 sm:$0xff]   ;;  %v1129_v30 = vsel %vm437_vm0, %v9637_v14, %v1124_v51 }
 0x102   : > { %2415 = vst.msk [vmem:[#allocation2 + $0x308] sm:$0xf] %vm2400_vm1, %v6487_v0  ;;  %2416 = vst.msk [vmem:[#allocation2 + $0x33c] sm:$0xf] %vm2400_vm1, %v6488_v42  ;;  %v7399_v56 = vld [vmem:[#allocation2 + $0x3b4] ss:$52 sps:$4 sm:$0xff]   ;;  %v6021_v0 = vcombine.low %v1574_v23, %v1574_v23  ;;  %v6022_v42 = vcombine.high %v1574_v23, %v1574_v23  ;;  %4907 = vmatmul.mubr.bf16.vlgmr.msra.gmra.mxu0 %v7393_v15  ;;  %v5969_v3 = vcombine.low %v1129_v30, %v1129_v30  ;;  %v1241_v8 = vpop.permute.xlu0 %1240 }
 0x103   : > { %1715 = vst [vmem:[#allocation2 + $0x1bc] sm:$0xf] %v6017_v12  ;;  %1716 = vst [vmem:[#allocation2 + $0x1f0] sm:$0xf] %v6018_v33  ;;  %4817 = vmatprep.mubr.bf16.mxu1 %v7399_v56  ;;  %v5970_v34 = vcombine.high %v1129_v30, %v1129_v30  ;;  %4914 = vmatprep.mubr.bf16.mxu0 %v7401_v28  ;;  %v9638_v12 = vld [vmem:[#allocation13_spill] sm:$0xff]  ;;  %v9641_v1 = vld [vmem:[#allocation16_spill] sm:$0xff] }
 0x104   : > { %1897 = vst [vmem:[#allocation2 + $0xf0] sm:$0xf] %v6045_v16  ;;  %1953 = vst [vmem:[#allocation2 + $0x24] sm:$0xf] %v6045_v16  ;;  %6954 = vmatpush3.bf16.msra.mxu0 %v7404_v25  ;;  %v1288_v33 = vsel %vm437_vm0, %v9638_v12, %v1241_v8  ;;  %v1544_v16 = vpop.permute.xlu1 %1543  ;;  %v9640_v25 = vld [vmem:[#allocation15_spill] sm:$0xff]  ;;  %v9642_v14 = vld [vmem:[#allocation17_spill] sm:$0xff] }
 0x105   : > { %1428 = vst [vmem:[#allocation2 + $0x4f4] sm:$0xf] %v5997_v11  ;;  %1429 = vst [vmem:[#allocation2 + $0x528] sm:$0xf] %v5998_v53  ;;  %6955 = vmatprep.subr.bf16.mxu0 %v7419_v62  ;;  %v1758_v61 = vsel %vm437_vm0, %v9639_v50, %v1544_v16  ;;  %v7407_v36 = vld [vmem:[#allocation2 + $0x41c] ss:$52 sps:$4 sm:$0xff]  }
 0x106   : > { %1484 = vst [vmem:[#allocation2 + $0x428] sm:$0xf] %v5997_v11  ;;  %1485 = vst [vmem:[#allocation2 + $0x45c] sm:$0xf] %v5998_v53  ;;  %v6001_v11 = vcombine.low %v1288_v33, %v1288_v33  ;;  %v6002_v53 = vcombine.high %v1288_v33, %v1288_v33  ;;  %v6051_v63 = vcombine.low %v1758_v61, %v1758_v61  ;;  %v7409_v15 = vld [vmem:[#allocation2 + $0xe4] ss:$52 sps:$4 sm:$0xff]  }
 0x107   : > { %1898 = vst [vmem:[#allocation2 + $0x124] sm:$0xf] %v6046_v58  ;;  %1954 = vst [vmem:[#allocation2 + $0x58] sm:$0xf] %v6046_v58  ;;  %v1576_v58 = vsel %vm437_vm0, %v9631_v22, %v1544_v16  ;;  %v6052_v46 = vcombine.high %v1758_v61, %v1758_v61  ;;  %v6491_v22 = vpack.c.bf16 %v358_v9, %v358_v9  ;;  %v7462_v8 = vld [vmem:[%s9572_s1 + $0x258] sm:$0xff]  }
 0x108   : > { %1717 = vst [vmem:[#allocation2 + $0x224] sm:$0xf] %v6019_v29  ;;  %1718 = vst [vmem:[#allocation2 + $0x258] sm:$0xf] %v6020_v13  ;;  %v6023_v49 = vcombine.low %v1576_v58, %v1576_v58  ;;  %v6024_v41 = vcombine.high %v1576_v58, %v1576_v58  ;;  %v7436_v29 = vld [vmem:[%s9572_s1 + $0x228] sm:$0xff]   ;;  %v1126_v13 = vpop.permute.xlu0 %1125  ;;  %6956 = vmatpush3.bf16.msra.mxu0 %v7420_v45  ;;  %v7463_v61 = vld [vmem:[%s9572_s1 + $0x218] sm:$0xff]  }
 0x109   : > { %1899 = vst [vmem:[#allocation2 + $0x158] sm:$0xf] %v6047_v38  ;;  %1955 = vst [vmem:[#allocation2 + $0x8c] sm:$0xf] %v6047_v38  ;;  %v8651_v38 = vpack.c.bf16 %v359_v44, %v358_v9  ;;  %v1132_v39 = vsel %vm437_vm0, %v9640_v25, %v1126_v13  ;;  %6957 = vmatprep.subr.bf16.mxu0 %v7435_v43  ;;  %v9644_v13 = vld [vmem:[#allocation20_spill] sm:$0xff] }
 0x10a   : > { %1430 = vst [vmem:[#allocation2 + $0x55c] sm:$0xf] %v5999_v31  ;;  %1431 = vst [vmem:[#allocation2 + $0x590] sm:$0xf] %v6000_v21  ;;  %v5971_v23 = vcombine.low %v1132_v39, %v1132_v39  ;;  %v5972_v17 = vcombine.high %v1132_v39, %v1132_v39 }
 0x10b   : > { %1486 = vst [vmem:[#allocation2 + $0x490] sm:$0xf] %v5999_v31  ;;  %1487 = vst [vmem:[#allocation2 + $0x4c4] sm:$0xf] %v6000_v21  ;;  %v6492_v31 = vpack.c.bf16 %v359_v44, %v359_v44  ;;  %v7405_v21 = vld [vmem:[#allocation2 + $0x3b0] ss:$52 sps:$4 sm:$0xff]   ;;  %2042 = vrot.lane.b32.xlu0 %v8651_v38, %s7660_s30 }
 0x10c   : > { %1900 = vst [vmem:[#allocation2 + $0x18c] sm:$0xf] %v6048_v5  ;;  %1956 = vst [vmem:[#allocation2 + $0xc0] sm:$0xf] %v6048_v5  ;;  %v7447_v5 = vld [vmem:[%s9572_s1 + $0x260] sm:$0xff]   ;;  %4818 = vmatmul.mubr.bf16.gmra.mxu1 %v7405_v21  ;;  %6958 = vmatpush3.bf16.msra.mxu0 %v7436_v29 }
 0x10d   : > { %2417 = vst.msk [vmem:[#allocation2 + $0x370] sm:$0xf] %vm2400_vm1, %v6489_v52  ;;  %2418 = vst.msk [vmem:[#allocation2 + $0x3a4] sm:$0xf] %vm2400_vm1, %v6490_v57  ;;  %v1243_v52 = vpop.permute.xlu1 %1242  ;;  %v7406_v57 = vld [vmem:[#allocation2 + $0x78] ss:$52 sps:$4 sm:$0xff]   ;;  %4825 = vmatprep.mubr.bf16.mxu1 %v7407_v36  ;;  %6959 = vmatprep.subr.bf16.mxu0 %v7447_v5 }
 0x10e   : > { %1719 = vst [vmem:[#allocation2 + $0x28c] sm:$0xf] %v6021_v0  ;;  %1720 = vst [vmem:[#allocation2 + $0x2c0] sm:$0xf] %v6022_v42  ;;  %v1291_v51 = vsel %vm437_vm0, %v9641_v1, %v1243_v52  ;;  %4915 = vmatmul.mubr.bf16.gmra.mxu0 %v7406_v57  ;;  %v1546_v0 = vpop.permute.xlu0 %1545  ;;  %v360_v42 = vld [vmem:[%s7710_s27 + $0x154] sm:$0xff] }
 0x10f   : > { %1901 = vst [vmem:[#allocation2 + $0x1c0] sm:$0xf] %v6049_v48  ;;  %1902 = vst [vmem:[#allocation2 + $0x1f4] sm:$0xf] %v6050_v32  ;;  %v6003_v56 = vcombine.low %v1291_v51, %v1291_v51  ;;  %v6004_v62 = vcombine.high %v1291_v51, %v1291_v51  ;;  %4922 = vmatprep.mubr.bf16.mxu0 %v7409_v15  ;;  %v1578_v28 = vsel %vm437_vm0, %v9633_v60, %v1546_v0  ;;  %v7413_v21 = vld [vmem:[#allocation2 + $0xe0] ss:$52 sps:$4 sm:$0xff]  }
 0x110   : > { %1957 = vst [vmem:[#allocation2 + $0xf4] sm:$0xf] %v6049_v48  ;;  %1958 = vst [vmem:[#allocation2 + $0x128] sm:$0xf] %v6050_v32  ;;  %v361_v48 = vld [vmem:[%s7710_s27 + $0x15c] sm:$0xff]  ;;  %v1760_v30 = vsel %vm437_vm0, %v9642_v14, %v1546_v0  ;;  %v6025_v45 = vcombine.low %v1578_v28, %v1578_v28  ;;  %v6026_v33 = vcombine.high %v1578_v28, %v1578_v28  ;;  %v362_v51 = vld [vmem:[%s7710_s27 + $0x16c] sm:$0xff] }
 0x111   : > { %1175 = vst [vmem:[#allocation2 + $0x5c0] sm:$0xf] %v5969_v3  ;;  %1176 = vst [vmem:[#allocation2 + $0x5f4] sm:$0xf] %v5970_v34  ;;  %v7448_v32 = vld [vmem:[%s9572_s1 + $0x220] sm:$0xff]   ;;  %v1548_v3 = vpop.permute.xlu1 %1547  ;;  %v8673_v34 = vpack.c.bf16 %v361_v48, %v360_v42  ;;  %v6053_v16 = vcombine.low %v1760_v30, %v1760_v30  ;;  %v6054_v43 = vcombine.high %v1760_v30, %v1760_v30  ;;  %v9647_v14 = vld [vmem:[#allocation22_spill] sm:$0xff] }
 0x112   : > { %1432 = vst [vmem:[#allocation2 + $0x5c4] sm:$0xf] %v6001_v11  ;;  %1433 = vst [vmem:[#allocation2 + $0x5f8] sm:$0xf] %v6002_v53  ;;  %v1580_v60 = vsel %vm437_vm0, %v9635_v6, %v1548_v3  ;;  %v6493_v58 = vpack.c.bf16 %v360_v42, %v360_v42  ;;  %v6494_v50 = vpack.c.bf16 %v361_v48, %v361_v48  ;;  %6960 = vmatpush3.bf16.msra.mxu0 %v7448_v32  ;;  %v7415_v5 = vld [vmem:[#allocation2 + $0x484] ss:$52 sps:$4 sm:$0xff]  }
 0x113   : > { %1488 = vst [vmem:[#allocation2 + $0x4f8] sm:$0xf] %v6001_v11  ;;  %1489 = vst [vmem:[#allocation2 + $0x52c] sm:$0xf] %v6002_v53  ;;  %v9643_v11 = vld [vmem:[#allocation19_spill] sm:$0xff]  ;;  %2044 = vrot.lane.b32.xlu1 %v8673_v34, %s7660_s30  ;;  %v6027_v9 = vcombine.low %v1580_v60, %v1580_v60  ;;  %v6028_v6 = vcombine.high %v1580_v60, %v1580_v60  ;;  %6961 = vmatprep.subr.bf16.mxu0 %v7462_v8  ;;  %v9646_v32 = vld [vmem:[#allocation18_spill] sm:$0xff] }
 0x114   : > { %1721 = vst [vmem:[#allocation2 + $0x2f4] sm:$0xf] %v6023_v49  ;;  %1722 = vst [vmem:[#allocation2 + $0x328] sm:$0xf] %v6024_v41  ;;  %v1762_v53 = vsel %vm437_vm0, %v9643_v11, %v1548_v3  ;;  %v7476_v41 = vld [vmem:[%s9572_s1 + $0x250] sm:$0xff]   ;;  %v7488_v3 = vld [vmem:[%s9572_s1 + $0x248] sm:$0xff]   ;;  %v6495_v60 = vpack.c.bf16 %v362_v51, %v362_v51 }
 0x115   : > { %1903 = vst [vmem:[#allocation2 + $0x228] sm:$0xf] %v6051_v63  ;;  %1904 = vst [vmem:[#allocation2 + $0x25c] sm:$0xf] %v6052_v46  ;;  %v6055_v44 = vcombine.low %v1762_v53, %v1762_v53  ;;  %v6056_v49 = vcombine.high %v1762_v53, %v1762_v53  ;;  %v7417_v57 = vld [vmem:[#allocation2 + $0x14c] ss:$52 sps:$4 sm:$0xff]  }
 0x116   : > { %1959 = vst [vmem:[#allocation2 + $0x15c] sm:$0xf] %v6051_v63  ;;  %1960 = vst [vmem:[#allocation2 + $0x190] sm:$0xf] %v6052_v46  ;;  %v1550_v63 = vpop.permute.xlu0 %1549  ;;  %v7412_v46 = vld [vmem:[#allocation2 + $0x418] ss:$52 sps:$4 sm:$0xff]   ;;  %4923 = vmatmul.mubr.bf16.gmra.mxu0 %v7413_v21 }
 0x117   : > { %2419 = vst.msk [vmem:[#allocation2 + $0x3d8] sm:$0xf] %vm2400_vm1, %v6491_v22  ;;  %2420 = vst.msk [vmem:[#allocation2 + $0x40c] sm:$0xf] %vm2400_vm1, %v6492_v31  ;;  %v1582_v29 = vsel %vm437_vm0, %v9638_v12, %v1550_v63  ;;  %v1764_v22 = vsel %vm437_vm0, %v9644_v13, %v1550_v63  ;;  %v1552_v31 = vpop.permute.xlu1 %1551  ;;  %4826 = vmatmul.mubr.bf16.gmra.mxu1 %v7412_v46  ;;  %v363_v42 = vld [vmem:[%s7710_s27 + $0x174] sm:$0xff]  ;;  %4930 = vmatprep.mubr.bf16.mxu0 %v7417_v57  ;;  %v7499_v63 = vld [vmem:[%s9572_s1 + $0x240] sm:$0xff]  }
 0x118   : > { %1177 = vst [vmem:[#allocation2 + $0x628] sm:$0xf] %v5971_v23  ;;  %1178 = vst [vmem:[#allocation2 + $0x65c] sm:$0xf] %v5972_v17  ;;  %v6029_v25 = vcombine.low %v1582_v29, %v1582_v29  ;;  %v6030_v12 = vcombine.high %v1582_v29, %v1582_v29  ;;  %v6057_v39 = vcombine.low %v1764_v22, %v1764_v22  ;;  %v9645_v23 = vld [vmem:[#allocation21_spill] sm:$0xff]  ;;  %4833 = vmatprep.mubr.bf16.mxu1 %v7415_v5  ;;  %v8738_v57 = vld [vmem:[%s9572_s1 + $0x318] sm:$0xff]  }
 0x119   : > { %1434 = vst [vmem:[#allocation2 + $0x62c] sm:$0xf] %v6003_v56  ;;  %1435 = vst [vmem:[#allocation2 + $0x660] sm:$0xf] %v6004_v62  ;;  %v6058_v52 = vcombine.high %v1764_v22, %v1764_v22  ;;  %v1584_v36 = vsel %vm437_vm0, %v9641_v1, %v1552_v31  ;;  %v1766_v17 = vsel %vm437_vm0, %v9645_v23, %v1552_v31  ;;  %6962 = vmatpush3.bf16.msra.mxu0 %v7463_v61  ;;  %v7477_v1 = vld [vmem:[%s9572_s1 + $0x210] sm:$0xff]   ;;  %v364_v21 = vld [vmem:[%s7710_s27 + $0x184] sm:$0xff] }
 0x11a   : > { %1490 = vst [vmem:[#allocation2 + $0x560] sm:$0xf] %v6003_v56  ;;  %1491 = vst [vmem:[#allocation2 + $0x594] sm:$0xf] %v6004_v62  ;;  %v6031_v15 = vcombine.low %v1584_v36, %v1584_v36  ;;  %v6032_v56 = vcombine.high %v1584_v36, %v1584_v36  ;;  %v6059_v62 = vcombine.low %v1766_v17, %v1766_v17  ;;  %v1554_v0 = vpop.permute.xlu0 %1553  ;;  %6963 = vmatprep.subr.bf16.mxu0 %v7476_v41  ;;  %v7421_v53 = vld [vmem:[#allocation2 + $0x480] ss:$52 sps:$4 sm:$0xff]  }
 0x11b   : > { %1723 = vst [vmem:[#allocation2 + $0x35c] sm:$0xf] %v6025_v45  ;;  %1724 = vst [vmem:[#allocation2 + $0x390] sm:$0xf] %v6026_v33  ;;  %v6060_v48 = vcombine.high %v1766_v17, %v1766_v17  ;;  %v1586_v28 = vsel %vm437_vm0, %v9646_v32, %v1554_v0  ;;  %v1768_v30 = vsel %vm437_vm0, %v9647_v14, %v1554_v0  ;;  %v7422_v61 = vld [vmem:[#allocation2 + $0x148] ss:$52 sps:$4 sm:$0xff]  }
 0x11c   : > { %1905 = vst [vmem:[#allocation2 + $0x290] sm:$0xf] %v6053_v16  ;;  %1906 = vst [vmem:[#allocation2 + $0x2c4] sm:$0xf] %v6054_v43  ;;  %v6033_v8 = vcombine.low %v1586_v28, %v1586_v28  ;;  %v6034_v45 = vcombine.high %v1586_v28, %v1586_v28  ;;  %v6061_v33 = vcombine.low %v1768_v30, %v1768_v30  ;;  %v7425_v46 = vld [vmem:[#allocation2 + $0x1b4] ss:$52 sps:$4 sm:$0xff]  }
 0x11d   : > { %1961 = vst [vmem:[#allocation2 + $0x1c4] sm:$0xf] %v6053_v16  ;;  %1962 = vst [vmem:[#allocation2 + $0x1f8] sm:$0xf] %v6054_v43  ;;  %v6062_v16 = vcombine.high %v1768_v30, %v1768_v30  ;;  %v8712_v43 = vpack.c.bf16 %v363_v42, %v362_v51  ;;  %v6496_v11 = vpack.c.bf16 %v363_v42, %v363_v42  ;;  %6964 = vmatpush3.bf16.msra.mxu0 %v7477_v1  ;;  %v365_v5 = vld [vmem:[%s7710_s27 + $0x18c] sm:$0xff] }
 0x11e   : > { %2421 = vst.msk [vmem:[#allocation2 + $0x440] sm:$0xf] %vm2400_vm1, %v6493_v58  ;;  %2422 = vst.msk [vmem:[#allocation2 + $0x474] sm:$0xf] %vm2400_vm1, %v6494_v50  ;;  %v7489_v58 = vld [vmem:[%s9572_s1 + $0x208] sm:$0xff]   ;;  %v1556_v50 = vpop.permute.xlu1 %1555  ;;  %6965 = vmatprep.subr.bf16.mxu0 %v7488_v3  ;;  %4931 = vmatmul.mubr.bf16.gmra.mxu0 %v7422_v61  ;;  %v291_v30 = vld [vmem:[%s7710_s27 + $0x1d2] sm:$0xff] }
 0x11f   : > { %1725 = vst [vmem:[#allocation2 + $0x3c4] sm:$0xf] %v6027_v9  ;;  %1726 = vst [vmem:[#allocation2 + $0x3f8] sm:$0xf] %v6028_v6  ;;  %2046 = vrot.lane.b32.xlu0 %v8712_v43, %s7660_s30  ;;  %v7423_v9 = vld [vmem:[#allocation2 + $0x4ec] ss:$52 sps:$4 sm:$0xff]   ;;  %4834 = vmatmul.mubr.bf16.gmra.mxu1 %v7421_v53 }
 0x120   : > { %1907 = vst [vmem:[#allocation2 + $0x2f8] sm:$0xf] %v6055_v44  ;;  %1908 = vst [vmem:[#allocation2 + $0x32c] sm:$0xf] %v6056_v49  ;;  %v9648_v6 = vld [vmem:[#allocation26_spill] sm:$0xff]  ;;  %4841 = vmatprep.mubr.bf16.mxu1 %v7423_v9  ;;  %4938 = vmatprep.mubr.bf16.mxu0 %v7425_v46  ;;  %v366_v3 = vld [vmem:[%s7710_s27 + $0x19c] sm:$0xff] }
 0x121   : > { %1963 = vst [vmem:[#allocation2 + $0x22c] sm:$0xf] %v6055_v44  ;;  %1964 = vst [vmem:[#allocation2 + $0x260] sm:$0xf] %v6056_v49  ;;  %v1588_v44 = vsel %vm437_vm0, %v9648_v6, %v1556_v50  ;;  %v9649_v49 = vld [vmem:[#allocation23_spill] sm:$0xff]  ;;  %6966 = vmatpush3.bf16.msra.mxu0 %v7489_v58  ;;  %v290_v42 = vld [vmem:[%s7710_s27 + $0x1ca] sm:$0xff] }
 0x122   : > { %1727 = vst [vmem:[#allocation2 + $0x42c] sm:$0xf] %v6029_v25  ;;  %1728 = vst [vmem:[#allocation2 + $0x460] sm:$0xf] %v6030_v12  ;;  %v1770_v41 = vsel %vm437_vm0, %v9649_v49, %v1556_v50  ;;  %v6035_v29 = vcombine.low %v1588_v44, %v1588_v44  ;;  %v6036_v13 = vcombine.high %v1588_v44, %v1588_v44  ;;  %v7500_v25 = vld [vmem:[%s9572_s1 + $0x200] sm:$0xff]   ;;  %6967 = vmatprep.subr.bf16.mxu0 %v7499_v63  ;;  %v2505_v50 = vld [vmem:[#allocation2 + $0x218] sm:$0xff] }
 0x123   : > { %1909 = vst [vmem:[#allocation2 + $0x360] sm:$0xf] %v6057_v39  ;;  %1910 = vst [vmem:[#allocation2 + $0x394] sm:$0xf] %v6058_v52  ;;  %v6063_v22 = vcombine.low %v1770_v41, %v1770_v41  ;;  %v6064_v31 = vcombine.high %v1770_v41, %v1770_v41  ;;  %v8733_v12 = vpack.c.bf16 %v365_v5, %v364_v21  ;;  %v7428_v36 = vld [vmem:[#allocation2 + $0x4e8] ss:$52 sps:$4 sm:$0xff]  }
 0x124   : > { %1965 = vst [vmem:[#allocation2 + $0x294] sm:$0xf] %v6057_v39  ;;  %1966 = vst [vmem:[#allocation2 + $0x2c8] sm:$0xf] %v6058_v52  ;;  %v6497_v39 = vpack.c.bf16 %v364_v21, %v364_v21  ;;  %v6498_v52 = vpack.c.bf16 %v365_v5, %v365_v5  ;;  %v7429_v23 = vld [vmem:[#allocation2 + $0x1b0] ss:$52 sps:$4 sm:$0xff]   ;;  %v1496_v53 = vpack.c.bf16 %v291_v30, %v290_v42 }
 0x125   : > { %1729 = vst [vmem:[#allocation2 + $0x494] sm:$0xf] %v6031_v15  ;;  %1730 = vst [vmem:[#allocation2 + $0x4c8] sm:$0xf] %v6032_v56  ;;  %2048 = vrot.lane.b32.xlu1 %v8733_v12, %s7660_s30  ;;  %v7431_v17 = vld [vmem:[#allocation2 + $0x554] ss:$52 sps:$4 sm:$0xff]   ;;  %6968 = vmatpush3.bf16.msra.mxu0 %v7500_v25  ;;  %v1558_v15 = vpop.permute.xlu1 %1557 }
 0x126   : > { %1911 = vst [vmem:[#allocation2 + $0x3c8] sm:$0xf] %v6059_v62  ;;  %1967 = vst [vmem:[#allocation2 + $0x2fc] sm:$0xf] %v6059_v62  ;;  %v7433_v51 = vld [vmem:[#allocation2 + $0x21c] ss:$52 sps:$4 sm:$0xff]   ;;  %7197 = vmatprep.subr.bf16.mxu0 %v8738_v57  ;;  %v1591_v56 = vsel %vm437_vm0, %v8311_v59, %v1558_v15  ;;  %4939 = vmatmul.mubr.bf16.gmra.mxu0 %v7429_v23  ;;  %v6499_v59 = vpack.c.bf16 %v366_v3, %v366_v3 }
 0x127   : > { %1912 = vst [vmem:[#allocation2 + $0x3fc] sm:$0xf] %v6060_v48  ;;  %1968 = vst [vmem:[#allocation2 + $0x330] sm:$0xf] %v6060_v48  ;;  %v9650_v62 = vld [vmem:[#allocation24_spill] sm:$0xff]  ;;  %4842 = vmatmul.mubr.bf16.gmra.mxu1 %v7428_v36  ;;  %v6037_v1 = vcombine.low %v1591_v56, %v1591_v56  ;;  %v6038_v48 = vcombine.high %v1591_v56, %v1591_v56  ;;  %4946 = vmatprep.mubr.bf16.mxu0 %v7433_v51  ;;  %v2512_v61 = vld [vmem:[#allocation2 + $0x24c] sm:$0xff] }
 0x128   : > { %1731 = vst [vmem:[#allocation2 + $0x4fc] sm:$0xf] %v6033_v8  ;;  %1732 = vst [vmem:[#allocation2 + $0x530] sm:$0xf] %v6034_v45  ;;  %v1772_v0 = vsel %vm437_vm0, %v9650_v62, %v1558_v15  ;;  %v367_v8 = vld [vmem:[%s7710_s27 + $0x1a4] sm:$0xff]  ;;  %4849 = vmatprep.mubr.bf16.mxu1 %v7431_v17  ;;  %v2630_v17 = vld [vmem:[#allocation2 + $0x5b8] sm:$0xff] }
 0x129   : > { %1913 = vst [vmem:[#allocation2 + $0x430] sm:$0xf] %v6061_v33  ;;  %1914 = vst [vmem:[#allocation2 + $0x464] sm:$0xf] %v6062_v16  ;;  %v6065_v28 = vcombine.low %v1772_v0, %v1772_v0  ;;  %v6066_v14 = vcombine.high %v1772_v0, %v1772_v0  ;;  %v8753_v45 = vpack.c.bf16 %v367_v8, %v366_v3  ;;  %v7437_v49 = vld [vmem:[#allocation2 + $0x5bc] ss:$52 sps:$4 sm:$0xff]   ;;  %v1560_v46 = vpop.permute.xlu1 %1559 }
 0x12a   : > { %1969 = vst [vmem:[#allocation2 + $0x364] sm:$0xf] %v6061_v33  ;;  %1970 = vst [vmem:[#allocation2 + $0x398] sm:$0xf] %v6062_v16  ;;  %v2616_v33 = vld [vmem:[#allocation2 + $0x550] sm:$0xff]  ;;  %v6500_v16 = vpack.c.bf16 %v367_v8, %v367_v8  ;;  %v332_v0 = vld [vmem:[%s7710_s27 + $0x4] sm:$0xff] }
 0x12b   : > { %2423 = vst.msk [vmem:[#allocation2 + $0x4a8] sm:$0xf] %vm2400_vm1, %v6495_v60  ;;  %2424 = vst.msk [vmem:[#allocation2 + $0x4dc] sm:$0xf] %vm2400_vm1, %v6496_v11  ;;  %v1441_v60 = vpop.permute.xlu0 %1440  ;;  %v2623_v11 = vld [vmem:[#allocation2 + $0x584] sm:$0xff]  ;;  %2246 = vrot.lane.b32.xlu0 %v8753_v45, %s7660_s30  ;;  %v333_v42 = vld [vmem:[%s7710_s27 + $0xc] sm:$0xff] }
 0x12c   : > { %1733 = vst [vmem:[#allocation2 + $0x564] sm:$0xf] %v6035_v29  ;;  %1734 = vst [vmem:[#allocation2 + $0x598] sm:$0xf] %v6036_v13  ;;  %v1446_v58 = vsel %vm437_vm0, %v9646_v32, %v1441_v60  ;;  %v6317_v41 = vcombine.low %v2616_v33, %v2623_v11  ;;  %v7439_v63 = vld [vmem:[#allocation2 + $0x284] ss:$52 sps:$4 sm:$0xff]   ;;  %v6215_v29 = vcombine.low %v2505_v50, %v2512_v61 }
 0x12d   : > { %1915 = vst [vmem:[#allocation2 + $0x498] sm:$0xf] %v6063_v22  ;;  %1916 = vst [vmem:[#allocation2 + $0x4cc] sm:$0xf] %v6064_v31  ;;  %v6005_v9 = vcombine.low %v1446_v58, %v1446_v58  ;;  %v6006_v44 = vcombine.high %v1446_v58, %v1446_v58  ;;  %v1594_v13 = vsel %vm437_vm0, %v1496_v53, %v1560_v46  ;;  %v9651_v32 = vld [vmem:[#allocation25_spill] sm:$0xff]  ;;  %v2023_v51 = vpop.permute.xlu1 %2022  ;;  %v2519_v30 = vld [vmem:[#allocation2 + $0x280] sm:$0xff] }
 0x12e   : > { %1971 = vst [vmem:[#allocation2 + $0x3cc] sm:$0xf] %v6063_v22  ;;  %1972 = vst [vmem:[#allocation2 + $0x400] sm:$0xf] %v6064_v31  ;;  %v1774_v22 = vsel %vm437_vm0, %v9651_v32, %v1560_v46  ;;  %v6039_v31 = vcombine.low %v1594_v13, %v1594_v13  ;;  %v6040_v21 = vcombine.high %v1594_v13, %v1594_v13  ;;  %4947 = vmatmul.mubr.bf16.gmra.mxu0 %v6215_v29  ;;  %v2526_v3 = vld [vmem:[#allocation2 + $0x2b4] sm:$0xff] }
 0x12f   : > { %2425 = vst.msk [vmem:[#allocation2 + $0x510] sm:$0xf] %vm2400_vm1, %v6497_v39  ;;  %2426 = vst.msk [vmem:[#allocation2 + $0x544] sm:$0xf] %vm2400_vm1, %v6498_v52  ;;  %4850 = vmatmul.mubr.bf16.gmra.mxu1 %v6317_v41  ;;  %v6067_v5 = vcombine.low %v1774_v22, %v1774_v22  ;;  %v6068_v25 = vcombine.high %v1774_v22, %v1774_v22  ;;  %v368_v39 = vld [vmem:[%s7710_s27 + $0x1b4] sm:$0xff]  ;;  %v369_v52 = vld [vmem:[%s7710_s27 + $0x1bc] sm:$0xff]  ;;  %v1443_v36 = vpop.permute.xlu0 %1442  ;;  %4954 = vmatprep.mubr.bf16.mxu0 %v7439_v63 }
 0x130   : > { %1735 = vst [vmem:[#allocation2 + $0x5cc] sm:$0xf] %v6037_v1  ;;  %1736 = vst [vmem:[#allocation2 + $0x600] sm:$0xf] %v6038_v48  ;;  %4857 = vmatprep.mubr.bf16.mxu1 %v7437_v49  ;;  %v2243_v23 = vpack.c.bf16 %v369_v52, %v368_v39  ;;  %v1449_v15 = vsel %vm437_vm0, %v9648_v6, %v1443_v36  ;;  %v6501_v56 = vpack.c.bf16 %v368_v39, %v368_v39  ;;  %v2637_v1 = vld [vmem:[#allocation2 + $0x5ec] sm:$0xff]  ;;  %v7457_v36 = vld [vmem:[%s9572_s1 + $0x2b8] sm:$0xff]  }
 0x131   : > { %1917 = vst [vmem:[#allocation2 + $0x500] sm:$0xf] %v6065_v28  ;;  %1918 = vst [vmem:[#allocation2 + $0x534] sm:$0xf] %v6066_v14  ;;  %v6502_v62 = vpack.c.bf16 %v369_v52, %v369_v52  ;;  %v2058_v48 = vsel %vm437_vm0, %v8419_v37, %v2023_v51  ;;  %v1985_v6 = vpack.c.bf16 %v333_v42, %v332_v0  ;;  %v2025_v37 = vpop.permute.xlu1 %2024  ;;  %v7443_v60 = vld [vmem:[#allocation2 + $0x624] ss:$52 sps:$4 sm:$0xff]  }
 0x132   : > { %1973 = vst [vmem:[#allocation2 + $0x434] sm:$0xf] %v6065_v28  ;;  %1974 = vst [vmem:[#allocation2 + $0x468] sm:$0xf] %v6066_v14  ;;  %v6007_v28 = vcombine.low %v1449_v15, %v1449_v15  ;;  %v6008_v14 = vcombine.high %v1449_v15, %v1449_v15  ;;  %2248 = vrot.lane.b32.xlu1 %v2243_v23, %s7660_s30  ;;  %v6081_v8 = vcombine.low %v2058_v48, %v2058_v48  ;;  %v7445_v53 = vld [vmem:[#allocation2 + $0x2ec] ss:$52 sps:$4 sm:$0xff]  }
 0x133   : > { %2427 = vst.msk [vmem:[#allocation2 + $0x578] sm:$0xf] %vm2400_vm1, %v6499_v59  ;;  %2428 = vst.msk [vmem:[#allocation2 + $0x5ac] sm:$0xf] %vm2400_vm1, %v6500_v16  ;;  %v6082_v33 = vcombine.high %v2058_v48, %v2058_v48  ;;  %v6330_v59 = vcombine.low %v2630_v17, %v2637_v1  ;;  %v6228_v16 = vcombine.low %v2519_v30, %v2526_v3  ;;  %v2019_v61 = vpop.permute.xlu0 %2018  ;;  %v7449_v41 = vld [vmem:[#allocation2 + $0x620] ss:$52 sps:$4 sm:$0xff]  }
 0x134   : > { %1492 = vst [vmem:[#allocation2 + $0x5c8] sm:$0xf] %v6005_v9  ;;  %1493 = vst [vmem:[#allocation2 + $0x5fc] sm:$0xf] %v6006_v44  ;;  %v2061_v11 = vsel %vm437_vm0, %v8309_v55, %v2025_v37  ;;  %v2052_v9 = vsel %vm437_vm0, %v1985_v6, %v2019_v61  ;;  %v7450_v55 = vld [vmem:[#allocation2 + $0x2e8] ss:$52 sps:$4 sm:$0xff]  }
 0x135   : > { %1737 = vst [vmem:[#allocation2 + $0x634] sm:$0xf] %v6039_v31  ;;  %1738 = vst [vmem:[#allocation2 + $0x668] sm:$0xf] %v6040_v21  ;;  %v6083_v58 = vcombine.low %v2061_v11, %v2061_v11  ;;  %v6084_v50 = vcombine.high %v2061_v11, %v2061_v11  ;;  %v6077_v44 = vcombine.low %v2052_v9, %v2052_v9  ;;  %v7453_v63 = vld [vmem:[#allocation2 + $0x1c] ss:$52 sps:$4 sm:$0xff]  }
 0x136   : > { %1919 = vst [vmem:[#allocation2 + $0x568] sm:$0xf] %v6067_v5  ;;  %1920 = vst [vmem:[#allocation2 + $0x59c] sm:$0xf] %v6068_v25  ;;  %4955 = vmatmul.mubr.bf16.gmra.mxu0 %v6228_v16  ;;  %v6078_v49 = vcombine.high %v2052_v9, %v2052_v9  ;;  %v7454_v46 = vld [vmem:[#allocation2 + $0x354] ss:$52 sps:$4 sm:$0xff]  }
 0x137   : > { %1975 = vst [vmem:[#allocation2 + $0x49c] sm:$0xf] %v6067_v5  ;;  %1976 = vst [vmem:[#allocation2 + $0x4d0] sm:$0xf] %v6068_v25  ;;  %4858 = vmatmul.mubr.bf16.gmra.mxu1 %v6330_v59  ;;  %4962 = vmatprep.mubr.bf16.mxu0 %v7445_v53  ;;  %v2029_v29 = vpop.permute.xlu1 %2028  ;;  %v2547_v5 = vld [vmem:[#allocation2 + $0x350] sm:$0xff]  ;;  %v2554_v25 = vld [vmem:[#allocation2 + $0x384] sm:$0xff] }
 0x138   : > { %2429 = vst.msk [vmem:[#allocation2 + $0x5e0] sm:$0xf] %vm2400_vm1, %v6501_v56  ;;  %2430 = vst.msk [vmem:[#allocation2 + $0x614] sm:$0xf] %vm2400_vm1, %v6502_v62  ;;  %4865 = vmatprep.mubr.bf16.mxu1 %v7443_v60  ;;  %v2067_v13 = vsel %vm437_vm0, %v8443_v20, %v2029_v29  ;;  %v7451_v23 = vld [vmem:[#allocation2 + $0x18] ss:$52 sps:$4 sm:$0xff]   ;;  %v6254_v51 = vcombine.low %v2547_v5, %v2554_v25 }
 0x139   : > { %1494 = vst [vmem:[#allocation2 + $0x630] sm:$0xf] %v6007_v28  ;;  %1495 = vst [vmem:[#allocation2 + $0x664] sm:$0xf] %v6008_v14  ;;  %v2021_v32 = vpop.permute.xlu0 %2020  ;;  %v6087_v22 = vcombine.low %v2067_v13, %v2067_v13  ;;  %v6088_v31 = vcombine.high %v2067_v13, %v2067_v13  ;;  %v7458_v62 = vld [vmem:[#allocation2 + $0x3bc] ss:$52 sps:$4 sm:$0xff]  }
 0x13a   : > { %2214 = vst [vmem:[#allocation2 + $0xf8] sm:$0xf] %v6081_v8  ;;  %2215 = vst [vmem:[#allocation2 + $0x12c] sm:$0xf] %v6082_v33  ;;  %v2055_v21 = vsel %vm437_vm0, %v8351_v4, %v2021_v32  ;;  %v7470_v4 = vld [vmem:[%s9572_s1 + $0x2f0] sm:$0xff]   ;;  %v7483_v6 = vld [vmem:[%s9572_s1 + $0x2a8] sm:$0xff]  }
 0x13b   : > { %2270 = vst [vmem:[#allocation2 + $0x2c] sm:$0xf] %v6081_v8  ;;  %2271 = vst [vmem:[#allocation2 + $0x60] sm:$0xf] %v6082_v33  ;;  %v6079_v39 = vcombine.low %v2055_v21, %v2055_v21  ;;  %v6080_v52 = vcombine.high %v2055_v21, %v2055_v21  ;;  %v7460_v0 = vld [vmem:[#allocation2 + $0x84] ss:$52 sps:$4 sm:$0xff]  }
 0x13c   : > { %2216 = vst [vmem:[#allocation2 + $0x160] sm:$0xf] %v6083_v58  ;;  %2217 = vst [vmem:[#allocation2 + $0x194] sm:$0xf] %v6084_v50  ;;  %v7471_v14 = vld [vmem:[%s9572_s1 + $0x2b0] sm:$0xff]   ;;  %v7496_v61 = vld [vmem:[%s9572_s1 + $0x2a0] sm:$0xff]  }
 0x13d   : > { %2272 = vst [vmem:[#allocation2 + $0x94] sm:$0xf] %v6083_v58  ;;  %2273 = vst [vmem:[#allocation2 + $0xc8] sm:$0xf] %v6084_v50  ;;  %v1744_v20 = vpop.permute.xlu1 %1743  ;;  %v7465_v33 = vld [vmem:[#allocation2 + $0x80] ss:$52 sps:$4 sm:$0xff]  }
 0x13e   : > { %2210 = vst [vmem:[#allocation2 + $0x28] sm:$0xf] %v6077_v44  ;;  %2211 = vst [vmem:[#allocation2 + $0x5c] sm:$0xf] %v6078_v49  ;;  %4963 = vmatmul.mubr.bf16.gmra.mxu0 %v7450_v55  ;;  %v2027_v17 = vpop.permute.xlu0 %2026  ;;  %v1777_v15 = vsel %vm437_vm0, %v8290_v27, %v1744_v20  ;;  %v7482_v27 = vld [vmem:[%s9572_s1 + $0x2e8] sm:$0xff]   ;;  %v2471_v9 = vld [vmem:[#allocation2 + $0x11c] sm:$0xff] }
 0x13f   : > { %4866 = vmatmul.mubr.bf16.gmra.mxu1 %v7449_v41  ;;  %4970 = vmatprep.mubr.bf16.mxu0 %v7454_v46  ;;  %2220 = vst [vmem:[#allocation2 + $0x230] sm:$0xf] %v6087_v22  ;;  %2221 = vst [vmem:[#allocation2 + $0x264] sm:$0xf] %v6088_v31  ;;  %v2064_v56 = vsel %vm437_vm0, %v8328_v18, %v2027_v17  ;;  %v6069_v42 = vcombine.low %v1777_v15, %v1777_v15  ;;  %v7464_v37 = vld [vmem:[#allocation2 + $0x3b8] ss:$52 sps:$4 sm:$0xff]  }
 0x140   : > { %5067 = vmatprep.mubr.bf16.mxu1 %v7453_v63  ;;  %2276 = vst [vmem:[#allocation2 + $0x164] sm:$0xf] %v6087_v22  ;;  %2277 = vst [vmem:[#allocation2 + $0x198] sm:$0xf] %v6088_v31  ;;  %v6070_v1 = vcombine.high %v1777_v15, %v1777_v15  ;;  %v6085_v48 = vcombine.low %v2064_v56, %v2064_v56  ;;  %v6086_v28 = vcombine.high %v2064_v56, %v2064_v56  ;;  %v7466_v16 = vld [vmem:[#allocation2 + $0xec] ss:$52 sps:$4 sm:$0xff]  }
 0x141   : > { %2212 = vst [vmem:[#allocation2 + $0x90] sm:$0xf] %v6079_v39  ;;  %2213 = vst [vmem:[#allocation2 + $0xc4] sm:$0xf] %v6080_v52  ;;  %v1746_v18 = vpop.permute.xlu1 %1745  ;;  %v7468_v11 = vld [vmem:[#allocation2 + $0x424] ss:$52 sps:$4 sm:$0xff]  }
 0x142   : > { %1921 = vst [vmem:[#allocation2 + $0x5d0] sm:$0xf] %v6069_v42  ;;  %1922 = vst [vmem:[#allocation2 + $0x604] sm:$0xf] %v6070_v1  ;;  %v1780_v30 = vsel %vm437_vm0, %v8433_v7, %v1746_v18  ;;  %v7494_v7 = vld [vmem:[%s9572_s1 + $0x2e0] sm:$0xff]   ;;  %v2464_v50 = vld [vmem:[#allocation2 + $0xe8] sm:$0xff] }
 0x143   : > { %1977 = vst [vmem:[#allocation2 + $0x504] sm:$0xf] %v6069_v42  ;;  %1978 = vst [vmem:[#allocation2 + $0x538] sm:$0xf] %v6070_v1  ;;  %v6071_v3 = vcombine.low %v1780_v30, %v1780_v30  ;;  %v6072_v8 = vcombine.high %v1780_v30, %v1780_v30  ;;  %v2575_v44 = vld [vmem:[#allocation2 + $0x420] sm:$0xff]  ;;  %v2582_v49 = vld [vmem:[#allocation2 + $0x454] sm:$0xff]  ;;  %v6178_v41 = vcombine.low %v2464_v50, %v2471_v9 }
 0x144   : > { %2218 = vst [vmem:[#allocation2 + $0x1c8] sm:$0xf] %v6085_v48  ;;  %2219 = vst [vmem:[#allocation2 + $0x1fc] sm:$0xf] %v6086_v28  ;;  %v7511_v55 = vld [vmem:[%s9572_s1 + $0x298] sm:$0xff]   ;;  %v6280_v46 = vcombine.low %v2575_v44, %v2582_v49  ;;  %v7525_v13 = vld [vmem:[%s9572_s1 + $0x2d0] sm:$0xff]  }
 0x145   : > { %2274 = vst [vmem:[#allocation2 + $0xfc] sm:$0xf] %v6085_v48  ;;  %2275 = vst [vmem:[#allocation2 + $0x130] sm:$0xf] %v6086_v28  ;;  %v2031_v59 = vpop.permute.xlu0 %2030  ;;  %v7474_v29 = vld [vmem:[#allocation2 + $0x154] ss:$52 sps:$4 sm:$0xff]  }
 0x146   : > { %4971 = vmatmul.mubr.bf16.gmra.mxu0 %v6254_v51  ;;  %1923 = vst [vmem:[#allocation2 + $0x638] sm:$0xf] %v6071_v3  ;;  %1924 = vst [vmem:[#allocation2 + $0x66c] sm:$0xf] %v6072_v8  ;;  %v2070_v60 = vsel %vm437_vm0, %v8407_v47, %v2031_v59  ;;  %v7510_v47 = vld [vmem:[%s9572_s1 + $0x2d8] sm:$0xff]   ;;  %v7526_v5 = vld [vmem:[%s9572_s1 + $0x290] sm:$0xff]  }
 0x147   : > { %5068 = vmatmul.mubr.bf16.vlgmr.msra.gmra.mxu1 %v7451_v23  ;;  %4978 = vmatprep.mubr.bf16.mxu0 %v7458_v62  ;;  %1979 = vst [vmem:[#allocation2 + $0x56c] sm:$0xf] %v6071_v3  ;;  %1980 = vst [vmem:[#allocation2 + $0x5a0] sm:$0xf] %v6072_v8  ;;  %v6089_v53 = vcombine.low %v2070_v60, %v2070_v60  ;;  %v6090_v58 = vcombine.high %v2070_v60, %v2070_v60  ;;  %v7472_v22 = vld [vmem:[#allocation2 + $0x48c] ss:$52 sps:$4 sm:$0xff]  }
 0x148   : > { %7066 = vmatpush3.bf16.msra.mxu1 %v7457_v36  ;;  %5075 = vmatprep.mubr.bf16.mxu1 %v7460_v0  ;;  %v2478_v39 = vld [vmem:[#allocation2 + $0x150] sm:$0xff]  ;;  %v2485_v52 = vld [vmem:[#allocation2 + $0x184] sm:$0xff]  ;;  %v2596_v20 = vld [vmem:[#allocation2 + $0x4bc] sm:$0xff] }
 0x149   : > { %7067 = vmatprep.subr.bf16.mxu1 %v7470_v4  ;;  %2222 = vst [vmem:[#allocation2 + $0x298] sm:$0xf] %v6089_v53  ;;  %2223 = vst [vmem:[#allocation2 + $0x2cc] sm:$0xf] %v6090_v58  ;;  %v2589_v23 = vld [vmem:[#allocation2 + $0x488] sm:$0xff]  ;;  %v6191_v4 = vcombine.low %v2478_v39, %v2485_v52  ;;  %v7555_v1 = vld [vmem:[%s9572_s1 + $0x280] sm:$0xff]  }
 0x14a   : > { %2278 = vst [vmem:[#allocation2 + $0x1cc] sm:$0xf] %v6089_v53  ;;  %2279 = vst [vmem:[#allocation2 + $0x200] sm:$0xf] %v6090_v58  ;;  %v7540_v15 = vld [vmem:[%s9572_s1 + $0x288] sm:$0xff]   ;;  %v6293_v56 = vcombine.low %v2589_v23, %v2596_v20  ;;  %v2492_v28 = vld [vmem:[#allocation2 + $0x1b8] sm:$0xff] }
 0x14b   : > { %v7480_v62 = vld [vmem:[#allocation2 + $0x1bc] ss:$52 sps:$4 sm:$0xff]   ;;  %v7478_v0 = vld [vmem:[#allocation2 + $0x4f4] ss:$52 sps:$4 sm:$0xff]   ;;  %v2506_v50 = vld [vmem:[#allocation2 + $0x220] sm:$0xff] }
 0x14c   : > { %7068 = vmatpush3.bf16.msra.mxu1 %v7471_v14  ;;  %v2499_v14 = vld [vmem:[#allocation2 + $0x1ec] sm:$0xff]  ;;  %v2610_v3 = vld [vmem:[#allocation2 + $0x524] sm:$0xff]  ;;  %v2617_v58 = vld [vmem:[#allocation2 + $0x558] sm:$0xff] }
 0x14d   : > { %7069 = vmatprep.subr.bf16.mxu1 %v7482_v27  ;;  %v2033_v63 = vpop.permute.xlu0 %2032  ;;  %v2603_v30 = vld [vmem:[#allocation2 + $0x4f0] sm:$0xff]  ;;  %v6204_v8 = vcombine.low %v2492_v28, %v2499_v14 }
 0x14e   : > { %4979 = vmatmul.mubr.bf16.gmra.mxu0 %v7464_v37  ;;  %v2073_v32 = vsel %vm437_vm0, %v8488_v2, %v2033_v63  ;;  %v7539_v2 = vld [vmem:[%s9572_s1 + $0x2c8] sm:$0xff]  }
 0x14f   : > { %5076 = vmatmul.mubr.bf16.gmra.mxu1 %v7465_v33  ;;  %4986 = vmatprep.mubr.bf16.mxu0 %v7468_v11  ;;  %v6091_v31 = vcombine.low %v2073_v32, %v2073_v32  ;;  %v6092_v21 = vcombine.high %v2073_v32, %v2073_v32  ;;  %v6306_v33 = vcombine.low %v2603_v30, %v2610_v3  ;;  %v2624_v44 = vld [vmem:[#allocation2 + $0x58c] sm:$0xff] }
 0x150   : > { %5083 = vmatprep.mubr.bf16.mxu1 %v7466_v16  ;;  %7070 = vmatpush3.bf16.msra.mxu1 %v7483_v6  ;;  %v7486_v6 = vld [vmem:[#allocation2 + $0x224] ss:$52 sps:$4 sm:$0xff]   ;;  %v7484_v16 = vld [vmem:[#allocation2 + $0x55c] ss:$52 sps:$4 sm:$0xff]  }
 0x151   : > { %7071 = vmatprep.subr.bf16.mxu1 %v7494_v7  ;;  %2224 = vst [vmem:[#allocation2 + $0x300] sm:$0xf] %v6091_v31  ;;  %2225 = vst [vmem:[#allocation2 + $0x334] sm:$0xf] %v6092_v21  ;;  %v2035_v25 = vpop.permute.xlu0 %2034 }
 0x152   : > { %2280 = vst [vmem:[#allocation2 + $0x234] sm:$0xf] %v6091_v31  ;;  %2281 = vst [vmem:[#allocation2 + $0x268] sm:$0xf] %v6092_v21  ;;  %v2076_v36 = vsel %vm437_vm0, %v8525_v24, %v2035_v25  ;;  %v7554_v24 = vld [vmem:[%s9572_s1 + $0x2c0] sm:$0xff]  }
 0x153   : > { %v6093_v17 = vcombine.low %v2076_v36, %v2076_v36  ;;  %v6094_v51 = vcombine.high %v2076_v36, %v2076_v36  ;;  %v7490_v25 = vld [vmem:[#allocation2 + $0x28c] ss:$52 sps:$4 sm:$0xff]  }
 0x154   : > { %7072 = vmatpush3.bf16.msra.mxu1 %v7496_v61  ;;  %v2513_v61 = vld [vmem:[#allocation2 + $0x254] sm:$0xff] }
 0x155   : > { %7073 = vmatprep.subr.bf16.mxu1 %v7510_v47  ;;  %2226 = vst [vmem:[#allocation2 + $0x368] sm:$0xf] %v6093_v17  ;;  %2227 = vst [vmem:[#allocation2 + $0x39c] sm:$0xf] %v6094_v51 }
 0x156   : > { %4987 = vmatmul.mubr.bf16.gmra.mxu0 %v6280_v46  ;;  %2282 = vst [vmem:[#allocation2 + $0x29c] sm:$0xf] %v6093_v17  ;;  %2283 = vst [vmem:[#allocation2 + $0x2d0] sm:$0xf] %v6094_v51  ;;  %v2520_v51 = vld [vmem:[#allocation2 + $0x288] sm:$0xff] }
 0x157   : > { %5084 = vmatmul.mubr.bf16.gmra.mxu1 %v6178_v41  ;;  %4994 = vmatprep.mubr.bf16.mxu0 %v7472_v22  ;;  %v1930_v42 = vpop.permute.xlu1 %1929 }
 0x158   : > { %5091 = vmatprep.mubr.bf16.mxu1 %v7474_v29  ;;  %7074 = vmatpush3.bf16.msra.mxu1 %v7511_v55  ;;  %v1935_v48 = vsel %vm437_vm0, %v8460_v10, %v1930_v42  ;;  %v2037_v59 = vpop.permute.xlu0 %2036  ;;  %v6217_v29 = vcombine.low %v2506_v50, %v2513_v61  ;;  %v7495_v42 = vld [vmem:[#allocation2 + $0x5c0] ss:$52 sps:$4 sm:$0xff]   ;;  %v7503_v50 = vld [vmem:[#allocation2 + $0x628] ss:$52 sps:$4 sm:$0xff]  }
 0x159   : > { %7075 = vmatprep.subr.bf16.mxu1 %v7525_v13  ;;  %v6073_v27 = vcombine.low %v1935_v48, %v1935_v48  ;;  %v6074_v18 = vcombine.high %v1935_v48, %v1935_v48  ;;  %v2079_v10 = vsel %vm437_vm0, %v8543_v54, %v2037_v59  ;;  %v7492_v13 = vld [vmem:[#allocation2 + $0x5c4] ss:$52 sps:$4 sm:$0xff]   ;;  %v7501_v48 = vld [vmem:[#allocation2 + $0x62c] ss:$52 sps:$4 sm:$0xff]  }
 0x15a   : > { %v6593_v37 = vpop.f32.mrf.mxu1  ;;  %v6521_v7 = vpop.f32.mrf.mxu0  ;;  %v6095_v60 = vcombine.low %v2079_v10, %v2079_v10  ;;  %v6096_v11 = vcombine.high %v2079_v10, %v2079_v10  ;;  %v2541_v10 = vld [vmem:[#allocation2 + $0x324] sm:$0xff] }
 0x15b   : > { %1981 = vst [vmem:[#allocation2 + $0x5d4] sm:$0xf] %v6073_v27  ;;  %1982 = vst [vmem:[#allocation2 + $0x608] sm:$0xf] %v6074_v18  ;;  %v7497_v27 = vld [vmem:[#allocation2 + $0x2f4] ss:$52 sps:$4 sm:$0xff]  }
 0x15c   : > { %7076 = vmatpush3.bf16.msra.mxu1 %v7526_v5  ;;  %v6594_v53 = vpop.f32.mrf.mxu1  ;;  %v6522_v9 = vpop.f32.mrf.mxu0  ;;  %2228 = vst [vmem:[#allocation2 + $0x3d0] sm:$0xf] %v6095_v60  ;;  %2229 = vst [vmem:[#allocation2 + $0x404] sm:$0xf] %v6096_v11  ;;  %v6319_v5 = vcombine.low %v2617_v58, %v2624_v44 }
 0x15d   : > { %7077 = vmatprep.subr.bf16.mxu1 %v7539_v2  ;;  %v8843_v47 = vadd.f32 %v6594_v53, %v6593_v37  ;;  %2284 = vst [vmem:[#allocation2 + $0x304] sm:$0xf] %v6095_v60  ;;  %2285 = vst [vmem:[#allocation2 + $0x338] sm:$0xf] %v6096_v11  ;;  %v8845_v49 = vadd.f32 %v6522_v9, %v6521_v7  ;;  %v2039_v2 = vpop.permute.xlu0 %2038 }
 0x15e   : > { %4995 = vmatmul.mubr.bf16.gmra.mxu0 %v6293_v56  ;;  %v6596_v54 = vpop.f32.mrf.mxu1  ;;  %v6524_v55 = vpop.f32.mrf.mxu0 }
 0x15f   : > { %5092 = vmatmul.mubr.bf16.gmra.mxu1 %v6191_v4  ;;  %5002 = vmatprep.mubr.bf16.mxu0 %v7478_v0  ;;  %v2527_v4 = vld [vmem:[#allocation2 + $0x2bc] sm:$0xff] }
 0x160   : > { %5099 = vmatprep.mubr.bf16.mxu1 %v7480_v62  ;;  %7078 = vmatpush3.bf16.msra.mxu1 %v7540_v15  ;;  %v6597_v46 = vpop.f32.mrf.mxu1  ;;  %v6525_v31 = vpop.f32.mrf.mxu0 }
 0x161   : > { %7079 = vmatprep.subr.bf16.mxu1 %v7554_v24  ;;  %v8849_v21 = vadd.f32 %v6597_v46, %v6596_v54  ;;  %v8851_v39 = vadd.f32 %v6525_v31, %v6524_v55  ;;  %v7506_v54 = vld [vmem:[#allocation2 + $0x35c] ss:$52 sps:$4 sm:$0xff]  }
 0x163   : > { %v1932_v41 = vpop.permute.xlu1 %1931  ;;  %v6599_v52 = vpop.f32.mrf.mxu1 }
 0x164   : > { %7080 = vmatpush3.bf16.msra.mxu1 %v7555_v1  ;;  %v1938_v63 = vsel %vm437_vm0, %v8559_v35, %v1932_v41  ;;  %v6527_v36 = vpop.f32.mrf.mxu0  ;;  %v2082_v35 = vsel %vm437_vm0, %v8573_v19, %v2039_v2  ;;  %v6230_v19 = vcombine.low %v2520_v51, %v2527_v4 }
 0x165   : > { %v6075_v32 = vcombine.low %v1938_v63, %v1938_v63  ;;  %v6076_v22 = vcombine.high %v1938_v63, %v1938_v63  ;;  %v6600_v23 = vpop.f32.mrf.mxu1  ;;  %v6097_v20 = vcombine.low %v2082_v35, %v2082_v35  ;;  %v6098_v17 = vcombine.high %v2082_v35, %v2082_v35  ;;  %v7509_v63 = vld [vmem:[#allocation2 + $0x24] ss:$52 sps:$4 sm:$0xff]  }
 0x166   : > { %5003 = vmatmul.mubr.bf16.gmra.mxu0 %v6306_v33  ;;  %v6528_v15 = vpop.f32.mrf.mxu0  ;;  %v8855_v56 = vadd.f32 %v6600_v23, %v6599_v52  ;;  %v7504_v35 = vld [vmem:[#allocation2 + $0x358] ss:$52 sps:$4 sm:$0xff]  }
 0x167   : > { %5100 = vmatmul.mubr.bf16.gmra.mxu1 %v6204_v8  ;;  %5010 = vmatprep.mubr.bf16.mxu0 %v7484_v16  ;;  %1983 = vst [vmem:[#allocation2 + $0x63c] sm:$0xf] %v6075_v32  ;;  %1984 = vst [vmem:[#allocation2 + $0x670] sm:$0xf] %v6076_v22  ;;  %v8857_v62 = vadd.f32 %v6528_v15, %v6527_v36  ;;  %v6602_v24 = vpop.f32.mrf.mxu1  ;;  %v7547_v15 = vld [vmem:[%s9572_s1 + $0x310] sm:$0xff]  }
 0x168   : > { %5107 = vmatprep.mubr.bf16.mxu1 %v7486_v6  ;;  %2230 = vst [vmem:[#allocation2 + $0x438] sm:$0xf] %v6097_v20  ;;  %2231 = vst [vmem:[#allocation2 + $0x46c] sm:$0xf] %v6098_v17  ;;  %v6530_v0 = vpop.f32.mrf.mxu0  ;;  %v2534_v6 = vld [vmem:[#allocation2 + $0x2f0] sm:$0xff] }
 0x169   : > { %2286 = vst [vmem:[#allocation2 + $0x36c] sm:$0xf] %v6097_v20  ;;  %2287 = vst [vmem:[#allocation2 + $0x3a0] sm:$0xf] %v6098_v17  ;;  %v6603_v1 = vpop.f32.mrf.mxu1  ;;  %v7507_v17 = vld [vmem:[#allocation2 + $0x20] ss:$52 sps:$4 sm:$0xff]  }
 0x16a   : > { %v6531_v28 = vpop.f32.mrf.mxu0  ;;  %v8859_v14 = vadd.f32 %v6603_v1, %v6602_v24 }
 0x16b   : > { %v8861_v18 = vadd.f32 %v6531_v28, %v6530_v0  ;;  %v6605_v30 = vpop.f32.mrf.mxu1  ;;  %v8889_v0 = vld [vmem:[%s9573_s2] ss:$0 sm:$0xff] }
 0x16d   : > { %v6533_v8 = vpop.f32.mrf.mxu0  ;;  %v6606_v59 = vpop.f32.mrf.mxu1 }
 0x16e   : > { %5011 = vmatmul.mubr.bf16.gmra.mxu0 %v6319_v5  ;;  %v8865_v60 = vadd.f32 %v6606_v59, %v6605_v30 }
 0x16f   : > { %5108 = vmatmul.mubr.bf16.gmra.mxu1 %v6217_v29  ;;  %5018 = vmatprep.mubr.bf16.mxu0 %v7492_v13  ;;  %v6534_v7 = vpop.f32.mrf.mxu0  ;;  %v6608_v53 = vpop.f32.mrf.mxu1 }
 0x170   : > { %5115 = vmatprep.mubr.bf16.mxu1 %v7490_v25  ;;  %v2041_v3 = vpop.permute.xlu1 %2040  ;;  %v8867_v11 = vadd.f32 %v6534_v7, %v6533_v8  ;;  %v4590_v7 = vadd.f32 %v8851_v39, %v8889_v0 }
 0x171   : > { %v2085_v33 = vsel %vm437_vm0, %v8596_v26, %v2041_v3  ;;  %v6536_v58 = vpop.f32.mrf.mxu0  ;;  %v6609_v61 = vpop.f32.mrf.mxu1  ;;  %v6243_v26 = vcombine.low %v2534_v6, %v2541_v10 }
 0x172   : > { %v6099_v37 = vcombine.low %v2085_v33, %v2085_v33  ;;  %v6100_v16 = vcombine.high %v2085_v33, %v2085_v33  ;;  %v8869_v44 = vadd.f32 %v6609_v61, %v6608_v53  ;;  %v7571_v33 = vld [vmem:[%s9572_s1 + $0x308] sm:$0xff]   ;;  %v7599_v61 = vld [vmem:[%s9572_s1 + $0x300] sm:$0xff]  }
 0x173   : > { %v6537_v9 = vpop.f32.mrf.mxu0 }
 0x174   : > { %2232 = vst [vmem:[#allocation2 + $0x4a0] sm:$0xf] %v6099_v37  ;;  %2233 = vst [vmem:[#allocation2 + $0x4d4] sm:$0xf] %v6100_v16  ;;  %v8871_v41 = vadd.f32 %v6537_v9, %v6536_v58  ;;  %v6611_v55 = vpop.f32.mrf.mxu1 }
 0x175   : > { %2288 = vst [vmem:[#allocation2 + $0x3d4] sm:$0xf] %v6099_v37  ;;  %2289 = vst [vmem:[#allocation2 + $0x408] sm:$0xf] %v6100_v16  ;;  %v6539_v46 = vpop.f32.mrf.mxu0  ;;  %v7512_v16 = vld [vmem:[#allocation2 + $0x3c0] ss:$52 sps:$4 sm:$0xff]  }
 0x176   : > { %5019 = vmatmul.mubr.bf16.gmra.mxu0 %v7495_v42  ;;  %v6612_v13 = vpop.f32.mrf.mxu1 }
 0x177   : > { %5116 = vmatmul.mubr.bf16.gmra.mxu1 %v6230_v19  ;;  %5026 = vmatprep.mubr.bf16.mxu0 %v7501_v48  ;;  %v6540_v22 = vpop.f32.mrf.mxu0  ;;  %v8875_v31 = vadd.f32 %v6612_v13, %v6611_v55  ;;  %v7517_v19 = vld [vmem:[#allocation2 + $0x8c] ss:$52 sps:$4 sm:$0xff]  }
 0x178   : > { %5123 = vmatprep.mubr.bf16.mxu1 %v7497_v27  ;;  %v8877_v52 = vadd.f32 %v6540_v22, %v6539_v46  ;;  %v6614_v2 = vpop.f32.mrf.mxu1  ;;  %v4595_v22 = vadd.f32 %v8857_v62, %v8889_v0  ;;  %v4598_v62 = vadd.f32 %v8861_v18, %v8889_v0 }
 0x179   : > { %v6542_v36 = vpop.f32.mrf.mxu0 }
 0x17a   : > { %v6615_v23 = vpop.f32.mrf.mxu1 }
 0x17b   : > { %v6543_v51 = vpop.f32.mrf.mxu0  ;;  %v8879_v4 = vadd.f32 %v6615_v23, %v6614_v2  ;;  %v7519_v23 = vld [vmem:[#allocation2 + $0x428] ss:$52 sps:$4 sm:$0xff]  }
 0x17c   : > { %v8891_v42 = vadd.f32 %v6543_v51, %v6542_v36  ;;  %v7522_v51 = vld [vmem:[#allocation2 + $0xf0] ss:$52 sps:$4 sm:$0xff]  }
 0x17d   : > { %v2043_v29 = vpop.permute.xlu0 %2042  ;;  %v6633_v1 = vpop.f32.mrf.mxu1 }
 0x17e   : > { %5027 = vmatmul.mubr.bf16.gmra.mxu0 %v7503_v50  ;;  %v2088_v32 = vsel %vm437_vm0, %v8616_v40, %v2043_v29  ;;  %v7514_v40 = vld [vmem:[#allocation2 + $0x3c4] ss:$52 sps:$4 sm:$0xff]   ;;  %v6545_v27 = vpop.f32.mrf.mxu0  ;;  %v7521_v50 = vld [vmem:[#allocation2 + $0x42c] ss:$52 sps:$4 sm:$0xff]  }
 0x17f   : > { %5124 = vmatmul.mubr.bf16.gmra.mxu1 %v6243_v26  ;;  %5228 = vmatprep.mubr.bf16.mxu0 %v7509_v63  ;;  %v6101_v5 = vcombine.low %v2088_v32, %v2088_v32  ;;  %v6102_v25 = vcombine.high %v2088_v32, %v2088_v32  ;;  %v6634_v30 = vpop.f32.mrf.mxu1 }
 0x180   : > { %5131 = vmatprep.mubr.bf16.mxu1 %v7506_v54  ;;  %v6546_v3 = vpop.f32.mrf.mxu0  ;;  %v6635_v8 = vadd.f32 %v6634_v30, %v6633_v1  ;;  %v7524_v54 = vld [vmem:[#allocation2 + $0xf4] ss:$52 sps:$4 sm:$0xff]  }
 0x181   : > { %2234 = vst [vmem:[#allocation2 + $0x508] sm:$0xf] %v6101_v5  ;;  %2235 = vst [vmem:[#allocation2 + $0x53c] sm:$0xf] %v6102_v25  ;;  %v8899_v6 = vadd.f32 %v6546_v3, %v6545_v27  ;;  %v6636_v59 = vpop.f32.mrf.mxu1 }
 0x182   : > { %2290 = vst [vmem:[#allocation2 + $0x43c] sm:$0xf] %v6101_v5  ;;  %2291 = vst [vmem:[#allocation2 + $0x470] sm:$0xf] %v6102_v25 }
 0x183   : > { %v6637_v10 = vpop.f32.mrf.mxu1 }
 0x184   : > { %v6638_v58 = vadd.f32 %v6637_v10, %v6636_v59 }
 0x185   : > { %v2045_v20 = vpop.permute.xlu1 %2044 }
 0x186   : > { %v2091_v24 = vsel %vm437_vm0, %v8651_v38, %v2045_v20  ;;  %5229 = vmatmul.mubr.bf16.vlgmr.msra.gmra.mxu0 %v7507_v17  ;;  %v4587_v38 = vadd.f32 %v8845_v49, %v8889_v0  ;;  %v7515_v49 = vld [vmem:[#allocation2 + $0x88] ss:$52 sps:$4 sm:$0xff]   ;;  %v6639_v9 = vpop.f32.mrf.mxu1  ;;  %v8910_v63 = vadd.f32 %v6638_v58, %v4590_v7 }
 0x187   : > { %5132 = vmatmul.mubr.bf16.gmra.mxu1 %v7504_v35  ;;  %v6103_v48 = vcombine.low %v2091_v24, %v2091_v24  ;;  %v6104_v28 = vcombine.high %v2091_v24, %v2091_v24  ;;  %5236 = vmatprep.mubr.bf16.mxu0 %v7517_v19  ;;  %v7529_v24 = vld [vmem:[#allocation2 + $0x494] ss:$52 sps:$4 sm:$0xff]  }
 0x188   : > { %5139 = vmatprep.mubr.bf16.mxu1 %v7514_v40  ;;  %7198 = vmatpush3.bf16.msra.mxu0 %v8738_v57  ;;  %v8901_v37 = vadd.f32 %v6635_v8, %v4587_v38  ;;  %v6548_v57 = vpop.f32.mrf.mxu0  ;;  %v6640_v29 = vpop.f32.mrf.mxu1 }
 0x189   : > { %2236 = vst [vmem:[#allocation2 + $0x570] sm:$0xf] %v6103_v48  ;;  %2237 = vst [vmem:[#allocation2 + $0x5a4] sm:$0xf] %v6104_v28  ;;  %7199 = vmatprep.subr.bf16.mxu0 %v7547_v15  ;;  %v6641_v25 = vadd.f32 %v6640_v29, %v6639_v9 }
 0x18a   : > { %2292 = vst [vmem:[#allocation2 + $0x4a4] sm:$0xf] %v6103_v48  ;;  %2293 = vst [vmem:[#allocation2 + $0x4d8] sm:$0xf] %v6104_v28  ;;  %v6549_v53 = vpop.f32.mrf.mxu0  ;;  %v6642_v36 = vpop.f32.mrf.mxu1  ;;  %v7532_v28 = vld [vmem:[#allocation2 + $0x15c] ss:$52 sps:$4 sm:$0xff]  }
 0x18b   : > { %v8908_v26 = vadd.f32 %v6549_v53, %v6548_v57  ;;  %v8918_v35 = vadd.f32 %v6641_v25, %v4595_v22 }
 0x18c   : > { %7200 = vmatpush3.bf16.msra.mxu0 %v7547_v15  ;;  %v6551_v46 = vpop.f32.mrf.mxu0  ;;  %v6643_v20 = vpop.f32.mrf.mxu1 }
 0x18d   : > { %7201 = vmatprep.subr.bf16.mxu0 %v7571_v33  ;;  %v6644_v15 = vadd.f32 %v6643_v20, %v6642_v36 }
 0x18e   : > { %5237 = vmatmul.mubr.bf16.gmra.mxu0 %v7515_v49  ;;  %v6552_v5 = vpop.f32.mrf.mxu0  ;;  %v6645_v48 = vpop.f32.mrf.mxu1  ;;  %v7527_v49 = vld [vmem:[#allocation2 + $0x490] ss:$52 sps:$4 sm:$0xff]  }
 0x18f   : > { %5140 = vmatmul.mubr.bf16.gmra.mxu1 %v7512_v16  ;;  %5244 = vmatprep.mubr.bf16.mxu0 %v7524_v54  ;;  %v8916_v2 = vadd.f32 %v6552_v5, %v6551_v46  ;;  %v8926_v38 = vadd.f32 %v6644_v15, %v4598_v62  ;;  %v7535_v54 = vld [vmem:[#allocation2 + $0x4fc] ss:$52 sps:$4 sm:$0xff]   ;;  %v7533_v62 = vld [vmem:[#allocation2 + $0x4f8] ss:$52 sps:$4 sm:$0xff]   ;;  %v4614_v15 = vadd.f32 %v8891_v42, %v8889_v0 }
 0x190   : > { %5147 = vmatprep.mubr.bf16.mxu1 %v7521_v50  ;;  %7202 = vmatpush3.bf16.msra.mxu0 %v7571_v33  ;;  %v6646_v18 = vpop.f32.mrf.mxu1  ;;  %v4606_v50 = vadd.f32 %v8871_v41, %v8889_v0  ;;  %v4611_v41 = vadd.f32 %v8877_v52, %v8889_v0  ;;  %v4619_v42 = vadd.f32 %v8899_v6, %v8889_v0 }
 0x191   : > { %v2047_v55 = vpop.permute.xlu0 %2046  ;;  %7203 = vmatprep.subr.bf16.mxu0 %v7599_v61  ;;  %v6647_v33 = vadd.f32 %v6646_v18, %v6645_v48  ;;  %v7543_v48 = vld [vmem:[#allocation2 + $0x564] ss:$52 sps:$4 sm:$0xff]   ;;  %v7546_v18 = vld [vmem:[#allocation2 + $0x22c] ss:$52 sps:$4 sm:$0xff]  }
 0x192   : > { %v2094_v39 = vsel %vm437_vm0, %v8673_v34, %v2047_v55  ;;  %v6554_v34 = vpop.f32.mrf.mxu0  ;;  %v6648_v57 = vpop.f32.mrf.mxu1 }
 0x193   : > { %v6105_v13 = vcombine.low %v2094_v39, %v2094_v39  ;;  %v6106_v32 = vcombine.high %v2094_v39, %v2094_v39 }
 0x194   : > { %7204 = vmatpush3.bf16.msra.mxu0 %v7599_v61  ;;  %v6555_v40 = vpop.f32.mrf.mxu0  ;;  %v6649_v53 = vpop.f32.mrf.mxu1  ;;  %v7530_v61 = vld [vmem:[#allocation2 + $0x158] ss:$52 sps:$4 sm:$0xff]  }
 0x195   : > { %2238 = vst [vmem:[#allocation2 + $0x5d8] sm:$0xf] %v6105_v13  ;;  %2239 = vst [vmem:[#allocation2 + $0x60c] sm:$0xf] %v6106_v32  ;;  %v8924_v19 = vadd.f32 %v6555_v40, %v6554_v34 }
 0x196   : > { %2294 = vst [vmem:[#allocation2 + $0x50c] sm:$0xf] %v6105_v13  ;;  %2295 = vst [vmem:[#allocation2 + $0x540] sm:$0xf] %v6106_v32  ;;  %v6557_v3 = vpop.f32.mrf.mxu0  ;;  %5245 = vmatmul.mubr.bf16.gmra.mxu0 %v7522_v51  ;;  %v7538_v13 = vld [vmem:[#allocation2 + $0x1c4] ss:$52 sps:$4 sm:$0xff]  }
 0x197   : > { %v2049_v17 = vpop.permute.xlu1 %2048  ;;  %5148 = vmatmul.mubr.bf16.gmra.mxu1 %v7519_v23  ;;  %5252 = vmatprep.mubr.bf16.mxu0 %v7532_v28  ;;  %v6651_v29 = vpop.f32.mrf.mxu1 }
 0x198   : > { %v2097_v1 = vsel %vm437_vm0, %v8712_v43, %v2049_v17  ;;  %5155 = vmatprep.mubr.bf16.mxu1 %v7529_v24  ;;  %v4603_v43 = vadd.f32 %v8867_v11, %v8889_v0  ;;  %v6558_v8 = vpop.f32.mrf.mxu0  ;;  %v6650_v11 = vadd.f32 %v6649_v53, %v6648_v57  ;;  %v7536_v24 = vld [vmem:[#allocation2 + $0x1c0] ss:$52 sps:$4 sm:$0xff]  }
 0x199   : > { %v6107_v27 = vcombine.low %v2097_v1, %v2097_v1  ;;  %v6108_v30 = vcombine.high %v2097_v1, %v2097_v1  ;;  %v8930_v59 = vadd.f32 %v6558_v8, %v6557_v3 }
 0x19a   : > { %v8932_v16 = vadd.f32 %v6647_v33, %v4603_v43  ;;  %v6560_v10 = vpop.f32.mrf.mxu0  ;;  %v8940_v32 = vadd.f32 %v6650_v11, %v4606_v50  ;;  %v7541_v50 = vld [vmem:[#allocation2 + $0x560] ss:$52 sps:$4 sm:$0xff]   ;;  %v7544_v11 = vld [vmem:[#allocation2 + $0x228] ss:$52 sps:$4 sm:$0xff]  }
 0x19b   : > { %2240 = vst [vmem:[#allocation2 + $0x640] sm:$0xf] %v6107_v27  ;;  %2241 = vst [vmem:[#allocation2 + $0x674] sm:$0xf] %v6108_v30 }
 0x19c   : > { %2296 = vst [vmem:[#allocation2 + $0x574] sm:$0xf] %v6107_v27  ;;  %2297 = vst [vmem:[#allocation2 + $0x5a8] sm:$0xf] %v6108_v30  ;;  %v6561_v9 = vpop.f32.mrf.mxu0 }
 0x19d   : > { %v2247_v7 = vpop.permute.xlu0 %2246  ;;  %v8938_v39 = vadd.f32 %v6561_v9, %v6560_v10  ;;  %v4622_v9 = vadd.f32 %v8908_v26, %v8889_v0  ;;  %v4627_v26 = vadd.f32 %v8916_v2, %v8889_v0 }
 0x19e   : > { %v2252_v58 = vsel %vm437_vm0, %v8733_v12, %v2247_v7  ;;  %v6563_v22 = vpop.f32.mrf.mxu0  ;;  %5253 = vmatmul.mubr.bf16.gmra.mxu0 %v7530_v61  ;;  %v6652_v12 = vpop.f32.mrf.mxu1 }
 0x19f   : > { %v6109_v55 = vcombine.low %v2252_v58, %v2252_v58  ;;  %v6110_v46 = vcombine.high %v2252_v58, %v2252_v58  ;;  %5156 = vmatmul.mubr.bf16.gmra.mxu1 %v7527_v49  ;;  %5260 = vmatprep.mubr.bf16.mxu0 %v7538_v13  ;;  %v6653_v25 = vadd.f32 %v6652_v12, %v6651_v29  ;;  %v7553_v58 = vld [vmem:[#allocation2 + $0x5cc] ss:$52 sps:$4 sm:$0xff]   ;;  %v7550_v29 = vld [vmem:[#allocation2 + $0x294] ss:$52 sps:$4 sm:$0xff]  }
 0x1a0   : > { %5163 = vmatprep.mubr.bf16.mxu1 %v7535_v54  ;;  %v6564_v5 = vpop.f32.mrf.mxu0  ;;  %v6654_v34 = vpop.f32.mrf.mxu1 }
 0x1a1   : > { %2298 = vst [vmem:[#allocation2 + $0x5dc] sm:$0xf] %v6109_v55  ;;  %2299 = vst [vmem:[#allocation2 + $0x610] sm:$0xf] %v6110_v46  ;;  %v8944_v36 = vadd.f32 %v6564_v5, %v6563_v22  ;;  %v8946_v23 = vadd.f32 %v6653_v25, %v4611_v41 }
 0x1a2   : > { %v6566_v20 = vpop.f32.mrf.mxu0  ;;  %v6655_v51 = vpop.f32.mrf.mxu1 }
 0x1a3   : > { %v6656_v52 = vadd.f32 %v6655_v51, %v6654_v34  ;;  %v7561_v51 = vld [vmem:[#allocation2 + $0x634] ss:$52 sps:$4 sm:$0xff]  }
 0x1a4   : > { %v2249_v17 = vpop.permute.xlu1 %2248  ;;  %v6567_v1 = vpop.f32.mrf.mxu0 }
 0x1a5   : > { %v2255_v40 = vsel %vm437_vm0, %v8753_v45, %v2249_v17  ;;  %v8952_v30 = vadd.f32 %v6567_v1, %v6566_v20  ;;  %v6657_v3 = vpop.f32.mrf.mxu1  ;;  %v8954_v43 = vadd.f32 %v6656_v52, %v4614_v15  ;;  %v7551_v20 = vld [vmem:[#allocation2 + $0x5c8] ss:$52 sps:$4 sm:$0xff]   ;;  %v4630_v15 = vadd.f32 %v8924_v19, %v8889_v0 }
 0x1a6   : > { %v6111_v28 = vcombine.low %v2255_v40, %v2255_v40  ;;  %v6112_v27 = vcombine.high %v2255_v40, %v2255_v40  ;;  %v6569_v8 = vpop.f32.mrf.mxu0  ;;  %5261 = vmatmul.mubr.bf16.gmra.mxu0 %v7536_v24  ;;  %v7548_v24 = vld [vmem:[#allocation2 + $0x290] ss:$52 sps:$4 sm:$0xff]   ;;  %v4635_v19 = vadd.f32 %v8930_v59, %v8889_v0 }
 0x1a7   : > { %5164 = vmatmul.mubr.bf16.gmra.mxu1 %v7533_v62  ;;  %5268 = vmatprep.mubr.bf16.mxu0 %v7546_v18  ;;  %v6658_v45 = vpop.f32.mrf.mxu1 }
 0x1a8   : > { %5171 = vmatprep.mubr.bf16.mxu1 %v7543_v48  ;;  %2300 = vst [vmem:[#allocation2 + $0x644] sm:$0xf] %v6111_v28  ;;  %2301 = vst [vmem:[#allocation2 + $0x678] sm:$0xf] %v6112_v27  ;;  %v6570_v33 = vpop.f32.mrf.mxu0  ;;  %v6659_v57 = vadd.f32 %v6658_v45, %v6657_v3  ;;  %v370_v48 = vld [vmem:[%s7710_s27 + $0x1cc] sm:$0xff]  ;;  %v371_v28 = vld [vmem:[%s7710_s27 + $0x1d4] sm:$0xff] }
 0x1a9   : > { %v8958_v10 = vadd.f32 %v6570_v33, %v6569_v8  ;;  %v6660_v7 = vpop.f32.mrf.mxu1  ;;  %v7558_v3 = vld [vmem:[#allocation2 + $0x2fc] ss:$52 sps:$4 sm:$0xff]   ;;  %v6503_v18 = vpack.c.bf16 %v370_v48, %v370_v48  ;;  %v6504_v8 = vpack.c.bf16 %v371_v28, %v371_v28  ;;  %v4646_v28 = vadd.f32 %v8952_v30, %v8889_v0  ;;  %s6472_s27 = sshll.u32 %s9681_s13, 5 }
 0x1aa   : > { %v8960_v49 = vadd.f32 %v6659_v57, %v4619_v42  ;;  %v6572_v53 = vpop.f32.mrf.mxu0  ;;  %s170_s14 = scalar_lea.vmem %s9574_s3, %s6472_s27 }
 0x1ab   : > { %v6661_v61 = vpop.f32.mrf.mxu1  ;;  %2431 = vst.msk [vmem:[#allocation2 + $0x648] sm:$0xf] %vm2400_vm1, %v6503_v18  ;;  %2432 = vst.msk [vmem:[#allocation2 + $0x67c] sm:$0xf] %vm2400_vm1, %v6504_v8 }
 0x1ac   : > { %v6573_v54 = vpop.f32.mrf.mxu0  ;;  %v6662_v55 = vadd.f32 %v6661_v61, %v6660_v7 }
 0x1ad   : > { %v8964_v46 = vadd.f32 %v6573_v54, %v6572_v53  ;;  %v6663_v6 = vpop.f32.mrf.mxu1 }
 0x1ae   : > { %v8966_v13 = vadd.f32 %v6662_v55, %v4622_v9  ;;  %v6575_v22 = vpop.f32.mrf.mxu0  ;;  %5269 = vmatmul.mubr.bf16.gmra.mxu0 %v7544_v11  ;;  %v7567_v11 = vld [vmem:[#allocation2 + $0x2c] ss:$52 sps:$4 sm:$0xff]   ;;  %v4638_v55 = vadd.f32 %v8938_v39, %v8889_v0 }
 0x1af   : > { %5172 = vmatmul.mubr.bf16.gmra.mxu1 %v7541_v50  ;;  %5276 = vmatprep.mubr.bf16.mxu0 %v7550_v29  ;;  %v6664_v12 = vpop.f32.mrf.mxu1  ;;  %v7559_v50 = vld [vmem:[#allocation2 + $0x630] ss:$52 sps:$4 sm:$0xff]  }
 0x1b0   : > { %5179 = vmatprep.mubr.bf16.mxu1 %v7553_v58  ;;  %v6576_v41 = vpop.f32.mrf.mxu0  ;;  %v6665_v5 = vadd.f32 %v6664_v12, %v6663_v6  ;;  %v7556_v6 = vld [vmem:[#allocation2 + $0x2f8] ss:$52 sps:$4 sm:$0xff]  }
 0x1b1   : > { %v8970_v25 = vadd.f32 %v6576_v41, %v6575_v22  ;;  %v6666_v34 = vpop.f32.mrf.mxu1 }
 0x1b2   : > { %v8972_v17 = vadd.f32 %v6665_v5, %v4627_v26  ;;  %v6578_v62 = vpop.f32.mrf.mxu0  ;;  %v7564_v26 = vld [vmem:[#allocation2 + $0x364] ss:$52 sps:$4 sm:$0xff]  }
 0x1b3   : > { %v6667_v40 = vpop.f32.mrf.mxu1 }
 0x1b4   : > { %v6579_v1 = vpop.f32.mrf.mxu0  ;;  %v6668_v52 = vadd.f32 %v6667_v40, %v6666_v34 }
 0x1b5   : > { %v8978_v2 = vadd.f32 %v6579_v1, %v6578_v62  ;;  %v6669_v27 = vpop.f32.mrf.mxu1 }
 0x1b6   : > { %v8980_v45 = vadd.f32 %v6668_v52, %v4630_v15  ;;  %v6581_v42 = vpop.f32.mrf.mxu0  ;;  %5277 = vmatmul.mubr.bf16.gmra.mxu0 %v7548_v24  ;;  %v7565_v15 = vld [vmem:[#allocation2 + $0x28] ss:$52 sps:$4 sm:$0xff]  }
 0x1b7   : > { %5180 = vmatmul.mubr.bf16.gmra.mxu1 %v7551_v20  ;;  %5284 = vmatprep.mubr.bf16.mxu0 %v7558_v3  ;;  %v6670_v33 = vpop.f32.mrf.mxu1  ;;  %v4643_v20 = vadd.f32 %v8944_v36, %v8889_v0  ;;  %v7574_v52 = vld [vmem:[#allocation2 + $0x94] ss:$52 sps:$4 sm:$0xff]  }
 0x1b8   : > { %5187 = vmatprep.mubr.bf16.mxu1 %v7561_v51  ;;  %v6582_v57 = vpop.f32.mrf.mxu0  ;;  %v6671_v7 = vadd.f32 %v6670_v33, %v6669_v27  ;;  %v7562_v27 = vld [vmem:[#allocation2 + $0x360] ss:$52 sps:$4 sm:$0xff]  }
 0x1b9   : > { %v8986_v53 = vadd.f32 %v6582_v57, %v6581_v42  ;;  %v6672_v58 = vpop.f32.mrf.mxu1  ;;  %v7570_v42 = vld [vmem:[#allocation2 + $0x3cc] ss:$52 sps:$4 sm:$0xff]  }
 0x1ba   : > { %v8988_v61 = vadd.f32 %v6671_v7, %v4635_v19  ;;  %v6584_v9 = vpop.f32.mrf.mxu0  ;;  %v4651_v7 = vadd.f32 %v8958_v10, %v8889_v0 }
 0x1bb   : > { %v6673_v54 = vpop.f32.mrf.mxu1 }
 0x1bc   : > { %v6585_v29 = vpop.f32.mrf.mxu0  ;;  %v6674_v22 = vadd.f32 %v6673_v54, %v6672_v58 }
 0x1bd   : > { %v8992_v12 = vadd.f32 %v6585_v29, %v6584_v9  ;;  %v6675_v59 = vpop.f32.mrf.mxu1 }
 0x1be   : > { %v8994_v41 = vadd.f32 %v6674_v22, %v4638_v55  ;;  %v6587_v5 = vpop.f32.mrf.mxu0  ;;  %5285 = vmatmul.mubr.bf16.gmra.mxu0 %v7556_v6  ;;  %v4654_v22 = vadd.f32 %v8964_v46, %v8889_v0  ;;  %v4659_v46 = vadd.f32 %v8970_v25, %v8889_v0 }
 0x1bf   : > { %5188 = vmatmul.mubr.bf16.gmra.mxu1 %v7559_v50  ;;  %5292 = vmatprep.mubr.bf16.mxu0 %v7564_v26  ;;  %v6676_v34 = vpop.f32.mrf.mxu1 }
 0x1c0   : > { %5389 = vmatprep.mubr.bf16.mxu1 %v7567_v11  ;;  %v6588_v62 = vpop.f32.mrf.mxu0  ;;  %v6677_v39 = vadd.f32 %v6676_v34, %v6675_v59  ;;  %v7572_v11 = vld [vmem:[#allocation2 + $0x90] ss:$52 sps:$4 sm:$0xff]   ;;  %v7568_v59 = vld [vmem:[#allocation2 + $0x3c8] ss:$52 sps:$4 sm:$0xff]  }
 0x1c1   : > { %v8998_v51 = vadd.f32 %v6588_v62, %v6587_v5  ;;  %v6678_v40 = vpop.f32.mrf.mxu1  ;;  %v7580_v34 = vld [vmem:[#allocation2 + $0xfc] ss:$52 sps:$4 sm:$0xff]   ;;  %v7577_v62 = vld [vmem:[#allocation2 + $0x434] ss:$52 sps:$4 sm:$0xff]  }
 0x1c2   : > { %v9000_v24 = vadd.f32 %v6677_v39, %v4643_v20  ;;  %v6590_v1 = vpop.f32.mrf.mxu0 }
 0x1c3   : > { %v6679_v48 = vpop.f32.mrf.mxu1 }
 0x1c4   : > { %v6591_v3 = vpop.f32.mrf.mxu0  ;;  %v6680_v18 = vadd.f32 %v6679_v48, %v6678_v40 }
 0x1c5   : > { %v9004_v8 = vadd.f32 %v6591_v3, %v6590_v1  ;;  %v6681_v36 = vpop.f32.mrf.mxu1 }
 0x1c6   : > { %v9006_v33 = vadd.f32 %v6680_v18, %v4646_v28  ;;  %v6745_v19 = vpop.f32.mrf.mxu0  ;;  %5293 = vmatmul.mubr.bf16.gmra.mxu0 %v7562_v27  ;;  %v7578_v18 = vld [vmem:[#allocation2 + $0xf8] ss:$52 sps:$4 sm:$0xff]  }
 0x1c7   : > { %5390 = vmatmul.mubr.bf16.vlgmr.msra.gmra.mxu1 %v7565_v15  ;;  %5300 = vmatprep.mubr.bf16.mxu0 %v7570_v42  ;;  %v6682_v57 = vpop.f32.mrf.mxu1 }
 0x1c8   : > { %5397 = vmatprep.mubr.bf16.mxu1 %v7574_v52  ;;  %v6683_v58 = vadd.f32 %v6682_v57, %v6681_v36  ;;  %v6746_v30 = vpop.f32.mrf.mxu0 }
 0x1c9   : > { %v6747_v50 = vadd.f32 %v6746_v30, %v6745_v19  ;;  %v6684_v9 = vpop.f32.mrf.mxu1  ;;  %v7575_v19 = vld [vmem:[#allocation2 + $0x430] ss:$52 sps:$4 sm:$0xff]  }
 0x1ca   : > { %v9010_v54 = vadd.f32 %v6683_v58, %v4651_v7  ;;  %v6748_v55 = vpop.f32.mrf.mxu0  ;;  %v7586_v58 = vld [vmem:[#allocation2 + $0x164] ss:$52 sps:$4 sm:$0xff]  }
 0x1cb   : > { %v9013_v6 = vadd.f32 %v6747_v50, %v8901_v37  ;;  %v6685_v29 = vpop.f32.mrf.mxu1  ;;  %v7583_v50 = vld [vmem:[#allocation2 + $0x49c] ss:$52 sps:$4 sm:$0xff]  }
 0x1cc   : > { %v6686_v26 = vadd.f32 %v6685_v29, %v6684_v9  ;;  %v6749_v5 = vpop.f32.mrf.mxu0 }
 0x1cd   : > { %v6750_v10 = vadd.f32 %v6749_v5, %v6748_v55  ;;  %v6687_v20 = vpop.f32.mrf.mxu1 }
 0x1ce   : > { %v9017_v39 = vadd.f32 %v6686_v26, %v4654_v22  ;;  %v6751_v40 = vpop.f32.mrf.mxu0  ;;  %5301 = vmatmul.mubr.bf16.gmra.mxu0 %v7568_v59 }
 0x1cf   : > { %5398 = vmatmul.mubr.bf16.gmra.mxu1 %v7572_v11  ;;  %v9020_v37 = vadd.f32 %v6750_v10, %v8910_v63  ;;  %5308 = vmatprep.mubr.bf16.mxu0 %v7577_v62  ;;  %v6688_v15 = vpop.f32.mrf.mxu1  ;;  %v4662_v63 = vadd.f32 %v8978_v2, %v8889_v0  ;;  %v4667_v2 = vadd.f32 %v8986_v53, %v8889_v0  ;;  %v7584_v10 = vld [vmem:[#allocation2 + $0x160] ss:$52 sps:$4 sm:$0xff]  }
 0x1d0   : > { %5405 = vmatprep.mubr.bf16.mxu1 %v7580_v34  ;;  %v6689_v1 = vadd.f32 %v6688_v15, %v6687_v20  ;;  %v6752_v52 = vpop.f32.mrf.mxu0 }
 0x1d1   : > { %v6753_v48 = vadd.f32 %v6752_v52, %v6751_v40  ;;  %v6690_v28 = vpop.f32.mrf.mxu1  ;;  %v7581_v40 = vld [vmem:[#allocation2 + $0x498] ss:$52 sps:$4 sm:$0xff]  }
 0x1d2   : > { %v9024_v27 = vadd.f32 %v6689_v1, %v4659_v46  ;;  %v6754_v3 = vpop.f32.mrf.mxu0  ;;  %v7592_v1 = vld [vmem:[#allocation2 + $0x1cc] ss:$52 sps:$4 sm:$0xff]  }
 0x1d3   : > { %v9027_v36 = vadd.f32 %v6753_v48, %v8918_v35  ;;  %v6691_v42 = vpop.f32.mrf.mxu1  ;;  %v7589_v48 = vld [vmem:[#allocation2 + $0x504] ss:$52 sps:$4 sm:$0xff]  }
 0x1d4   : > { %v6692_v57 = vadd.f32 %v6691_v42, %v6690_v28  ;;  %v6755_v7 = vpop.f32.mrf.mxu0 }
 0x1d5   : > { %v6756_v25 = vadd.f32 %v6755_v7, %v6754_v3 }
 0x1d6   : > { %v9031_v9 = vadd.f32 %v6692_v57, %v4662_v63  ;;  %v6757_v11 = vpop.f32.mrf.mxu0  ;;  %5309 = vmatmul.mubr.bf16.gmra.mxu0 %v7575_v19 }
 0x1d7   : > { %v6693_v30 = vpop.f32.mrf.mxu1  ;;  %5406 = vmatmul.mubr.bf16.gmra.mxu1 %v7578_v18  ;;  %v9034_v35 = vadd.f32 %v6756_v25, %v8926_v38  ;;  %5316 = vmatprep.mubr.bf16.mxu0 %v7583_v50  ;;  %v4670_v38 = vadd.f32 %v8992_v12, %v8889_v0  ;;  %v4675_v12 = vadd.f32 %v8998_v51, %v8889_v0  ;;  %v7590_v25 = vld [vmem:[#allocation2 + $0x1c8] ss:$52 sps:$4 sm:$0xff]  }
 0x1d8   : > { %5413 = vmatprep.mubr.bf16.mxu1 %v7586_v58  ;;  %v6758_v22 = vpop.f32.mrf.mxu0 }
 0x1d9   : > { %v6694_v55 = vpop.f32.mrf.mxu1  ;;  %v6759_v59 = vadd.f32 %v6758_v22, %v6757_v11  ;;  %v7587_v11 = vld [vmem:[#allocation2 + $0x500] ss:$52 sps:$4 sm:$0xff]  }
 0x1da   : > { %v6695_v29 = vadd.f32 %v6694_v55, %v6693_v30  ;;  %v6760_v34 = vpop.f32.mrf.mxu0 }
 0x1db   : > { %v6696_v26 = vpop.f32.mrf.mxu1  ;;  %v9041_v20 = vadd.f32 %v6759_v59, %v8932_v16  ;;  %v7595_v59 = vld [vmem:[#allocation2 + $0x56c] ss:$52 sps:$4 sm:$0xff]  }
 0x1dc   : > { %v9038_v5 = vadd.f32 %v6695_v29, %v4667_v2  ;;  %v6761_v46 = vpop.f32.mrf.mxu0  ;;  %v7598_v29 = vld [vmem:[#allocation2 + $0x234] ss:$52 sps:$4 sm:$0xff]  }
 0x1dd   : > { %v6697_v62 = vpop.f32.mrf.mxu1  ;;  %v6762_v53 = vadd.f32 %v6761_v46, %v6760_v34 }
 0x1de   : > { %v6698_v15 = vadd.f32 %v6697_v62, %v6696_v26  ;;  %v6763_v3 = vpop.f32.mrf.mxu0  ;;  %5317 = vmatmul.mubr.bf16.gmra.mxu0 %v7581_v40 }
 0x1df   : > { %v6699_v52 = vpop.f32.mrf.mxu1  ;;  %5414 = vmatmul.mubr.bf16.gmra.mxu1 %v7584_v10  ;;  %v9048_v16 = vadd.f32 %v6762_v53, %v8940_v32  ;;  %5324 = vmatprep.mubr.bf16.mxu0 %v7589_v48  ;;  %v4678_v32 = vadd.f32 %v9004_v8, %v8889_v0  ;;  %v4683_v8 = vadd.f32 %v8843_v47, %v8889_v0  ;;  %v7596_v53 = vld [vmem:[#allocation2 + $0x230] ss:$52 sps:$4 sm:$0xff]  }
 0x1e0   : > { %v9045_v28 = vadd.f32 %v6698_v15, %v4670_v38  ;;  %5421 = vmatprep.mubr.bf16.mxu1 %v7592_v1  ;;  %v6764_v63 = vpop.f32.mrf.mxu0 }
 0x1e1   : > { %v6700_v18 = vpop.f32.mrf.mxu1  ;;  %v6765_v19 = vadd.f32 %v6764_v63, %v6763_v3  ;;  %v7593_v3 = vld [vmem:[#allocation2 + $0x568] ss:$52 sps:$4 sm:$0xff]  }
 0x1e2   : > { %v6701_v42 = vadd.f32 %v6700_v18, %v6699_v52  ;;  %v6766_v58 = vpop.f32.mrf.mxu0 }
 0x1e3   : > { %v6702_v57 = vpop.f32.mrf.mxu1  ;;  %v9055_v30 = vadd.f32 %v6765_v19, %v8946_v23  ;;  %v7605_v19 = vld [vmem:[#allocation2 + $0x5d4] ss:$52 sps:$4 sm:$0xff]  }
 0x1e4   : > { %v9052_v7 = vadd.f32 %v6701_v42, %v4675_v12  ;;  %v6767_v2 = vpop.f32.mrf.mxu0  ;;  %v7602_v42 = vld [vmem:[#allocation2 + $0x29c] ss:$52 sps:$4 sm:$0xff]  }
 0x1e5   : > { %v6703_v50 = vpop.f32.mrf.mxu1  ;;  %v6768_v51 = vadd.f32 %v6767_v2, %v6766_v58 }
 0x1e6   : > { %v6704_v55 = vadd.f32 %v6703_v50, %v6702_v57  ;;  %v6769_v34 = vpop.f32.mrf.mxu0  ;;  %5325 = vmatmul.mubr.bf16.gmra.mxu0 %v7587_v11 }
 0x1e7   : > { %v6705_v22 = vpop.f32.mrf.mxu1  ;;  %5422 = vmatmul.mubr.bf16.gmra.mxu1 %v7590_v25  ;;  %v9062_v23 = vadd.f32 %v6768_v51, %v8954_v43  ;;  %5332 = vmatprep.mubr.bf16.mxu0 %v7595_v59  ;;  %v4686_v43 = vadd.f32 %v8849_v21, %v8889_v0  ;;  %v4691_v21 = vadd.f32 %v8855_v56, %v8889_v0  ;;  %v7600_v51 = vld [vmem:[#allocation2 + $0x298] ss:$52 sps:$4 sm:$0xff]  }
 0x1e8   : > { %v9059_v26 = vadd.f32 %v6704_v55, %v4678_v32  ;;  %5429 = vmatprep.mubr.bf16.mxu1 %v7598_v29  ;;  %v6770_v38 = vpop.f32.mrf.mxu0 }
 0x1e9   : > { %v6706_v10 = vpop.f32.mrf.mxu1  ;;  %v6771_v40 = vadd.f32 %v6770_v38, %v6769_v34  ;;  %v7603_v34 = vld [vmem:[#allocation2 + $0x5d0] ss:$52 sps:$4 sm:$0xff]  }
 0x1ea   : > { %v6707_v62 = vadd.f32 %v6706_v10, %v6705_v22  ;;  %v6772_v1 = vpop.f32.mrf.mxu0 }
 0x1eb   : > { %v6708_v15 = vpop.f32.mrf.mxu1  ;;  %v9069_v52 = vadd.f32 %v6771_v40, %v8960_v49  ;;  %v7608_v40 = vld [vmem:[#allocation2 + $0x63c] ss:$52 sps:$4 sm:$0xff]  }
 0x1ec   : > { %v9066_v46 = vadd.f32 %v6707_v62, %v4683_v8  ;;  %v6773_v12 = vpop.f32.mrf.mxu0  ;;  %v7611_v62 = vld [vmem:[#allocation2 + $0x304] ss:$52 sps:$4 sm:$0xff]  }
 0x1ed   : > { %v6709_v48 = vpop.f32.mrf.mxu1  ;;  %v6774_v47 = vadd.f32 %v6773_v12, %v6772_v1 }
 0x1ee   : > { %v6710_v18 = vadd.f32 %v6709_v48, %v6708_v15  ;;  %v6775_v58 = vpop.f32.mrf.mxu0  ;;  %5333 = vmatmul.mubr.bf16.gmra.mxu0 %v7593_v3 }
 0x1ef   : > { %v6711_v63 = vpop.f32.mrf.mxu1  ;;  %5430 = vmatmul.mubr.bf16.gmra.mxu1 %v7596_v53  ;;  %v9076_v49 = vadd.f32 %v6774_v47, %v8966_v13  ;;  %5340 = vmatprep.mubr.bf16.mxu0 %v7605_v19  ;;  %v4694_v13 = vadd.f32 %v8859_v14, %v8889_v0  ;;  %v4699_v14 = vadd.f32 %v8865_v60, %v8889_v0  ;;  %v7609_v47 = vld [vmem:[#allocation2 + $0x300] ss:$52 sps:$4 sm:$0xff]  }
 0x1f0   : > { %v9073_v57 = vadd.f32 %v6710_v18, %v4686_v43  ;;  %5437 = vmatprep.mubr.bf16.mxu1 %v7602_v42  ;;  %v6776_v32 = vpop.f32.mrf.mxu0  ;;  %v7614_v60 = vld [vmem:[#allocation2 + $0x36c] ss:$52 sps:$4 sm:$0xff]  }
 0x1f1   : > { %v6712_v25 = vpop.f32.mrf.mxu1  ;;  %v6777_v11 = vadd.f32 %v6776_v32, %v6775_v58  ;;  %v7615_v58 = vld [vmem:[#allocation2 + $0x30] ss:$52 sps:$4 sm:$0xff]  }
 0x1f2   : > { %v6713_v50 = vadd.f32 %v6712_v25, %v6711_v63  ;;  %v6778_v29 = vpop.f32.mrf.mxu0  ;;  %v7606_v25 = vld [vmem:[#allocation2 + $0x638] ss:$52 sps:$4 sm:$0xff]  }
 0x1f3   : > { %v6714_v55 = vpop.f32.mrf.mxu1  ;;  %v9083_v22 = vadd.f32 %v6777_v11, %v8972_v17 }
 0x1f4   : > { %v9080_v2 = vadd.f32 %v6713_v50, %v4691_v21  ;;  %v6779_v8 = vpop.f32.mrf.mxu0 }
 0x1f5   : > { %v6715_v59 = vpop.f32.mrf.mxu1  ;;  %v6780_v56 = vadd.f32 %v6779_v8, %v6778_v29 }
 0x1f6   : > { %v6716_v10 = vadd.f32 %v6715_v59, %v6714_v55  ;;  %v6781_v1 = vpop.f32.mrf.mxu0  ;;  %5341 = vmatmul.mubr.bf16.gmra.mxu0 %v7603_v34 }
 0x1f7   : > { %v6717_v38 = vpop.f32.mrf.mxu1  ;;  %5438 = vmatmul.mubr.bf16.gmra.mxu1 %v7600_v51  ;;  %v9090_v17 = vadd.f32 %v6780_v56, %v8980_v45  ;;  %5348 = vmatprep.mubr.bf16.mxu0 %v7608_v40  ;;  %v4702_v45 = vadd.f32 %v8869_v44, %v8889_v0  ;;  %v4707_v44 = vadd.f32 %v8875_v31, %v8889_v0  ;;  %v7616_v56 = vld [vmem:[#allocation2 + $0x98] ss:$52 sps:$4 sm:$0xff]   ;;  %v7619_v31 = vld [vmem:[#allocation2 + $0x3d4] ss:$52 sps:$4 sm:$0xff]  }
 0x1f8   : > { %v9087_v15 = vadd.f32 %v6716_v10, %v4694_v13  ;;  %5445 = vmatprep.mubr.bf16.mxu1 %v7611_v62  ;;  %v6782_v43 = vpop.f32.mrf.mxu0 }
 0x1f9   : > { %v6718_v53 = vpop.f32.mrf.mxu1  ;;  %v6783_v3 = vadd.f32 %v6782_v43, %v6781_v1  ;;  %v7620_v1 = vld [vmem:[#allocation2 + $0x100] ss:$52 sps:$4 sm:$0xff]  }
 0x1fa   : > { %v6719_v48 = vadd.f32 %v6718_v53, %v6717_v38  ;;  %v6784_v42 = vpop.f32.mrf.mxu0  ;;  %v7612_v38 = vld [vmem:[#allocation2 + $0x368] ss:$52 sps:$4 sm:$0xff]   ;;  %v4710_v53 = vadd.f32 %v8879_v4, %v8889_v0 }
 0x1fb   : > { %v6720_v18 = vpop.f32.mrf.mxu1  ;;  %v9097_v63 = vadd.f32 %v6783_v3, %v8988_v61 }
 0x1fc   : > { %v9094_v12 = vadd.f32 %v6719_v48, %v4699_v14  ;;  %v6785_v50 = vpop.f32.mrf.mxu0 }
 0x1fd   : > { %v6721_v19 = vpop.f32.mrf.mxu1  ;;  %v6786_v32 = vadd.f32 %v6785_v50, %v6784_v42  ;;  %v7617_v50 = vld [vmem:[#allocation2 + $0x3d0] ss:$52 sps:$4 sm:$0xff]  }
 0x1fe   : > { %v6722_v21 = vadd.f32 %v6721_v19, %v6720_v18  ;;  %v6787_v29 = vpop.f32.mrf.mxu0  ;;  %5349 = vmatmul.mubr.bf16.gmra.mxu0 %v7606_v25 }
 0x1ff   : > { %v6723_v11 = vpop.f32.mrf.mxu1  ;;  %5446 = vmatmul.mubr.bf16.gmra.mxu1 %v7609_v47  ;;  %v9104_v61 = vadd.f32 %v6786_v32, %v8994_v41  ;;  %7205 = vmatprep.mubr.msk.bf16.mxu0 %vm437_vm0, %v7615_v58 }
 0x200   : > { %v9101_v55 = vadd.f32 %v6722_v21, %v4702_v45  ;;  %5453 = vmatprep.mubr.bf16.mxu1 %v7614_v60  ;;  %v6788_v13 = vpop.f32.mrf.mxu0  ;;  %v7621_v21 = vld [vmem:[#allocation2 + $0x168] ss:$52 sps:$4 sm:$0xff]  }
 0x201   : > { %v6724_v51 = vpop.f32.mrf.mxu1  ;;  %v6789_v34 = vadd.f32 %v6788_v13, %v6787_v29 }
 0x202   : > { %v6725_v59 = vadd.f32 %v6724_v51, %v6723_v11  ;;  %v6790_v62 = vpop.f32.mrf.mxu0  ;;  %v7625_v11 = vld [vmem:[#allocation2 + $0x1d0] ss:$52 sps:$4 sm:$0xff]  }
 0x203   : > { %v6726_v10 = vpop.f32.mrf.mxu1  ;;  %v9112_v40 = vadd.f32 %v6789_v34, %v9000_v24  ;;  %v7624_v51 = vld [vmem:[#allocation2 + $0x43c] ss:$52 sps:$4 sm:$0xff]  }
 0x204   : > { %v9109_v8 = vadd.f32 %v6725_v59, %v4707_v44  ;;  %v6791_v48 = vpop.f32.mrf.mxu0 }
 0x205   : > { %v6727_v41 = vpop.f32.mrf.mxu1  ;;  %v6792_v43 = vadd.f32 %v6791_v48, %v6790_v62 }
 0x206   : > { %v6728_v14 = vadd.f32 %v6727_v41, %v6726_v10  ;;  %v6793_v42 = vpop.f32.mrf.mxu0  ;;  %7206 = vmatmul.mubr.msk.bf16.vlgmr.msra.gmra.mxu0 %vm437_vm0, %v7616_v56 }
 0x207   : > { %v6857_v3 = vpop.f32.mrf.mxu1  ;;  %5454 = vmatmul.mubr.bf16.gmra.mxu1 %v7612_v38  ;;  %v9120_v24 = vadd.f32 %v6792_v43, %v9006_v33  ;;  %7209 = vmatprep.mubr.msk.bf16.mxu0 %vm437_vm0, %v7620_v1 }
 0x208   : > { %v9116_v18 = vadd.f32 %v6728_v14, %v4710_v53  ;;  %5461 = vmatprep.mubr.bf16.mxu1 %v7619_v31  ;;  %v6794_v19 = vpop.f32.mrf.mxu0  ;;  %v7622_v53 = vld [vmem:[#allocation2 + $0x438] ss:$52 sps:$4 sm:$0xff]   ;;  %v7630_v31 = vld [vmem:[#allocation2 + $0x2a0] ss:$52 sps:$4 sm:$0xff]  }
 0x209   : > { %v6858_v47 = vpop.f32.mrf.mxu1  ;;  %v6795_v0 = vadd.f32 %v6794_v19, %v6793_v42 }
 0x20a   : > { %v6859_v4 = vadd.f32 %v6858_v47, %v6857_v3  ;;  %v6796_v25 = vpop.f32.mrf.mxu0  ;;  %v7629_v3 = vld [vmem:[#allocation2 + $0x4a4] ss:$52 sps:$4 sm:$0xff]  }
 0x20b   : > { %v6860_v58 = vpop.f32.mrf.mxu1  ;;  %v9127_v60 = vadd.f32 %v6795_v0, %v9010_v54 }
 0x20c   : > { %v9124_v45 = vadd.f32 %v6859_v4, %v9013_v6  ;;  %v6797_v33 = vpop.f32.mrf.mxu0 }
 0x20d   : > { %v6861_v32 = vpop.f32.mrf.mxu1  ;;  %v6798_v44 = vadd.f32 %v6797_v33, %v6796_v25 }
 0x20e   : > { %v6862_v29 = vadd.f32 %v6861_v32, %v6860_v58  ;;  %v6799_v34 = vpop.f32.mrf.mxu0  ;;  %7210 = vmatmul.mubr.msk.bf16.gmra.mxu0 %vm437_vm0, %v7621_v21 }
 0x20f   : > { %v6863_v59 = vpop.f32.mrf.mxu1  ;;  %5462 = vmatmul.mubr.bf16.gmra.mxu1 %v7617_v50  ;;  %v9134_v6 = vadd.f32 %v6798_v44, %v9017_v39  ;;  %7213 = vmatprep.mubr.msk.bf16.mxu0 %vm437_vm0, %v7625_v11  ;;  %v7627_v11 = vld [vmem:[#allocation2 + $0x4a0] ss:$52 sps:$4 sm:$0xff]  }
 0x210   : > { %v9130_v13 = vadd.f32 %v6862_v29, %v9020_v37  ;;  %5469 = vmatprep.mubr.bf16.mxu1 %v7624_v51  ;;  %v6800_v10 = vpop.f32.mrf.mxu0  ;;  %v7626_v37 = vld [vmem:[#allocation2 + $0x238] ss:$52 sps:$4 sm:$0xff]   ;;  %v7635_v51 = vld [vmem:[#allocation2 + $0x370] ss:$52 sps:$4 sm:$0xff]  }
 0x211   : > { %v6864_v54 = vpop.f32.mrf.mxu1  ;;  %v6801_v56 = vadd.f32 %v6800_v10, %v6799_v34 }
 0x212   : > { %v6865_v62 = vadd.f32 %v6864_v54, %v6863_v59  ;;  %v6802_v1 = vpop.f32.mrf.mxu0  ;;  %v7634_v59 = vld [vmem:[#allocation2 + $0x50c] ss:$52 sps:$4 sm:$0xff]  }
 0x213   : > { %v6866_v38 = vpop.f32.mrf.mxu1  ;;  %v9141_v14 = vadd.f32 %v6801_v56, %v9024_v27 }
 0x214   : > { %v9138_v41 = vadd.f32 %v6865_v62, %v9027_v36  ;;  %v6803_v39 = vpop.f32.mrf.mxu0 }
 0x215   : > { %v6867_v48 = vpop.f32.mrf.mxu1  ;;  %v6804_v42 = vadd.f32 %v6803_v39, %v6802_v1 }
 0x216   : > { %v6868_v43 = vadd.f32 %v6867_v48, %v6866_v38  ;;  %v6805_v4 = vpop.f32.mrf.mxu0  ;;  %7214 = vmatmul.mubr.msk.bf16.gmra.mxu0 %vm437_vm0, %v7626_v37 }
 0x217   : > { %v6869_v47 = vpop.f32.mrf.mxu1  ;;  %5470 = vmatmul.mubr.bf16.gmra.mxu1 %v7622_v53  ;;  %v9148_v36 = vadd.f32 %v6804_v42, %v9031_v9  ;;  %7217 = vmatprep.mubr.msk.bf16.mxu0 %vm437_vm0, %v7630_v31  ;;  %v7632_v31 = vld [vmem:[#allocation2 + $0x508] ss:$52 sps:$4 sm:$0xff]  }
 0x218   : > { %v9144_v19 = vadd.f32 %v6868_v43, %v9034_v35  ;;  %5477 = vmatprep.mubr.bf16.mxu1 %v7629_v3  ;;  %v6806_v0 = vpop.f32.mrf.mxu0  ;;  %v7631_v35 = vld [vmem:[#allocation2 + $0x308] ss:$52 sps:$4 sm:$0xff]   ;;  %v7640_v3 = vld [vmem:[#allocation2 + $0x440] ss:$52 sps:$4 sm:$0xff]  }
 0x219   : > { %v6870_v27 = vpop.f32.mrf.mxu1  ;;  %v6807_v25 = vadd.f32 %v6806_v0, %v6805_v4 }
 0x21a   : > { %v6871_v58 = vadd.f32 %v6870_v27, %v6869_v47  ;;  %v6808_v32 = vpop.f32.mrf.mxu0  ;;  %v7639_v47 = vld [vmem:[#allocation2 + $0x574] ss:$52 sps:$4 sm:$0xff]  }
 0x21b   : > { %v6872_v21 = vpop.f32.mrf.mxu1  ;;  %v9155_v33 = vadd.f32 %v6807_v25, %v9038_v5 }
 0x21c   : > { %v9152_v50 = vadd.f32 %v6871_v58, %v9041_v20  ;;  %v6809_v9 = vpop.f32.mrf.mxu0 }
 0x21d   : > { %v6873_v29 = vpop.f32.mrf.mxu1  ;;  %v6810_v34 = vadd.f32 %v6809_v9, %v6808_v32 }
 0x21e   : > { %v6874_v44 = vadd.f32 %v6873_v29, %v6872_v21  ;;  %v6811_v62 = vpop.f32.mrf.mxu0  ;;  %7218 = vmatmul.mubr.msk.bf16.gmra.mxu0 %vm437_vm0, %v7631_v35 }
 0x21f   : > { %v6875_v54 = vpop.f32.mrf.mxu1  ;;  %5478 = vmatmul.mubr.bf16.gmra.mxu1 %v7627_v11  ;;  %v9162_v20 = vadd.f32 %v6810_v34, %v9045_v28  ;;  %7221 = vmatprep.mubr.msk.bf16.mxu0 %vm437_vm0, %v7635_v51  ;;  %v7637_v51 = vld [vmem:[#allocation2 + $0x570] ss:$52 sps:$4 sm:$0xff]  }
 0x220   : > { %v9158_v10 = vadd.f32 %v6874_v44, %v9048_v16  ;;  %5485 = vmatprep.mubr.bf16.mxu1 %v7634_v59  ;;  %v6812_v56 = vpop.f32.mrf.mxu0  ;;  %v7636_v16 = vld [vmem:[#allocation2 + $0x3d8] ss:$52 sps:$4 sm:$0xff]   ;;  %v7645_v59 = vld [vmem:[#allocation2 + $0x510] ss:$52 sps:$4 sm:$0xff]  }
 0x221   : > { %v6876_v5 = vpop.f32.mrf.mxu1  ;;  %v6813_v1 = vadd.f32 %v6812_v56, %v6811_v62 }
 0x222   : > { %v6877_v38 = vadd.f32 %v6876_v5, %v6875_v54  ;;  %v6814_v48 = vpop.f32.mrf.mxu0  ;;  %v7644_v54 = vld [vmem:[#allocation2 + $0x5dc] ss:$52 sps:$4 sm:$0xff]  }
 0x223   : > { %v6878_v37 = vpop.f32.mrf.mxu1  ;;  %v9169_v39 = vadd.f32 %v6813_v1, %v9052_v7 }
 0x224   : > { %v9166_v53 = vadd.f32 %v6877_v38, %v9055_v30  ;;  %v6815_v28 = vpop.f32.mrf.mxu0 }
 0x225   : > { %v6879_v43 = vpop.f32.mrf.mxu1  ;;  %v6816_v4 = vadd.f32 %v6815_v28, %v6814_v48 }
 0x226   : > { %v6880_v42 = vadd.f32 %v6879_v43, %v6878_v37  ;;  %v6817_v58 = vpop.f32.mrf.mxu0  ;;  %7222 = vmatmul.mubr.msk.bf16.gmra.mxu0 %vm437_vm0, %v7636_v16 }
 0x227   : > { %v6881_v27 = vpop.f32.mrf.mxu1  ;;  %5486 = vmatmul.mubr.bf16.gmra.mxu1 %v7632_v31  ;;  %v9176_v30 = vadd.f32 %v6816_v4, %v9059_v26  ;;  %7225 = vmatprep.mubr.msk.bf16.mxu0 %vm437_vm0, %v7640_v3  ;;  %v7642_v3 = vld [vmem:[#allocation2 + $0x5d8] ss:$52 sps:$4 sm:$0xff]  }
 0x228   : > { %v9172_v0 = vadd.f32 %v6880_v42, %v9062_v23  ;;  %5493 = vmatprep.mubr.bf16.mxu1 %v7639_v47  ;;  %v6818_v25 = vpop.f32.mrf.mxu0  ;;  %v7641_v23 = vld [vmem:[#allocation2 + $0x4a8] ss:$52 sps:$4 sm:$0xff]   ;;  %v7650_v47 = vld [vmem:[#allocation2 + $0x5e0] ss:$52 sps:$4 sm:$0xff]  }
 0x229   : > { %v6882_v7 = vpop.f32.mrf.mxu1  ;;  %v6819_v32 = vadd.f32 %v6818_v25, %v6817_v58 }
 0x22a   : > { %v6883_v21 = vadd.f32 %v6882_v7, %v6881_v27  ;;  %v6820_v29 = vpop.f32.mrf.mxu0  ;;  %v7649_v27 = vld [vmem:[#allocation2 + $0x644] ss:$52 sps:$4 sm:$0xff]  }
 0x22b   : > { %v6884_v35 = vpop.f32.mrf.mxu1  ;;  %v9183_v9 = vadd.f32 %v6819_v32, %v9066_v46 }
 0x22c   : > { %v9180_v11 = vadd.f32 %v6883_v21, %v9069_v52  ;;  %v6821_v26 = vpop.f32.mrf.mxu0 }
 0x22d   : > { %v6885_v44 = vpop.f32.mrf.mxu1  ;;  %v6822_v62 = vadd.f32 %v6821_v26, %v6820_v29 }
 0x22e   : > { %v6886_v34 = vadd.f32 %v6885_v44, %v6884_v35  ;;  %v6823_v38 = vpop.f32.mrf.mxu0  ;;  %7226 = vmatmul.mubr.msk.bf16.gmra.mxu0 %vm437_vm0, %v7641_v23 }
 0x22f   : > { %v6887_v5 = vpop.f32.mrf.mxu1  ;;  %5494 = vmatmul.mubr.bf16.gmra.mxu1 %v7637_v51  ;;  %v9190_v52 = vadd.f32 %v6822_v62, %v9073_v57  ;;  %7229 = vmatprep.mubr.msk.bf16.mxu0 %vm437_vm0, %v7645_v59  ;;  %v7647_v59 = vld [vmem:[#allocation2 + $0x640] ss:$52 sps:$4 sm:$0xff]  }
 0x230   : > { %v9186_v56 = vadd.f32 %v6886_v34, %v9076_v49  ;;  %5501 = vmatprep.mubr.bf16.mxu1 %v7644_v54  ;;  %v6824_v1 = vpop.f32.mrf.mxu0  ;;  %v7646_v49 = vld [vmem:[#allocation2 + $0x578] ss:$52 sps:$4 sm:$0xff]  }
 0x231   : > { %v6888_v46 = vpop.f32.mrf.mxu1  ;;  %v6825_v48 = vadd.f32 %v6824_v1, %v6823_v38 }
 0x232   : > { %v6889_v37 = vadd.f32 %v6888_v46, %v6887_v5  ;;  %v6826_v43 = vpop.f32.mrf.mxu0 }
 0x233   : > { %v6890_v16 = vpop.f32.mrf.mxu1  ;;  %v9197_v28 = vadd.f32 %v6825_v48, %v9080_v2 }
 0x234   : > { %v9194_v31 = vadd.f32 %v6889_v37, %v9083_v22  ;;  %v6827_v57 = vpop.f32.mrf.mxu0 }
 0x235   : > { %v6891_v42 = vpop.f32.mrf.mxu1  ;;  %v6828_v58 = vadd.f32 %v6827_v57, %v6826_v43 }
 0x236   : > { %v6892_v4 = vadd.f32 %v6891_v42, %v6890_v16  ;;  %v6829_v21 = vpop.f32.mrf.mxu0  ;;  %7230 = vmatmul.mubr.msk.bf16.gmra.mxu0 %vm437_vm0, %v7646_v49 }
 0x237   : > { %v6893_v7 = vpop.f32.mrf.mxu1  ;;  %5502 = vmatmul.mubr.bf16.gmra.mxu1 %v7642_v3  ;;  %v9204_v22 = vadd.f32 %v6828_v58, %v9087_v15  ;;  %7233 = vmatprep.mubr.msk.bf16.mxu0 %vm437_vm0, %v7650_v47 }
 0x238   : > { %v9200_v25 = vadd.f32 %v6892_v4, %v9090_v17  ;;  %5509 = vmatprep.mubr.bf16.mxu1 %v7649_v27  ;;  %v6830_v32 = vpop.f32.mrf.mxu0  ;;  %v7651_v17 = vld [vmem:[#allocation2 + $0x648] ss:$52 sps:$4 sm:$0xff]  }
 0x239   : > { %v6894_v2 = vpop.f32.mrf.mxu1  ;;  %v6831_v29 = vadd.f32 %v6830_v32, %v6829_v21 }
 0x23a   : > { %v6895_v35 = vadd.f32 %v6894_v2, %v6893_v7  ;;  %v6832_v44 = vpop.f32.mrf.mxu0 }
 0x23b   : > { %v6896_v23 = vpop.f32.mrf.mxu1  ;;  %v9211_v26 = vadd.f32 %v6831_v29, %v9094_v12 }
 0x23c   : > { %v9208_v51 = vadd.f32 %v6895_v35, %v9097_v63  ;;  %v6833_v54 = vpop.f32.mrf.mxu0 }
 0x23d   : > { %v6897_v34 = vpop.f32.mrf.mxu1  ;;  %v6834_v62 = vadd.f32 %v6833_v54, %v6832_v44 }
 0x23e   : > { %v6898_v15 = vadd.f32 %v6897_v34, %v6896_v23  ;;  %v6835_v46 = vpop.f32.mrf.mxu0  ;;  %7234 = vmatmul.mubr.msk.bf16.gmra.mxu0 %vm437_vm0, %v7651_v17 }
 0x23f   : > { %v6899_v5 = vpop.f32.mrf.mxu1  ;;  %5510 = vmatmul.mubr.bf16.gmra.mxu1 %v7647_v59  ;;  %v9218_v63 = vadd.f32 %v6834_v62, %v9101_v55 }
 0x240   : > { %v9214_v38 = vadd.f32 %v6898_v15, %v9104_v61  ;;  %v6836_v37 = vpop.f32.mrf.mxu0 }
 0x241   : > { %v6900_v1 = vpop.f32.mrf.mxu1  ;;  %v6837_v12 = vadd.f32 %v6836_v37, %v6835_v46 }
 0x242   : > { %v6901_v48 = vadd.f32 %v6900_v1, %v6899_v5  ;;  %v6838_v49 = vpop.f32.mrf.mxu0 }
 0x243   : > { %v6902_v16 = vpop.f32.mrf.mxu1  ;;  %v9224_v3 = vadd.f32 %v6837_v12, %v9109_v8 }
 0x244   : > { %v9221_v43 = vadd.f32 %v6901_v48, %v9112_v40  ;;  %v6839_v42 = vpop.f32.mrf.mxu0 }
 0x245   : > { %v6903_v61 = vpop.f32.mrf.mxu1  ;;  %v6840_v57 = vadd.f32 %v6839_v42, %v6838_v49 }
 0x246   : > { %v6904_v47 = vadd.f32 %v6903_v61, %v6902_v16  ;;  %v6969_v27 = vpop.f32.mrf.mxu0 }
 0x247   : > { %v6905_v4 = vpop.f32.mrf.mxu1  ;;  %v9230_v58 = vadd.f32 %v6840_v57, %v9116_v18 }
 0x248   : > { %v9227_v55 = vadd.f32 %v6904_v47, %v9120_v24  ;;  %v6970_v40 = vpop.f32.mrf.mxu0 }
 0x249   : > { %v6906_v7 = vpop.f32.mrf.mxu1  ;;  %v6971_v2 = vadd.f32 %v6970_v40, %v6969_v27 }
 0x24a   : > { %v6907_v21 = vadd.f32 %v6906_v7, %v6905_v4  ;;  %v6972_v35 = vpop.f32.mrf.mxu0 }
 0x24b   : > { %v6908_v32 = vpop.f32.mrf.mxu1  ;;  %v9236_v29 = vadd.f32 %v6971_v2, %v9124_v45 }
 0x24c   : > { %v9233_v8 = vadd.f32 %v6907_v21, %v9127_v60  ;;  %v6973_v24 = vpop.f32.mrf.mxu0 }
 0x24d   : > { %v6909_v23 = vpop.f32.mrf.mxu1  ;;  %v6974_v17 = vadd.f32 %v6973_v24, %v6972_v35 }
 0x24e   : > { %v6910_v44 = vadd.f32 %v6909_v23, %v6908_v32  ;;  %v6975_v34 = vpop.f32.mrf.mxu0 }
 0x24f   : > { %v6911_v59 = vpop.f32.mrf.mxu1  ;;  %v9242_v54 = vadd.f32 %v6974_v17, %v9130_v13 }
 0x250   : > { %v9239_v18 = vadd.f32 %v6910_v44, %v9134_v6  ;;  %v6976_v60 = vpop.f32.mrf.mxu0 }
 0x251   : > { %v6912_v15 = vpop.f32.mrf.mxu1  ;;  %v6977_v5 = vadd.f32 %v6976_v60, %v6975_v34 }
 0x252   : > { %v6913_v62 = vadd.f32 %v6912_v15, %v6911_v59  ;;  %v6978_v1 = vpop.f32.mrf.mxu0 }
 0x253   : > { %v6914_v46 = vpop.f32.mrf.mxu1  ;;  %v9248_v37 = vadd.f32 %v6977_v5, %v9138_v41 }
 0x254   : > { %v9245_v45 = vadd.f32 %v6913_v62, %v9141_v14  ;;  %v6979_v6 = vpop.f32.mrf.mxu0 }
 0x255   : > { %v6915_v48 = vpop.f32.mrf.mxu1  ;;  %v6980_v16 = vadd.f32 %v6979_v6, %v6978_v1 }
 0x256   : > { %v6916_v12 = vadd.f32 %v6915_v48, %v6914_v46  ;;  %v6981_v61 = vpop.f32.mrf.mxu0 }
 0x257   : > { %v6917_v49 = vpop.f32.mrf.mxu1  ;;  %v9254_v42 = vadd.f32 %v6980_v16, %v9144_v19 }
 0x258   : > { %v9251_v13 = vadd.f32 %v6916_v12, %v9148_v36  ;;  %v6982_v14 = vpop.f32.mrf.mxu0 }
 0x259   : > { %v6918_v47 = vpop.f32.mrf.mxu1  ;;  %v6983_v4 = vadd.f32 %v6982_v14, %v6981_v61 }
 0x25a   : > { %v6919_v57 = vadd.f32 %v6918_v47, %v6917_v49  ;;  %v6984_v7 = vpop.f32.mrf.mxu0 }
 0x25b   : > { %v6920_v27 = vpop.f32.mrf.mxu1  ;;  %v9260_v21 = vadd.f32 %v6983_v4, %v9152_v50 }
 0x25c   : > { %v9257_v41 = vadd.f32 %v6919_v57, %v9155_v33  ;;  %v6985_v36 = vpop.f32.mrf.mxu0 }
 0x25d   : > { %v6921_v40 = vpop.f32.mrf.mxu1  ;;  %v6986_v32 = vadd.f32 %v6985_v36, %v6984_v7 }
 0x25e   : > { %v6922_v2 = vadd.f32 %v6921_v40, %v6920_v27  ;;  %v6987_v23 = vpop.f32.mrf.mxu0 }
 0x25f   : > { %v6923_v35 = vpop.f32.mrf.mxu1  ;;  %v9266_v44 = vadd.f32 %v6986_v32, %v9158_v10 }
 0x260   : > { %v9263_v19 = vadd.f32 %v6922_v2, %v9162_v20  ;;  %v6988_v33 = vpop.f32.mrf.mxu0 }
 0x261   : > { %v6924_v24 = vpop.f32.mrf.mxu1  ;;  %v6989_v59 = vadd.f32 %v6988_v33, %v6987_v23 }
 0x262   : > { %v6925_v17 = vadd.f32 %v6924_v24, %v6923_v35  ;;  %v6990_v15 = vpop.f32.mrf.mxu0 }
 0x263   : > { %v6926_v34 = vpop.f32.mrf.mxu1  ;;  %v9272_v62 = vadd.f32 %v6989_v59, %v9166_v53 }
 0x264   : > { %v9269_v50 = vadd.f32 %v6925_v17, %v9169_v39  ;;  %v6991_v20 = vpop.f32.mrf.mxu0 }
 0x265   : > { %v6927_v60 = vpop.f32.mrf.mxu1  ;;  %v6992_v46 = vadd.f32 %v6991_v20, %v6990_v15 }
 0x266   : > { %v6928_v5 = vadd.f32 %v6927_v60, %v6926_v34  ;;  %v6993_v48 = vpop.f32.mrf.mxu0 }
 0x267   : > { %v6929_v1 = vpop.f32.mrf.mxu1  ;;  %v9278_v12 = vadd.f32 %v6992_v46, %v9172_v0 }
 0x268   : > { %v9275_v10 = vadd.f32 %v6928_v5, %v9176_v30  ;;  %v6994_v39 = vpop.f32.mrf.mxu0 }
 0x269   : > { %v6930_v6 = vpop.f32.mrf.mxu1  ;;  %v6995_v49 = vadd.f32 %v6994_v39, %v6993_v48 }
 0x26a   : > { %v6931_v16 = vadd.f32 %v6930_v6, %v6929_v1  ;;  %v6996_v47 = vpop.f32.mrf.mxu0 }
 0x26b   : > { %v6932_v61 = vpop.f32.mrf.mxu1  ;;  %v9284_v57 = vadd.f32 %v6995_v49, %v9180_v11 }
 0x26c   : > { %v9281_v53 = vadd.f32 %v6931_v16, %v9183_v9  ;;  %v6997_v30 = vpop.f32.mrf.mxu0 }
 0x26d   : > { %v6933_v14 = vpop.f32.mrf.mxu1  ;;  %v6998_v27 = vadd.f32 %v6997_v30, %v6996_v47 }
 0x26e   : > { %v6934_v4 = vadd.f32 %v6933_v14, %v6932_v61  ;;  %v6999_v40 = vpop.f32.mrf.mxu0 }
 0x26f   : > { %v6935_v7 = vpop.f32.mrf.mxu1  ;;  %v9290_v2 = vadd.f32 %v6998_v27, %v9186_v56 }
 0x270   : > { %v9287_v0 = vadd.f32 %v6934_v4, %v9190_v52  ;;  %v7000_v9 = vpop.f32.mrf.mxu0 }
 0x271   : > { %v6936_v36 = vpop.f32.mrf.mxu1  ;;  %v7001_v35 = vadd.f32 %v7000_v9, %v6999_v40 }
 0x272   : > { %v6937_v32 = vadd.f32 %v6936_v36, %v6935_v7  ;;  %v7002_v24 = vpop.f32.mrf.mxu0 }
 0x273   : > { %v6938_v23 = vpop.f32.mrf.mxu1  ;;  %v9296_v17 = vadd.f32 %v7001_v35, %v9194_v31 }
 0x274   : > { %v9293_v11 = vadd.f32 %v6937_v32, %v9197_v28  ;;  %v7003_v52 = vpop.f32.mrf.mxu0 }
 0x275   : > { %v6939_v33 = vpop.f32.mrf.mxu1  ;;  %v7004_v34 = vadd.f32 %v7003_v52, %v7002_v24 }
 0x276   : > { %v6940_v59 = vadd.f32 %v6939_v33, %v6938_v23  ;;  %v7005_v60 = vpop.f32.mrf.mxu0 }
 0x277   : > { %v6941_v15 = vpop.f32.mrf.mxu1  ;;  %v9302_v5 = vadd.f32 %v7004_v34, %v9200_v25 }
 0x278   : > { %v9299_v56 = vadd.f32 %v6940_v59, %v9204_v22  ;;  %v7006_v28 = vpop.f32.mrf.mxu0 }
 0x279   : > { %v6942_v20 = vpop.f32.mrf.mxu1  ;;  %v7007_v1 = vadd.f32 %v7006_v28, %v7005_v60 }
 0x27a   : > { %v6943_v46 = vadd.f32 %v6942_v20, %v6941_v15  ;;  %v7008_v6 = vpop.f32.mrf.mxu0 }
 0x27b   : > { %v6944_v48 = vpop.f32.mrf.mxu1  ;;  %v9308_v16 = vadd.f32 %v7007_v1, %v9208_v51 }
 0x27c   : > { %v9305_v31 = vadd.f32 %v6943_v46, %v9211_v26  ;;  %v7009_v22 = vpop.f32.mrf.mxu0 }
 0x27d   : > { %v6945_v39 = vpop.f32.mrf.mxu1  ;;  %v7010_v61 = vadd.f32 %v7009_v22, %v7008_v6 }
 0x27e   : > { %v6946_v49 = vadd.f32 %v6945_v39, %v6944_v48  ;;  %v7011_v14 = vpop.f32.mrf.mxu0 }
 0x27f   : > { %v6947_v47 = vpop.f32.mrf.mxu1  ;;  %v9314_v4 = vadd.f32 %v7010_v61, %v9214_v38 }
 0x280   : > { %v9311_v25 = vadd.f32 %v6946_v49, %v9218_v63  ;;  %v7012_v26 = vpop.f32.mrf.mxu0 }
 0x281   : > { %v6948_v30 = vpop.f32.mrf.mxu1  ;;  %v7013_v7 = vadd.f32 %v7012_v26, %v7011_v14 }
 0x282   : > { %v6949_v27 = vadd.f32 %v6948_v30, %v6947_v47  ;;  %v7014_v36 = vpop.f32.mrf.mxu0 }
 0x283   : > { %v6950_v40 = vpop.f32.mrf.mxu1  ;;  %v9320_v32 = vadd.f32 %v7013_v7, %v9221_v43 }
 0x284   : > { %v9317_v51 = vadd.f32 %v6949_v27, %v9224_v3  ;;  %v7015_v63 = vpop.f32.mrf.mxu0 }
 0x285   : > { %v6951_v9 = vpop.f32.mrf.mxu1  ;;  %v7016_v23 = vadd.f32 %v7015_v63, %v7014_v36 }
 0x286   : > { %9652 = vst [vmem:[#allocation5_spill] sm:$0xff] %v9317_v51  ;;  %v6952_v35 = vadd.f32 %v6951_v9, %v6950_v40  ;;  %v7017_v33 = vpop.f32.mrf.mxu0 }
 0x287   : > { %v9322_v24 = vpop.f32.mrf.mxu1  ;;  %v9328_v59 = vadd.f32 %v7016_v23, %v9227_v55 }
 0x288   : > { %v9325_v38 = vadd.f32 %v6952_v35, %v9230_v58  ;;  %v7018_v3 = vpop.f32.mrf.mxu0 }
 0x289   : > { %v9330_v52 = vpop.f32.mrf.mxu1  ;;  %v7019_v34 = vadd.f32 %v7018_v3, %v7017_v33 }
 0x28a   : > { %9653 = vst [vmem:[#allocation6_spill] sm:$0xff] %v9325_v38  ;;  %v7020_v43 = vpop.f32.mrf.mxu0 }
 0x28b   : > { %v9332_v15 = vpop.f32.mrf.mxu1  ;;  %v9335_v60 = vadd.f32 %v7019_v34, %v9233_v8 }
 0x28c   : > { %v7021_v46 = vpop.f32.mrf.mxu0 }
 0x28d   : > { %v9337_v20 = vpop.f32.mrf.mxu1  ;;  %v7022_v28 = vadd.f32 %v7021_v46, %v7020_v43 }
 0x28e   : > { %v7023_v1 = vpop.f32.mrf.mxu0 }
 0x28f   : > { %v9339_v58 = vpop.f32.mrf.mxu1  ;;  %v9342_v55 = vadd.f32 %v7022_v28, %v9239_v18 }
 0x290   : > { %v7024_v6 = vpop.f32.mrf.mxu0 }
 0x291   : > { %v9344_v48 = vpop.f32.mrf.mxu1  ;;  %v7025_v39 = vadd.f32 %v7024_v6, %v7023_v1 }
 0x292   : > { %v7026_v22 = vpop.f32.mrf.mxu0 }
 0x293   : > { %v9346_v49 = vpop.f32.mrf.mxu1  ;;  %v9349_v8 = vadd.f32 %v7025_v39, %v9245_v45 }
 0x294   : > { %v7027_v47 = vpop.f32.mrf.mxu0 }
 0x295   : > { %v9351_v61 = vpop.f32.mrf.mxu1  ;;  %v7028_v14 = vadd.f32 %v7027_v47, %v7026_v22 }
 0x296   : > { %v7029_v27 = vpop.f32.mrf.mxu0 }
 0x297   : > { %v9353_v30 = vpop.f32.mrf.mxu1  ;;  %v9356_v18 = vadd.f32 %v7028_v14, %v9251_v13 }
 0x298   : > { %v7030_v7 = vpop.f32.mrf.mxu0 }
 0x299   : > { %v9358_v26 = vpop.f32.mrf.mxu1  ;;  %v7031_v40 = vadd.f32 %v7030_v7, %v7029_v27 }
 0x29a   : > { %v7032_v9 = vpop.f32.mrf.mxu0 }
 0x29b   : > { %v9360_v36 = vpop.f32.mrf.mxu1  ;;  %v9363_v45 = vadd.f32 %v7031_v40, %v9257_v41 }
 0x29c   : > { %v7033_v63 = vpop.f32.mrf.mxu0 }
 0x29d   : > { %v9365_v35 = vpop.f32.mrf.mxu1  ;;  %v7034_v23 = vadd.f32 %v7033_v63, %v7032_v9 }
 0x29e   : > { %v7035_v3 = vpop.f32.mrf.mxu0 }
 0x29f   : > { %v9367_v33 = vpop.f32.mrf.mxu1  ;;  %v9370_v13 = vadd.f32 %v7034_v23, %v9263_v19 }
 0x2a0   : > { %v7036_v43 = vpop.f32.mrf.mxu0 }
 0x2a1   : > { %9654 = vst [vmem:[#allocation7_spill] sm:$0xff] %v9370_v13  ;;  %v9372_v34 = vpop.f32.mrf.mxu1  ;;  %v7037_v46 = vadd.f32 %v7036_v43, %v7035_v3 }
 0x2a2   : > { %v7038_v1 = vpop.f32.mrf.mxu0 }
 0x2a3   : > { %v9374_v28 = vpop.f32.mrf.mxu1  ;;  %v9377_v41 = vadd.f32 %v7037_v46, %v9269_v50 }
 0x2a4   : > { %v7039_v39 = vpop.f32.mrf.mxu0 }
 0x2a5   : > { %v9379_v6 = vpop.f32.mrf.mxu1  ;;  %v7040_v22 = vadd.f32 %v7039_v39, %v7038_v1 }
 0x2a6   : > { %v7041_v14 = vpop.f32.mrf.mxu0 }
 0x2a7   : > { %v9381_v47 = vpop.f32.mrf.mxu1  ;;  %v9384_v19 = vadd.f32 %v7040_v22, %v9275_v10 }
 0x2a8   : > { %v7042_v7 = vpop.f32.mrf.mxu0 }
 0x2a9   : > { %9655 = vst [vmem:[#allocation8_spill] sm:$0xff] %v9384_v19  ;;  %v9386_v27 = vpop.f32.mrf.mxu1  ;;  %v7043_v40 = vadd.f32 %v7042_v7, %v7041_v14 }
 0x2aa   : > { %v7044_v63 = vpop.f32.mrf.mxu0 }
 0x2ab   : > { %v9388_v9 = vpop.f32.mrf.mxu1  ;;  %v9391_v50 = vadd.f32 %v7043_v40, %v9281_v53 }
 0x2ac   : > { %v7045_v3 = vpop.f32.mrf.mxu0 }
 0x2ad   : > { %9656 = vst [vmem:[#allocation9_spill] sm:$0xff] %v9391_v50  ;;  %v9393_v23 = vpop.f32.mrf.mxu1  ;;  %v7046_v43 = vadd.f32 %v7045_v3, %v7044_v63 }
 0x2ae   : > { %v7047_v1 = vpop.f32.mrf.mxu0 }
 0x2af   : > { %v9395_v46 = vpop.f32.mrf.mxu1  ;;  %v9398_v10 = vadd.f32 %v7046_v43, %v9287_v0 }
 0x2b0   : > { %v7048_v22 = vpop.f32.mrf.mxu0 }
 0x2b1   : > { %9657 = vst [vmem:[#allocation10_spill] sm:$0xff] %v9398_v10  ;;  %v9400_v39 = vpop.f32.mrf.mxu1  ;;  %v7049_v14 = vadd.f32 %v7048_v22, %v7047_v1 }
 0x2b2   : > { %v7050_v38 = vpop.f32.mrf.mxu0 }
 0x2b3   : > { %v9402_v7 = vpop.f32.mrf.mxu1  ;;  %v9405_v53 = vadd.f32 %v7049_v14, %v9293_v11 }
 0x2b4   : > { %v7051_v51 = vpop.f32.mrf.mxu0 }
 0x2b5   : > { %9658 = vst [vmem:[#allocation11_spill] sm:$0xff] %v9405_v53  ;;  %v9407_v40 = vpop.f32.mrf.mxu1  ;;  %v7052_v63 = vadd.f32 %v7051_v51, %v7050_v38 }
 0x2b6   : > { %v7053_v50 = vpop.f32.mrf.mxu0 }
 0x2b7   : > { %v9409_v3 = vpop.f32.mrf.mxu1  ;;  %v9412_v0 = vadd.f32 %v7052_v63, %v9299_v56 }
 0x2b8   : > { %v7054_v10 = vpop.f32.mrf.mxu0 }
 0x2b9   : > { %9659 = vst [vmem:[#allocation12_spill] sm:$0xff] %v9412_v0  ;;  %v9414_v43 = vpop.f32.mrf.mxu1  ;;  %v7055_v1 = vadd.f32 %v7054_v10, %v7053_v50  ;;  %v7089_v10 = vadd.f32 %v9344_v48, %v9339_v58  ;;  %v7086_v58 = vadd.f32 %v9337_v20, %v9332_v15  ;;  %v7095_v15 = vadd.f32 %v9358_v26, %v9353_v30 }
 0x2ba   : > { %v7056_v13 = vpop.f32.mrf.mxu0 }
 0x2bb   : > { %v9416_v22 = vpop.f32.mrf.mxu1  ;;  %v9419_v11 = vadd.f32 %v7055_v1, %v9305_v31 }
 0x2bc   : > { %v7057_v53 = vpop.f32.mrf.mxu0 }
 0x2bd   : > { %9660 = vst [vmem:[#allocation4_spill] sm:$0xff] %v9419_v11  ;;  %v9421_v14 = vpop.f32.mrf.mxu1  ;;  %v7058_v51 = vadd.f32 %v7057_v53, %v7056_v13  ;;  %v7083_v13 = vadd.f32 %v9330_v52, %v9322_v24 }
 0x2be   : > { %v9425_v19 = vpop.f32.mrf.mxu0 }
 0x2bf   : > { %v9423_v38 = vpop.f32.mrf.mxu1  ;;  %9661 = vst [vmem:[#allocation13_spill] sm:$0xff] %v9425_v19  ;;  %v9428_v56 = vadd.f32 %v7058_v51, %v9311_v25  ;;  %v7092_v25 = vadd.f32 %v9351_v61, %v9346_v49  ;;  %v5392_v24 = vadd.f32 %v7083_v13, %v9236_v29 }
 0x2c0   : > { %v9432_v50 = vpop.f32.mrf.mxu0 }
 0x2c1   : > { %9662 = vst [vmem:[#allocation14_spill] sm:$0xff] %v9428_v56  ;;  %v9430_v63 = vpop.f32.mrf.mxu1  ;;  %9663 = vst [vmem:[#allocation15_spill] sm:$0xff] %v9432_v50  ;;  %v5400_v56 = vadd.f32 %v7089_v10, %v9248_v37  ;;  %v5403_v49 = vadd.f32 %v7092_v25, %v9254_v42  ;;  %v5395_v37 = vadd.f32 %v7086_v58, %v9242_v54 }
 0x2c2   : > { %v9438_v1 = vpop.f32.mrf.mxu0  ;;  %v7098_v54 = vadd.f32 %v9365_v35, %v9360_v36  ;;  %v5408_v58 = vadd.f32 %v7095_v15, %v9260_v21 }
 0x2c3   : > { %v9436_v31 = vpop.f32.mrf.mxu1  ;;  %9664 = vst [vmem:[#allocation16_spill] sm:$0xff] %v9438_v1 }
 0x2c4   : > { %v9444_v11 = vpop.f32.mrf.mxu0  ;;  %v5411_v35 = vadd.f32 %v7098_v54, %v9266_v44  ;;  %v7110_v44 = vadd.f32 %v9393_v23, %v9388_v9 }
 0x2c5   : > { %v9442_v53 = vpop.f32.mrf.mxu1  ;;  %9665 = vst [vmem:[#allocation17_spill] sm:$0xff] %v9444_v11  ;;  %v7101_v11 = vadd.f32 %v9372_v34, %v9367_v33  ;;  %v7104_v33 = vadd.f32 %v9379_v6, %v9374_v28  ;;  %v7113_v28 = vadd.f32 %v9400_v39, %v9395_v46  ;;  %v7116_v46 = vadd.f32 %v9407_v40, %v9402_v7 }
 0x2c6   : > { %v7207_v48 = vpop.f32.mrf.mxu0  ;;  %v7125_v40 = vadd.f32 %v9430_v63, %v9423_v38  ;;  %v7128_v63 = vadd.f32 %v9442_v53, %v9436_v31 }
 0x2c7   : > { %v9448_v51 = vpop.f32.mrf.mxu1  ;;  %v5561_v50 = vadd.f32 %v7207_v48, %v5400_v56  ;;  %v5416_v42 = vadd.f32 %v7101_v11, %v9272_v62  ;;  %v5419_v62 = vadd.f32 %v7104_v33, %v9278_v12  ;;  %v7107_v11 = vadd.f32 %v9386_v27, %v9381_v47 }
 0x2c8   : > { %v5552_v52 = vpop.f32.mrf.mxu0  ;;  %v5432_v12 = vadd.f32 %v7113_v28, %v9296_v17  ;;  %v5435_v9 = vadd.f32 %v7116_v46, %v9302_v5 }
 0x2c9   : > { %v9453_v1 = vpop.f32.mrf.mxu1  ;;  %v5553_v19 = vadd.f32 %v5552_v52, %v5392_v24  ;;  %v5681_v20 = vmax.f32 %v5561_v50, 0.0 }
 0x2ca   : > { %v7208_v61 = vpop.f32.mrf.mxu0 }
 0x2cb   : > { %v9458_v0 = vpop.f32.mrf.mxu1  ;;  %v5679_v56 = vmax.f32 %v5553_v19, 0.0  ;;  %v5564_v10 = vadd.f32 %v7208_v61, %v5403_v49 }
 0x2cc   : > { %v5555_v29 = vpop.f32.mrf.mxu0 }
 0x2cd   : > { %v9464_v48 = vpop.f32.mrf.mxu1  ;;  %v5711_v34 = vmax.f32 %v5679_v56, %v5681_v20  ;;  %v5556_v13 = vadd.f32 %v5555_v29, %v5395_v37  ;;  %v5682_v30 = vmax.f32 %v5564_v10, 0.0 }
 0x2ce   : > { %v7211_v25 = vpop.f32.mrf.mxu0 }
 0x2cf   : > { %v9468_v24 = vpop.f32.mrf.mxu1  ;;  %5727 = vst.msk [vmem:[#allocation3] sm:$0xff] %vm437_vm0, %v5711_v34  ;;  %v5680_v26 = vmax.f32 %v5556_v13, 0.0  ;;  %v5577_v19 = vadd.f32 %v7211_v25, %v5416_v42  ;;  %v5424_v42 = vadd.f32 %v7107_v11, %v9284_v57 }
 0x2d0   : > { %v5568_v52 = vpop.f32.mrf.mxu0 }
 0x2d1   : > { %v7136_v50 = vpop.f32.mrf.mxu1  ;;  %v5712_v6 = vmax.f32 %v5680_v26, %v5682_v30  ;;  %v5569_v49 = vadd.f32 %v5568_v52, %v5408_v58  ;;  %v5685_v37 = vmax.f32 %v5577_v19, 0.0  ;;  %v5427_v30 = vadd.f32 %v7110_v44, %v9290_v2 }
 0x2d2   : > { %v7212_v36 = vpop.f32.mrf.mxu0  ;;  %v7119_v26 = vadd.f32 %v9414_v43, %v9409_v3  ;;  %v7122_v2 = vadd.f32 %v9421_v14, %v9416_v22  ;;  %v7137_v31 = vadd.f32 %v7136_v50, %v9468_v24  ;;  %v7131_v22 = vadd.f32 %v9453_v1, %v9448_v51 }
 0x2d3   : > { %v9477_v61 = vpop.f32.mrf.mxu1  ;;  %5728 = vst.msk [vmem:[#allocation3 + $0x8] sm:$0xff] %vm437_vm0, %v5712_v6  ;;  %v5683_v21 = vmax.f32 %v5569_v49, 0.0  ;;  %v5580_v15 = vadd.f32 %v7212_v36, %v5419_v62  ;;  %v5448_v49 = vadd.f32 %v7125_v40, %v9320_v32  ;;  %v5451_v32 = vadd.f32 %v7128_v63, %v9328_v59 }
 0x2d4   : > { %v5571_v56 = vpop.f32.mrf.mxu0  ;;  %v5440_v11 = vadd.f32 %v7119_v26, %v9308_v16  ;;  %v5464_v51 = vadd.f32 %v7137_v31, %v9349_v8 }
 0x2d5   : > { %v7139_v20 = vpop.f32.mrf.mxu1  ;;  %v5713_v39 = vmax.f32 %v5683_v21, %v5685_v37  ;;  %v5572_v10 = vadd.f32 %v5571_v56, %v5411_v35  ;;  %v5686_v27 = vmax.f32 %v5580_v15, 0.0  ;;  %v5443_v56 = vadd.f32 %v7122_v2, %v9314_v4 }
 0x2d6   : > { %v7215_v47 = vpop.f32.mrf.mxu0  ;;  %v7134_v4 = vadd.f32 %v9464_v48, %v9458_v0 }
 0x2d7   : > { %v9486_v29 = vpop.f32.mrf.mxu1  ;;  %5729 = vst.msk [vmem:[#allocation3 + $0x10] sm:$0xff] %vm437_vm0, %v5713_v39  ;;  %v5684_v33 = vmax.f32 %v5572_v10, 0.0  ;;  %v5593_v34 = vadd.f32 %v7215_v47, %v5432_v12  ;;  %v7140_v47 = vadd.f32 %v7139_v20, %v9477_v61 }
 0x2d8   : > { %v5584_v7 = vpop.f32.mrf.mxu0  ;;  %v5459_v26 = vadd.f32 %v7134_v4, %v9342_v55 }
 0x2d9   : > { %v9492_v13 = vpop.f32.mrf.mxu1  ;;  %v5714_v54 = vmax.f32 %v5684_v33, %v5686_v27  ;;  %v5585_v25 = vadd.f32 %v5584_v7, %v5424_v42  ;;  %v5689_v19 = vmax.f32 %v5593_v34, 0.0 }
 0x2da   : > { %v7216_v23 = vpop.f32.mrf.mxu0  ;;  %v7143_v0 = vadd.f32 %v9492_v13, %v9486_v29 }
 0x2db   : > { %v9497_v17 = vpop.f32.mrf.mxu1  ;;  %5730 = vst.msk [vmem:[#allocation3 + $0x18] sm:$0xff] %vm437_vm0, %v5714_v54  ;;  %v5687_v57 = vmax.f32 %v5585_v25, 0.0  ;;  %v5596_v58 = vadd.f32 %v7216_v23, %v5435_v9  ;;  %v5456_v54 = vadd.f32 %v7131_v22, %v9335_v60 }
 0x2dc   : > { %v5587_v38 = vpop.f32.mrf.mxu0 }
 0x2dd   : > { %v9504_v52 = vpop.f32.mrf.mxu1  ;;  %v5715_v28 = vmax.f32 %v5687_v57, %v5689_v19  ;;  %v5588_v6 = vadd.f32 %v5587_v38, %v5427_v30  ;;  %v5690_v43 = vmax.f32 %v5596_v58, 0.0  ;;  %v5467_v30 = vadd.f32 %v7140_v47, %v9356_v18  ;;  %v9669_v47 = vld [vmem:[#allocation9_spill] sm:$0xff] }
 0x2de   : > { %v7219_v3 = vpop.f32.mrf.mxu0  ;;  %v7146_v18 = vadd.f32 %v9504_v52, %v9497_v17 }
 0x2df   : > { %v7147_v5 = vpop.f32.mrf.mxu1  ;;  %5731 = vst.msk [vmem:[#allocation3 + $0x20] sm:$0xff] %vm437_vm0, %v5715_v28  ;;  %v5688_v62 = vmax.f32 %v5588_v6, 0.0  ;;  %v5609_v36 = vadd.f32 %v7219_v3, %v5448_v49  ;;  %v5472_v3 = vadd.f32 %v7143_v0, %v9363_v45 }
 0x2e0   : > { %v5600_v37 = vpop.f32.mrf.mxu0 }
 0x2e1   : > { %v7148_v35 = vpop.f32.mrf.mxu1  ;;  %v5716_v53 = vmax.f32 %v5688_v62, %v5690_v43  ;;  %v5601_v21 = vadd.f32 %v5600_v37, %v5440_v11  ;;  %v5693_v10 = vmax.f32 %v5609_v36, 0.0  ;;  %v9666_v37 = vld [vmem:[#allocation8_spill] sm:$0xff] }
 0x2e2   : > { %v7220_v14 = vpop.f32.mrf.mxu0  ;;  %v5763_v46 = vld [vmem:[#allocation3 + $0x2] ss:$4 sm:$0xff]  ;;  %v5771_v39 = vld [vmem:[#allocation3 + $0x3] ss:$4 sm:$0xff]  ;;  %v7149_v20 = vadd.f32 %v7148_v35, %v7147_v5 }
 0x2e3   : > { %v7150_v15 = vpop.f32.mrf.mxu1  ;;  %5732 = vst.msk [vmem:[#allocation3 + $0x28] sm:$0xff] %vm437_vm0, %v5716_v53  ;;  %v5691_v16 = vmax.f32 %v5601_v21, 0.0  ;;  %v5612_v12 = vadd.f32 %v7220_v14, %v5451_v32  ;;  %v5778_v24 = vmax.f32 %v5763_v46, %v5771_v39  ;;  %v9667_v21 = vld [vmem:[#allocation7_spill] sm:$0xff] }
 0x2e4   : > { %v5603_v50 = vpop.f32.mrf.mxu0  ;;  %v5480_v5 = vadd.f32 %v7149_v20, %v9377_v41  ;;  %v5475_v17 = vadd.f32 %v7146_v18, %v9667_v21  ;;  %v9671_v20 = vld [vmem:[#allocation13_spill] sm:$0xff] }
 0x2e5   : > { %v7151_v44 = vpop.f32.mrf.mxu1  ;;  %v5717_v27 = vmax.f32 %v5691_v16, %v5693_v10  ;;  %v5604_v59 = vadd.f32 %v5603_v50, %v5443_v56  ;;  %5786 = vrot.lane.b32.xlu0 %v5778_v24, %s7660_s30  ;;  %v5694_v34 = vmax.f32 %v5612_v12, 0.0 }
 0x2e6   : > { %v7223_v33 = vpop.f32.mrf.mxu0  ;;  %v7152_v38 = vadd.f32 %v7151_v44, %v7150_v15  ;;  %v9668_v44 = vld [vmem:[#allocation11_spill] sm:$0xff] }
 0x2e7   : > { %v7153_v1 = vpop.f32.mrf.mxu1  ;;  %5733 = vst.msk [vmem:[#allocation3 + $0x30] sm:$0xff] %vm437_vm0, %v5717_v27  ;;  %v5692_v42 = vmax.f32 %v5604_v59, 0.0  ;;  %v5625_v7 = vadd.f32 %v7223_v33, %v5464_v51 }
 0x2e8   : > { %v5616_v61 = vpop.f32.mrf.mxu0  ;;  %v5483_v31 = vadd.f32 %v7152_v38, %v9666_v37 }
 0x2e9   : > { %v7154_v40 = vpop.f32.mrf.mxu1  ;;  %v5718_v25 = vmax.f32 %v5692_v42, %v5694_v34  ;;  %v5617_v9 = vadd.f32 %v5616_v61, %v5456_v54  ;;  %v5697_v48 = vmax.f32 %v5625_v7, 0.0  ;;  %v9670_v54 = vld [vmem:[#allocation12_spill] sm:$0xff] }
 0x2ea   : > { %v7224_v8 = vpop.f32.mrf.mxu0  ;;  %v7155_v41 = vadd.f32 %v7154_v40, %v7153_v1 }
 0x2eb   : > { %v7156_v23 = vpop.f32.mrf.mxu1  ;;  %5734 = vst.msk [vmem:[#allocation3 + $0x38] sm:$0xff] %vm437_vm0, %v5718_v25  ;;  %v5695_v19 = vmax.f32 %v5617_v9, 0.0  ;;  %v5628_v57 = vadd.f32 %v7224_v8, %v5467_v30  ;;  %v9672_v25 = vld [vmem:[#allocation15_spill] sm:$0xff] }
 0x2ec   : > { %v5619_v60 = vpop.f32.mrf.mxu0  ;;  %v5488_v27 = vadd.f32 %v7155_v41, %v9669_v47  ;;  %v7061_v9 = vadd.f32 %v9672_v25, %v9671_v20 }
 0x2ed   : > { %v7157_v58 = vpop.f32.mrf.mxu1  ;;  %v5719_v63 = vmax.f32 %v5695_v19, %v5697_v48  ;;  %v5620_v28 = vadd.f32 %v5619_v60, %v5459_v26  ;;  %v5698_v29 = vmax.f32 %v5628_v57, 0.0  ;;  %v9673_v48 = vld [vmem:[#allocation10_spill] sm:$0xff] }
 0x2ee   : > { %v7227_v55 = vpop.f32.mrf.mxu0  ;;  %v7158_v59 = vadd.f32 %v7157_v58, %v7156_v23 }
 0x2ef   : > { %v7159_v6 = vpop.f32.mrf.mxu1  ;;  %5735 = vst.msk [vmem:[#allocation3 + $0x40] sm:$0xff] %vm437_vm0, %v5719_v63  ;;  %v5696_v13 = vmax.f32 %v5620_v28, 0.0  ;;  %v5641_v49 = vadd.f32 %v7227_v55, %v5480_v5 }
 0x2f0   : > { %v5632_v43 = vpop.f32.mrf.mxu0  ;;  %v5491_v19 = vadd.f32 %v7158_v59, %v9673_v48 }
 0x2f1   : > { %v7160_v2 = vpop.f32.mrf.mxu1  ;;  %v5720_v62 = vmax.f32 %v5696_v13, %v5698_v29  ;;  %v5633_v35 = vadd.f32 %v5632_v43, %v5472_v3  ;;  %v5701_v32 = vmax.f32 %v5641_v49, 0.0  ;;  %v9675_v13 = vld [vmem:[#allocation16_spill] sm:$0xff]  ;;  %v9676_v49 = vld [vmem:[#allocation17_spill] sm:$0xff] }
 0x2f2   : > { %v7161_v36 = vadd.f32 %v7160_v2, %v7159_v6  ;;  %v7228_v53 = vpop.f32.mrf.mxu0  ;;  %v5765_v52 = vld [vmem:[#allocation3 + $0x22] ss:$4 sm:$0xff]  ;;  %v5773_v15 = vld [vmem:[#allocation3 + $0x23] ss:$4 sm:$0xff]  ;;  %v7064_v2 = vadd.f32 %v9676_v49, %v9675_v13 }
 0x2f3   : > { %v7162_v11 = vpop.f32.mrf.mxu1  ;;  %5736 = vst.msk [vmem:[#allocation3 + $0x48] sm:$0xff] %vm437_vm0, %v5720_v62  ;;  %v5699_v22 = vmax.f32 %v5633_v35, 0.0  ;;  %v5644_v14 = vadd.f32 %v7228_v53, %v5483_v31  ;;  %v5779_v45 = vmax.f32 %v5765_v52, %v5773_v15  ;;  %v9674_v6 = vld [vmem:[#allocation5_spill] sm:$0xff]  ;;  %v9677_v62 = vld [vmem:[#allocation4_spill] sm:$0xff] }
 0x2f4   : > { %v5635_v46 = vpop.f32.mrf.mxu0  ;;  %v5496_v24 = vadd.f32 %v7161_v36, %v9668_v44  ;;  %v5351_v5 = vadd.f32 %v7061_v9, %v9674_v6 }
 0x2f5   : > { %v7163_v56 = vpop.f32.mrf.mxu1  ;;  %v5721_v39 = vmax.f32 %v5699_v22, %v5701_v32  ;;  %v5636_v16 = vadd.f32 %v5635_v46, %v5475_v17  ;;  %5788 = vrot.lane.b32.xlu1 %v5779_v45, %s7660_s30  ;;  %v5702_v1 = vmax.f32 %v5644_v14, 0.0  ;;  %v9678_v32 = vld [vmem:[#allocation6_spill] sm:$0xff] }
 0x2f6   : > { %v7164_v10 = vadd.f32 %v7163_v56, %v7162_v11  ;;  %v7231_v50 = vpop.f32.mrf.mxu0  ;;  %v5354_v22 = vadd.f32 %v7064_v2, %v9678_v32  ;;  %v9679_v45 = vld [vmem:[#allocation14_spill] sm:$0xff] }
 0x2f7   : > { %v7165_v12 = vpop.f32.mrf.mxu1  ;;  %5737 = vst.msk [vmem:[#allocation3 + $0x50] sm:$0xff] %vm437_vm0, %v5721_v39  ;;  %v5700_v51 = vmax.f32 %v5636_v16, 0.0  ;;  %v5657_v4 = vadd.f32 %v7231_v50, %v5496_v24 }
 0x2f8   : > { %v5648_v34 = vpop.f32.mrf.mxu0  ;;  %v5499_v61 = vadd.f32 %v7164_v10, %v9670_v54  ;;  %v5745_v54 = vld [vmem:[#allocation3 + $0x20] ss:$4 sm:$0xff] }
 0x2f9   : > { %v7166_v33 = vpop.f32.mrf.mxu1  ;;  %v5722_v42 = vmax.f32 %v5700_v51, %v5702_v1  ;;  %v5649_v7 = vadd.f32 %v5648_v34, %v5488_v27  ;;  %v5705_v8 = vmax.f32 %v5657_v4, 0.0  ;;  %v5751_v34 = vld [vmem:[#allocation3 + $0x1] ss:$4 sm:$0xff] }
 0x2fa   : > { %v7232_v30 = vpop.f32.mrf.mxu0  ;;  %v7167_v57 = vadd.f32 %v7166_v33, %v7165_v12  ;;  %v5743_v33 = vld [vmem:[#allocation3] ss:$4 sm:$0xff] }
 0x2fb   : > { %v7168_v40 = vpop.f32.mrf.mxu1  ;;  %5738 = vst.msk [vmem:[#allocation3 + $0x58] sm:$0xff] %vm437_vm0, %v5722_v42  ;;  %v5703_v23 = vmax.f32 %v5649_v7, 0.0  ;;  %v5660_v26 = vadd.f32 %v7232_v30, %v5499_v61  ;;  %v5758_v42 = vmax.f32 %v5743_v33, %v5751_v34  ;;  %v5753_v61 = vld [vmem:[#allocation3 + $0x21] ss:$4 sm:$0xff] }
 0x2fc   : > { %v5651_v58 = vpop.f32.mrf.mxu0  ;;  %v5504_v36 = vadd.f32 %v7167_v57, %v9677_v62  ;;  %v5759_v20 = vmax.f32 %v5745_v54, %v5753_v61 }
 0x2fd   : > { %v7169_v0 = vpop.f32.mrf.mxu1  ;;  %v5723_v60 = vmax.f32 %v5703_v23, %v5705_v8  ;;  %v5652_v38 = vadd.f32 %v5651_v58, %v5491_v19  ;;  %v5706_v18 = vmax.f32 %v5660_v26, 0.0 }
 0x2fe   : > { %v7235_v28 = vpop.f32.mrf.mxu0  ;;  %v7170_v3 = vadd.f32 %v7169_v0, %v7168_v40 }
 0x2ff   : > { %v7171_v63 = vpop.f32.mrf.mxu1  ;;  %5739 = vst.msk [vmem:[#allocation3 + $0x60] sm:$0xff] %vm437_vm0, %v5723_v60  ;;  %v5704_v55 = vmax.f32 %v5652_v38, 0.0 }
 0x300   : > { %v5664_v35 = vpop.f32.mrf.mxu0  ;;  %v5507_v46 = vadd.f32 %v7170_v3, %v9679_v45 }
 0x301   : > { %v7172_v29 = vpop.f32.mrf.mxu1  ;;  %v5724_v11 = vmax.f32 %v5704_v55, %v5706_v18  ;;  %v5665_v41 = vadd.f32 %v5664_v35, %v5504_v36 }
 0x302   : > { %v7173_v43 = vadd.f32 %v7172_v29, %v7171_v63  ;;  %v7236_v53 = vpop.f32.mrf.mxu0  ;;  %v5767_v21 = vld [vmem:[#allocation3 + $0x42] ss:$4 sm:$0xff]  ;;  %v5775_v17 = vld [vmem:[#allocation3 + $0x43] ss:$4 sm:$0xff]  ;;  %v5747_v30 = vld [vmem:[#allocation3 + $0x40] ss:$4 sm:$0xff] }
 0x303   : > { %v7174_v37 = vpop.f32.mrf.mxu1  ;;  %5740 = vst.msk [vmem:[#allocation3 + $0x68] sm:$0xff] %vm437_vm0, %v5724_v11  ;;  %v5780_v15 = vmax.f32 %v5767_v21, %v5775_v17  ;;  %v5707_v10 = vmax.f32 %v5665_v41, 0.0  ;;  %v5755_v8 = vld [vmem:[#allocation3 + $0x41] ss:$4 sm:$0xff] }
 0x304   : > { %v5512_v31 = vadd.f32 %v7173_v43, %v5351_v5  ;;  %v5667_v39 = vpop.f32.mrf.mxu0  ;;  %v5760_v23 = vmax.f32 %v5747_v30, %v5755_v8 }
 0x305   : > { %v7175_v52 = vpop.f32.mrf.mxu1  ;;  %5790 = vrot.lane.b32.xlu0 %v5780_v15, %s7660_s30  ;;  %v5668_v44 = vadd.f32 %v5667_v39, %v5507_v46 }
 0x306   : > { %v5673_v14 = vadd.f32 %v7235_v28, %v5512_v31  ;;  %v7176_v56 = vadd.f32 %v7175_v52, %v7174_v37 }
 0x307   : > { %v5708_v47 = vmax.f32 %v5668_v44, 0.0 }
 0x308   : > { %v5709_v16 = vmax.f32 %v5673_v14, 0.0  ;;  %v5515_v12 = vadd.f32 %v7176_v56, %v5354_v22 }
 0x30a   : > { %v5725_v24 = vmax.f32 %v5707_v10, %v5709_v16  ;;  %v5676_v50 = vadd.f32 %v7236_v53, %v5515_v12 }
 0x30c   : > { %5741 = vst.msk [vmem:[#allocation3 + $0x70] sm:$0xff] %vm437_vm0, %v5725_v24  ;;  %v5710_v27 = vmax.f32 %v5676_v50, 0.0 }
 0x30e   : > { %v5726_v59 = vmax.f32 %v5708_v47, %v5710_v27 }
 0x310   : > { %5742 = vst.msk [vmem:[#allocation3 + $0x78] sm:$0xff] %vm437_vm0, %v5726_v59 }
 0x317   : > { %v5769_v1 = vld [vmem:[#allocation3 + $0x62] ss:$4 sm:$0xff]  ;;  %v5777_v51 = vld [vmem:[#allocation3 + $0x63] ss:$4 sm:$0xff]  ;;  %v5749_v48 = vld [vmem:[#allocation3 + $0x60] ss:$4 sm:$0xff] }
 0x318   : > { %v5781_v4 = vmax.f32 %v5769_v1, %v5777_v51  ;;  %v5757_v19 = vld [vmem:[#allocation3 + $0x61] ss:$4 sm:$0xff] }
 0x319   : > { %v5761_v57 = vmax.f32 %v5749_v48, %v5757_v19 }
 0x31a   : > { %5792 = vrot.lane.b32.xlu1 %v5781_v4, %s7660_s30 }
 0x357   : > { %v5787_v7 = vpop.permute.xlu0 %5786 }
 0x358   : > { %v5798_v40 = vsel %vm437_vm0, %v5758_v42, %v5787_v7 }
 0x359   : > { %5802 = vst [vmem:[%s170_s14] sm:$0xff] %v5798_v40 }
 0x367   : > { %v5789_v25 = vpop.permute.xlu1 %5788 }
 0x368   : > { %v5799_v9 = vsel %vm437_vm0, %v5759_v20, %v5789_v25 }
 0x369   : > { %5803 = vst [vmem:[%s170_s14 + $0x8] sm:$0xff] %v5799_v9 }
 0x377   : > { %v5791_v26 = vpop.permute.xlu0 %5790 }
 0x378   : > { %v5800_v0 = vsel %vm437_vm0, %v5760_v23, %v5791_v26 }
 0x379   : > { %5804 = vst [vmem:[%s170_s14 + $0x10] sm:$0xff] %v5800_v0 }
 0x38c   : > { %v5793_v58 = vpop.permute.xlu1 %5792 }
 0x38d   : > { %v5801_v60 = vsel %vm437_vm0, %v5761_v57, %v5793_v58 }
 0x38e   : > { %5805 = vst [vmem:[%s170_s14 + $0x18] sm:$0xff] %v5801_v60 }
 0x38f PF: > { %s13_s12 = sadd.s32 1, %s7658_s12  }
 0x390   : > { %p10_p4 = scmp.ge.s32.totalorder %s13_s12, 4  }
 0x392   :  { %12 = sbr.rel (!%p10_p4) target bundleno = 1 (0x1), region = 77 }

// kernel: cifar10_net_forward.8
= control target key start
LH: loop header
LB: loop body
LE: loop exit
PB: predicated region body
PF: predicated region fallthrough
CT: control target
= control target key end

     0   :  { %v5189_v36 = vmov 1983009808   ;;  %v26_v38 = vlaneseq  ;;  %s6907_s1 = inlined_call_operand.vmem [shape: bf16[2048,512], index: 1, kind: input, shape index: {}]   ;;  %s6908_s0 = inlined_call_operand.vmem [shape: f32[2,2048], index: 0, kind: input, shape index: {}]   ;;  %s6909_s2 = inlined_call_operand.vmem [shape: f32[1,512], index: 2, kind: input, shape index: {}]   ;;  %s6910_s3 = inlined_call_operand.vmem [shape: f32[2,512], index: 3, kind: output, shape index: {}]  }
   0x1   :  { %v4416_v0 = vld [vmem:[%s6907_s1 + $0xe4] ss:$16 sps:$4 sm:$0xff]   ;;  %v4420_v2 = vld [vmem:[%s6907_s1 + $0xe0] ss:$16 sps:$4 sm:$0xff]   ;;  %v24_v37 = vunpack.c.l.s4 %v5189_v36 }
   0x2   :  { %v4418_v1 = vld [vmem:[%s6907_s1 + $0x2e4] ss:$16 sps:$4 sm:$0xff]   ;;  %3216 = vmatprep.subr.bf16.mxu0 %v4416_v0  ;;  %v4421_v3 = vld [vmem:[%s6907_s1 + $0x2e0] ss:$16 sps:$4 sm:$0xff]   ;;  %v5327_v43 = vshrl.u32 %v26_v38, 7 }
   0x3   :  { %3257 = vmatprep.subr.bf16.mxu1 %v4418_v1  ;;  %v4422_v4 = vld [vmem:[%s6907_s1 + $0xc4] ss:$16 sps:$4 sm:$0xff]   ;;  %3217 = vmatpush1.bf16.msra.mxu0 %v4420_v2  ;;  %v4426_v6 = vld [vmem:[%s6907_s1 + $0xc0] ss:$16 sps:$4 sm:$0xff]   ;;  %v25_v42 = vunpack.c.0.s8 %v24_v37 }
   0x4   :  { %3258 = vmatpush1.bf16.msra.mxu1 %v4421_v3  ;;  %v4424_v5 = vld [vmem:[%s6907_s1 + $0x2c4] ss:$16 sps:$4 sm:$0xff]   ;;  %3218 = vmatprep.subr.bf16.mxu0 %v4422_v4  ;;  %v4427_v7 = vld [vmem:[%s6907_s1 + $0x2c0] ss:$16 sps:$4 sm:$0xff]  }
   0x5   :  { %3259 = vmatprep.subr.bf16.mxu1 %v4424_v5  ;;  %v4428_v8 = vld [vmem:[%s6907_s1 + $0xa4] ss:$16 sps:$4 sm:$0xff]   ;;  %v4432_v10 = vld [vmem:[%s6907_s1 + $0xa0] ss:$16 sps:$4 sm:$0xff]   ;;  %v5345_v49 = vsub.s32 %v25_v42, %v5327_v43  ;;  %v15_v42 = vld [vmem:[%s6908_s0 + $0x8] sm:$0xff] }
   0x6   :  { %v4430_v9 = vld [vmem:[%s6907_s1 + $0x2a4] ss:$16 sps:$4 sm:$0xff]   ;;  %v4433_v11 = vld [vmem:[%s6907_s1 + $0x2a0] ss:$16 sps:$4 sm:$0xff]  }
   0x7   :  { %3219 = vmatpush1.bf16.msra.mxu0 %v4426_v6  ;;  %v4434_v12 = vld [vmem:[%s6907_s1 + $0x84] ss:$16 sps:$4 sm:$0xff]   ;;  %v4438_v14 = vld [vmem:[%s6907_s1 + $0x80] ss:$16 sps:$4 sm:$0xff]  }
   0x8   :  { %3260 = vmatpush1.bf16.msra.mxu1 %v4427_v7  ;;  %3220 = vmatprep.subr.bf16.mxu0 %v4428_v8  ;;  %v4436_v13 = vld [vmem:[%s6907_s1 + $0x284] ss:$16 sps:$4 sm:$0xff]   ;;  %v4439_v15 = vld [vmem:[%s6907_s1 + $0x280] ss:$16 sps:$4 sm:$0xff]  }
   0x9   :  { %3261 = vmatprep.subr.bf16.mxu1 %v4430_v9  ;;  %v4440_v16 = vld [vmem:[%s6907_s1 + $0x64] ss:$16 sps:$4 sm:$0xff]   ;;  %v4444_v18 = vld [vmem:[%s6907_s1 + $0x60] ss:$16 sps:$4 sm:$0xff]  }
   0xa   :  { %v4442_v17 = vld [vmem:[%s6907_s1 + $0x264] ss:$16 sps:$4 sm:$0xff]   ;;  %v4445_v19 = vld [vmem:[%s6907_s1 + $0x260] ss:$16 sps:$4 sm:$0xff]  }
   0xb   :  { %3221 = vmatpush1.bf16.msra.mxu0 %v4432_v10  ;;  %v4446_v20 = vld [vmem:[%s6907_s1 + $0x44] ss:$16 sps:$4 sm:$0xff]   ;;  %v4450_v22 = vld [vmem:[%s6907_s1 + $0x40] ss:$16 sps:$4 sm:$0xff]  }
   0xc   :  { %3262 = vmatpush1.bf16.msra.mxu1 %v4433_v11  ;;  %3222 = vmatprep.subr.bf16.mxu0 %v4434_v12  ;;  %v4448_v21 = vld [vmem:[%s6907_s1 + $0x244] ss:$16 sps:$4 sm:$0xff]   ;;  %v4451_v23 = vld [vmem:[%s6907_s1 + $0x240] ss:$16 sps:$4 sm:$0xff]  }
   0xd   :  { %3263 = vmatprep.subr.bf16.mxu1 %v4436_v13  ;;  %v4452_v24 = vld [vmem:[%s6907_s1 + $0x24] ss:$16 sps:$4 sm:$0xff]   ;;  %v4456_v26 = vld [vmem:[%s6907_s1 + $0x20] ss:$16 sps:$4 sm:$0xff]  }
   0xe   :  { %v4454_v25 = vld [vmem:[%s6907_s1 + $0x224] ss:$16 sps:$4 sm:$0xff]   ;;  %v4457_v27 = vld [vmem:[%s6907_s1 + $0x220] ss:$16 sps:$4 sm:$0xff]  }
   0xf   :  { %3223 = vmatpush1.bf16.msra.mxu0 %v4438_v14  ;;  %v4458_v28 = vld [vmem:[%s6907_s1 + $0x4] ss:$16 sps:$4 sm:$0xff]   ;;  %v4462_v30 = vld [vmem:[%s6907_s1] ss:$16 sps:$4 sm:$0xff]  }
  0x10   :  { %3264 = vmatpush1.bf16.msra.mxu1 %v4439_v15  ;;  %3224 = vmatprep.subr.bf16.mxu0 %v4440_v16  ;;  %v4460_v29 = vld [vmem:[%s6907_s1 + $0x204] ss:$16 sps:$4 sm:$0xff]   ;;  %v4463_v31 = vld [vmem:[%s6907_s1 + $0x200] ss:$16 sps:$4 sm:$0xff]  }
  0x11   :  { %3265 = vmatprep.subr.bf16.mxu1 %v4442_v17  ;;  %v4464_v32 = vld [vmem:[%s6907_s1 + $0x1e4] ss:$16 sps:$4 sm:$0xff]   ;;  %v4468_v34 = vld [vmem:[%s6907_s1 + $0x1e0] ss:$16 sps:$4 sm:$0xff]  }
  0x12   :  { %v4466_v33 = vld [vmem:[%s6907_s1 + $0x3e4] ss:$16 sps:$4 sm:$0xff]   ;;  %v4469_v35 = vld [vmem:[%s6907_s1 + $0x3e0] ss:$16 sps:$4 sm:$0xff]  }
  0x13   :  { %3225 = vmatpush1.bf16.msra.mxu0 %v4444_v18  ;;  %v4470_v39 = vld [vmem:[%s6907_s1 + $0x1c4] ss:$16 sps:$4 sm:$0xff]   ;;  %v4474_v41 = vld [vmem:[%s6907_s1 + $0x1c0] ss:$16 sps:$4 sm:$0xff]  }
  0x14   :  { %3266 = vmatpush1.bf16.msra.mxu1 %v4445_v19  ;;  %3226 = vmatprep.subr.bf16.mxu0 %v4446_v20  ;;  %v4472_v40 = vld [vmem:[%s6907_s1 + $0x3c4] ss:$16 sps:$4 sm:$0xff]   ;;  %v4475_v44 = vld [vmem:[%s6907_s1 + $0x3c0] ss:$16 sps:$4 sm:$0xff]  }
  0x15   :  { %3267 = vmatprep.subr.bf16.mxu1 %v4448_v21  ;;  %v4476_v45 = vld [vmem:[%s6907_s1 + $0x1a4] ss:$16 sps:$4 sm:$0xff]   ;;  %v4480_v47 = vld [vmem:[%s6907_s1 + $0x1a0] ss:$16 sps:$4 sm:$0xff]  }
  0x16   :  { %v4478_v46 = vld [vmem:[%s6907_s1 + $0x3a4] ss:$16 sps:$4 sm:$0xff]   ;;  %v4481_v48 = vld [vmem:[%s6907_s1 + $0x3a0] ss:$16 sps:$4 sm:$0xff]  }
  0x17   :  { %3227 = vmatpush1.bf16.msra.mxu0 %v4450_v22  ;;  %v4482_v50 = vld [vmem:[%s6907_s1 + $0x184] ss:$16 sps:$4 sm:$0xff]   ;;  %v4486_v53 = vld [vmem:[%s6907_s1 + $0x180] ss:$16 sps:$4 sm:$0xff]  }
  0x18   :  { %3268 = vmatpush1.bf16.msra.mxu1 %v4451_v23  ;;  %3228 = vmatprep.subr.bf16.mxu0 %v4452_v24  ;;  %v4484_v51 = vld [vmem:[%s6907_s1 + $0x384] ss:$16 sps:$4 sm:$0xff]   ;;  %v4487_v56 = vld [vmem:[%s6907_s1 + $0x380] ss:$16 sps:$4 sm:$0xff]  }
  0x19   :  { %3269 = vmatprep.subr.bf16.mxu1 %v4454_v25  ;;  %v14_v52 = vld [vmem:[%s6908_s0] sm:$0xff] }
  0x1a   :  { %v29_v54 = vrot.slane %v14_v52, %v5345_v49  ;;  %v22_v55 = vcombine.high %v14_v52, %v14_v52  ;;  %v4488_v57 = vld [vmem:[%s6907_s1 + $0x164] ss:$16 sps:$4 sm:$0xff]   ;;  %v4492_v61 = vld [vmem:[%s6907_s1 + $0x160] ss:$16 sps:$4 sm:$0xff]  }
  0x1b   :  { %3229 = vmatpush1.bf16.msra.mxu0 %v4456_v26  ;;  %v4490_v58 = vld [vmem:[%s6907_s1 + $0x364] ss:$16 sps:$4 sm:$0xff]   ;;  %v4493_v0 = vld [vmem:[%s6907_s1 + $0x360] ss:$16 sps:$4 sm:$0xff]  }
  0x1c   :  { %3270 = vmatpush1.bf16.msra.mxu1 %v4457_v27  ;;  %3230 = vmatprep.subr.bf16.mxu0 %v4458_v28  ;;  %v37_v59 = vcombine.high %v29_v54, %v29_v54  ;;  %v36_v60 = vrot.slane %v22_v55, %v5345_v49  ;;  %v4494_v1 = vld [vmem:[%s6907_s1 + $0x144] ss:$16 sps:$4 sm:$0xff]   ;;  %v4498_v4 = vld [vmem:[%s6907_s1 + $0x140] ss:$16 sps:$4 sm:$0xff]   ;;  %v5424_v16 = vpack.c.bf16 %v29_v54, %v29_v54 }
  0x1d   :  { %3271 = vmatprep.subr.bf16.mxu1 %v4460_v29  ;;  %v4496_v2 = vld [vmem:[%s6907_s1 + $0x344] ss:$16 sps:$4 sm:$0xff]   ;;  %v4499_v5 = vld [vmem:[%s6907_s1 + $0x340] ss:$16 sps:$4 sm:$0xff]  }
  0x1e   :  { %v5373_v62 = vpack.c.bf16 %v37_v59, %v37_v59  ;;  %v38_v63 = vcombine.high %v36_v60, %v36_v60  ;;  %v4500_v6 = vld [vmem:[%s6907_s1 + $0x124] ss:$16 sps:$4 sm:$0xff]   ;;  %v4504_v8 = vld [vmem:[%s6907_s1 + $0x120] ss:$16 sps:$4 sm:$0xff]   ;;  %v5426_v17 = vpack.c.bf16 %v36_v60, %v36_v60 }
  0x1f   :  { %3231 = vmatpush1.bf16.msra.mxu0 %v4462_v30  ;;  %v4502_v7 = vld [vmem:[%s6907_s1 + $0x324] ss:$16 sps:$4 sm:$0xff]   ;;  %v4505_v9 = vld [vmem:[%s6907_s1 + $0x320] ss:$16 sps:$4 sm:$0xff]  }
  0x20   :  { %3272 = vmatpush1.bf16.msra.mxu1 %v4463_v31  ;;  %3232 = vmatprep.subr.bf16.mxu0 %v4464_v32  ;;  %v5384_v3 = vpack.c.bf16 %v38_v63, %v38_v63  ;;  %v4506_v10 = vld [vmem:[%s6907_s1 + $0x104] ss:$16 sps:$4 sm:$0xff]   ;;  %v4510_v12 = vld [vmem:[%s6907_s1 + $0x100] ss:$16 sps:$4 sm:$0xff]  }
  0x21   :  { %3273 = vmatprep.subr.bf16.mxu1 %v4466_v33  ;;  %3248 = vmatprep.mubr.bf16.mxu0 %v5373_v62  ;;  %v4508_v11 = vld [vmem:[%s6907_s1 + $0x304] ss:$16 sps:$4 sm:$0xff]   ;;  %v4511_v13 = vld [vmem:[%s6907_s1 + $0x300] ss:$16 sps:$4 sm:$0xff]  }
  0x22   :  { %3289 = vmatprep.mubr.bf16.mxu1 %v5384_v3  ;;  %v4515_v14 = vld [vmem:[%s6907_s1 + $0x4e4] ss:$16 sps:$4 sm:$0xff]   ;;  %v4513_v18 = vld [vmem:[%s6907_s1 + $0x4e0] ss:$16 sps:$4 sm:$0xff]  }
  0x23   :  { %3233 = vmatpush2.bf16.msra.mxu0 %v4468_v34  ;;  %v4518_v15 = vld [vmem:[%s6907_s1 + $0x6e4] ss:$16 sps:$4 sm:$0xff]   ;;  %v4516_v19 = vld [vmem:[%s6907_s1 + $0x6e0] ss:$16 sps:$4 sm:$0xff]  }
  0x24   :  { %3274 = vmatpush2.bf16.msra.mxu1 %v4469_v35  ;;  %3234 = vmatprep.subr.bf16.mxu0 %v4470_v39  ;;  %v4521_v20 = vld [vmem:[%s6907_s1 + $0x4c4] ss:$16 sps:$4 sm:$0xff]   ;;  %v4519_v22 = vld [vmem:[%s6907_s1 + $0x4c0] ss:$16 sps:$4 sm:$0xff]  }
  0x25   :  { %3275 = vmatprep.subr.bf16.mxu1 %v4472_v40  ;;  %v4524_v21 = vld [vmem:[%s6907_s1 + $0x6c4] ss:$16 sps:$4 sm:$0xff]   ;;  %v4522_v23 = vld [vmem:[%s6907_s1 + $0x6c0] ss:$16 sps:$4 sm:$0xff]  }
  0x26   :  { %v4527_v24 = vld [vmem:[%s6907_s1 + $0x4a4] ss:$16 sps:$4 sm:$0xff]   ;;  %v4525_v26 = vld [vmem:[%s6907_s1 + $0x4a0] ss:$16 sps:$4 sm:$0xff]  }
  0x27   :  { %3235 = vmatpush2.bf16.msra.mxu0 %v4474_v41  ;;  %v4530_v25 = vld [vmem:[%s6907_s1 + $0x6a4] ss:$16 sps:$4 sm:$0xff]   ;;  %v4528_v27 = vld [vmem:[%s6907_s1 + $0x6a0] ss:$16 sps:$4 sm:$0xff]  }
  0x28   :  { %3276 = vmatpush2.bf16.msra.mxu1 %v4475_v44  ;;  %3236 = vmatprep.subr.bf16.mxu0 %v4476_v45  ;;  %v4533_v28 = vld [vmem:[%s6907_s1 + $0x484] ss:$16 sps:$4 sm:$0xff]   ;;  %v4531_v30 = vld [vmem:[%s6907_s1 + $0x480] ss:$16 sps:$4 sm:$0xff]   ;;  %v5506_v44 = vrot.slane %v15_v42, %v5345_v49  ;;  %v39_v45 = vcombine.high %v15_v42, %v15_v42 }
  0x29   :  { %3277 = vmatprep.subr.bf16.mxu1 %v4478_v46  ;;  %v4536_v29 = vld [vmem:[%s6907_s1 + $0x684] ss:$16 sps:$4 sm:$0xff]   ;;  %v4534_v31 = vld [vmem:[%s6907_s1 + $0x680] ss:$16 sps:$4 sm:$0xff]  }
  0x2a   :  { %v4539_v32 = vld [vmem:[%s6907_s1 + $0x464] ss:$16 sps:$4 sm:$0xff]   ;;  %v4537_v34 = vld [vmem:[%s6907_s1 + $0x460] ss:$16 sps:$4 sm:$0xff]  }
  0x2b   :  { %3237 = vmatpush2.bf16.msra.mxu0 %v4480_v47  ;;  %v4542_v33 = vld [vmem:[%s6907_s1 + $0x664] ss:$16 sps:$4 sm:$0xff]   ;;  %v4540_v35 = vld [vmem:[%s6907_s1 + $0x660] ss:$16 sps:$4 sm:$0xff]  }
  0x2c   :  { %3278 = vmatpush2.bf16.msra.mxu1 %v4481_v48  ;;  %3238 = vmatprep.subr.bf16.mxu0 %v4482_v50  ;;  %v4545_v36 = vld [vmem:[%s6907_s1 + $0x444] ss:$16 sps:$4 sm:$0xff]   ;;  %v4543_v38 = vld [vmem:[%s6907_s1 + $0x440] ss:$16 sps:$4 sm:$0xff]   ;;  %v54_v48 = vcombine.high %v5506_v44, %v5506_v44  ;;  %v5517_v50 = vrot.slane %v39_v45, %v5345_v49 }
  0x2d   :  { %3279 = vmatprep.subr.bf16.mxu1 %v4484_v51  ;;  %v4548_v37 = vld [vmem:[%s6907_s1 + $0x644] ss:$16 sps:$4 sm:$0xff]   ;;  %v4546_v39 = vld [vmem:[%s6907_s1 + $0x640] ss:$16 sps:$4 sm:$0xff]  }
  0x2e   :  { %v4551_v40 = vld [vmem:[%s6907_s1 + $0x424] ss:$16 sps:$4 sm:$0xff]   ;;  %v4549_v46 = vld [vmem:[%s6907_s1 + $0x420] ss:$16 sps:$4 sm:$0xff]   ;;  %v55_v54 = vcombine.high %v5517_v50, %v5517_v50 }
  0x2f   :  { %3239 = vmatpush2.bf16.msra.mxu0 %v4486_v53  ;;  %v4554_v41 = vld [vmem:[%s6907_s1 + $0x624] ss:$16 sps:$4 sm:$0xff]   ;;  %v4552_v47 = vld [vmem:[%s6907_s1 + $0x620] ss:$16 sps:$4 sm:$0xff]   ;;  %v5525_v53 = vpack.c.bf16 %v54_v48, %v54_v48 }
  0x30   :  { %3280 = vmatpush2.bf16.msra.mxu1 %v4487_v56  ;;  %3240 = vmatprep.subr.bf16.mxu0 %v4488_v57  ;;  %v4557_v51 = vld [vmem:[%s6907_s1 + $0x404] ss:$16 sps:$4 sm:$0xff]   ;;  %v4555_v55 = vld [vmem:[%s6907_s1 + $0x400] ss:$16 sps:$4 sm:$0xff]   ;;  %v5535_v57 = vpack.c.bf16 %v55_v54, %v55_v54 }
  0x31   :  { %3281 = vmatprep.subr.bf16.mxu1 %v4490_v58  ;;  %v4560_v52 = vld [vmem:[%s6907_s1 + $0x604] ss:$16 sps:$4 sm:$0xff]   ;;  %v4558_v56 = vld [vmem:[%s6907_s1 + $0x600] ss:$16 sps:$4 sm:$0xff]  }
  0x32   :  { %v4563_v58 = vld [vmem:[%s6907_s1 + $0x5e4] ss:$16 sps:$4 sm:$0xff]   ;;  %v4561_v60 = vld [vmem:[%s6907_s1 + $0x5e0] ss:$16 sps:$4 sm:$0xff]  }
  0x33   :  { %3241 = vmatpush2.bf16.msra.mxu0 %v4492_v61  ;;  %v4566_v59 = vld [vmem:[%s6907_s1 + $0x7e4] ss:$16 sps:$4 sm:$0xff]   ;;  %v4564_v61 = vld [vmem:[%s6907_s1 + $0x7e0] ss:$16 sps:$4 sm:$0xff]  }
  0x34   :  { %3282 = vmatpush2.bf16.msra.mxu1 %v4493_v0  ;;  %3242 = vmatprep.subr.bf16.mxu0 %v4494_v1  ;;  %v4569_v63 = vld [vmem:[%s6907_s1 + $0x5c4] ss:$16 sps:$4 sm:$0xff]   ;;  %v4567_v1 = vld [vmem:[%s6907_s1 + $0x5c0] ss:$16 sps:$4 sm:$0xff]  }
  0x35   :  { %3283 = vmatprep.subr.bf16.mxu1 %v4496_v2  ;;  %v4572_v0 = vld [vmem:[%s6907_s1 + $0x7c4] ss:$16 sps:$4 sm:$0xff]   ;;  %v4570_v2 = vld [vmem:[%s6907_s1 + $0x7c0] ss:$16 sps:$4 sm:$0xff]  }
  0x36   :  { %v4619_v45 = vld [vmem:[%s6907_s1 + $0xac0] ss:$16 sps:$4 sm:$0xff]  }
  0x37   :  { %3243 = vmatpush2.bf16.msra.mxu0 %v4498_v4  ;;  %v4575_v4 = vld [vmem:[%s6907_s1 + $0x5a4] ss:$16 sps:$4 sm:$0xff]   ;;  %v4625_v54 = vld [vmem:[%s6907_s1 + $0xaa0] ss:$16 sps:$4 sm:$0xff]  }
  0x38   :  { %3284 = vmatpush2.bf16.msra.mxu1 %v4499_v5  ;;  %3244 = vmatprep.subr.bf16.mxu0 %v4500_v6  ;;  %v4578_v5 = vld [vmem:[%s6907_s1 + $0x7a4] ss:$16 sps:$4 sm:$0xff]   ;;  %v4573_v6 = vld [vmem:[%s6907_s1 + $0x5a0] ss:$16 sps:$4 sm:$0xff]  }
  0x39   :  { %3285 = vmatprep.subr.bf16.mxu1 %v4502_v7  ;;  %v4576_v7 = vld [vmem:[%s6907_s1 + $0x7a0] ss:$16 sps:$4 sm:$0xff]  }
  0x3b   :  { %3245 = vmatpush2.bf16.msra.mxu0 %v4504_v8  ;;  %v4581_v8 = vld [vmem:[%s6907_s1 + $0x584] ss:$16 sps:$4 sm:$0xff]  }
  0x3c   :  { %3286 = vmatpush2.bf16.msra.mxu1 %v4505_v9  ;;  %3246 = vmatprep.subr.bf16.mxu0 %v4506_v10  ;;  %v4584_v9 = vld [vmem:[%s6907_s1 + $0x784] ss:$16 sps:$4 sm:$0xff]   ;;  %v4579_v10 = vld [vmem:[%s6907_s1 + $0x580] ss:$16 sps:$4 sm:$0xff]  }
  0x3d   :  { %3287 = vmatprep.subr.bf16.mxu1 %v4508_v11  ;;  %v4582_v11 = vld [vmem:[%s6907_s1 + $0x780] ss:$16 sps:$4 sm:$0xff]  }
  0x3f   :  { %3247 = vmatpush2.bf16.msra.mxu0 %v4510_v12  ;;  %v4587_v12 = vld [vmem:[%s6907_s1 + $0x564] ss:$16 sps:$4 sm:$0xff]  }
  0x40   :  { %3288 = vmatpush2.bf16.msra.mxu1 %v4511_v13  ;;  %3298 = vmatprep.subr.bf16.mxu0 %v4515_v14  ;;  %v4590_v13 = vld [vmem:[%s6907_s1 + $0x764] ss:$16 sps:$4 sm:$0xff]   ;;  %v4585_v14 = vld [vmem:[%s6907_s1 + $0x560] ss:$16 sps:$4 sm:$0xff]  }
  0x41   :  { %3339 = vmatprep.subr.bf16.mxu1 %v4518_v15  ;;  %v4588_v15 = vld [vmem:[%s6907_s1 + $0x760] ss:$16 sps:$4 sm:$0xff]  }
  0x42   :  { %3249 = vmatmul.mubr.bf16.vlgmr.msra.gmra.mxu0 %v5424_v16 }
  0x43   :  { %3290 = vmatmul.mubr.bf16.vlgmr.msra.gmra.mxu1 %v5426_v17  ;;  %3299 = vmatpush1.bf16.msra.mxu0 %v4513_v18  ;;  %v4593_v18 = vld [vmem:[%s6907_s1 + $0x544] ss:$16 sps:$4 sm:$0xff]  }
  0x44   :  { %3340 = vmatpush1.bf16.msra.mxu1 %v4516_v19  ;;  %3300 = vmatprep.subr.bf16.mxu0 %v4521_v20  ;;  %v4596_v19 = vld [vmem:[%s6907_s1 + $0x744] ss:$16 sps:$4 sm:$0xff]   ;;  %v4591_v20 = vld [vmem:[%s6907_s1 + $0x540] ss:$16 sps:$4 sm:$0xff]  }
  0x45   :  { %3341 = vmatprep.subr.bf16.mxu1 %v4524_v21  ;;  %3330 = vmatprep.mubr.bf16.mxu0 %v5525_v53  ;;  %v4594_v21 = vld [vmem:[%s6907_s1 + $0x740] ss:$16 sps:$4 sm:$0xff]  }
  0x46   :  { %3371 = vmatprep.mubr.bf16.mxu1 %v5535_v57 }
  0x47   :  { %3301 = vmatpush1.bf16.msra.mxu0 %v4519_v22  ;;  %v4599_v22 = vld [vmem:[%s6907_s1 + $0x524] ss:$16 sps:$4 sm:$0xff]  }
  0x48   :  { %3342 = vmatpush1.bf16.msra.mxu1 %v4522_v23  ;;  %3302 = vmatprep.subr.bf16.mxu0 %v4527_v24  ;;  %v4602_v23 = vld [vmem:[%s6907_s1 + $0x724] ss:$16 sps:$4 sm:$0xff]   ;;  %v4597_v24 = vld [vmem:[%s6907_s1 + $0x520] ss:$16 sps:$4 sm:$0xff]  }
  0x49   :  { %3343 = vmatprep.subr.bf16.mxu1 %v4530_v25  ;;  %v4600_v25 = vld [vmem:[%s6907_s1 + $0x720] ss:$16 sps:$4 sm:$0xff]  }
  0x4b   :  { %3303 = vmatpush1.bf16.msra.mxu0 %v4525_v26  ;;  %v4605_v26 = vld [vmem:[%s6907_s1 + $0x504] ss:$16 sps:$4 sm:$0xff]  }
  0x4c   :  { %3344 = vmatpush1.bf16.msra.mxu1 %v4528_v27  ;;  %3304 = vmatprep.subr.bf16.mxu0 %v4533_v28  ;;  %v4608_v27 = vld [vmem:[%s6907_s1 + $0x704] ss:$16 sps:$4 sm:$0xff]   ;;  %v4603_v28 = vld [vmem:[%s6907_s1 + $0x500] ss:$16 sps:$4 sm:$0xff]  }
  0x4d   :  { %3345 = vmatprep.subr.bf16.mxu1 %v4536_v29  ;;  %v4606_v29 = vld [vmem:[%s6907_s1 + $0x700] ss:$16 sps:$4 sm:$0xff]  }
  0x4f   :  { %3305 = vmatpush1.bf16.msra.mxu0 %v4531_v30  ;;  %v4612_v30 = vld [vmem:[%s6907_s1 + $0x8e4] ss:$16 sps:$4 sm:$0xff]  }
  0x50   :  { %3346 = vmatpush1.bf16.msra.mxu1 %v4534_v31  ;;  %3306 = vmatprep.subr.bf16.mxu0 %v4539_v32  ;;  %v4615_v31 = vld [vmem:[%s6907_s1 + $0xae4] ss:$16 sps:$4 sm:$0xff]   ;;  %v5643_v32 = vpack.c.bf16 %v5506_v44, %v5506_v44 }
  0x51   :  { %3347 = vmatprep.subr.bf16.mxu1 %v4542_v33  ;;  %v5647_v33 = vpack.c.bf16 %v5517_v50, %v5517_v50 }
  0x53   :  { %3307 = vmatpush1.bf16.msra.mxu0 %v4537_v34  ;;  %v4610_v34 = vld [vmem:[%s6907_s1 + $0x8e0] ss:$16 sps:$4 sm:$0xff]  }
  0x54   :  { %3348 = vmatpush1.bf16.msra.mxu1 %v4540_v35  ;;  %3308 = vmatprep.subr.bf16.mxu0 %v4545_v36  ;;  %v4613_v35 = vld [vmem:[%s6907_s1 + $0xae0] ss:$16 sps:$4 sm:$0xff]   ;;  %v4618_v36 = vld [vmem:[%s6907_s1 + $0x8c4] ss:$16 sps:$4 sm:$0xff]  }
  0x55   :  { %3349 = vmatprep.subr.bf16.mxu1 %v4548_v37  ;;  %v16_v37 = vld [vmem:[%s6908_s0 + $0x10] sm:$0xff] }
  0x57   :  { %3309 = vmatpush1.bf16.msra.mxu0 %v4543_v38  ;;  %v4621_v38 = vld [vmem:[%s6907_s1 + $0xac4] ss:$16 sps:$4 sm:$0xff]  }
  0x58   :  { %3350 = vmatpush1.bf16.msra.mxu1 %v4546_v39  ;;  %3310 = vmatprep.subr.bf16.mxu0 %v4551_v40  ;;  %v5665_v39 = vrot.slane %v16_v37, %v5345_v49  ;;  %v56_v40 = vcombine.high %v16_v37, %v16_v37  ;;  %v4685_v37 = vld [vmem:[%s6907_s1 + $0xb60] ss:$16 sps:$4 sm:$0xff]  }
  0x59   :  { %3351 = vmatprep.subr.bf16.mxu1 %v4554_v41  ;;  %v4616_v41 = vld [vmem:[%s6907_s1 + $0x8c0] ss:$16 sps:$4 sm:$0xff]  }
  0x5a   :  { %v71_v42 = vcombine.high %v5665_v39, %v5665_v39  ;;  %v5675_v44 = vrot.slane %v56_v40, %v5345_v49  ;;  %v4693_v40 = vld [vmem:[%s6907_s1 + $0xb44] ss:$16 sps:$4 sm:$0xff]  }
  0x5b   :  { %3311 = vmatpush1.bf16.msra.mxu0 %v4549_v46  ;;  %v4624_v46 = vld [vmem:[%s6907_s1 + $0x8a4] ss:$16 sps:$4 sm:$0xff]  }
  0x5c   :  { %3352 = vmatpush1.bf16.msra.mxu1 %v4552_v47  ;;  %3312 = vmatprep.subr.bf16.mxu0 %v4557_v51  ;;  %v4627_v47 = vld [vmem:[%s6907_s1 + $0xaa4] ss:$16 sps:$4 sm:$0xff]   ;;  %v5686_v48 = vpack.c.bf16 %v71_v42, %v71_v42  ;;  %v72_v50 = vcombine.high %v5675_v44, %v5675_v44  ;;  %v4622_v51 = vld [vmem:[%s6907_s1 + $0x8a0] ss:$16 sps:$4 sm:$0xff]   ;;  %v17_v42 = vld [vmem:[%s6908_s0 + $0x18] sm:$0xff] }
  0x5d   :  { %3353 = vmatprep.subr.bf16.mxu1 %v4560_v52 }
  0x5e   :  { %v5694_v52 = vpack.c.bf16 %v72_v50, %v72_v50  ;;  %v73_v50 = vcombine.high %v17_v42, %v17_v42 }
  0x5f   :  { %3313 = vmatpush1.bf16.msra.mxu0 %v4555_v55  ;;  %v4630_v55 = vld [vmem:[%s6907_s1 + $0x884] ss:$16 sps:$4 sm:$0xff]  }
  0x60   :  { %3354 = vmatpush1.bf16.msra.mxu1 %v4558_v56  ;;  %3314 = vmatprep.subr.bf16.mxu0 %v4563_v58  ;;  %v4633_v56 = vld [vmem:[%s6907_s1 + $0xa84] ss:$16 sps:$4 sm:$0xff]   ;;  %v4628_v58 = vld [vmem:[%s6907_s1 + $0x880] ss:$16 sps:$4 sm:$0xff]  }
  0x61   :  { %3355 = vmatprep.subr.bf16.mxu1 %v4566_v59  ;;  %v4631_v59 = vld [vmem:[%s6907_s1 + $0xa80] ss:$16 sps:$4 sm:$0xff]  }
  0x63   :  { %3315 = vmatpush2.bf16.msra.mxu0 %v4561_v60  ;;  %v4636_v60 = vld [vmem:[%s6907_s1 + $0x864] ss:$16 sps:$4 sm:$0xff]  }
  0x64   :  { %3356 = vmatpush2.bf16.msra.mxu1 %v4564_v61  ;;  %3316 = vmatprep.subr.bf16.mxu0 %v4569_v63  ;;  %v4639_v61 = vld [vmem:[%s6907_s1 + $0xa64] ss:$16 sps:$4 sm:$0xff]   ;;  %v4634_v63 = vld [vmem:[%s6907_s1 + $0x860] ss:$16 sps:$4 sm:$0xff]  }
  0x65   :  { %3357 = vmatprep.subr.bf16.mxu1 %v4572_v0  ;;  %v4637_v0 = vld [vmem:[%s6907_s1 + $0xa60] ss:$16 sps:$4 sm:$0xff]  }
  0x67   :  { %3317 = vmatpush2.bf16.msra.mxu0 %v4567_v1  ;;  %v4642_v1 = vld [vmem:[%s6907_s1 + $0x844] ss:$16 sps:$4 sm:$0xff]  }
  0x68   :  { %3358 = vmatpush2.bf16.msra.mxu1 %v4570_v2  ;;  %3318 = vmatprep.subr.bf16.mxu0 %v4575_v4  ;;  %v4645_v2 = vld [vmem:[%s6907_s1 + $0xa44] ss:$16 sps:$4 sm:$0xff]   ;;  %v4640_v4 = vld [vmem:[%s6907_s1 + $0x840] ss:$16 sps:$4 sm:$0xff]  }
  0x69   :  { %3359 = vmatprep.subr.bf16.mxu1 %v4578_v5  ;;  %v4643_v5 = vld [vmem:[%s6907_s1 + $0xa40] ss:$16 sps:$4 sm:$0xff]  }
  0x6b   :  { %3319 = vmatpush2.bf16.msra.mxu0 %v4573_v6  ;;  %v4648_v6 = vld [vmem:[%s6907_s1 + $0x824] ss:$16 sps:$4 sm:$0xff]  }
  0x6c   :  { %3360 = vmatpush2.bf16.msra.mxu1 %v4576_v7  ;;  %3320 = vmatprep.subr.bf16.mxu0 %v4581_v8  ;;  %v4651_v7 = vld [vmem:[%s6907_s1 + $0xa24] ss:$16 sps:$4 sm:$0xff]   ;;  %v4646_v8 = vld [vmem:[%s6907_s1 + $0x820] ss:$16 sps:$4 sm:$0xff]  }
  0x6d   :  { %3361 = vmatprep.subr.bf16.mxu1 %v4584_v9  ;;  %v4649_v9 = vld [vmem:[%s6907_s1 + $0xa20] ss:$16 sps:$4 sm:$0xff]  }
  0x6f   :  { %3321 = vmatpush2.bf16.msra.mxu0 %v4579_v10  ;;  %v4654_v10 = vld [vmem:[%s6907_s1 + $0x804] ss:$16 sps:$4 sm:$0xff]  }
  0x70   :  { %3362 = vmatpush2.bf16.msra.mxu1 %v4582_v11  ;;  %3322 = vmatprep.subr.bf16.mxu0 %v4587_v12  ;;  %v4657_v11 = vld [vmem:[%s6907_s1 + $0xa04] ss:$16 sps:$4 sm:$0xff]   ;;  %v4652_v12 = vld [vmem:[%s6907_s1 + $0x800] ss:$16 sps:$4 sm:$0xff]  }
  0x71   :  { %3363 = vmatprep.subr.bf16.mxu1 %v4590_v13  ;;  %v4655_v13 = vld [vmem:[%s6907_s1 + $0xa00] ss:$16 sps:$4 sm:$0xff]  }
  0x73   :  { %3323 = vmatpush2.bf16.msra.mxu0 %v4585_v14  ;;  %v4660_v14 = vld [vmem:[%s6907_s1 + $0x9e4] ss:$16 sps:$4 sm:$0xff]  }
  0x74   :  { %3364 = vmatpush2.bf16.msra.mxu1 %v4588_v15  ;;  %3324 = vmatprep.subr.bf16.mxu0 %v4593_v18  ;;  %v4663_v15 = vld [vmem:[%s6907_s1 + $0xbe4] ss:$16 sps:$4 sm:$0xff]   ;;  %v4658_v18 = vld [vmem:[%s6907_s1 + $0x9e0] ss:$16 sps:$4 sm:$0xff]  }
  0x75   :  { %3365 = vmatprep.subr.bf16.mxu1 %v4596_v19  ;;  %v4661_v19 = vld [vmem:[%s6907_s1 + $0xbe0] ss:$16 sps:$4 sm:$0xff]  }
  0x77   :  { %3325 = vmatpush2.bf16.msra.mxu0 %v4591_v20  ;;  %v4666_v20 = vld [vmem:[%s6907_s1 + $0x9c4] ss:$16 sps:$4 sm:$0xff]  }
  0x78   :  { %3366 = vmatpush2.bf16.msra.mxu1 %v4594_v21  ;;  %3326 = vmatprep.subr.bf16.mxu0 %v4599_v22  ;;  %v4669_v21 = vld [vmem:[%s6907_s1 + $0xbc4] ss:$16 sps:$4 sm:$0xff]   ;;  %v4664_v22 = vld [vmem:[%s6907_s1 + $0x9c0] ss:$16 sps:$4 sm:$0xff]  }
  0x79   :  { %3367 = vmatprep.subr.bf16.mxu1 %v4602_v23  ;;  %v4667_v23 = vld [vmem:[%s6907_s1 + $0xbc0] ss:$16 sps:$4 sm:$0xff]  }
  0x7b   :  { %3327 = vmatpush2.bf16.msra.mxu0 %v4597_v24  ;;  %v4672_v24 = vld [vmem:[%s6907_s1 + $0x9a4] ss:$16 sps:$4 sm:$0xff]  }
  0x7c   :  { %3368 = vmatpush2.bf16.msra.mxu1 %v4600_v25  ;;  %3328 = vmatprep.subr.bf16.mxu0 %v4605_v26  ;;  %v4675_v25 = vld [vmem:[%s6907_s1 + $0xba4] ss:$16 sps:$4 sm:$0xff]   ;;  %v4670_v26 = vld [vmem:[%s6907_s1 + $0x9a0] ss:$16 sps:$4 sm:$0xff]  }
  0x7d   :  { %3369 = vmatprep.subr.bf16.mxu1 %v4608_v27  ;;  %v4673_v27 = vld [vmem:[%s6907_s1 + $0xba0] ss:$16 sps:$4 sm:$0xff]  }
  0x7f   :  { %3329 = vmatpush2.bf16.msra.mxu0 %v4603_v28  ;;  %v4678_v28 = vld [vmem:[%s6907_s1 + $0x984] ss:$16 sps:$4 sm:$0xff]  }
  0x80   :  { %3370 = vmatpush2.bf16.msra.mxu1 %v4606_v29  ;;  %3380 = vmatprep.subr.bf16.mxu0 %v4612_v30  ;;  %v4681_v29 = vld [vmem:[%s6907_s1 + $0xb84] ss:$16 sps:$4 sm:$0xff]   ;;  %v4676_v30 = vld [vmem:[%s6907_s1 + $0x980] ss:$16 sps:$4 sm:$0xff]  }
  0x81   :  { %3421 = vmatprep.subr.bf16.mxu1 %v4615_v31  ;;  %v4679_v31 = vld [vmem:[%s6907_s1 + $0xb80] ss:$16 sps:$4 sm:$0xff]  }
  0x82   :  { %3331 = vmatmul.mubr.bf16.vlgmr.msra.gmra.mxu0 %v5643_v32 }
  0x83   :  { %3372 = vmatmul.mubr.bf16.vlgmr.msra.gmra.mxu1 %v5647_v33  ;;  %3381 = vmatpush1.bf16.msra.mxu0 %v4610_v34  ;;  %v4684_v34 = vld [vmem:[%s6907_s1 + $0x964] ss:$16 sps:$4 sm:$0xff]  }
  0x84   :  { %3422 = vmatpush1.bf16.msra.mxu1 %v4613_v35  ;;  %3382 = vmatprep.subr.bf16.mxu0 %v4618_v36  ;;  %v4687_v35 = vld [vmem:[%s6907_s1 + $0xb64] ss:$16 sps:$4 sm:$0xff]   ;;  %v4682_v36 = vld [vmem:[%s6907_s1 + $0x960] ss:$16 sps:$4 sm:$0xff]  }
  0x85   :  { %3423 = vmatprep.subr.bf16.mxu1 %v4621_v38  ;;  %3412 = vmatprep.mubr.bf16.mxu0 %v5686_v48  ;;  %v4690_v38 = vld [vmem:[%s6907_s1 + $0x944] ss:$16 sps:$4 sm:$0xff]  }
  0x86   :  { %3453 = vmatprep.mubr.bf16.mxu1 %v5694_v52 }
  0x87   :  { %3383 = vmatpush1.bf16.msra.mxu0 %v4616_v41  ;;  %v4688_v41 = vld [vmem:[%s6907_s1 + $0x940] ss:$16 sps:$4 sm:$0xff]  }
  0x88   :  { %3424 = vmatpush1.bf16.msra.mxu1 %v4619_v45  ;;  %3384 = vmatprep.subr.bf16.mxu0 %v4624_v46  ;;  %v4691_v45 = vld [vmem:[%s6907_s1 + $0xb40] ss:$16 sps:$4 sm:$0xff]   ;;  %v4696_v46 = vld [vmem:[%s6907_s1 + $0x924] ss:$16 sps:$4 sm:$0xff]  }
  0x89   :  { %3425 = vmatprep.subr.bf16.mxu1 %v4627_v47  ;;  %v4699_v47 = vld [vmem:[%s6907_s1 + $0xb24] ss:$16 sps:$4 sm:$0xff]  }
  0x8b   :  { %3385 = vmatpush1.bf16.msra.mxu0 %v4622_v51  ;;  %v4694_v51 = vld [vmem:[%s6907_s1 + $0x920] ss:$16 sps:$4 sm:$0xff]  }
  0x8c   :  { %3426 = vmatpush1.bf16.msra.mxu1 %v4625_v54  ;;  %3386 = vmatprep.subr.bf16.mxu0 %v4630_v55  ;;  %v4697_v54 = vld [vmem:[%s6907_s1 + $0xb20] ss:$16 sps:$4 sm:$0xff]   ;;  %v4702_v55 = vld [vmem:[%s6907_s1 + $0x904] ss:$16 sps:$4 sm:$0xff]  }
  0x8d   :  { %3427 = vmatprep.subr.bf16.mxu1 %v4633_v56  ;;  %v4705_v56 = vld [vmem:[%s6907_s1 + $0xb04] ss:$16 sps:$4 sm:$0xff]  }
  0x8f   :  { %3387 = vmatpush1.bf16.msra.mxu0 %v4628_v58  ;;  %v5854_v58 = vrot.slane %v17_v42, %v5345_v49  ;;  %v4760_v42 = vld [vmem:[%s6907_s1 + $0xfe4] ss:$16 sps:$4 sm:$0xff]  }
  0x90   :  { %3428 = vmatpush1.bf16.msra.mxu1 %v4631_v59  ;;  %3388 = vmatprep.subr.bf16.mxu0 %v4636_v60  ;;  %v5857_v59 = vrot.slane %v73_v50, %v5345_v49  ;;  %v4700_v60 = vld [vmem:[%s6907_s1 + $0x900] ss:$16 sps:$4 sm:$0xff]   ;;  %v4766_v50 = vld [vmem:[%s6907_s1 + $0xfc4] ss:$16 sps:$4 sm:$0xff]  }
  0x91   :  { %3429 = vmatprep.subr.bf16.mxu1 %v4639_v61  ;;  %v4703_v61 = vld [vmem:[%s6907_s1 + $0xb00] ss:$16 sps:$4 sm:$0xff]  }
  0x93   :  { %3389 = vmatpush1.bf16.msra.mxu0 %v4634_v63  ;;  %v4709_v63 = vld [vmem:[%s6907_s1 + $0xce4] ss:$16 sps:$4 sm:$0xff]  }
  0x94   :  { %3430 = vmatpush1.bf16.msra.mxu1 %v4637_v0  ;;  %3390 = vmatprep.subr.bf16.mxu0 %v4642_v1  ;;  %v4712_v0 = vld [vmem:[%s6907_s1 + $0xee4] ss:$16 sps:$4 sm:$0xff]   ;;  %v88_v1 = vcombine.high %v5854_v58, %v5854_v58 }
  0x95   :  { %3431 = vmatprep.subr.bf16.mxu1 %v4645_v2  ;;  %v89_v2 = vcombine.high %v5857_v59, %v5857_v59 }
  0x97   :  { %3391 = vmatpush1.bf16.msra.mxu0 %v4640_v4  ;;  %v5877_v4 = vpack.c.bf16 %v5665_v39, %v5665_v39  ;;  %v4715_v39 = vld [vmem:[%s6907_s1 + $0xcc4] ss:$16 sps:$4 sm:$0xff]  }
  0x98   :  { %3432 = vmatpush1.bf16.msra.mxu1 %v4643_v5  ;;  %3392 = vmatprep.subr.bf16.mxu0 %v4648_v6  ;;  %v5881_v5 = vpack.c.bf16 %v5675_v44, %v5675_v44  ;;  %v4707_v6 = vld [vmem:[%s6907_s1 + $0xce0] ss:$16 sps:$4 sm:$0xff]   ;;  %v4718_v44 = vld [vmem:[%s6907_s1 + $0xec4] ss:$16 sps:$4 sm:$0xff]  }
  0x99   :  { %3433 = vmatprep.subr.bf16.mxu1 %v4651_v7  ;;  %v4710_v7 = vld [vmem:[%s6907_s1 + $0xee0] ss:$16 sps:$4 sm:$0xff]  }
  0x9b   :  { %3393 = vmatpush1.bf16.msra.mxu0 %v4646_v8  ;;  %v5895_v8 = vpack.c.bf16 %v88_v1, %v88_v1  ;;  %v4773_v1 = vld [vmem:[%s6907_s1 + $0xd80] ss:$16 sps:$4 sm:$0xff]  }
  0x9c   :  { %3434 = vmatpush1.bf16.msra.mxu1 %v4649_v9  ;;  %3394 = vmatprep.subr.bf16.mxu0 %v4654_v10  ;;  %v5897_v9 = vpack.c.bf16 %v89_v2, %v89_v2  ;;  %v4713_v10 = vld [vmem:[%s6907_s1 + $0xcc0] ss:$16 sps:$4 sm:$0xff]  }
  0x9d   :  { %3435 = vmatprep.subr.bf16.mxu1 %v4657_v11  ;;  %v4716_v11 = vld [vmem:[%s6907_s1 + $0xec0] ss:$16 sps:$4 sm:$0xff]  }
  0x9e   :  { %v4776_v2 = vld [vmem:[%s6907_s1 + $0xf80] ss:$16 sps:$4 sm:$0xff]  }
  0x9f   :  { %3395 = vmatpush1.bf16.msra.mxu0 %v4652_v12  ;;  %v4721_v12 = vld [vmem:[%s6907_s1 + $0xca4] ss:$16 sps:$4 sm:$0xff]  }
  0xa0   :  { %3436 = vmatpush1.bf16.msra.mxu1 %v4655_v13  ;;  %3396 = vmatprep.subr.bf16.mxu0 %v4660_v14  ;;  %v4724_v13 = vld [vmem:[%s6907_s1 + $0xea4] ss:$16 sps:$4 sm:$0xff]   ;;  %v4719_v14 = vld [vmem:[%s6907_s1 + $0xca0] ss:$16 sps:$4 sm:$0xff]  }
  0xa1   :  { %3437 = vmatprep.subr.bf16.mxu1 %v4663_v15  ;;  %v4722_v15 = vld [vmem:[%s6907_s1 + $0xea0] ss:$16 sps:$4 sm:$0xff]  }
  0xa3   :  { %3397 = vmatpush2.bf16.msra.mxu0 %v4658_v18  ;;  %v4727_v18 = vld [vmem:[%s6907_s1 + $0xc84] ss:$16 sps:$4 sm:$0xff]  }
  0xa4   :  { %3438 = vmatpush2.bf16.msra.mxu1 %v4661_v19  ;;  %3398 = vmatprep.subr.bf16.mxu0 %v4666_v20  ;;  %v4730_v19 = vld [vmem:[%s6907_s1 + $0xe84] ss:$16 sps:$4 sm:$0xff]   ;;  %v4725_v20 = vld [vmem:[%s6907_s1 + $0xc80] ss:$16 sps:$4 sm:$0xff]  }
  0xa5   :  { %3439 = vmatprep.subr.bf16.mxu1 %v4669_v21  ;;  %v4728_v21 = vld [vmem:[%s6907_s1 + $0xe80] ss:$16 sps:$4 sm:$0xff]  }
  0xa7   :  { %3399 = vmatpush2.bf16.msra.mxu0 %v4664_v22  ;;  %v4733_v22 = vld [vmem:[%s6907_s1 + $0xc64] ss:$16 sps:$4 sm:$0xff]  }
  0xa8   :  { %3440 = vmatpush2.bf16.msra.mxu1 %v4667_v23  ;;  %3400 = vmatprep.subr.bf16.mxu0 %v4672_v24  ;;  %v4736_v23 = vld [vmem:[%s6907_s1 + $0xe64] ss:$16 sps:$4 sm:$0xff]   ;;  %v4731_v24 = vld [vmem:[%s6907_s1 + $0xc60] ss:$16 sps:$4 sm:$0xff]  }
  0xa9   :  { %3441 = vmatprep.subr.bf16.mxu1 %v4675_v25  ;;  %v4734_v25 = vld [vmem:[%s6907_s1 + $0xe60] ss:$16 sps:$4 sm:$0xff]  }
  0xab   :  { %3401 = vmatpush2.bf16.msra.mxu0 %v4670_v26  ;;  %v4739_v26 = vld [vmem:[%s6907_s1 + $0xc44] ss:$16 sps:$4 sm:$0xff]  }
  0xac   :  { %3442 = vmatpush2.bf16.msra.mxu1 %v4673_v27  ;;  %3402 = vmatprep.subr.bf16.mxu0 %v4678_v28  ;;  %v4742_v27 = vld [vmem:[%s6907_s1 + $0xe44] ss:$16 sps:$4 sm:$0xff]   ;;  %v4737_v28 = vld [vmem:[%s6907_s1 + $0xc40] ss:$16 sps:$4 sm:$0xff]  }
  0xad   :  { %3443 = vmatprep.subr.bf16.mxu1 %v4681_v29  ;;  %v4740_v29 = vld [vmem:[%s6907_s1 + $0xe40] ss:$16 sps:$4 sm:$0xff]  }
  0xaf   :  { %3403 = vmatpush2.bf16.msra.mxu0 %v4676_v30  ;;  %v4745_v30 = vld [vmem:[%s6907_s1 + $0xc24] ss:$16 sps:$4 sm:$0xff]  }
  0xb0   :  { %3444 = vmatpush2.bf16.msra.mxu1 %v4679_v31  ;;  %3404 = vmatprep.subr.bf16.mxu0 %v4684_v34  ;;  %v4748_v31 = vld [vmem:[%s6907_s1 + $0xe24] ss:$16 sps:$4 sm:$0xff]   ;;  %v4743_v34 = vld [vmem:[%s6907_s1 + $0xc20] ss:$16 sps:$4 sm:$0xff]  }
  0xb1   :  { %3445 = vmatprep.subr.bf16.mxu1 %v4687_v35  ;;  %v4746_v35 = vld [vmem:[%s6907_s1 + $0xe20] ss:$16 sps:$4 sm:$0xff]  }
  0xb3   :  { %3405 = vmatpush2.bf16.msra.mxu0 %v4682_v36  ;;  %v4751_v36 = vld [vmem:[%s6907_s1 + $0xc04] ss:$16 sps:$4 sm:$0xff]  }
  0xb4   :  { %3446 = vmatpush2.bf16.msra.mxu1 %v4685_v37  ;;  %3406 = vmatprep.subr.bf16.mxu0 %v4690_v38  ;;  %v4754_v37 = vld [vmem:[%s6907_s1 + $0xe04] ss:$16 sps:$4 sm:$0xff]   ;;  %v4749_v38 = vld [vmem:[%s6907_s1 + $0xc00] ss:$16 sps:$4 sm:$0xff]  }
  0xb5   :  { %3447 = vmatprep.subr.bf16.mxu1 %v4693_v40  ;;  %v4752_v40 = vld [vmem:[%s6907_s1 + $0xe00] ss:$16 sps:$4 sm:$0xff]  }
  0xb7   :  { %3407 = vmatpush2.bf16.msra.mxu0 %v4688_v41  ;;  %v4757_v41 = vld [vmem:[%s6907_s1 + $0xde4] ss:$16 sps:$4 sm:$0xff]  }
  0xb8   :  { %3448 = vmatpush2.bf16.msra.mxu1 %v4691_v45  ;;  %3408 = vmatprep.subr.bf16.mxu0 %v4696_v46  ;;  %v4755_v45 = vld [vmem:[%s6907_s1 + $0xde0] ss:$16 sps:$4 sm:$0xff]  }
  0xb9   :  { %3449 = vmatprep.subr.bf16.mxu1 %v4699_v47  ;;  %v4758_v46 = vld [vmem:[%s6907_s1 + $0xfe0] ss:$16 sps:$4 sm:$0xff]   ;;  %v4763_v47 = vld [vmem:[%s6907_s1 + $0xdc4] ss:$16 sps:$4 sm:$0xff]  }
  0xbb   :  { %3409 = vmatpush2.bf16.msra.mxu0 %v4694_v51  ;;  %v4761_v51 = vld [vmem:[%s6907_s1 + $0xdc0] ss:$16 sps:$4 sm:$0xff]  }
  0xbc   :  { %3450 = vmatpush2.bf16.msra.mxu1 %v4697_v54  ;;  %3410 = vmatprep.subr.bf16.mxu0 %v4702_v55  ;;  %v4764_v54 = vld [vmem:[%s6907_s1 + $0xfc0] ss:$16 sps:$4 sm:$0xff]   ;;  %v4769_v55 = vld [vmem:[%s6907_s1 + $0xda4] ss:$16 sps:$4 sm:$0xff]  }
  0xbd   :  { %3451 = vmatprep.subr.bf16.mxu1 %v4705_v56  ;;  %v4772_v56 = vld [vmem:[%s6907_s1 + $0xfa4] ss:$16 sps:$4 sm:$0xff]  }
  0xbf   :  { %3411 = vmatpush2.bf16.msra.mxu0 %v4700_v60  ;;  %v4767_v60 = vld [vmem:[%s6907_s1 + $0xda0] ss:$16 sps:$4 sm:$0xff]  }
  0xc0   :  { %3452 = vmatpush2.bf16.msra.mxu1 %v4703_v61  ;;  %3462 = vmatprep.subr.bf16.mxu0 %v4709_v63  ;;  %v4770_v61 = vld [vmem:[%s6907_s1 + $0xfa0] ss:$16 sps:$4 sm:$0xff]   ;;  %v4775_v63 = vld [vmem:[%s6907_s1 + $0xd84] ss:$16 sps:$4 sm:$0xff]  }
  0xc1   :  { %3503 = vmatprep.subr.bf16.mxu1 %v4712_v0  ;;  %v4778_v0 = vld [vmem:[%s6907_s1 + $0xf84] ss:$16 sps:$4 sm:$0xff]  }
  0xc2   :  { %3413 = vmatmul.mubr.bf16.vlgmr.msra.gmra.mxu0 %v5877_v4 }
  0xc3   :  { %3454 = vmatmul.mubr.bf16.vlgmr.msra.gmra.mxu1 %v5881_v5  ;;  %3463 = vmatpush1.bf16.msra.mxu0 %v4707_v6  ;;  %v4781_v6 = vld [vmem:[%s6907_s1 + $0xd64] ss:$16 sps:$4 sm:$0xff]  }
  0xc4   :  { %3504 = vmatpush1.bf16.msra.mxu1 %v4710_v7  ;;  %3464 = vmatprep.subr.bf16.mxu0 %v4715_v39  ;;  %v4784_v7 = vld [vmem:[%s6907_s1 + $0xf64] ss:$16 sps:$4 sm:$0xff]   ;;  %v4779_v39 = vld [vmem:[%s6907_s1 + $0xd60] ss:$16 sps:$4 sm:$0xff]  }
  0xc5   :  { %3505 = vmatprep.subr.bf16.mxu1 %v4718_v44  ;;  %3494 = vmatprep.mubr.bf16.mxu0 %v5895_v8  ;;  %v4782_v44 = vld [vmem:[%s6907_s1 + $0xf60] ss:$16 sps:$4 sm:$0xff]  }
  0xc6   :  { %3535 = vmatprep.mubr.bf16.mxu1 %v5897_v9 }
  0xc7   :  { %3465 = vmatpush1.bf16.msra.mxu0 %v4713_v10  ;;  %v4787_v10 = vld [vmem:[%s6907_s1 + $0xd44] ss:$16 sps:$4 sm:$0xff]  }
  0xc8   :  { %3506 = vmatpush1.bf16.msra.mxu1 %v4716_v11  ;;  %3466 = vmatprep.subr.bf16.mxu0 %v4721_v12  ;;  %v4790_v11 = vld [vmem:[%s6907_s1 + $0xf44] ss:$16 sps:$4 sm:$0xff]   ;;  %v4785_v12 = vld [vmem:[%s6907_s1 + $0xd40] ss:$16 sps:$4 sm:$0xff]  }
  0xc9   :  { %3507 = vmatprep.subr.bf16.mxu1 %v4724_v13  ;;  %v4788_v13 = vld [vmem:[%s6907_s1 + $0xf40] ss:$16 sps:$4 sm:$0xff]  }
  0xcb   :  { %3467 = vmatpush1.bf16.msra.mxu0 %v4719_v14  ;;  %v4793_v14 = vld [vmem:[%s6907_s1 + $0xd24] ss:$16 sps:$4 sm:$0xff]  }
  0xcc   :  { %3508 = vmatpush1.bf16.msra.mxu1 %v4722_v15  ;;  %3468 = vmatprep.subr.bf16.mxu0 %v4727_v18  ;;  %v4796_v15 = vld [vmem:[%s6907_s1 + $0xf24] ss:$16 sps:$4 sm:$0xff]   ;;  %v4791_v18 = vld [vmem:[%s6907_s1 + $0xd20] ss:$16 sps:$4 sm:$0xff]  }
  0xcd   :  { %3509 = vmatprep.subr.bf16.mxu1 %v4730_v19  ;;  %v4794_v19 = vld [vmem:[%s6907_s1 + $0xf20] ss:$16 sps:$4 sm:$0xff]  }
  0xcf   :  { %3469 = vmatpush1.bf16.msra.mxu0 %v4725_v20  ;;  %v4799_v20 = vld [vmem:[%s6907_s1 + $0xd04] ss:$16 sps:$4 sm:$0xff]  }
  0xd0   :  { %3510 = vmatpush1.bf16.msra.mxu1 %v4728_v21  ;;  %3470 = vmatprep.subr.bf16.mxu0 %v4733_v22  ;;  %v4802_v21 = vld [vmem:[%s6907_s1 + $0xf04] ss:$16 sps:$4 sm:$0xff]   ;;  %v4797_v22 = vld [vmem:[%s6907_s1 + $0xd00] ss:$16 sps:$4 sm:$0xff]  }
  0xd1   :  { %3511 = vmatprep.subr.bf16.mxu1 %v4736_v23  ;;  %v4800_v23 = vld [vmem:[%s6907_s1 + $0xf00] ss:$16 sps:$4 sm:$0xff]  }
  0xd3   :  { %3471 = vmatpush1.bf16.msra.mxu0 %v4731_v24  ;;  %v634_v24 = vld [vmem:[%s6909_s2] sm:$0xf] }
  0xd4   :  { %3512 = vmatpush1.bf16.msra.mxu1 %v4734_v25  ;;  %3472 = vmatprep.subr.bf16.mxu0 %v4739_v26  ;;  %v638_v25 = vsub.s32 0, %v5327_v43  ;;  %v4806_v26 = vld [vmem:[%s6907_s1 + $0xec] ss:$16 sps:$4 sm:$0xff]  }
  0xd5   :  { %3513 = vmatprep.subr.bf16.mxu1 %v4742_v27  ;;  %v4809_v27 = vld [vmem:[%s6907_s1 + $0x2ec] ss:$16 sps:$4 sm:$0xff]  }
  0xd7   :  { %3473 = vmatpush1.bf16.msra.mxu0 %v4737_v28  ;;  %v642_v28 = vsub.s32 1, %v5327_v43 }
  0xd8   :  { %3514 = vmatpush1.bf16.msra.mxu1 %v4740_v29  ;;  %3474 = vmatprep.subr.bf16.mxu0 %v4745_v30  ;;  %v6090_v29 = vpack.c.bf16 %v5854_v58, %v5854_v58  ;;  %v6094_v30 = vpack.c.bf16 %v5857_v59, %v5857_v59  ;;  %v4812_v58 = vld [vmem:[%s6907_s1 + $0xcc] ss:$16 sps:$4 sm:$0xff]  }
  0xd9   :  { %3515 = vmatprep.subr.bf16.mxu1 %v4748_v31  ;;  %v4804_v31 = vld [vmem:[%s6907_s1 + $0xe8] ss:$16 sps:$4 sm:$0xff]   ;;  %v4815_v59 = vld [vmem:[%s6907_s1 + $0x2cc] ss:$16 sps:$4 sm:$0xff]  }
  0xdb   :  { %3475 = vmatpush1.bf16.msra.mxu0 %v4743_v34  ;;  %v639_v34 = vrot.slane %v634_v24, %v638_v25  ;;  %v4854_v25 = vld [vmem:[%s6907_s1 + $0x1ec] ss:$16 sps:$4 sm:$0xff]  }
  0xdc   :  { %3516 = vmatpush1.bf16.msra.mxu1 %v4746_v35  ;;  %3476 = vmatprep.subr.bf16.mxu0 %v4751_v36  ;;  %v4807_v35 = vld [vmem:[%s6907_s1 + $0x2e8] ss:$16 sps:$4 sm:$0xff]   ;;  %v643_v36 = vrot.slane %v634_v24, %v642_v28 }
  0xdd   :  { %3517 = vmatprep.subr.bf16.mxu1 %v4754_v37  ;;  %v4810_v37 = vld [vmem:[%s6907_s1 + $0xc8] ss:$16 sps:$4 sm:$0xff]  }
  0xde   :  { %v4849_v24 = vld [vmem:[%s6907_s1 + $0x208] ss:$16 sps:$4 sm:$0xff]  }
  0xdf   :  { %3477 = vmatpush1.bf16.msra.mxu0 %v4749_v38  ;;  %v4855_v28 = vld [vmem:[%s6907_s1 + $0x3e8] ss:$16 sps:$4 sm:$0xff]  }
  0xe0   :  { %3518 = vmatpush1.bf16.msra.mxu1 %v4752_v40  ;;  %3478 = vmatprep.subr.bf16.mxu0 %v4757_v41  ;;  %v4813_v41 = vld [vmem:[%s6907_s1 + $0x2c8] ss:$16 sps:$4 sm:$0xff]  }
  0xe1   :  { %3519 = vmatprep.subr.bf16.mxu1 %v4760_v42 }
  0xe3   :  { %3479 = vmatpush2.bf16.msra.mxu0 %v4755_v45  ;;  %v4818_v45 = vld [vmem:[%s6907_s1 + $0xac] ss:$16 sps:$4 sm:$0xff]  }
  0xe4   :  { %3520 = vmatpush2.bf16.msra.mxu1 %v4758_v46  ;;  %3480 = vmatprep.subr.bf16.mxu0 %v4763_v47 }
  0xe5   :  { %3521 = vmatprep.subr.bf16.mxu1 %v4766_v50  ;;  %v4821_v50 = vld [vmem:[%s6907_s1 + $0x2ac] ss:$16 sps:$4 sm:$0xff]  }
  0xe7   :  { %3481 = vmatpush2.bf16.msra.mxu0 %v4761_v51 }
  0xe8   :  { %3522 = vmatpush2.bf16.msra.mxu1 %v4764_v54  ;;  %3482 = vmatprep.subr.bf16.mxu0 %v4769_v55  ;;  %v4816_v55 = vld [vmem:[%s6907_s1 + $0xa8] ss:$16 sps:$4 sm:$0xff]  }
  0xe9   :  { %3523 = vmatprep.subr.bf16.mxu1 %v4772_v56  ;;  %v4819_v56 = vld [vmem:[%s6907_s1 + $0x2a8] ss:$16 sps:$4 sm:$0xff]  }
  0xeb   :  { %3483 = vmatpush2.bf16.msra.mxu0 %v4767_v60 }
  0xec   :  { %3524 = vmatpush2.bf16.msra.mxu1 %v4770_v61  ;;  %3484 = vmatprep.subr.bf16.mxu0 %v4775_v63 }
  0xed   :  { %3525 = vmatprep.subr.bf16.mxu1 %v4778_v0 }
  0xef   :  { %3485 = vmatpush2.bf16.msra.mxu0 %v4773_v1 }
  0xf0   :  { %3526 = vmatpush2.bf16.msra.mxu1 %v4776_v2  ;;  %3486 = vmatprep.subr.bf16.mxu0 %v4781_v6  ;;  %v4824_v2 = vld [vmem:[%s6907_s1 + $0x8c] ss:$16 sps:$4 sm:$0xff]   ;;  %v4825_v6 = vld [vmem:[%s6907_s1 + $0x288] ss:$16 sps:$4 sm:$0xff]  }
  0xf1   :  { %3527 = vmatprep.subr.bf16.mxu1 %v4784_v7  ;;  %v4830_v7 = vld [vmem:[%s6907_s1 + $0x6c] ss:$16 sps:$4 sm:$0xff]  }
  0xf3   :  { %3487 = vmatpush2.bf16.msra.mxu0 %v4779_v39  ;;  %v4833_v39 = vld [vmem:[%s6907_s1 + $0x26c] ss:$16 sps:$4 sm:$0xff]  }
  0xf4   :  { %3528 = vmatpush2.bf16.msra.mxu1 %v4782_v44  ;;  %3488 = vmatprep.subr.bf16.mxu0 %v4787_v10  ;;  %v4828_v44 = vld [vmem:[%s6907_s1 + $0x68] ss:$16 sps:$4 sm:$0xff]  }
  0xf5   :  { %3529 = vmatprep.subr.bf16.mxu1 %v4790_v11  ;;  %v4831_v10 = vld [vmem:[%s6907_s1 + $0x268] ss:$16 sps:$4 sm:$0xff]   ;;  %v4836_v11 = vld [vmem:[%s6907_s1 + $0x4c] ss:$16 sps:$4 sm:$0xff]  }
  0xf7   :  { %3489 = vmatpush2.bf16.msra.mxu0 %v4785_v12  ;;  %v4839_v12 = vld [vmem:[%s6907_s1 + $0x24c] ss:$16 sps:$4 sm:$0xff]  }
  0xf8   :  { %3530 = vmatpush2.bf16.msra.mxu1 %v4788_v13  ;;  %3490 = vmatprep.subr.bf16.mxu0 %v4793_v14  ;;  %v4834_v13 = vld [vmem:[%s6907_s1 + $0x48] ss:$16 sps:$4 sm:$0xff]  }
  0xf9   :  { %3531 = vmatprep.subr.bf16.mxu1 %v4796_v15  ;;  %v4837_v14 = vld [vmem:[%s6907_s1 + $0x248] ss:$16 sps:$4 sm:$0xff]   ;;  %v4842_v15 = vld [vmem:[%s6907_s1 + $0x2c] ss:$16 sps:$4 sm:$0xff]  }
  0xfb   :  { %3491 = vmatpush2.bf16.msra.mxu0 %v4791_v18  ;;  %v4845_v18 = vld [vmem:[%s6907_s1 + $0x22c] ss:$16 sps:$4 sm:$0xff]  }
  0xfc   :  { %3532 = vmatpush2.bf16.msra.mxu1 %v4794_v19  ;;  %3492 = vmatprep.subr.bf16.mxu0 %v4799_v20  ;;  %v4840_v19 = vld [vmem:[%s6907_s1 + $0x28] ss:$16 sps:$4 sm:$0xff]  }
  0xfd   :  { %3533 = vmatprep.subr.bf16.mxu1 %v4802_v21  ;;  %v4843_v20 = vld [vmem:[%s6907_s1 + $0x228] ss:$16 sps:$4 sm:$0xff]   ;;  %v4848_v21 = vld [vmem:[%s6907_s1 + $0xc] ss:$16 sps:$4 sm:$0xff]  }
  0xff   :  { %3493 = vmatpush2.bf16.msra.mxu0 %v4797_v22  ;;  %v4851_v22 = vld [vmem:[%s6907_s1 + $0x20c] ss:$16 sps:$4 sm:$0xff]  }
 0x100   :  { %3534 = vmatpush2.bf16.msra.mxu1 %v4800_v23  ;;  %3544 = vmatprep.subr.bf16.mxu0 %v4806_v26  ;;  %v4846_v23 = vld [vmem:[%s6907_s1 + $0x8] ss:$16 sps:$4 sm:$0xff]   ;;  %v4857_v26 = vld [vmem:[%s6907_s1 + $0x3ec] ss:$16 sps:$4 sm:$0xff]  }
 0x101   :  { %3585 = vmatprep.subr.bf16.mxu1 %v4809_v27  ;;  %v4852_v27 = vld [vmem:[%s6907_s1 + $0x1e8] ss:$16 sps:$4 sm:$0xff]  }
 0x102   :  { %v3250_v38 = vpop.f32.mrf.mxu0  ;;  %3495 = vmatmul.mubr.bf16.vlgmr.msra.gmra.mxu0 %v6090_v29 }
 0x103   :  { %v3291_v40 = vpop.f32.mrf.mxu1  ;;  %3536 = vmatmul.mubr.bf16.vlgmr.msra.gmra.mxu1 %v6094_v30  ;;  %v3251_v42 = vadd.f32 %v3250_v38, %v639_v34  ;;  %3545 = vmatpush1.bf16.msra.mxu0 %v4804_v31  ;;  %v4860_v31 = vld [vmem:[%s6907_s1 + $0x1cc] ss:$16 sps:$4 sm:$0xff]   ;;  %v4867_v38 = vld [vmem:[%s6907_s1 + $0x3a8] ss:$16 sps:$4 sm:$0xff]  }
 0x104   :  { %3586 = vmatpush1.bf16.msra.mxu1 %v4807_v35  ;;  %v3252_v46 = vpop.f32.mrf.mxu0  ;;  %3546 = vmatprep.subr.bf16.mxu0 %v4812_v58  ;;  %v4863_v34 = vld [vmem:[%s6907_s1 + $0x3cc] ss:$16 sps:$4 sm:$0xff]   ;;  %v4858_v35 = vld [vmem:[%s6907_s1 + $0x1c8] ss:$16 sps:$4 sm:$0xff]  }
 0x105   :  { %v3293_v47 = vpop.f32.mrf.mxu1  ;;  %3587 = vmatprep.subr.bf16.mxu1 %v4815_v59  ;;  %v6122_v51 = vadd.f32 %v3291_v40, %v3251_v42  ;;  %v3253_v54 = vadd.f32 %v3252_v46, %v643_v36  ;;  %3576 = vmatprep.mubr.bf16.mxu0 %v5373_v62  ;;  %v4827_v62 = vld [vmem:[%s6907_s1 + $0x28c] ss:$16 sps:$4 sm:$0xff]   ;;  %v4861_v58 = vld [vmem:[%s6907_s1 + $0x3c8] ss:$16 sps:$4 sm:$0xff]  }
 0x106   :  { %3617 = vmatprep.mubr.bf16.mxu1 %v5384_v3  ;;  %v3254_v60 = vpop.f32.mrf.mxu0  ;;  %v4822_v3 = vld [vmem:[%s6907_s1 + $0x88] ss:$16 sps:$4 sm:$0xff]   ;;  %v4866_v59 = vld [vmem:[%s6907_s1 + $0x1ac] ss:$16 sps:$4 sm:$0xff]  }
 0x107   :  { %v3295_v61 = vpop.f32.mrf.mxu1  ;;  %v6132_v63 = vadd.f32 %v3293_v47, %v3253_v54  ;;  %3547 = vmatpush1.bf16.msra.mxu0 %v4810_v37  ;;  %v4869_v36 = vld [vmem:[%s6907_s1 + $0x3ac] ss:$16 sps:$4 sm:$0xff]   ;;  %v4864_v37 = vld [vmem:[%s6907_s1 + $0x1a8] ss:$16 sps:$4 sm:$0xff]  }
 0x108   :  { %3588 = vmatpush1.bf16.msra.mxu1 %v4813_v41  ;;  %v3255_v0 = vpop.f32.mrf.mxu0  ;;  %3548 = vmatprep.subr.bf16.mxu0 %v4818_v45  ;;  %v4872_v40 = vld [vmem:[%s6907_s1 + $0x18c] ss:$16 sps:$4 sm:$0xff]   ;;  %v4870_v42 = vld [vmem:[%s6907_s1 + $0x188] ss:$16 sps:$4 sm:$0xff]  }
 0x109   :  { %v3296_v1 = vpop.f32.mrf.mxu1  ;;  %3589 = vmatprep.subr.bf16.mxu1 %v4821_v50  ;;  %v4875_v41 = vld [vmem:[%s6907_s1 + $0x38c] ss:$16 sps:$4 sm:$0xff]   ;;  %v4873_v45 = vld [vmem:[%s6907_s1 + $0x388] ss:$16 sps:$4 sm:$0xff]  }
 0x10a   :  { %v4878_v46 = vld [vmem:[%s6907_s1 + $0x16c] ss:$16 sps:$4 sm:$0xff]   ;;  %v4876_v50 = vld [vmem:[%s6907_s1 + $0x168] ss:$16 sps:$4 sm:$0xff]  }
 0x10b   :  { %3549 = vmatpush1.bf16.msra.mxu0 %v4816_v55  ;;  %v4881_v47 = vld [vmem:[%s6907_s1 + $0x36c] ss:$16 sps:$4 sm:$0xff]   ;;  %v4879_v54 = vld [vmem:[%s6907_s1 + $0x368] ss:$16 sps:$4 sm:$0xff]  }
 0x10c   :  { %3590 = vmatpush1.bf16.msra.mxu1 %v4819_v56  ;;  %3550 = vmatprep.subr.bf16.mxu0 %v4824_v2  ;;  %v4884_v55 = vld [vmem:[%s6907_s1 + $0x14c] ss:$16 sps:$4 sm:$0xff]   ;;  %v4882_v60 = vld [vmem:[%s6907_s1 + $0x148] ss:$16 sps:$4 sm:$0xff]  }
 0x10d   :  { %3591 = vmatprep.subr.bf16.mxu1 %v4827_v62  ;;  %v4887_v56 = vld [vmem:[%s6907_s1 + $0x34c] ss:$16 sps:$4 sm:$0xff]   ;;  %v4885_v61 = vld [vmem:[%s6907_s1 + $0x348] ss:$16 sps:$4 sm:$0xff]  }
 0x10e   :  { %v4890_v0 = vld [vmem:[%s6907_s1 + $0x12c] ss:$16 sps:$4 sm:$0xff]   ;;  %v4888_v2 = vld [vmem:[%s6907_s1 + $0x128] ss:$16 sps:$4 sm:$0xff]  }
 0x10f   :  { %3551 = vmatpush1.bf16.msra.mxu0 %v4822_v3  ;;  %v4893_v1 = vld [vmem:[%s6907_s1 + $0x32c] ss:$16 sps:$4 sm:$0xff]   ;;  %v4891_v62 = vld [vmem:[%s6907_s1 + $0x328] ss:$16 sps:$4 sm:$0xff]  }
 0x110   :  { %3592 = vmatpush1.bf16.msra.mxu1 %v4825_v6  ;;  %3552 = vmatprep.subr.bf16.mxu0 %v4830_v7  ;;  %v4896_v3 = vld [vmem:[%s6907_s1 + $0x10c] ss:$16 sps:$4 sm:$0xff]   ;;  %v4894_v7 = vld [vmem:[%s6907_s1 + $0x108] ss:$16 sps:$4 sm:$0xff]  }
 0x111   :  { %3593 = vmatprep.subr.bf16.mxu1 %v4833_v39  ;;  %v4899_v6 = vld [vmem:[%s6907_s1 + $0x30c] ss:$16 sps:$4 sm:$0xff]   ;;  %v4897_v39 = vld [vmem:[%s6907_s1 + $0x308] ss:$16 sps:$4 sm:$0xff]  }
 0x113   :  { %3553 = vmatpush1.bf16.msra.mxu0 %v4828_v44  ;;  %v4902_v44 = vld [vmem:[%s6907_s1 + $0x4ec] ss:$16 sps:$4 sm:$0xff]  }
 0x114   :  { %3594 = vmatpush1.bf16.msra.mxu1 %v4831_v10  ;;  %3554 = vmatprep.subr.bf16.mxu0 %v4836_v11  ;;  %v4905_v10 = vld [vmem:[%s6907_s1 + $0x6ec] ss:$16 sps:$4 sm:$0xff]   ;;  %v4900_v11 = vld [vmem:[%s6907_s1 + $0x4e8] ss:$16 sps:$4 sm:$0xff]  }
 0x115   :  { %3595 = vmatprep.subr.bf16.mxu1 %v4839_v12  ;;  %v4903_v12 = vld [vmem:[%s6907_s1 + $0x6e8] ss:$16 sps:$4 sm:$0xff]  }
 0x117   :  { %3555 = vmatpush1.bf16.msra.mxu0 %v4834_v13  ;;  %v4908_v13 = vld [vmem:[%s6907_s1 + $0x4cc] ss:$16 sps:$4 sm:$0xff]  }
 0x118   :  { %3596 = vmatpush1.bf16.msra.mxu1 %v4837_v14  ;;  %3556 = vmatprep.subr.bf16.mxu0 %v4842_v15  ;;  %v4911_v14 = vld [vmem:[%s6907_s1 + $0x6cc] ss:$16 sps:$4 sm:$0xff]  }
 0x119   :  { %3597 = vmatprep.subr.bf16.mxu1 %v4845_v18 }
 0x11b   :  { %3557 = vmatpush1.bf16.msra.mxu0 %v4840_v19 }
 0x11c   :  { %3598 = vmatpush1.bf16.msra.mxu1 %v4843_v20  ;;  %3558 = vmatprep.subr.bf16.mxu0 %v4848_v21  ;;  %v4906_v20 = vld [vmem:[%s6907_s1 + $0x4c8] ss:$16 sps:$4 sm:$0xff]  }
 0x11d   :  { %3599 = vmatprep.subr.bf16.mxu1 %v4851_v22  ;;  %v4909_v21 = vld [vmem:[%s6907_s1 + $0x6c8] ss:$16 sps:$4 sm:$0xff]  }
 0x11f   :  { %3559 = vmatpush1.bf16.msra.mxu0 %v4846_v23 }
 0x120   :  { %3600 = vmatpush1.bf16.msra.mxu1 %v4849_v24  ;;  %3560 = vmatprep.subr.bf16.mxu0 %v4854_v25 }
 0x121   :  { %3601 = vmatprep.subr.bf16.mxu1 %v4857_v26 }
 0x123   :  { %3561 = vmatpush2.bf16.msra.mxu0 %v4852_v27 }
 0x124   :  { %3602 = vmatpush2.bf16.msra.mxu1 %v4855_v28  ;;  %3562 = vmatprep.subr.bf16.mxu0 %v4860_v31  ;;  %v4912_v28 = vld [vmem:[%s6907_s1 + $0x4a8] ss:$16 sps:$4 sm:$0xff]  }
 0x125   :  { %3603 = vmatprep.subr.bf16.mxu1 %v4863_v34  ;;  %v4915_v31 = vld [vmem:[%s6907_s1 + $0x6a8] ss:$16 sps:$4 sm:$0xff]  }
 0x127   :  { %3563 = vmatpush2.bf16.msra.mxu0 %v4858_v35  ;;  %v4918_v35 = vld [vmem:[%s6907_s1 + $0x488] ss:$16 sps:$4 sm:$0xff]  }
 0x128   :  { %3604 = vmatpush2.bf16.msra.mxu1 %v4861_v58  ;;  %3564 = vmatprep.subr.bf16.mxu0 %v4866_v59  ;;  %v4921_v58 = vld [vmem:[%s6907_s1 + $0x688] ss:$16 sps:$4 sm:$0xff]   ;;  %v4926_v59 = vld [vmem:[%s6907_s1 + $0x46c] ss:$16 sps:$4 sm:$0xff]  }
 0x129   :  { %3605 = vmatprep.subr.bf16.mxu1 %v4869_v36  ;;  %v4929_v36 = vld [vmem:[%s6907_s1 + $0x66c] ss:$16 sps:$4 sm:$0xff]  }
 0x12b   :  { %3565 = vmatpush2.bf16.msra.mxu0 %v4864_v37  ;;  %v4924_v37 = vld [vmem:[%s6907_s1 + $0x468] ss:$16 sps:$4 sm:$0xff]  }
 0x12c   :  { %3606 = vmatpush2.bf16.msra.mxu1 %v4867_v38  ;;  %3566 = vmatprep.subr.bf16.mxu0 %v4872_v40  ;;  %v4927_v38 = vld [vmem:[%s6907_s1 + $0x668] ss:$16 sps:$4 sm:$0xff]   ;;  %v4932_v40 = vld [vmem:[%s6907_s1 + $0x44c] ss:$16 sps:$4 sm:$0xff]  }
 0x12d   :  { %3607 = vmatprep.subr.bf16.mxu1 %v4875_v41  ;;  %v4935_v41 = vld [vmem:[%s6907_s1 + $0x64c] ss:$16 sps:$4 sm:$0xff]  }
 0x12f   :  { %3567 = vmatpush2.bf16.msra.mxu0 %v4870_v42  ;;  %v4930_v42 = vld [vmem:[%s6907_s1 + $0x448] ss:$16 sps:$4 sm:$0xff]  }
 0x130   :  { %3608 = vmatpush2.bf16.msra.mxu1 %v4873_v45  ;;  %3568 = vmatprep.subr.bf16.mxu0 %v4878_v46  ;;  %v4933_v45 = vld [vmem:[%s6907_s1 + $0x648] ss:$16 sps:$4 sm:$0xff]   ;;  %v4938_v46 = vld [vmem:[%s6907_s1 + $0x42c] ss:$16 sps:$4 sm:$0xff]  }
 0x131   :  { %3609 = vmatprep.subr.bf16.mxu1 %v4881_v47  ;;  %v4941_v47 = vld [vmem:[%s6907_s1 + $0x62c] ss:$16 sps:$4 sm:$0xff]  }
 0x133   :  { %3569 = vmatpush2.bf16.msra.mxu0 %v4876_v50  ;;  %v4936_v50 = vld [vmem:[%s6907_s1 + $0x428] ss:$16 sps:$4 sm:$0xff]  }
 0x134   :  { %3610 = vmatpush2.bf16.msra.mxu1 %v4879_v54  ;;  %3570 = vmatprep.subr.bf16.mxu0 %v4884_v55  ;;  %v4939_v54 = vld [vmem:[%s6907_s1 + $0x628] ss:$16 sps:$4 sm:$0xff]   ;;  %v4944_v55 = vld [vmem:[%s6907_s1 + $0x40c] ss:$16 sps:$4 sm:$0xff]  }
 0x135   :  { %3611 = vmatprep.subr.bf16.mxu1 %v4887_v56  ;;  %v4947_v56 = vld [vmem:[%s6907_s1 + $0x60c] ss:$16 sps:$4 sm:$0xff]  }
 0x137   :  { %3571 = vmatpush2.bf16.msra.mxu0 %v4882_v60  ;;  %v4942_v60 = vld [vmem:[%s6907_s1 + $0x408] ss:$16 sps:$4 sm:$0xff]  }
 0x138   :  { %3612 = vmatpush2.bf16.msra.mxu1 %v4885_v61  ;;  %3572 = vmatprep.subr.bf16.mxu0 %v4890_v0  ;;  %v4945_v61 = vld [vmem:[%s6907_s1 + $0x608] ss:$16 sps:$4 sm:$0xff]   ;;  %v4950_v0 = vld [vmem:[%s6907_s1 + $0x5ec] ss:$16 sps:$4 sm:$0xff]  }
 0x139   :  { %3613 = vmatprep.subr.bf16.mxu1 %v4893_v1  ;;  %v4953_v1 = vld [vmem:[%s6907_s1 + $0x7ec] ss:$16 sps:$4 sm:$0xff]  }
 0x13b   :  { %3573 = vmatpush2.bf16.msra.mxu0 %v4888_v2  ;;  %v4948_v2 = vld [vmem:[%s6907_s1 + $0x5e8] ss:$16 sps:$4 sm:$0xff]  }
 0x13c   :  { %3614 = vmatpush2.bf16.msra.mxu1 %v4891_v62  ;;  %3574 = vmatprep.subr.bf16.mxu0 %v4896_v3  ;;  %v4951_v62 = vld [vmem:[%s6907_s1 + $0x7e8] ss:$16 sps:$4 sm:$0xff]   ;;  %v4956_v3 = vld [vmem:[%s6907_s1 + $0x5cc] ss:$16 sps:$4 sm:$0xff]  }
 0x13d   :  { %3615 = vmatprep.subr.bf16.mxu1 %v4899_v6  ;;  %v4959_v6 = vld [vmem:[%s6907_s1 + $0x7cc] ss:$16 sps:$4 sm:$0xff]  }
 0x13f   :  { %3575 = vmatpush2.bf16.msra.mxu0 %v4894_v7  ;;  %v4954_v7 = vld [vmem:[%s6907_s1 + $0x5c8] ss:$16 sps:$4 sm:$0xff]  }
 0x140   :  { %3616 = vmatpush2.bf16.msra.mxu1 %v4897_v39  ;;  %3626 = vmatprep.subr.bf16.mxu0 %v4902_v44  ;;  %v4957_v39 = vld [vmem:[%s6907_s1 + $0x7c8] ss:$16 sps:$4 sm:$0xff]   ;;  %v4962_v44 = vld [vmem:[%s6907_s1 + $0x5ac] ss:$16 sps:$4 sm:$0xff]  }
 0x141   :  { %3667 = vmatprep.subr.bf16.mxu1 %v4905_v10  ;;  %v4965_v10 = vld [vmem:[%s6907_s1 + $0x7ac] ss:$16 sps:$4 sm:$0xff]  }
 0x142   :  { %v3332_v15 = vpop.f32.mrf.mxu0  ;;  %3577 = vmatmul.mubr.bf16.vlgmr.msra.gmra.mxu0 %v5424_v16  ;;  %v4914_v16 = vld [vmem:[%s6907_s1 + $0x4ac] ss:$16 sps:$4 sm:$0xff]  }
 0x143   :  { %v3373_v18 = vpop.f32.mrf.mxu1  ;;  %3618 = vmatmul.mubr.bf16.vlgmr.msra.gmra.mxu1 %v5426_v17  ;;  %v3333_v19 = vadd.f32 %v3332_v15, %v6122_v51  ;;  %3627 = vmatpush1.bf16.msra.mxu0 %v4900_v11  ;;  %v4917_v17 = vld [vmem:[%s6907_s1 + $0x6ac] ss:$16 sps:$4 sm:$0xff]   ;;  %v4960_v11 = vld [vmem:[%s6907_s1 + $0x5a8] ss:$16 sps:$4 sm:$0xff]  }
 0x144   :  { %3668 = vmatpush1.bf16.msra.mxu1 %v4903_v12  ;;  %v3334_v22 = vpop.f32.mrf.mxu0  ;;  %3628 = vmatprep.subr.bf16.mxu0 %v4908_v13  ;;  %v4963_v12 = vld [vmem:[%s6907_s1 + $0x7a8] ss:$16 sps:$4 sm:$0xff]   ;;  %v4968_v13 = vld [vmem:[%s6907_s1 + $0x58c] ss:$16 sps:$4 sm:$0xff]  }
 0x145   :  { %v3375_v23 = vpop.f32.mrf.mxu1  ;;  %3669 = vmatprep.subr.bf16.mxu1 %v4911_v14  ;;  %v6323_v51 = vadd.f32 %v3373_v18, %v3333_v19  ;;  %v3335_v24 = vadd.f32 %v3334_v22, %v6132_v63  ;;  %3658 = vmatprep.mubr.bf16.mxu0 %v5525_v53  ;;  %v4920_v53 = vld [vmem:[%s6907_s1 + $0x48c] ss:$16 sps:$4 sm:$0xff]   ;;  %v4966_v15 = vld [vmem:[%s6907_s1 + $0x588] ss:$16 sps:$4 sm:$0xff]  }
 0x146   :  { %3699 = vmatprep.mubr.bf16.mxu1 %v5535_v57  ;;  %v3336_v25 = vpop.f32.mrf.mxu0  ;;  %v4923_v57 = vld [vmem:[%s6907_s1 + $0x68c] ss:$16 sps:$4 sm:$0xff]   ;;  %v4969_v18 = vld [vmem:[%s6907_s1 + $0x788] ss:$16 sps:$4 sm:$0xff]  }
 0x147   :  { %v3377_v26 = vpop.f32.mrf.mxu1  ;;  %v6328_v27 = vadd.f32 %v3375_v23, %v3335_v24  ;;  %3629 = vmatpush1.bf16.msra.mxu0 %v4906_v20  ;;  %v4971_v14 = vld [vmem:[%s6907_s1 + $0x78c] ss:$16 sps:$4 sm:$0xff]   ;;  %v4975_v22 = vld [vmem:[%s6907_s1 + $0x768] ss:$16 sps:$4 sm:$0xff]  }
 0x148   :  { %3670 = vmatpush1.bf16.msra.mxu1 %v4909_v21  ;;  %v3337_v34 = vpop.f32.mrf.mxu0  ;;  %3630 = vmatprep.subr.bf16.mxu0 %v4914_v16  ;;  %v4974_v19 = vld [vmem:[%s6907_s1 + $0x56c] ss:$16 sps:$4 sm:$0xff]   ;;  %v4972_v21 = vld [vmem:[%s6907_s1 + $0x568] ss:$16 sps:$4 sm:$0xff]  }
 0x149   :  { %v3378_v63 = vpop.f32.mrf.mxu1  ;;  %3671 = vmatprep.subr.bf16.mxu1 %v4917_v17  ;;  %v4977_v20 = vld [vmem:[%s6907_s1 + $0x76c] ss:$16 sps:$4 sm:$0xff]   ;;  %v4978_v17 = vld [vmem:[%s6907_s1 + $0x548] ss:$16 sps:$4 sm:$0xff]  }
 0x14a   :  { %v4980_v23 = vld [vmem:[%s6907_s1 + $0x54c] ss:$16 sps:$4 sm:$0xff]   ;;  %v4981_v24 = vld [vmem:[%s6907_s1 + $0x748] ss:$16 sps:$4 sm:$0xff]  }
 0x14b   :  { %3631 = vmatpush1.bf16.msra.mxu0 %v4912_v28  ;;  %v4983_v16 = vld [vmem:[%s6907_s1 + $0x74c] ss:$16 sps:$4 sm:$0xff]   ;;  %v4984_v28 = vld [vmem:[%s6907_s1 + $0x528] ss:$16 sps:$4 sm:$0xff]  }
 0x14c   :  { %3672 = vmatpush1.bf16.msra.mxu1 %v4915_v31  ;;  %3632 = vmatprep.subr.bf16.mxu0 %v4920_v53  ;;  %v4986_v25 = vld [vmem:[%s6907_s1 + $0x52c] ss:$16 sps:$4 sm:$0xff]   ;;  %v4987_v31 = vld [vmem:[%s6907_s1 + $0x728] ss:$16 sps:$4 sm:$0xff]  }
 0x14d   :  { %3673 = vmatprep.subr.bf16.mxu1 %v4923_v57  ;;  %v4989_v26 = vld [vmem:[%s6907_s1 + $0x72c] ss:$16 sps:$4 sm:$0xff]   ;;  %v4990_v53 = vld [vmem:[%s6907_s1 + $0x508] ss:$16 sps:$4 sm:$0xff]  }
 0x14e   :  { %v4992_v34 = vld [vmem:[%s6907_s1 + $0x50c] ss:$16 sps:$4 sm:$0xff]   ;;  %v4993_v57 = vld [vmem:[%s6907_s1 + $0x708] ss:$16 sps:$4 sm:$0xff]  }
 0x14f   :  { %3633 = vmatpush1.bf16.msra.mxu0 %v4918_v35  ;;  %v4995_v63 = vld [vmem:[%s6907_s1 + $0x70c] ss:$16 sps:$4 sm:$0xff]  }
 0x150   :  { %3674 = vmatpush1.bf16.msra.mxu1 %v4921_v58  ;;  %3634 = vmatprep.subr.bf16.mxu0 %v4926_v59  ;;  %v4998_v35 = vld [vmem:[%s6907_s1 + $0x8ec] ss:$16 sps:$4 sm:$0xff]   ;;  %v4996_v59 = vld [vmem:[%s6907_s1 + $0x8e8] ss:$16 sps:$4 sm:$0xff]  }
 0x151   :  { %3675 = vmatprep.subr.bf16.mxu1 %v4929_v36  ;;  %v5001_v58 = vld [vmem:[%s6907_s1 + $0xaec] ss:$16 sps:$4 sm:$0xff]   ;;  %v4999_v36 = vld [vmem:[%s6907_s1 + $0xae8] ss:$16 sps:$4 sm:$0xff]  }
 0x153   :  { %3635 = vmatpush1.bf16.msra.mxu0 %v4924_v37  ;;  %v5004_v37 = vld [vmem:[%s6907_s1 + $0x8cc] ss:$16 sps:$4 sm:$0xff]  }
 0x154   :  { %3676 = vmatpush1.bf16.msra.mxu1 %v4927_v38  ;;  %3636 = vmatprep.subr.bf16.mxu0 %v4932_v40  ;;  %v5007_v38 = vld [vmem:[%s6907_s1 + $0xacc] ss:$16 sps:$4 sm:$0xff]  }
 0x155   :  { %3677 = vmatprep.subr.bf16.mxu1 %v4935_v41 }
 0x157   :  { %3637 = vmatpush1.bf16.msra.mxu0 %v4930_v42 }
 0x158   :  { %3678 = vmatpush1.bf16.msra.mxu1 %v4933_v45  ;;  %3638 = vmatprep.subr.bf16.mxu0 %v4938_v46  ;;  %v5002_v45 = vld [vmem:[%s6907_s1 + $0x8c8] ss:$16 sps:$4 sm:$0xff]  }
 0x159   :  { %3679 = vmatprep.subr.bf16.mxu1 %v4941_v47  ;;  %v5005_v46 = vld [vmem:[%s6907_s1 + $0xac8] ss:$16 sps:$4 sm:$0xff]  }
 0x15b   :  { %3639 = vmatpush1.bf16.msra.mxu0 %v4936_v50 }
 0x15c   :  { %3680 = vmatpush1.bf16.msra.mxu1 %v4939_v54  ;;  %3640 = vmatprep.subr.bf16.mxu0 %v4944_v55 }
 0x15d   :  { %3681 = vmatprep.subr.bf16.mxu1 %v4947_v56 }
 0x15f   :  { %3641 = vmatpush1.bf16.msra.mxu0 %v4942_v60 }
 0x160   :  { %3682 = vmatpush1.bf16.msra.mxu1 %v4945_v61  ;;  %3642 = vmatprep.subr.bf16.mxu0 %v4950_v0  ;;  %v5008_v61 = vld [vmem:[%s6907_s1 + $0x8a8] ss:$16 sps:$4 sm:$0xff]  }
 0x161   :  { %3683 = vmatprep.subr.bf16.mxu1 %v4953_v1  ;;  %v5011_v0 = vld [vmem:[%s6907_s1 + $0xaa8] ss:$16 sps:$4 sm:$0xff]  }
 0x163   :  { %3643 = vmatpush2.bf16.msra.mxu0 %v4948_v2  ;;  %v5014_v2 = vld [vmem:[%s6907_s1 + $0x888] ss:$16 sps:$4 sm:$0xff]  }
 0x164   :  { %3684 = vmatpush2.bf16.msra.mxu1 %v4951_v62  ;;  %3644 = vmatprep.subr.bf16.mxu0 %v4956_v3  ;;  %v5017_v62 = vld [vmem:[%s6907_s1 + $0xa88] ss:$16 sps:$4 sm:$0xff]   ;;  %v5022_v3 = vld [vmem:[%s6907_s1 + $0x86c] ss:$16 sps:$4 sm:$0xff]  }
 0x165   :  { %3685 = vmatprep.subr.bf16.mxu1 %v4959_v6  ;;  %v5025_v6 = vld [vmem:[%s6907_s1 + $0xa6c] ss:$16 sps:$4 sm:$0xff]  }
 0x167   :  { %3645 = vmatpush2.bf16.msra.mxu0 %v4954_v7  ;;  %v5020_v7 = vld [vmem:[%s6907_s1 + $0x868] ss:$16 sps:$4 sm:$0xff]  }
 0x168   :  { %3686 = vmatpush2.bf16.msra.mxu1 %v4957_v39  ;;  %3646 = vmatprep.subr.bf16.mxu0 %v4962_v44  ;;  %v5023_v39 = vld [vmem:[%s6907_s1 + $0xa68] ss:$16 sps:$4 sm:$0xff]   ;;  %v5028_v44 = vld [vmem:[%s6907_s1 + $0x84c] ss:$16 sps:$4 sm:$0xff]  }
 0x169   :  { %3687 = vmatprep.subr.bf16.mxu1 %v4965_v10  ;;  %v5031_v10 = vld [vmem:[%s6907_s1 + $0xa4c] ss:$16 sps:$4 sm:$0xff]  }
 0x16b   :  { %3647 = vmatpush2.bf16.msra.mxu0 %v4960_v11  ;;  %v5026_v11 = vld [vmem:[%s6907_s1 + $0x848] ss:$16 sps:$4 sm:$0xff]  }
 0x16c   :  { %3688 = vmatpush2.bf16.msra.mxu1 %v4963_v12  ;;  %3648 = vmatprep.subr.bf16.mxu0 %v4968_v13  ;;  %v5029_v12 = vld [vmem:[%s6907_s1 + $0xa48] ss:$16 sps:$4 sm:$0xff]   ;;  %v5034_v13 = vld [vmem:[%s6907_s1 + $0x82c] ss:$16 sps:$4 sm:$0xff]  }
 0x16d   :  { %3689 = vmatprep.subr.bf16.mxu1 %v4971_v14  ;;  %v5037_v14 = vld [vmem:[%s6907_s1 + $0xa2c] ss:$16 sps:$4 sm:$0xff]  }
 0x16f   :  { %3649 = vmatpush2.bf16.msra.mxu0 %v4966_v15  ;;  %v5032_v15 = vld [vmem:[%s6907_s1 + $0x828] ss:$16 sps:$4 sm:$0xff]  }
 0x170   :  { %3690 = vmatpush2.bf16.msra.mxu1 %v4969_v18  ;;  %3650 = vmatprep.subr.bf16.mxu0 %v4974_v19  ;;  %v5035_v18 = vld [vmem:[%s6907_s1 + $0xa28] ss:$16 sps:$4 sm:$0xff]   ;;  %v5040_v19 = vld [vmem:[%s6907_s1 + $0x80c] ss:$16 sps:$4 sm:$0xff]  }
 0x171   :  { %3691 = vmatprep.subr.bf16.mxu1 %v4977_v20  ;;  %v5043_v20 = vld [vmem:[%s6907_s1 + $0xa0c] ss:$16 sps:$4 sm:$0xff]  }
 0x173   :  { %3651 = vmatpush2.bf16.msra.mxu0 %v4972_v21  ;;  %v5038_v21 = vld [vmem:[%s6907_s1 + $0x808] ss:$16 sps:$4 sm:$0xff]  }
 0x174   :  { %3692 = vmatpush2.bf16.msra.mxu1 %v4975_v22  ;;  %3652 = vmatprep.subr.bf16.mxu0 %v4980_v23  ;;  %v5041_v22 = vld [vmem:[%s6907_s1 + $0xa08] ss:$16 sps:$4 sm:$0xff]   ;;  %v5046_v23 = vld [vmem:[%s6907_s1 + $0x9ec] ss:$16 sps:$4 sm:$0xff]  }
 0x175   :  { %3693 = vmatprep.subr.bf16.mxu1 %v4983_v16  ;;  %v5049_v16 = vld [vmem:[%s6907_s1 + $0xbec] ss:$16 sps:$4 sm:$0xff]  }
 0x177   :  { %3653 = vmatpush2.bf16.msra.mxu0 %v4978_v17  ;;  %v5044_v17 = vld [vmem:[%s6907_s1 + $0x9e8] ss:$16 sps:$4 sm:$0xff]  }
 0x178   :  { %3694 = vmatpush2.bf16.msra.mxu1 %v4981_v24  ;;  %3654 = vmatprep.subr.bf16.mxu0 %v4986_v25  ;;  %v5047_v24 = vld [vmem:[%s6907_s1 + $0xbe8] ss:$16 sps:$4 sm:$0xff]   ;;  %v5052_v25 = vld [vmem:[%s6907_s1 + $0x9cc] ss:$16 sps:$4 sm:$0xff]  }
 0x179   :  { %3695 = vmatprep.subr.bf16.mxu1 %v4989_v26  ;;  %v5055_v26 = vld [vmem:[%s6907_s1 + $0xbcc] ss:$16 sps:$4 sm:$0xff]  }
 0x17b   :  { %3655 = vmatpush2.bf16.msra.mxu0 %v4984_v28  ;;  %v5050_v28 = vld [vmem:[%s6907_s1 + $0x9c8] ss:$16 sps:$4 sm:$0xff]  }
 0x17c   :  { %3696 = vmatpush2.bf16.msra.mxu1 %v4987_v31  ;;  %3656 = vmatprep.subr.bf16.mxu0 %v4992_v34  ;;  %v5053_v31 = vld [vmem:[%s6907_s1 + $0xbc8] ss:$16 sps:$4 sm:$0xff]   ;;  %v5058_v34 = vld [vmem:[%s6907_s1 + $0x9ac] ss:$16 sps:$4 sm:$0xff]  }
 0x17d   :  { %3697 = vmatprep.subr.bf16.mxu1 %v4995_v63  ;;  %v5061_v63 = vld [vmem:[%s6907_s1 + $0xbac] ss:$16 sps:$4 sm:$0xff]  }
 0x17f   :  { %3657 = vmatpush2.bf16.msra.mxu0 %v4990_v53  ;;  %v5056_v53 = vld [vmem:[%s6907_s1 + $0x9a8] ss:$16 sps:$4 sm:$0xff]  }
 0x180   :  { %3698 = vmatpush2.bf16.msra.mxu1 %v4993_v57  ;;  %3708 = vmatprep.subr.bf16.mxu0 %v4998_v35  ;;  %v5059_v57 = vld [vmem:[%s6907_s1 + $0xba8] ss:$16 sps:$4 sm:$0xff]   ;;  %v5064_v35 = vld [vmem:[%s6907_s1 + $0x98c] ss:$16 sps:$4 sm:$0xff]  }
 0x181   :  { %3749 = vmatprep.subr.bf16.mxu1 %v5001_v58  ;;  %v5067_v58 = vld [vmem:[%s6907_s1 + $0xb8c] ss:$16 sps:$4 sm:$0xff]  }
 0x182   :  { %v3414_v40 = vpop.f32.mrf.mxu0  ;;  %3659 = vmatmul.mubr.bf16.vlgmr.msra.gmra.mxu0 %v5643_v32  ;;  %v5010_v32 = vld [vmem:[%s6907_s1 + $0x8ac] ss:$16 sps:$4 sm:$0xff]  }
 0x183   :  { %v3455_v41 = vpop.f32.mrf.mxu1  ;;  %3700 = vmatmul.mubr.bf16.vlgmr.msra.gmra.mxu1 %v5647_v33  ;;  %v3415_v42 = vadd.f32 %v3414_v40, %v6323_v51  ;;  %3709 = vmatpush1.bf16.msra.mxu0 %v4996_v59  ;;  %v5013_v33 = vld [vmem:[%s6907_s1 + $0xaac] ss:$16 sps:$4 sm:$0xff]   ;;  %v5062_v59 = vld [vmem:[%s6907_s1 + $0x988] ss:$16 sps:$4 sm:$0xff]  }
 0x184   :  { %3750 = vmatpush1.bf16.msra.mxu1 %v4999_v36  ;;  %v3416_v47 = vpop.f32.mrf.mxu0  ;;  %3710 = vmatprep.subr.bf16.mxu0 %v5004_v37  ;;  %v5065_v36 = vld [vmem:[%s6907_s1 + $0xb88] ss:$16 sps:$4 sm:$0xff]   ;;  %v5070_v37 = vld [vmem:[%s6907_s1 + $0x96c] ss:$16 sps:$4 sm:$0xff]  }
 0x185   :  { %v3457_v50 = vpop.f32.mrf.mxu1  ;;  %3751 = vmatprep.subr.bf16.mxu1 %v5007_v38  ;;  %v6525_v51 = vadd.f32 %v3455_v41, %v3415_v42  ;;  %v3417_v54 = vadd.f32 %v3416_v47, %v6328_v27  ;;  %3740 = vmatprep.mubr.bf16.mxu0 %v5686_v48  ;;  %v5016_v48 = vld [vmem:[%s6907_s1 + $0x88c] ss:$16 sps:$4 sm:$0xff]   ;;  %v5068_v40 = vld [vmem:[%s6907_s1 + $0x968] ss:$16 sps:$4 sm:$0xff]  }
 0x186   :  { %3781 = vmatprep.mubr.bf16.mxu1 %v5694_v52  ;;  %v3418_v55 = vpop.f32.mrf.mxu0  ;;  %v5019_v52 = vld [vmem:[%s6907_s1 + $0xa8c] ss:$16 sps:$4 sm:$0xff]   ;;  %v5071_v41 = vld [vmem:[%s6907_s1 + $0xb68] ss:$16 sps:$4 sm:$0xff]  }
 0x187   :  { %v3459_v56 = vpop.f32.mrf.mxu1  ;;  %v6530_v60 = vadd.f32 %v3457_v50, %v3417_v54  ;;  %3711 = vmatpush1.bf16.msra.mxu0 %v5002_v45  ;;  %v5073_v38 = vld [vmem:[%s6907_s1 + $0xb6c] ss:$16 sps:$4 sm:$0xff]   ;;  %v5077_v47 = vld [vmem:[%s6907_s1 + $0xb48] ss:$16 sps:$4 sm:$0xff]  }
 0x188   :  { %3752 = vmatpush1.bf16.msra.mxu1 %v5005_v46  ;;  %v3419_v1 = vpop.f32.mrf.mxu0  ;;  %3712 = vmatprep.subr.bf16.mxu0 %v5010_v32  ;;  %v5076_v42 = vld [vmem:[%s6907_s1 + $0x94c] ss:$16 sps:$4 sm:$0xff]   ;;  %v5074_v46 = vld [vmem:[%s6907_s1 + $0x948] ss:$16 sps:$4 sm:$0xff]  }
 0x189   :  { %v3460_v27 = vpop.f32.mrf.mxu1  ;;  %3753 = vmatprep.subr.bf16.mxu1 %v5013_v33  ;;  %v5079_v45 = vld [vmem:[%s6907_s1 + $0xb4c] ss:$16 sps:$4 sm:$0xff]   ;;  %v5080_v33 = vld [vmem:[%s6907_s1 + $0x928] ss:$16 sps:$4 sm:$0xff]  }
 0x18a   :  { %v5082_v50 = vld [vmem:[%s6907_s1 + $0x92c] ss:$16 sps:$4 sm:$0xff]   ;;  %v5083_v54 = vld [vmem:[%s6907_s1 + $0xb28] ss:$16 sps:$4 sm:$0xff]  }
 0x18b   :  { %3713 = vmatpush1.bf16.msra.mxu0 %v5008_v61  ;;  %v5085_v32 = vld [vmem:[%s6907_s1 + $0xb2c] ss:$16 sps:$4 sm:$0xff]   ;;  %v5086_v61 = vld [vmem:[%s6907_s1 + $0x908] ss:$16 sps:$4 sm:$0xff]  }
 0x18c   :  { %3754 = vmatpush1.bf16.msra.mxu1 %v5011_v0  ;;  %3714 = vmatprep.subr.bf16.mxu0 %v5016_v48  ;;  %v5088_v55 = vld [vmem:[%s6907_s1 + $0x90c] ss:$16 sps:$4 sm:$0xff]   ;;  %v5089_v0 = vld [vmem:[%s6907_s1 + $0xb08] ss:$16 sps:$4 sm:$0xff]  }
 0x18d   :  { %3755 = vmatprep.subr.bf16.mxu1 %v5019_v52  ;;  %v5091_v56 = vld [vmem:[%s6907_s1 + $0xb0c] ss:$16 sps:$4 sm:$0xff]   ;;  %v5092_v48 = vld [vmem:[%s6907_s1 + $0xce8] ss:$16 sps:$4 sm:$0xff]  }
 0x18e   :  { %v5094_v1 = vld [vmem:[%s6907_s1 + $0xcec] ss:$16 sps:$4 sm:$0xff]   ;;  %v5095_v52 = vld [vmem:[%s6907_s1 + $0xee8] ss:$16 sps:$4 sm:$0xff]  }
 0x18f   :  { %3715 = vmatpush1.bf16.msra.mxu0 %v5014_v2  ;;  %v5097_v27 = vld [vmem:[%s6907_s1 + $0xeec] ss:$16 sps:$4 sm:$0xff]  }
 0x190   :  { %3756 = vmatpush1.bf16.msra.mxu1 %v5017_v62  ;;  %3716 = vmatprep.subr.bf16.mxu0 %v5022_v3  ;;  %v5100_v2 = vld [vmem:[%s6907_s1 + $0xccc] ss:$16 sps:$4 sm:$0xff]  }
 0x191   :  { %3757 = vmatprep.subr.bf16.mxu1 %v5025_v6  ;;  %v5103_v62 = vld [vmem:[%s6907_s1 + $0xecc] ss:$16 sps:$4 sm:$0xff]  }
 0x193   :  { %3717 = vmatpush1.bf16.msra.mxu0 %v5020_v7 }
 0x194   :  { %3758 = vmatpush1.bf16.msra.mxu1 %v5023_v39  ;;  %3718 = vmatprep.subr.bf16.mxu0 %v5028_v44  ;;  %v5098_v39 = vld [vmem:[%s6907_s1 + $0xcc8] ss:$16 sps:$4 sm:$0xff]  }
 0x195   :  { %3759 = vmatprep.subr.bf16.mxu1 %v5031_v10  ;;  %v5101_v44 = vld [vmem:[%s6907_s1 + $0xec8] ss:$16 sps:$4 sm:$0xff]  }
 0x197   :  { %3719 = vmatpush1.bf16.msra.mxu0 %v5026_v11 }
 0x198   :  { %3760 = vmatpush1.bf16.msra.mxu1 %v5029_v12  ;;  %3720 = vmatprep.subr.bf16.mxu0 %v5034_v13 }
 0x199   :  { %3761 = vmatprep.subr.bf16.mxu1 %v5037_v14 }
 0x19b   :  { %3721 = vmatpush1.bf16.msra.mxu0 %v5032_v15 }
 0x19c   :  { %3762 = vmatpush1.bf16.msra.mxu1 %v5035_v18  ;;  %3722 = vmatprep.subr.bf16.mxu0 %v5040_v19  ;;  %v5104_v18 = vld [vmem:[%s6907_s1 + $0xca8] ss:$16 sps:$4 sm:$0xff]  }
 0x19d   :  { %3763 = vmatprep.subr.bf16.mxu1 %v5043_v20  ;;  %v5107_v19 = vld [vmem:[%s6907_s1 + $0xea8] ss:$16 sps:$4 sm:$0xff]  }
 0x19f   :  { %3723 = vmatpush1.bf16.msra.mxu0 %v5038_v21 }
 0x1a0   :  { %3764 = vmatpush1.bf16.msra.mxu1 %v5041_v22  ;;  %3724 = vmatprep.subr.bf16.mxu0 %v5046_v23 }
 0x1a1   :  { %3765 = vmatprep.subr.bf16.mxu1 %v5049_v16  ;;  %v5110_v16 = vld [vmem:[%s6907_s1 + $0xc88] ss:$16 sps:$4 sm:$0xff]  }
 0x1a3   :  { %3725 = vmatpush2.bf16.msra.mxu0 %v5044_v17  ;;  %v5113_v17 = vld [vmem:[%s6907_s1 + $0xe88] ss:$16 sps:$4 sm:$0xff]  }
 0x1a4   :  { %3766 = vmatpush2.bf16.msra.mxu1 %v5047_v24  ;;  %3726 = vmatprep.subr.bf16.mxu0 %v5052_v25  ;;  %v5118_v24 = vld [vmem:[%s6907_s1 + $0xc6c] ss:$16 sps:$4 sm:$0xff]  }
 0x1a5   :  { %3767 = vmatprep.subr.bf16.mxu1 %v5055_v26  ;;  %v5121_v25 = vld [vmem:[%s6907_s1 + $0xe6c] ss:$16 sps:$4 sm:$0xff]   ;;  %v5116_v26 = vld [vmem:[%s6907_s1 + $0xc68] ss:$16 sps:$4 sm:$0xff]  }
 0x1a7   :  { %3727 = vmatpush2.bf16.msra.mxu0 %v5050_v28  ;;  %v5119_v28 = vld [vmem:[%s6907_s1 + $0xe68] ss:$16 sps:$4 sm:$0xff]  }
 0x1a8   :  { %3768 = vmatpush2.bf16.msra.mxu1 %v5053_v31  ;;  %3728 = vmatprep.subr.bf16.mxu0 %v5058_v34  ;;  %v5124_v31 = vld [vmem:[%s6907_s1 + $0xc4c] ss:$16 sps:$4 sm:$0xff]  }
 0x1a9   :  { %3769 = vmatprep.subr.bf16.mxu1 %v5061_v63  ;;  %v5127_v34 = vld [vmem:[%s6907_s1 + $0xe4c] ss:$16 sps:$4 sm:$0xff]   ;;  %v5122_v63 = vld [vmem:[%s6907_s1 + $0xc48] ss:$16 sps:$4 sm:$0xff]  }
 0x1ab   :  { %3729 = vmatpush2.bf16.msra.mxu0 %v5056_v53  ;;  %v5125_v53 = vld [vmem:[%s6907_s1 + $0xe48] ss:$16 sps:$4 sm:$0xff]  }
 0x1ac   :  { %3770 = vmatpush2.bf16.msra.mxu1 %v5059_v57  ;;  %3730 = vmatprep.subr.bf16.mxu0 %v5064_v35  ;;  %v5130_v57 = vld [vmem:[%s6907_s1 + $0xc2c] ss:$16 sps:$4 sm:$0xff]  }
 0x1ad   :  { %3771 = vmatprep.subr.bf16.mxu1 %v5067_v58  ;;  %v5133_v35 = vld [vmem:[%s6907_s1 + $0xe2c] ss:$16 sps:$4 sm:$0xff]   ;;  %v5128_v58 = vld [vmem:[%s6907_s1 + $0xc28] ss:$16 sps:$4 sm:$0xff]  }
 0x1af   :  { %3731 = vmatpush2.bf16.msra.mxu0 %v5062_v59  ;;  %v5131_v59 = vld [vmem:[%s6907_s1 + $0xe28] ss:$16 sps:$4 sm:$0xff]  }
 0x1b0   :  { %3772 = vmatpush2.bf16.msra.mxu1 %v5065_v36  ;;  %3732 = vmatprep.subr.bf16.mxu0 %v5070_v37  ;;  %v5136_v36 = vld [vmem:[%s6907_s1 + $0xc0c] ss:$16 sps:$4 sm:$0xff]  }
 0x1b1   :  { %3773 = vmatprep.subr.bf16.mxu1 %v5073_v38  ;;  %v5139_v37 = vld [vmem:[%s6907_s1 + $0xe0c] ss:$16 sps:$4 sm:$0xff]   ;;  %v5134_v38 = vld [vmem:[%s6907_s1 + $0xc08] ss:$16 sps:$4 sm:$0xff]  }
 0x1b3   :  { %3733 = vmatpush2.bf16.msra.mxu0 %v5068_v40  ;;  %v5137_v40 = vld [vmem:[%s6907_s1 + $0xe08] ss:$16 sps:$4 sm:$0xff]  }
 0x1b4   :  { %3774 = vmatpush2.bf16.msra.mxu1 %v5071_v41  ;;  %3734 = vmatprep.subr.bf16.mxu0 %v5076_v42  ;;  %v5142_v41 = vld [vmem:[%s6907_s1 + $0xdec] ss:$16 sps:$4 sm:$0xff]  }
 0x1b5   :  { %3775 = vmatprep.subr.bf16.mxu1 %v5079_v45  ;;  %v5145_v42 = vld [vmem:[%s6907_s1 + $0xfec] ss:$16 sps:$4 sm:$0xff]   ;;  %v5140_v45 = vld [vmem:[%s6907_s1 + $0xde8] ss:$16 sps:$4 sm:$0xff]  }
 0x1b7   :  { %3735 = vmatpush2.bf16.msra.mxu0 %v5074_v46  ;;  %v5143_v46 = vld [vmem:[%s6907_s1 + $0xfe8] ss:$16 sps:$4 sm:$0xff]  }
 0x1b8   :  { %3776 = vmatpush2.bf16.msra.mxu1 %v5077_v47  ;;  %3736 = vmatprep.subr.bf16.mxu0 %v5082_v50  ;;  %v5148_v47 = vld [vmem:[%s6907_s1 + $0xdcc] ss:$16 sps:$4 sm:$0xff]  }
 0x1b9   :  { %3777 = vmatprep.subr.bf16.mxu1 %v5085_v32  ;;  %v5151_v50 = vld [vmem:[%s6907_s1 + $0xfcc] ss:$16 sps:$4 sm:$0xff]   ;;  %v5146_v32 = vld [vmem:[%s6907_s1 + $0xdc8] ss:$16 sps:$4 sm:$0xff]  }
 0x1bb   :  { %3737 = vmatpush2.bf16.msra.mxu0 %v5080_v33  ;;  %v5149_v33 = vld [vmem:[%s6907_s1 + $0xfc8] ss:$16 sps:$4 sm:$0xff]  }
 0x1bc   :  { %3778 = vmatpush2.bf16.msra.mxu1 %v5083_v54  ;;  %3738 = vmatprep.subr.bf16.mxu0 %v5088_v55  ;;  %v5154_v54 = vld [vmem:[%s6907_s1 + $0xdac] ss:$16 sps:$4 sm:$0xff]  }
 0x1bd   :  { %3779 = vmatprep.subr.bf16.mxu1 %v5091_v56  ;;  %v5157_v55 = vld [vmem:[%s6907_s1 + $0xfac] ss:$16 sps:$4 sm:$0xff]   ;;  %v5152_v56 = vld [vmem:[%s6907_s1 + $0xda8] ss:$16 sps:$4 sm:$0xff]  }
 0x1bf   :  { %3739 = vmatpush2.bf16.msra.mxu0 %v5086_v61  ;;  %v5155_v61 = vld [vmem:[%s6907_s1 + $0xfa8] ss:$16 sps:$4 sm:$0xff]  }
 0x1c0   :  { %3780 = vmatpush2.bf16.msra.mxu1 %v5089_v0  ;;  %3790 = vmatprep.subr.bf16.mxu0 %v5094_v1  ;;  %v5160_v0 = vld [vmem:[%s6907_s1 + $0xd8c] ss:$16 sps:$4 sm:$0xff]  }
 0x1c1   :  { %3831 = vmatprep.subr.bf16.mxu1 %v5097_v27  ;;  %v5163_v1 = vld [vmem:[%s6907_s1 + $0xf8c] ss:$16 sps:$4 sm:$0xff]   ;;  %v5158_v27 = vld [vmem:[%s6907_s1 + $0xd88] ss:$16 sps:$4 sm:$0xff]  }
 0x1c2   :  { %v3496_v3 = vpop.f32.mrf.mxu0  ;;  %3741 = vmatmul.mubr.bf16.vlgmr.msra.gmra.mxu0 %v5877_v4  ;;  %v5106_v4 = vld [vmem:[%s6907_s1 + $0xcac] ss:$16 sps:$4 sm:$0xff]  }
 0x1c3   :  { %v3537_v6 = vpop.f32.mrf.mxu1  ;;  %3782 = vmatmul.mubr.bf16.vlgmr.msra.gmra.mxu1 %v5881_v5  ;;  %v3497_v7 = vadd.f32 %v3496_v3, %v6525_v51  ;;  %3791 = vmatpush1.bf16.msra.mxu0 %v5092_v48  ;;  %v5109_v5 = vld [vmem:[%s6907_s1 + $0xeac] ss:$16 sps:$4 sm:$0xff]   ;;  %v5161_v48 = vld [vmem:[%s6907_s1 + $0xf88] ss:$16 sps:$4 sm:$0xff]  }
 0x1c4   :  { %3832 = vmatpush1.bf16.msra.mxu1 %v5095_v52  ;;  %v3498_v10 = vpop.f32.mrf.mxu0  ;;  %3792 = vmatprep.subr.bf16.mxu0 %v5100_v2  ;;  %v5166_v52 = vld [vmem:[%s6907_s1 + $0xd6c] ss:$16 sps:$4 sm:$0xff]   ;;  %v5167_v3 = vld [vmem:[%s6907_s1 + $0xf68] ss:$16 sps:$4 sm:$0xff]  }
 0x1c5   :  { %v3539_v11 = vpop.f32.mrf.mxu1  ;;  %3833 = vmatprep.subr.bf16.mxu1 %v5103_v62  ;;  %v3538_v51 = vadd.f32 %v3537_v6, %v3497_v7  ;;  %v3499_v12 = vadd.f32 %v3498_v10, %v6530_v60  ;;  %3822 = vmatprep.mubr.bf16.mxu0 %v5895_v8  ;;  %v5112_v8 = vld [vmem:[%s6907_s1 + $0xc8c] ss:$16 sps:$4 sm:$0xff]   ;;  %v5164_v62 = vld [vmem:[%s6907_s1 + $0xd68] ss:$16 sps:$4 sm:$0xff]  }
 0x1c6   :  { %3863 = vmatprep.mubr.bf16.mxu1 %v5897_v9  ;;  %v3500_v13 = vpop.f32.mrf.mxu0  ;;  %v5115_v9 = vld [vmem:[%s6907_s1 + $0xe8c] ss:$16 sps:$4 sm:$0xff]  }
 0x1c7   :  { %v3541_v14 = vpop.f32.mrf.mxu1  ;;  %v3540_v15 = vadd.f32 %v3539_v11, %v3499_v12  ;;  %3793 = vmatpush1.bf16.msra.mxu0 %v5098_v39  ;;  %v3872_v60 = vmax.f32 %v3538_v51, 0.0  ;;  %v5169_v2 = vld [vmem:[%s6907_s1 + $0xf6c] ss:$16 sps:$4 sm:$0xff]   ;;  %v5170_v39 = vld [vmem:[%s6907_s1 + $0xd48] ss:$16 sps:$4 sm:$0xff]  }
 0x1c8   :  { %3834 = vmatpush1.bf16.msra.mxu1 %v5101_v44  ;;  %v3501_v20 = vpop.f32.mrf.mxu0  ;;  %3794 = vmatprep.subr.bf16.mxu0 %v5106_v4  ;;  %v5172_v6 = vld [vmem:[%s6907_s1 + $0xd4c] ss:$16 sps:$4 sm:$0xff]   ;;  %v5173_v44 = vld [vmem:[%s6907_s1 + $0xf48] ss:$16 sps:$4 sm:$0xff]  }
 0x1c9   :  { %v3542_v21 = vpop.f32.mrf.mxu1  ;;  %3835 = vmatprep.subr.bf16.mxu1 %v5109_v5  ;;  %v3873_v22 = vmax.f32 %v3540_v15, 0.0  ;;  %v5175_v7 = vld [vmem:[%s6907_s1 + $0xf4c] ss:$16 sps:$4 sm:$0xff]   ;;  %v5176_v4 = vld [vmem:[%s6907_s1 + $0xd28] ss:$16 sps:$4 sm:$0xff]   ;;  %v646_v15 = vsub.s32 2, %v5327_v43 }
 0x1ca   :  { %v5178_v10 = vld [vmem:[%s6907_s1 + $0xd2c] ss:$16 sps:$4 sm:$0xff]   ;;  %v5179_v5 = vld [vmem:[%s6907_s1 + $0xf28] ss:$16 sps:$4 sm:$0xff]  }
 0x1cb   :  { %v6742_v23 = vcombine.low %v3872_v60, %v3873_v22  ;;  %3795 = vmatpush1.bf16.msra.mxu0 %v5104_v18  ;;  %v5181_v11 = vld [vmem:[%s6907_s1 + $0xf2c] ss:$16 sps:$4 sm:$0xff]   ;;  %v5182_v13 = vld [vmem:[%s6907_s1 + $0xd08] ss:$16 sps:$4 sm:$0xff]   ;;  %v650_v18 = vsub.s32 3, %v5327_v43 }
 0x1cc   :  { %3836 = vmatpush1.bf16.msra.mxu1 %v5107_v19  ;;  %3796 = vmatprep.subr.bf16.mxu0 %v5112_v8  ;;  %v5184_v51 = vld [vmem:[%s6907_s1 + $0xd0c] ss:$16 sps:$4 sm:$0xff]   ;;  %v5185_v14 = vld [vmem:[%s6907_s1 + $0xf08] ss:$16 sps:$4 sm:$0xff]   ;;  %v5188_v19 = vld [vmem:[%s6909_s2] sm:$0xf] }
 0x1cd   :  { %3837 = vmatprep.subr.bf16.mxu1 %v5115_v9  ;;  %v5187_v12 = vld [vmem:[%s6907_s1 + $0xf0c] ss:$16 sps:$4 sm:$0xff]   ;;  %v647_v20 = vrot.slane %v5188_v19, %v646_v15  ;;  %v651_v21 = vrot.slane %v5188_v19, %v650_v18 }
 0x1cf   :  { %3797 = vmatpush1.bf16.msra.mxu0 %v5110_v16 }
 0x1d0   :  { %3838 = vmatpush1.bf16.msra.mxu1 %v5113_v17  ;;  %3798 = vmatprep.subr.bf16.mxu0 %v5118_v24 }
 0x1d1   :  { %3839 = vmatprep.subr.bf16.mxu1 %v5121_v25 }
 0x1d3   :  { %3799 = vmatpush1.bf16.msra.mxu0 %v5116_v26 }
 0x1d4   :  { %3840 = vmatpush1.bf16.msra.mxu1 %v5119_v28  ;;  %3800 = vmatprep.subr.bf16.mxu0 %v5124_v31 }
 0x1d5   :  { %3841 = vmatprep.subr.bf16.mxu1 %v5127_v34 }
 0x1d7   :  { %3801 = vmatpush1.bf16.msra.mxu0 %v5122_v63 }
 0x1d8   :  { %3842 = vmatpush1.bf16.msra.mxu1 %v5125_v53  ;;  %3802 = vmatprep.subr.bf16.mxu0 %v5130_v57 }
 0x1d9   :  { %3843 = vmatprep.subr.bf16.mxu1 %v5133_v35 }
 0x1db   :  { %3803 = vmatpush1.bf16.msra.mxu0 %v5128_v58 }
 0x1dc   :  { %3844 = vmatpush1.bf16.msra.mxu1 %v5131_v59  ;;  %3804 = vmatprep.subr.bf16.mxu0 %v5136_v36 }
 0x1dd   :  { %3845 = vmatprep.subr.bf16.mxu1 %v5139_v37 }
 0x1df   :  { %3805 = vmatpush1.bf16.msra.mxu0 %v5134_v38 }
 0x1e0   :  { %3846 = vmatpush1.bf16.msra.mxu1 %v5137_v40  ;;  %3806 = vmatprep.subr.bf16.mxu0 %v5142_v41 }
 0x1e1   :  { %3847 = vmatprep.subr.bf16.mxu1 %v5145_v42 }
 0x1e3   :  { %3807 = vmatpush2.bf16.msra.mxu0 %v5140_v45 }
 0x1e4   :  { %3848 = vmatpush2.bf16.msra.mxu1 %v5143_v46  ;;  %3808 = vmatprep.subr.bf16.mxu0 %v5148_v47 }
 0x1e5   :  { %3849 = vmatprep.subr.bf16.mxu1 %v5151_v50 }
 0x1e7   :  { %3809 = vmatpush2.bf16.msra.mxu0 %v5146_v32 }
 0x1e8   :  { %3850 = vmatpush2.bf16.msra.mxu1 %v5149_v33  ;;  %3810 = vmatprep.subr.bf16.mxu0 %v5154_v54 }
 0x1e9   :  { %3851 = vmatprep.subr.bf16.mxu1 %v5157_v55 }
 0x1eb   :  { %3811 = vmatpush2.bf16.msra.mxu0 %v5152_v56 }
 0x1ec   :  { %3852 = vmatpush2.bf16.msra.mxu1 %v5155_v61  ;;  %3812 = vmatprep.subr.bf16.mxu0 %v5160_v0 }
 0x1ed   :  { %3853 = vmatprep.subr.bf16.mxu1 %v5163_v1 }
 0x1ef   :  { %3813 = vmatpush2.bf16.msra.mxu0 %v5158_v27 }
 0x1f0   :  { %3854 = vmatpush2.bf16.msra.mxu1 %v5161_v48  ;;  %3814 = vmatprep.subr.bf16.mxu0 %v5166_v52 }
 0x1f1   :  { %3855 = vmatprep.subr.bf16.mxu1 %v5169_v2 }
 0x1f3   :  { %3815 = vmatpush2.bf16.msra.mxu0 %v5164_v62 }
 0x1f4   :  { %3856 = vmatpush2.bf16.msra.mxu1 %v5167_v3  ;;  %3816 = vmatprep.subr.bf16.mxu0 %v5172_v6 }
 0x1f5   :  { %3857 = vmatprep.subr.bf16.mxu1 %v5175_v7 }
 0x1f7   :  { %3817 = vmatpush2.bf16.msra.mxu0 %v5170_v39 }
 0x1f8   :  { %3858 = vmatpush2.bf16.msra.mxu1 %v5173_v44  ;;  %3818 = vmatprep.subr.bf16.mxu0 %v5178_v10 }
 0x1f9   :  { %3859 = vmatprep.subr.bf16.mxu1 %v5181_v11 }
 0x1fb   :  { %3819 = vmatpush2.bf16.msra.mxu0 %v5176_v4  ;;  %v3888_v4 = vrot.slane %v6742_v23, %v5345_v49 }
 0x1fc   :  { %3860 = vmatpush2.bf16.msra.mxu1 %v5179_v5  ;;  %3820 = vmatprep.subr.bf16.mxu0 %v5184_v51 }
 0x1fd   :  { %3861 = vmatprep.subr.bf16.mxu1 %v5187_v12 }
 0x1ff   :  { %3821 = vmatpush2.bf16.msra.mxu0 %v5182_v13 }
 0x200   :  { %3862 = vmatpush2.bf16.msra.mxu1 %v5185_v14 }
 0x202   :  { %v3578_v8 = vpop.f32.mrf.mxu0  ;;  %3823 = vmatmul.mubr.bf16.vlgmr.msra.gmra.mxu0 %v6090_v29 }
 0x203   :  { %v3619_v9 = vpop.f32.mrf.mxu1  ;;  %3864 = vmatmul.mubr.bf16.vlgmr.msra.gmra.mxu1 %v6094_v30  ;;  %v3579_v60 = vadd.f32 %v3578_v8, %v647_v20 }
 0x204   :  { %v3580_v22 = vpop.f32.mrf.mxu0 }
 0x205   :  { %v3621_v16 = vpop.f32.mrf.mxu1  ;;  %v3620_v17 = vadd.f32 %v3619_v9, %v3579_v60  ;;  %v3581_v24 = vadd.f32 %v3580_v22, %v651_v21 }
 0x206   :  { %v3582_v43 = vpop.f32.mrf.mxu0 }
 0x207   :  { %v3623_v25 = vpop.f32.mrf.mxu1  ;;  %v3622_v26 = vadd.f32 %v3621_v16, %v3581_v24 }
 0x208   :  { %v3583_v28 = vpop.f32.mrf.mxu0 }
 0x209   :  { %v3624_v31 = vpop.f32.mrf.mxu1 }
 0x242   :  { %v3660_v34 = vpop.f32.mrf.mxu0 }
 0x243   :  { %v3701_v63 = vpop.f32.mrf.mxu1  ;;  %v3661_v53 = vadd.f32 %v3660_v34, %v3620_v17 }
 0x244   :  { %v3662_v57 = vpop.f32.mrf.mxu0 }
 0x245   :  { %v3703_v35 = vpop.f32.mrf.mxu1  ;;  %v3702_v58 = vadd.f32 %v3701_v63, %v3661_v53  ;;  %v3663_v59 = vadd.f32 %v3662_v57, %v3622_v26 }
 0x246   :  { %v3664_v29 = vpop.f32.mrf.mxu0 }
 0x247   :  { %v3705_v36 = vpop.f32.mrf.mxu1  ;;  %v3704_v30 = vadd.f32 %v3703_v35, %v3663_v59 }
 0x248   :  { %v3665_v37 = vpop.f32.mrf.mxu0 }
 0x249   :  { %v3706_v38 = vpop.f32.mrf.mxu1 }
 0x282   :  { %v3742_v40 = vpop.f32.mrf.mxu0 }
 0x283   :  { %v3783_v41 = vpop.f32.mrf.mxu1  ;;  %v3743_v42 = vadd.f32 %v3742_v40, %v3702_v58 }
 0x284   :  { %v3744_v45 = vpop.f32.mrf.mxu0 }
 0x285   :  { %v3785_v46 = vpop.f32.mrf.mxu1  ;;  %v3784_v47 = vadd.f32 %v3783_v41, %v3743_v42  ;;  %v3745_v55 = vadd.f32 %v3744_v45, %v3704_v30 }
 0x286   :  { %v3746_v50 = vpop.f32.mrf.mxu0 }
 0x287   :  { %v3787_v32 = vpop.f32.mrf.mxu1  ;;  %v3786_v0 = vadd.f32 %v3785_v46, %v3745_v55 }
 0x288   :  { %v3747_v33 = vpop.f32.mrf.mxu0 }
 0x289   :  { %v3788_v54 = vpop.f32.mrf.mxu1 }
 0x2c2   :  { %v3824_v56 = vpop.f32.mrf.mxu0 }
 0x2c3   :  { %v3865_v61 = vpop.f32.mrf.mxu1  ;;  %v3825_v1 = vadd.f32 %v3824_v56, %v3784_v47 }
 0x2c4   :  { %v3826_v27 = vpop.f32.mrf.mxu0 }
 0x2c5   :  { %v3867_v48 = vpop.f32.mrf.mxu1  ;;  %v3866_v52 = vadd.f32 %v3865_v61, %v3825_v1  ;;  %v3827_v2 = vadd.f32 %v3826_v27, %v3786_v0 }
 0x2c6   :  { %v3828_v62 = vpop.f32.mrf.mxu0 }
 0x2c7   :  { %v3869_v3 = vpop.f32.mrf.mxu1  ;;  %v3868_v6 = vadd.f32 %v3867_v48, %v3827_v2  ;;  %v3874_v44 = vmax.f32 %v3866_v52, 0.0 }
 0x2c8   :  { %v3829_v7 = vpop.f32.mrf.mxu0 }
 0x2c9   :  { %v3870_v39 = vpop.f32.mrf.mxu1  ;;  %v3875_v10 = vmax.f32 %v3868_v6, 0.0 }
 0x2cb   :  { %v3881_v11 = vcombine.low %v3874_v44, %v3875_v10 }
 0x2cd   :  { %v3895_v5 = vrot.slane %v3881_v11, %v5345_v49 }
 0x2cf   :  { %v3896_v51 = vcombine.low %v3888_v4, %v3895_v5 }
 0x2d1   :  { %3898 = vst [vmem:[%s6910_s3] sm:$0xff] %v3896_v51 }

</bundles_post_ra>
